<compile_context>
chip_gen: v6e
topology: v6e:2x2x1
jax: 0.10.0
libtpu: 0.0.40
codegen_flags: <defaults>
</compile_context>

<pallas_src>
import functools

import jax
import jax.numpy as jnp
from jax import lax
from jax.experimental import pallas as pl
from jax.experimental.pallas import tpu as pltpu

K = 3  # every conv in the decoder is 3x3


# --------------------------------------------------------------------------- #
# Weight packing: fold the W-direction conv structure into banded matrices.
# Activations are row-flattened: row vector u[w * Cin + cin] = x[h, w, cin].
# --------------------------------------------------------------------------- #
def _wf_from_torch_layout(w_t):
    # PyTorch ConvTranspose2d weight (Cin, Cout, K, K) -> forward-conv taps
    # w_f[kh, kw, cin, cout] = w_t[cin, cout, K-1-kh, K-1-kw]
    return jnp.transpose(w_t[:, :, ::-1, ::-1], (2, 3, 0, 1))


def _build_tconv_row_weights(w_t, w_in):
    """Banded row operators for ConvTranspose2d(k=3, s=2, p=1, output_padding=1).

    Returns (3, w_in*Cin, 2*w_in*Cout) stacked along kh so that
      y_even_rows = x_row_i   @ B[1]
      y_odd_rows  = x_row_i   @ B[0] + x_row_{i+1} @ B[2]
    """
    wf = _wf_from_torch_layout(w_t)                       # (3, 3, Cin, Cout)
    cin, cout = wf.shape[2], wf.shape[3]
    mats = []
    for kh in range(K):
        B = jnp.zeros((w_in * cin, 2 * w_in * cout), jnp.float32)
        for j in range(w_in):
            # even output column 2j: tap kw=1 from input column j
            B = B.at[j * cin:(j + 1) * cin,
                     (2 * j) * cout:(2 * j + 1) * cout].set(wf[kh, 1])
            # odd output column 2j+1: kw=0 from col j, kw=2 from col j+1
            B = B.at[j * cin:(j + 1) * cin,
                     (2 * j + 1) * cout:(2 * j + 2) * cout].set(wf[kh, 0])
            if j + 1 < w_in:
                B = B.at[(j + 1) * cin:(j + 2) * cin,
                         (2 * j + 1) * cout:(2 * j + 2) * cout].set(wf[kh, 2])
        mats.append(B)
    return jnp.stack(mats, 0)


def _build_conv_row_weights(w_t, w_in):
    """Banded row operators for ConvTranspose2d(k=3, s=1, p=1).  Returns
    (3, w_in*Cin, w_in*Cout); output row i is
      y_i = x_{i-1} @ C[0] + x_i @ C[1] + x_{i+1} @ C[2]
    """
    wf = _wf_from_torch_layout(w_t)
    cin, cout = wf.shape[2], wf.shape[3]
    mats = []
    for kh in range(K):
        C = jnp.zeros((w_in * cin, w_in * cout), jnp.float32)
        for j in range(w_in):                  # output column j
            for kw in range(K):
                jin = j + kw - 1
                if 0 <= jin < w_in:
                    C = C.at[jin * cin:(jin + 1) * cin,
                             j * cout:(j + 1) * cout].set(wf[kh, kw])
        mats.append(C)
    return jnp.stack(mats, 0)


# --------------------------------------------------------------------------- #
# Static "polyphase" row-order bookkeeping (all trace-time Python).
# Stored matrices hold image rows in `perm` order; each stride-2 layer appends
# [even-children ; odd-children].  Neighbor rows (r +/- 1) are re-assembled
# from contiguous runs of the stored matrix plus zero (halo) rows.
# --------------------------------------------------------------------------- #
def _neighbor_runs(perm, h_img, delta):
    pos = {ir: k for k, ir in enumerate(perm)}
    tgt = []
    for img, r in perm:
        rr = r + delta
        tgt.append(pos[(img, rr)] if 0 <= rr < h_img else -1)
    runs, k, m = [], 0, len(tgt)
    while k < m:
        if tgt[k] < 0:
            j = k
            while j < m and tgt[j] < 0:
                j += 1
            runs.append(("zero", 0, j - k))
            k = j
        else:
            j = k + 1
            while j < m and tgt[j] >= 0 and tgt[j] == tgt[j - 1] + 1:
                j += 1
            runs.append(("slice", tgt[k], j - k))
            k = j
    return runs


def _build_plan(nb, h0):
    """Run decompositions for the 3 stride-2 layers and the final conv, plus the
    inverse permutation that restores image-major natural row order."""
    perm = [(img, r) for img in range(nb) for r in range(h0)]
    h = h0
    up_runs = []
    for _ in range(3):
        up_runs.append(_neighbor_runs(perm, h, +1))
        perm = ([(img, 2 * r) for img, r in perm]
                + [(img, 2 * r + 1) for img, r in perm])
        h *= 2
    fin_m = _neighbor_runs(perm, h, -1)
    fin_p = _neighbor_runs(perm, h, +1)
    pos = {ir: k for k, ir in enumerate(perm)}
    inv = [pos[(img, r)] for img in range(nb) for r in range(h)]
    return up_runs, fin_m, fin_p, inv


def _assemble(stored, runs):
    """Gather rows of `stored` (a value) according to a static run plan."""
    width = stored.shape[1]
    parts = []
    for kind, start, size in runs:
        if kind == "zero":
            parts.append(jnp.zeros((size, width), jnp.float32))
        else:
            parts.append(stored[start:start + size, :])
    return parts[0] if len(parts) == 1 else jnp.concatenate(parts, axis=0)


# --------------------------------------------------------------------------- #
# Kernel
# --------------------------------------------------------------------------- #
def _make_decoder_kernel(nb, up_runs, fin_m, fin_p):
    def kernel(x_ref, wa0, wb0, b0, wa1, wb1, b1, wa2, wb2, b2, wf, bf, o_ref):
        # Layer-0 LHS: all nb images of this grid step stacked along M.
        if nb == 1:
            x = x_ref[0]
        else:
            x = jnp.concatenate([x_ref[i] for i in range(nb)], axis=0)

        for layer, (wa, wb, b) in enumerate(
                ((wa0, wb0, b0), (wa1, wb1, b1), (wa2, wb2, b2))):
            x_ip = _assemble(x, up_runs[layer])          # rows i+1 (halo = 0)
            n_out = wb.shape[1]
            bias = b[...]
            # one matmul gives [even rows | odd-row partial]
            eo = jnp.dot(x, wa[...], preferred_element_type=jnp.float32)
            even = jnp.maximum(eo[:, :n_out] + bias, 0.0)
            odd = jnp.maximum(
                eo[:, n_out:]
                + jnp.dot(x_ip, wb[...], preferred_element_type=jnp.float32)
                + bias, 0.0)
            x = jnp.concatenate([even, odd], axis=0)     # polyphase row order

        # Final stride-1 conv: single matmul, the three row taps stacked along K.
        lhs = jnp.concatenate(
            [_assemble(x, fin_m), x, _assemble(x, fin_p)], axis=1)
        o_ref[...] = (jnp.dot(lhs, wf[...], preferred_element_type=jnp.float32)
                      + bf[...])
    return kernel


# --------------------------------------------------------------------------- #
# Wrapper
# --------------------------------------------------------------------------- #
@functools.partial(jax.jit, static_argnames=("grid_steps",))
def decoder_forward(x_nchw, params, grid_steps=2):
    """Pallas implementation of Decoder.forward.  x_nchw: (N, hidden, H, W).

    grid_steps=2 keeps one grid step per TensorCore on v7x; use grid_steps=1 on
    single-TC chips (v5e/v6e) to fold the whole batch into the matmul M dim.
    """
    n, c0, h0, w_sp = x_nchw.shape
    x_rows = jnp.transpose(x_nchw, (0, 2, 3, 1)).reshape(n, h0, w_sp * c0)

    wa0, wb0, b0 = params["wa0"], params["wb0"], params["b0"]
    wa1, wb1, b1 = params["wa1"], params["wb1"], params["b1"]
    wa2, wb2, b2 = params["wa2"], params["wb2"], params["b2"]
    wf, bf = params["wf"], params["bf"]

    g = grid_steps if (grid_steps > 0 and n % grid_steps == 0) else 1
    nb = n // g

    h_out, w_out = 8 * h0, 8 * w_sp
    k_out = bf.shape[1]                      # w_out * padded-cout (lane dense)
    c_pad = k_out // w_out
    c_out = params["bt3"].shape[0]
    m_out = nb * h_out

    up_runs, fin_m, fin_p, inv = _build_plan(nb, h0)
    kernel = _make_decoder_kernel(nb, up_runs, fin_m, fin_p)

    def const(b):  # weights / biases stay VMEM-resident across grid steps
        return (0, 0)

    out_rows = pl.pallas_call(
        kernel,
        out_shape=jax.ShapeDtypeStruct((g * m_out, k_out), jnp.float32),
        grid=(g,),
        in_specs=[
            pl.BlockSpec((nb, h0, w_sp * c0), lambda b: (b, 0, 0)),
            pl.BlockSpec(wa0.shape, const), pl.BlockSpec(wb0.shape, const),
            pl.BlockSpec(b0.shape, const),
            pl.BlockSpec(wa1.shape, const), pl.BlockSpec(wb1.shape, const),
            pl.BlockSpec(b1.shape, const),
            pl.BlockSpec(wa2.shape, const), pl.BlockSpec(wb2.shape, const),
            pl.BlockSpec(b2.shape, const),
            pl.BlockSpec(wf.shape, const), pl.BlockSpec(bf.shape, const),
        ],
        out_specs=pl.BlockSpec((m_out, k_out), lambda b: (b, 0)),
        compiler_params=pltpu.CompilerParams(
            dimension_semantics=("parallel",),
            vmem_limit_bytes=32 * 1024 * 1024,
        ),
    )(x_rows, wa0, wb0, b0, wa1, wb1, b1, wa2, wb2, b2, wf, bf)

    # Undo the polyphase row order (tiny wrapper-side gather), drop channel pad.
    out = out_rows.reshape(g, m_out, k_out)
    out = jnp.take(out, jnp.asarray(inv, dtype=jnp.int32), axis=1)
    out = out.reshape(n, h_out, w_out, c_pad)[..., :c_out]
    return jnp.transpose(out, (0, 3, 1, 2))            # NHWC -> NCHW


# --------------------------------------------------------------------------- #
# Params (synthetic init in the PyTorch ConvTranspose2d layout, then packed)
# --------------------------------------------------------------------------- #
def init_params(key, hidden_channels, out_channels, in_spatial):
    chans = [(hidden_channels, 64), (64, 32), (32, 16), (16, out_channels)]
    params = {}
    w_sp = in_spatial
    for i, (cin, cout) in enumerate(chans):
        key, k1, k2 = jax.random.split(key, 3)
        bound = 1.0 / float(cin * K * K) ** 0.5
        w_t = jax.random.uniform(k1, (cin, cout, K, K), jnp.float32, -bound, bound)
        b = jax.random.uniform(k2, (cout,), jnp.float32, -bound, bound)
        params[f"wt{i}"] = w_t          # raw weights, for the pure-JAX reference
        params[f"bt{i}"] = b
        if i < 3:
            B = _build_tconv_row_weights(w_t, w_sp)   # (3, w*cin, 2*w*cout)
            # [B1 | B0]: one matmul -> [even rows | odd-row partial]
            params[f"wa{i}"] = jnp.concatenate([B[1], B[0]], axis=1)
            params[f"wb{i}"] = B[2]
            params[f"b{i}"] = jnp.tile(b, (2 * w_sp,)).reshape(1, 2 * w_sp * cout)
            w_sp = 2 * w_sp
        else:
            # pad Cout so the output row width is a multiple of 128 lanes
            c_pad = cout
            while (w_sp * c_pad) % 128 != 0:
                c_pad += 1
            w_t_p = jnp.pad(w_t, ((0, 0), (0, c_pad - cout), (0, 0), (0, 0)))
            b_p = jnp.pad(b, (0, c_pad - cout))
            C = _build_conv_row_weights(w_t_p, w_sp)  # (3, w*cin, w*c_pad)
            # stack the three row taps along the contraction dim (1 matmul)
            params["wf"] = jnp.concatenate([C[0], C[1], C[2]], axis=0)
            params["bf"] = jnp.tile(b_p, (w_sp,)).reshape(1, w_sp * c_pad)

    # TODO(synk): tile the banded row operators along W once they outgrow VMEM
    # (O(spatial^2) growth; first hits on v7x's 64 MiB physical VMEM).
    packed_bytes = sum(params[k].size * params[k].dtype.itemsize
                       for k in params if k.startswith(("wa", "wb", "wf")))
    assert packed_bytes < 24 * 1024 * 1024, packed_bytes
    return params


# --------------------------------------------------------------------------- #
# Pure-JAX (XLA conv) reference of the PyTorch forward, NCHW throughout
# --------------------------------------------------------------------------- #
def decoder_reference(x_nchw, params):
    x = x_nchw
    strides = [2, 2, 2, 1]
    out_pads = [1, 1, 1, 0]
    for i in range(4):
        w_t = params[f"wt{i}"]                    # (Cin, Cout, K, K)
        b = params[f"bt{i}"]
        s, op = strides[i], out_pads[i]
        w_flip = w_t[:, :, ::-1, ::-1]            # flipped kernel, IOHW
        pad = (K - 1 - 1, K - 1 - 1 + op)         # padding=1 in the module
        y = lax.conv_general_dilated(
            x, w_flip, window_strides=(1, 1),
            padding=(pad, pad), lhs_dilation=(s, s),
            dimension_numbers=("NCHW", "IOHW", "NCHW"),
            precision=lax.Precision.HIGHEST)
        y = y + b[None, :, None, None]
        if i < 3:
            y = jnp.maximum(y, 0.0)
        x = y
    return x


# --------------------------------------------------------------------------- #
if __name__ == "__main__":
    batch, hidden_channels, out_channels, spatial = 4, 32, 3, 4

    key = jax.random.PRNGKey(0)
    key, kx = jax.random.split(key)
    x = jax.random.normal(kx, (batch, hidden_channels, spatial, spatial),
                          jnp.float32)
    params = init_params(key, hidden_channels, out_channels, spatial)

    out = jax.block_until_ready(decoder_forward(x, params))
    assert out.shape == (batch, out_channels, spatial * 8, spatial * 8), out.shape

    ref = jax.block_until_ready(decoder_reference(x, params))
    # Kernel matmuls run at the MXU's default precision; the reference is full
    # f32.  Structural bugs produce errors orders of magnitude above this tol.
    err = float(jnp.max(jnp.abs(out - ref)))
    assert jnp.allclose(out, ref, atol=2e-2, rtol=2e-2), err

    print("KERNEL_OK")
</pallas_src>

<mosaic_0001>
module attributes {stable_mosaic.version = 11 : i64} {
  func.func @kernel(%arg0: i32, %arg1: memref<2x4x128xf32, #tpu.memory_space<vmem>>, %arg2: memref<128x1024xf32, #tpu.memory_space<vmem>>, %arg3: memref<128x512xf32, #tpu.memory_space<vmem>>, %arg4: memref<1x512xf32, #tpu.memory_space<vmem>>, %arg5: memref<512x1024xf32, #tpu.memory_space<vmem>>, %arg6: memref<512x512xf32, #tpu.memory_space<vmem>>, %arg7: memref<1x512xf32, #tpu.memory_space<vmem>>, %arg8: memref<512x1024xf32, #tpu.memory_space<vmem>>, %arg9: memref<512x512xf32, #tpu.memory_space<vmem>>, %arg10: memref<1x512xf32, #tpu.memory_space<vmem>>, %arg11: memref<1536x128xf32, #tpu.memory_space<vmem>>, %arg12: memref<1x128xf32, #tpu.memory_space<vmem>>, %arg13: memref<64x128xf32, #tpu.memory_space<vmem>>) attributes {dimension_semantics = [#tpu.dimension_semantics<parallel>], iteration_bounds = array<i64: 2>, scalar_prefetch = 0 : i64, scratch_operands = 0 : i64, tpu.core_type = #tpu.core_type<tc>, window_params = [{transform_indices = @transform_0, window_bounds = array<i64: 2, 4, 128>}, {pipeline_mode = #tpu.pipeline_mode<synchronous>, transform_indices = @transform_1, window_bounds = array<i64: 128, 1024>}, {pipeline_mode = #tpu.pipeline_mode<synchronous>, transform_indices = @transform_2, window_bounds = array<i64: 128, 512>}, {pipeline_mode = #tpu.pipeline_mode<synchronous>, transform_indices = @transform_3, window_bounds = array<i64: 1, 512>}, {pipeline_mode = #tpu.pipeline_mode<synchronous>, transform_indices = @transform_4, window_bounds = array<i64: 512, 1024>}, {pipeline_mode = #tpu.pipeline_mode<synchronous>, transform_indices = @transform_5, window_bounds = array<i64: 512, 512>}, {pipeline_mode = #tpu.pipeline_mode<synchronous>, transform_indices = @transform_6, window_bounds = array<i64: 1, 512>}, {pipeline_mode = #tpu.pipeline_mode<synchronous>, transform_indices = @transform_7, window_bounds = array<i64: 512, 1024>}, {pipeline_mode = #tpu.pipeline_mode<synchronous>, transform_indices = @transform_8, window_bounds = array<i64: 512, 512>}, {pipeline_mode = #tpu.pipeline_mode<synchronous>, transform_indices = @transform_9, window_bounds = array<i64: 1, 512>}, {pipeline_mode = #tpu.pipeline_mode<synchronous>, transform_indices = @transform_10, window_bounds = array<i64: 1536, 128>}, {pipeline_mode = #tpu.pipeline_mode<synchronous>, transform_indices = @transform_11, window_bounds = array<i64: 1, 128>}, {transform_indices = @transform_12, window_bounds = array<i64: 64, 128>}]} {
    %c0 = arith.constant 0 : index
    %c0_0 = arith.constant 0 : index
    %c0_1 = arith.constant 0 : index
    %0 = vector.load %arg1[%c0, %c0_0, %c0_1] : memref<2x4x128xf32, #tpu.memory_space<vmem>>, vector<1x4x128xf32>
    %1 = vector.shape_cast %0 : vector<1x4x128xf32> to vector<4x128xf32>
    %c1 = arith.constant 1 : index
    %c0_2 = arith.constant 0 : index
    %c0_3 = arith.constant 0 : index
    %2 = vector.load %arg1[%c1, %c0_2, %c0_3] : memref<2x4x128xf32, #tpu.memory_space<vmem>>, vector<1x4x128xf32>
    %3 = vector.shape_cast %2 : vector<1x4x128xf32> to vector<4x128xf32>
    %4 = tpu.concatenate %1, %3 in 0 : vector<4x128xf32>, vector<4x128xf32> -> vector<8x128xf32>
    %5 = vector.extract_strided_slice %4 {offsets = [1, 0], sizes = [3, 128], strides = [1, 1]} : vector<8x128xf32> to vector<3x128xf32>
    %cst = arith.constant 0.000000e+00 : f32
    %6 = vector.broadcast %cst : f32 to vector<1x128xf32>
    %7 = vector.extract_strided_slice %4 {offsets = [5, 0], sizes = [3, 128], strides = [1, 1]} : vector<8x128xf32> to vector<3x128xf32>
    %cst_4 = arith.constant 0.000000e+00 : f32
    %8 = vector.broadcast %cst_4 : f32 to vector<1x128xf32>
    %9 = tpu.concatenate %5, %6, %7, %8 in 0 : vector<3x128xf32>, vector<1x128xf32>, vector<3x128xf32>, vector<1x128xf32> -> vector<8x128xf32>
    %c0_5 = arith.constant 0 : index
    %c0_6 = arith.constant 0 : index
    %10 = vector.load %arg4[%c0_5, %c0_6] : memref<1x512xf32, #tpu.memory_space<vmem>>, vector<1x512xf32>
    %c0_7 = arith.constant 0 : index
    %c0_8 = arith.constant 0 : index
    %11 = vector.load %arg2[%c0_7, %c0_8] : memref<128x1024xf32, #tpu.memory_space<vmem>>, vector<128x1024xf32>
    %cst_9 = arith.constant dense<0.000000e+00> : vector<8x1024xf32>
    %12 = tpu.matmul %4, %11, %cst_9 {dimension_numbers = #tpu.dot_dimension_numbers<[1], [0], [0], [1], [0, 0, 1, 1], [], []>} : vector<8x128xf32>, vector<128x1024xf32>, vector<8x1024xf32> -> vector<8x1024xf32>
    %13 = vector.extract_strided_slice %12 {offsets = [0, 0], sizes = [8, 512], strides = [1, 1]} : vector<8x1024xf32> to vector<8x512xf32>
    %14 = vector.broadcast %10 : vector<1x512xf32> to vector<8x512xf32>
    %15 = arith.addf %13, %14 : vector<8x512xf32>
    %cst_10 = arith.constant 0.000000e+00 : f32
    %16 = vector.broadcast %cst_10 : f32 to vector<8x512xf32>
    %17 = arith.maximumf %15, %16 : vector<8x512xf32>
    %18 = vector.extract_strided_slice %12 {offsets = [0, 512], sizes = [8, 512], strides = [1, 1]} : vector<8x1024xf32> to vector<8x512xf32>
    %c0_11 = arith.constant 0 : index
    %c0_12 = arith.constant 0 : index
    %19 = vector.load %arg3[%c0_11, %c0_12] : memref<128x512xf32, #tpu.memory_space<vmem>>, vector<128x512xf32>
    %cst_13 = arith.constant dense<0.000000e+00> : vector<8x512xf32>
    %20 = tpu.matmul %9, %19, %cst_13 {dimension_numbers = #tpu.dot_dimension_numbers<[1], [0], [0], [1], [0, 0, 1, 1], [], []>} : vector<8x128xf32>, vector<128x512xf32>, vector<8x512xf32> -> vector<8x512xf32>
    %21 = arith.addf %18, %20 : vector<8x512xf32>
    %22 = vector.broadcast %10 : vector<1x512xf32> to vector<8x512xf32>
    %23 = arith.addf %21, %22 : vector<8x512xf32>
    %cst_14 = arith.constant 0.000000e+00 : f32
    %24 = vector.broadcast %cst_14 : f32 to vector<8x512xf32>
    %25 = arith.maximumf %23, %24 : vector<8x512xf32>
    %26 = tpu.concatenate %17, %25 in 0 : vector<8x512xf32>, vector<8x512xf32> -> vector<16x512xf32>
    %27 = vector.extract_strided_slice %26 {offsets = [8, 0], sizes = [8, 512], strides = [1, 1]} : vector<16x512xf32> to vector<8x512xf32>
    %28 = vector.extract_strided_slice %26 {offsets = [1, 0], sizes = [3, 512], strides = [1, 1]} : vector<16x512xf32> to vector<3x512xf32>
    %cst_15 = arith.constant 0.000000e+00 : f32
    %29 = vector.broadcast %cst_15 : f32 to vector<1x512xf32>
    %30 = vector.extract_strided_slice %26 {offsets = [5, 0], sizes = [3, 512], strides = [1, 1]} : vector<16x512xf32> to vector<3x512xf32>
    %cst_16 = arith.constant 0.000000e+00 : f32
    %31 = vector.broadcast %cst_16 : f32 to vector<1x512xf32>
    %32 = tpu.concatenate %27, %28, %29, %30, %31 in 0 : vector<8x512xf32>, vector<3x512xf32>, vector<1x512xf32>, vector<3x512xf32>, vector<1x512xf32> -> vector<16x512xf32>
    %c0_17 = arith.constant 0 : index
    %c0_18 = arith.constant 0 : index
    %33 = vector.load %arg7[%c0_17, %c0_18] : memref<1x512xf32, #tpu.memory_space<vmem>>, vector<1x512xf32>
    %c0_19 = arith.constant 0 : index
    %c0_20 = arith.constant 0 : index
    %34 = vector.load %arg5[%c0_19, %c0_20] : memref<512x1024xf32, #tpu.memory_space<vmem>>, vector<512x1024xf32>
    %cst_21 = arith.constant dense<0.000000e+00> : vector<16x1024xf32>
    %35 = tpu.matmul %26, %34, %cst_21 {dimension_numbers = #tpu.dot_dimension_numbers<[1], [0], [0], [1], [0, 0, 1, 1], [], []>} : vector<16x512xf32>, vector<512x1024xf32>, vector<16x1024xf32> -> vector<16x1024xf32>
    %36 = vector.extract_strided_slice %35 {offsets = [0, 0], sizes = [16, 512], strides = [1, 1]} : vector<16x1024xf32> to vector<16x512xf32>
    %37 = vector.broadcast %33 : vector<1x512xf32> to vector<16x512xf32>
    %38 = arith.addf %36, %37 : vector<16x512xf32>
    %cst_22 = arith.constant 0.000000e+00 : f32
    %39 = vector.broadcast %cst_22 : f32 to vector<16x512xf32>
    %40 = arith.maximumf %38, %39 : vector<16x512xf32>
    %41 = vector.extract_strided_slice %35 {offsets = [0, 512], sizes = [16, 512], strides = [1, 1]} : vector<16x1024xf32> to vector<16x512xf32>
    %c0_23 = arith.constant 0 : index
    %c0_24 = arith.constant 0 : index
    %42 = vector.load %arg6[%c0_23, %c0_24] : memref<512x512xf32, #tpu.memory_space<vmem>>, vector<512x512xf32>
    %cst_25 = arith.constant dense<0.000000e+00> : vector<16x512xf32>
    %43 = tpu.matmul %32, %42, %cst_25 {dimension_numbers = #tpu.dot_dimension_numbers<[1], [0], [0], [1], [0, 0, 1, 1], [], []>} : vector<16x512xf32>, vector<512x512xf32>, vector<16x512xf32> -> vector<16x512xf32>
    %44 = arith.addf %41, %43 : vector<16x512xf32>
    %45 = vector.broadcast %33 : vector<1x512xf32> to vector<16x512xf32>
    %46 = arith.addf %44, %45 : vector<16x512xf32>
    %cst_26 = arith.constant 0.000000e+00 : f32
    %47 = vector.broadcast %cst_26 : f32 to vector<16x512xf32>
    %48 = arith.maximumf %46, %47 : vector<16x512xf32>
    %49 = tpu.concatenate %40, %48 in 0 : vector<16x512xf32>, vector<16x512xf32> -> vector<32x512xf32>
    %50 = vector.extract_strided_slice %49 {offsets = [16, 0], sizes = [16, 512], strides = [1, 1]} : vector<32x512xf32> to vector<16x512xf32>
    %51 = vector.extract_strided_slice %49 {offsets = [8, 0], sizes = [8, 512], strides = [1, 1]} : vector<32x512xf32> to vector<8x512xf32>
    %52 = vector.extract_strided_slice %49 {offsets = [1, 0], sizes = [3, 512], strides = [1, 1]} : vector<32x512xf32> to vector<3x512xf32>
    %cst_27 = arith.constant 0.000000e+00 : f32
    %53 = vector.broadcast %cst_27 : f32 to vector<1x512xf32>
    %54 = vector.extract_strided_slice %49 {offsets = [5, 0], sizes = [3, 512], strides = [1, 1]} : vector<32x512xf32> to vector<3x512xf32>
    %cst_28 = arith.constant 0.000000e+00 : f32
    %55 = vector.broadcast %cst_28 : f32 to vector<1x512xf32>
    %56 = tpu.concatenate %50, %51, %52, %53, %54, %55 in 0 : vector<16x512xf32>, vector<8x512xf32>, vector<3x512xf32>, vector<1x512xf32>, vector<3x512xf32>, vector<1x512xf32> -> vector<32x512xf32>
    %c0_29 = arith.constant 0 : index
    %c0_30 = arith.constant 0 : index
    %57 = vector.load %arg10[%c0_29, %c0_30] : memref<1x512xf32, #tpu.memory_space<vmem>>, vector<1x512xf32>
    %c0_31 = arith.constant 0 : index
    %c0_32 = arith.constant 0 : index
    %58 = vector.load %arg8[%c0_31, %c0_32] : memref<512x1024xf32, #tpu.memory_space<vmem>>, vector<512x1024xf32>
    %cst_33 = arith.constant dense<0.000000e+00> : vector<32x1024xf32>
    %59 = tpu.matmul %49, %58, %cst_33 {dimension_numbers = #tpu.dot_dimension_numbers<[1], [0], [0], [1], [0, 0, 1, 1], [], []>} : vector<32x512xf32>, vector<512x1024xf32>, vector<32x1024xf32> -> vector<32x1024xf32>
    %60 = vector.extract_strided_slice %59 {offsets = [0, 0], sizes = [32, 512], strides = [1, 1]} : vector<32x1024xf32> to vector<32x512xf32>
    %61 = vector.broadcast %57 : vector<1x512xf32> to vector<32x512xf32>
    %62 = arith.addf %60, %61 : vector<32x512xf32>
    %cst_34 = arith.constant 0.000000e+00 : f32
    %63 = vector.broadcast %cst_34 : f32 to vector<32x512xf32>
    %64 = arith.maximumf %62, %63 : vector<32x512xf32>
    %65 = vector.extract_strided_slice %59 {offsets = [0, 512], sizes = [32, 512], strides = [1, 1]} : vector<32x1024xf32> to vector<32x512xf32>
    %c0_35 = arith.constant 0 : index
    %c0_36 = arith.constant 0 : index
    %66 = vector.load %arg9[%c0_35, %c0_36] : memref<512x512xf32, #tpu.memory_space<vmem>>, vector<512x512xf32>
    %cst_37 = arith.constant dense<0.000000e+00> : vector<32x512xf32>
    %67 = tpu.matmul %56, %66, %cst_37 {dimension_numbers = #tpu.dot_dimension_numbers<[1], [0], [0], [1], [0, 0, 1, 1], [], []>} : vector<32x512xf32>, vector<512x512xf32>, vector<32x512xf32> -> vector<32x512xf32>
    %68 = arith.addf %65, %67 : vector<32x512xf32>
    %69 = vector.broadcast %57 : vector<1x512xf32> to vector<32x512xf32>
    %70 = arith.addf %68, %69 : vector<32x512xf32>
    %cst_38 = arith.constant 0.000000e+00 : f32
    %71 = vector.broadcast %cst_38 : f32 to vector<32x512xf32>
    %72 = arith.maximumf %70, %71 : vector<32x512xf32>
    %73 = tpu.concatenate %64, %72 in 0 : vector<32x512xf32>, vector<32x512xf32> -> vector<64x512xf32>
    %cst_39 = arith.constant 0.000000e+00 : f32
    %74 = vector.broadcast %cst_39 : f32 to vector<1x512xf32>
    %75 = vector.extract_strided_slice %73 {offsets = [56, 0], sizes = [3, 512], strides = [1, 1]} : vector<64x512xf32> to vector<3x512xf32>
    %cst_40 = arith.constant 0.000000e+00 : f32
    %76 = vector.broadcast %cst_40 : f32 to vector<1x512xf32>
    %77 = vector.extract_strided_slice %73 {offsets = [60, 0], sizes = [3, 512], strides = [1, 1]} : vector<64x512xf32> to vector<3x512xf32>
    %78 = vector.extract_strided_slice %73 {offsets = [48, 0], sizes = [8, 512], strides = [1, 1]} : vector<64x512xf32> to vector<8x512xf32>
    %79 = vector.extract_strided_slice %73 {offsets = [32, 0], sizes = [16, 512], strides = [1, 1]} : vector<64x512xf32> to vector<16x512xf32>
    %80 = vector.extract_strided_slice %73 {offsets = [0, 0], sizes = [32, 512], strides = [1, 1]} : vector<64x512xf32> to vector<32x512xf32>
    %81 = tpu.concatenate %74, %75, %76, %77, %78, %79, %80 in 0 : vector<1x512xf32>, vector<3x512xf32>, vector<1x512xf32>, vector<3x512xf32>, vector<8x512xf32>, vector<16x512xf32>, vector<32x512xf32> -> vector<64x512xf32>
    %82 = vector.extract_strided_slice %73 {offsets = [32, 0], sizes = [32, 512], strides = [1, 1]} : vector<64x512xf32> to vector<32x512xf32>
    %83 = vector.extract_strided_slice %73 {offsets = [16, 0], sizes = [16, 512], strides = [1, 1]} : vector<64x512xf32> to vector<16x512xf32>
    %84 = vector.extract_strided_slice %73 {offsets = [8, 0], sizes = [8, 512], strides = [1, 1]} : vector<64x512xf32> to vector<8x512xf32>
    %85 = vector.extract_strided_slice %73 {offsets = [1, 0], sizes = [3, 512], strides = [1, 1]} : vector<64x512xf32> to vector<3x512xf32>
    %cst_41 = arith.constant 0.000000e+00 : f32
    %86 = vector.broadcast %cst_41 : f32 to vector<1x512xf32>
    %87 = vector.extract_strided_slice %73 {offsets = [5, 0], sizes = [3, 512], strides = [1, 1]} : vector<64x512xf32> to vector<3x512xf32>
    %cst_42 = arith.constant 0.000000e+00 : f32
    %88 = vector.broadcast %cst_42 : f32 to vector<1x512xf32>
    %89 = tpu.concatenate %82, %83, %84, %85, %86, %87, %88 in 0 : vector<32x512xf32>, vector<16x512xf32>, vector<8x512xf32>, vector<3x512xf32>, vector<1x512xf32>, vector<3x512xf32>, vector<1x512xf32> -> vector<64x512xf32>
    %90 = tpu.concatenate %81, %73, %89 in 1 : vector<64x512xf32>, vector<64x512xf32>, vector<64x512xf32> -> vector<64x1536xf32>
    %c0_43 = arith.constant 0 : index
    %c0_44 = arith.constant 0 : index
    %91 = vector.load %arg11[%c0_43, %c0_44] : memref<1536x128xf32, #tpu.memory_space<vmem>>, vector<1536x128xf32>
    %cst_45 = arith.constant dense<0.000000e+00> : vector<64x128xf32>
    %92 = tpu.matmul %90, %91, %cst_45 {dimension_numbers = #tpu.dot_dimension_numbers<[1], [0], [0], [1], [0, 0, 1, 1], [], []>} : vector<64x1536xf32>, vector<1536x128xf32>, vector<64x128xf32> -> vector<64x128xf32>
    %c0_46 = arith.constant 0 : index
    %c0_47 = arith.constant 0 : index
    %93 = vector.load %arg12[%c0_46, %c0_47] : memref<1x128xf32, #tpu.memory_space<vmem>>, vector<1x128xf32>
    %94 = vector.broadcast %93 : vector<1x128xf32> to vector<64x128xf32>
    %95 = arith.addf %92, %94 : vector<64x128xf32>
    %c0_48 = arith.constant 0 : index
    %c0_49 = arith.constant 0 : index
    %96 = vector.load %arg13[%c0_48, %c0_49] : memref<64x128xf32, #tpu.memory_space<vmem>>, vector<64x128xf32>
    tpu.vector_store %arg13[%c0_48, %c0_49], %95 {strides = array<i32>} : memref<64x128xf32, #tpu.memory_space<vmem>>, vector<64x128xf32>,
    return
  }
  func.func @transform_0(%arg0: i32) -> (i32, i32, i32) {
    %c0_i32 = arith.constant 0 : i32
    %c0_i32_0 = arith.constant 0 : i32
    %c0_i32_1 = arith.constant 0 : i32
    return %arg0, %c0_i32, %c0_i32_0 : i32, i32, i32
  }
  func.func @transform_1(%arg0: i32) -> (i32, i32) {
    %c0_i32 = arith.constant 0 : i32
    %c0_i32_0 = arith.constant 0 : i32
    %c0_i32_1 = arith.constant 0 : i32
    return %c0_i32, %c0_i32_0 : i32, i32
  }
  func.func @transform_2(%arg0: i32) -> (i32, i32) {
    %c0_i32 = arith.constant 0 : i32
    %c0_i32_0 = arith.constant 0 : i32
    %c0_i32_1 = arith.constant 0 : i32
    return %c0_i32, %c0_i32_0 : i32, i32
  }
  func.func @transform_3(%arg0: i32) -> (i32, i32) {
    %c0_i32 = arith.constant 0 : i32
    %c0_i32_0 = arith.constant 0 : i32
    %c0_i32_1 = arith.constant 0 : i32
    return %c0_i32, %c0_i32_0 : i32, i32
  }
  func.func @transform_4(%arg0: i32) -> (i32, i32) {
    %c0_i32 = arith.constant 0 : i32
    %c0_i32_0 = arith.constant 0 : i32
    %c0_i32_1 = arith.constant 0 : i32
    return %c0_i32, %c0_i32_0 : i32, i32
  }
  func.func @transform_5(%arg0: i32) -> (i32, i32) {
    %c0_i32 = arith.constant 0 : i32
    %c0_i32_0 = arith.constant 0 : i32
    %c0_i32_1 = arith.constant 0 : i32
    return %c0_i32, %c0_i32_0 : i32, i32
  }
  func.func @transform_6(%arg0: i32) -> (i32, i32) {
    %c0_i32 = arith.constant 0 : i32
    %c0_i32_0 = arith.constant 0 : i32
    %c0_i32_1 = arith.constant 0 : i32
    return %c0_i32, %c0_i32_0 : i32, i32
  }
  func.func @transform_7(%arg0: i32) -> (i32, i32) {
    %c0_i32 = arith.constant 0 : i32
    %c0_i32_0 = arith.constant 0 : i32
    %c0_i32_1 = arith.constant 0 : i32
    return %c0_i32, %c0_i32_0 : i32, i32
  }
  func.func @transform_8(%arg0: i32) -> (i32, i32) {
    %c0_i32 = arith.constant 0 : i32
    %c0_i32_0 = arith.constant 0 : i32
    %c0_i32_1 = arith.constant 0 : i32
    return %c0_i32, %c0_i32_0 : i32, i32
  }
  func.func @transform_9(%arg0: i32) -> (i32, i32) {
    %c0_i32 = arith.constant 0 : i32
    %c0_i32_0 = arith.constant 0 : i32
    %c0_i32_1 = arith.constant 0 : i32
    return %c0_i32, %c0_i32_0 : i32, i32
  }
  func.func @transform_10(%arg0: i32) -> (i32, i32) {
    %c0_i32 = arith.constant 0 : i32
    %c0_i32_0 = arith.constant 0 : i32
    %c0_i32_1 = arith.constant 0 : i32
    return %c0_i32, %c0_i32_0 : i32, i32
  }
  func.func @transform_11(%arg0: i32) -> (i32, i32) {
    %c0_i32 = arith.constant 0 : i32
    %c0_i32_0 = arith.constant 0 : i32
    %c0_i32_1 = arith.constant 0 : i32
    return %c0_i32, %c0_i32_0 : i32, i32
  }
  func.func @transform_12(%arg0: i32) -> (i32, i32) {
    %c0_i32 = arith.constant 0 : i32
    %c0_i32_0 = arith.constant 0 : i32
    return %arg0, %c0_i32 : i32, i32
  }
}

</mosaic_0001>

<bundles_post_ra>
// kernel: decoder_forward.1
= control target key start
LH: loop header
LB: loop body
LE: loop exit
PB: predicated region body
PF: predicated region fallthrough
CT: control target
= control target key end

     0   :  { %17 = vsyncpa [#allocation3], 0  ;;  %s8140_s0 = inlined_call_operand.vmem [shape: f32[4,4,128], index: 0, kind: input, shape index: {}]   ;;  %s8141_s1 = inlined_call_operand.hbm [shape: f32[128,1024], index: 1, kind: input, shape index: {}]   ;;  %s8142_s2 = inlined_call_operand.hbm [shape: f32[128,512], index: 2, kind: input, shape index: {}]   ;;  %s8143_s3 = inlined_call_operand.hbm [shape: f32[1,512], index: 3, kind: input, shape index: {}]   ;;  %s8144_s4 = inlined_call_operand.hbm [shape: f32[512,1024], index: 4, kind: input, shape index: {}]   ;;  %s8145_s5 = inlined_call_operand.hbm [shape: f32[512,512], index: 5, kind: input, shape index: {}]   ;;  %s8146_s6 = inlined_call_operand.hbm [shape: f32[1,512], index: 6, kind: input, shape index: {}]   ;;  %s8147_s7 = inlined_call_operand.hbm [shape: f32[512,1024], index: 7, kind: input, shape index: {}]   ;;  %s8148_s8 = inlined_call_operand.hbm [shape: f32[512,512], index: 8, kind: input, shape index: {}]   ;;  %s8149_s9 = inlined_call_operand.hbm [shape: f32[1,512], index: 9, kind: input, shape index: {}]   ;;  %s8150_s10 = inlined_call_operand.hbm [shape: f32[1536,128], index: 10, kind: input, shape index: {}]   ;;  %s8151_s11 = inlined_call_operand.hbm [shape: f32[1,128], index: 11, kind: input, shape index: {}]   ;;  %s8152_s12 = inlined_call_operand.vmem [shape: f32[128,128], index: 12, kind: output, shape index: {}]  }
   0x1   :  { %18 = vsyncpa [#allocation5], 0 }
   0x2   :  { %19 = vsyncpa [#allocation8], 0 }
   0x3   :  { %20 = vsyncpa [#allocation11], 0 }
   0x4   :  { %21 = vsyncpa [#allocation14], 0 }
   0x5   :  { %22 = vsyncpa [#allocation17], 0  ;;  %s6955_s21 = smov 0  }
   0x6 LB: > { %s6872_s22 = smov [#allocation4]   ;;  %s6961_s24 = sadd.s32 4294967295, %s6870_s21   ;;  %s6870_s21 = sphi %s6955_s21, %s28_s21  }
   0x7   : > { %s341_s23 = sshll.u32 %s6872_s22, 4  ;;  %p6037_p0 = scmp.ge.s32.totalorder %s6870_s21, 1  ;;  %s342_s23 = int_to_ptr.vmem [resolvable:$true] %s341_s23 }
   0x8   : > { %p316_p1 = scmp.lt.s32.totalorder %s6870_s21, 3  ;;  %p8155_p2 = scmp.eq.s32.totalorder %s6961_s24, 0 }
   0x9   : > { %s6873_s27 = smov [#allocation7]   ;;  %s6874_s29 = smov [#allocation10]  }
   0xa   : > { %p6966_p3 = pnand %p6037_p0, %p316_p1  ;;  %s365_s28 = sshll.u32 %s6873_s27, 4  ;;  %s6978_s28 = int_to_ptr.vmem [resolvable:$true] %s365_s28 }
   0xb   : > { %s392_s30 = sshll.u32 %s6874_s29, 4  ;;  %s6565_s14 = scalar_lea.vmem %s342_s23, 8192  ;;  %s6980_s30 = int_to_ptr.vmem [resolvable:$true] %s392_s30 }
   0xc   : > { %s8161_s25 = scalar_select %p6966_p3, 1, 0 }
   0xd   : > { %p6472_p4 = pneg %p6966_p3  ;;  %p6566_p7 = scmp.ne.s32.totalorder %s342_s23, %s6565_s14 }
   0xe   : > { %p6573_p10 = scmp.lt.s32.totalorder %s342_s23, %s342_s23  ;;  %p6574_p11 = scmp.lt.s32.totalorder %s6565_s14, %s6565_s14 }
   0xf   : > { %p6974_p5 = pnand %p8155_p2, %p6472_p4 }
  0x10   : > { %p6575_p12 = por %p6574_p11, %p6573_p10 }
  0x11   : > { %p6984_p6 = pneg %p6974_p5 }
  0x13   : > { %p6568_p8 = pnand %p6566_p7, %p6984_p6 }
  0x15   : > { %p6569_p9 = pneg %p6568_p8 }
  0x17   : > { %p6576_p13 = pnand %p6575_p12, %p6569_p9 }
  0x19   : > { %6579 = shalt.err (!%p6576_p13)
}
  0x1a   : > { %s8153_s15 = smov 512   ;;  %s8154_s16 = smov 32  }
  0x1b   : > { %6478 = dma.hbm_to_vmem [thread:$0]  (!%p6974_p5), %s8142_s2, 8192, %s342_s23, [#allocation5], %s8153_s15, %s8153_s15, %s8154_s16  }
  0x1c   : > { %s6591_s19 = scalar_lea.vmem %s6978_s28, 65536  ;;  %p6599_p7 = scmp.lt.s32.totalorder %s6978_s28, %s6978_s28 }
  0x1d   : > { %p6592_p0 = scmp.ne.s32.totalorder %s6978_s28, %s6591_s19  ;;  %p6600_p8 = scmp.lt.s32.totalorder %s6591_s19, %s6591_s19 }
  0x1f   : > { %p6594_p1 = pnand %p6592_p0, %p6984_p6  ;;  %p6601_p9 = por %p6600_p8, %p6599_p7 }
  0x21   : > { %p6595_p4 = pneg %p6594_p1 }
  0x23   : > { %p6602_p10 = pnand %p6601_p9, %p6595_p4 }
  0x25   : > { %6605 = shalt.err (!%p6602_p10)
}
  0x26   : > { %s6877_s20 = smov 1024   ;;  %s6878_s22 = smov 64  }
  0x27   : > { %6484 = dma.hbm_to_vmem [thread:$0]  (!%p6974_p5), %s8144_s4, 65536, %s6978_s28, [#allocation8], %s6877_s20, %s6877_s20, %s6878_s22  }
  0x28   : > { %s6617_s29 = scalar_lea.vmem %s6980_s30, 64  ;;  %p6625_p0 = scmp.lt.s32.totalorder %s6980_s30, %s6980_s30 }
  0x29   : > { %p6618_p11 = scmp.ne.s32.totalorder %s6980_s30, %s6617_s29  ;;  %p6626_p1 = scmp.lt.s32.totalorder %s6617_s29, %s6617_s29 }
  0x2b   : > { %p6620_p12 = pnand %p6618_p11, %p6984_p6  ;;  %p6627_p4 = por %p6626_p1, %p6625_p0 }
  0x2d   : > { %p6621_p13 = pneg %p6620_p12 }
  0x2f   : > { %p6628_p7 = pnand %p6627_p4, %p6621_p13 }
  0x31   : > { %6631 = shalt.err (!%p6628_p7)
}
  0x32   : > { %6490 = dma.hbm_to_vmem [thread:$0]  (!%p6974_p5), %s8146_s6, 64, %s6980_s30, [#allocation11]  }
  0x33   : > { %s6879_s28 = smov [#allocation13]   ;;  %s6880_s19 = smov [#allocation16]  }
  0x34   : > { %s415_s18 = sshll.u32 %s6879_s28, 4  ;;  %s439_s23 = sshll.u32 %s6880_s19, 4  ;;  %s416_s18 = int_to_ptr.vmem [resolvable:$true] %s415_s18  ;;  %s440_s23 = int_to_ptr.vmem [resolvable:$true] %s439_s23 }
  0x35   : > { %s6643_s27 = scalar_lea.vmem %s416_s18, 32768  ;;  %p6651_p11 = scmp.lt.s32.totalorder %s416_s18, %s416_s18 }
  0x36   : > { %p6644_p8 = scmp.ne.s32.totalorder %s416_s18, %s6643_s27  ;;  %p6652_p12 = scmp.lt.s32.totalorder %s6643_s27, %s6643_s27 }
  0x38   : > { %p6646_p9 = pnand %p6644_p8, %p6984_p6  ;;  %p6653_p13 = por %p6652_p12, %p6651_p11 }
  0x3a   : > { %p6647_p10 = pneg %p6646_p9 }
  0x3c   : > { %p6654_p0 = pnand %p6653_p13, %p6647_p10 }
  0x3e   : > { %6657 = shalt.err (!%p6654_p0)
}
  0x3f   : > { %6496 = dma.hbm_to_vmem [thread:$0]  (!%p6974_p5), %s8148_s8, 32768, %s416_s18, [#allocation14], %s8153_s15, %s8153_s15, %s8154_s16  }
  0x40   : > { %s6669_s14 = scalar_lea.vmem %s440_s23, 24576  ;;  %p6677_p8 = scmp.lt.s32.totalorder %s440_s23, %s440_s23 }
  0x41   : > { %p6670_p1 = scmp.ne.s32.totalorder %s440_s23, %s6669_s14  ;;  %p6678_p9 = scmp.lt.s32.totalorder %s6669_s14, %s6669_s14 }
  0x43   : > { %p6672_p4 = pnand %p6670_p1, %p6984_p6  ;;  %p6679_p11 = por %p6678_p9, %p6677_p8 }
  0x45   : > { %p6673_p7 = pneg %p6672_p4 }
  0x47   : > { %p6680_p10 = pnand %p6679_p11, %p6673_p7 }
  0x49   : > { %6683 = shalt.err (!%p6680_p10)
}
  0x4a   : > { %s6881_s17 = smov 128   ;;  %s6882_s28 = smov 8  }
  0x4b   : > { %6502 = dma.hbm_to_vmem [thread:$0]  (!%p6974_p5), %s8150_s10, 24576, %s440_s23, [#allocation17], %s6881_s17, %s6881_s17, %s6882_s28  }
  0x4c   : > { %s6883_s18 = smov [#allocation2]   ;;  %s6884_s29 = smov [#allocation6]  }
  0x4d   : > { %s328_s30 = sshll.u32 %s6883_s18, 4  ;;  %s355_s15 = sshll.u32 %s6884_s29, 4  ;;  %s329_s30 = int_to_ptr.vmem [resolvable:$true] %s328_s30  ;;  %s356_s15 = int_to_ptr.vmem [resolvable:$true] %s355_s15 }
  0x4e   : > { %s6695_s16 = scalar_lea.vmem %s329_s30, 16384  ;;  %p6703_p1 = scmp.lt.s32.totalorder %s329_s30, %s329_s30 }
  0x4f   : > { %p6696_p12 = scmp.ne.s32.totalorder %s329_s30, %s6695_s16  ;;  %p6704_p4 = scmp.lt.s32.totalorder %s6695_s16, %s6695_s16 }
  0x51   : > { %p6698_p13 = pnand %p6696_p12, %p6984_p6  ;;  %p6705_p7 = por %p6704_p4, %p6703_p1 }
  0x53   : > { %p6699_p0 = pneg %p6698_p13 }
  0x55   : > { %p6706_p8 = pnand %p6705_p7, %p6699_p0 }
  0x57   : > { %6709 = shalt.err (!%p6706_p8)
}
  0x58   : > { %6475 = dma.hbm_to_vmem [thread:$0]  (!%p6974_p5), %s8141_s1, 16384, %s329_s30, [#allocation3], %s6877_s20, %s6877_s20, %s6878_s22  }
  0x59   : > { %s6721_s17 = scalar_lea.vmem %s356_s15, 64  ;;  %p6729_p12 = scmp.lt.s32.totalorder %s356_s15, %s356_s15 }
  0x5a   : > { %p6722_p9 = scmp.ne.s32.totalorder %s356_s15, %s6721_s17  ;;  %p6730_p13 = scmp.lt.s32.totalorder %s6721_s17, %s6721_s17 }
  0x5c   : > { %p6724_p11 = pnand %p6722_p9, %p6984_p6  ;;  %p6731_p1 = por %p6730_p13, %p6729_p12 }
  0x5e   : > { %p6725_p10 = pneg %p6724_p11 }
  0x60   : > { %p6732_p0 = pnand %p6731_p1, %p6725_p10 }
  0x62   : > { %6735 = shalt.err (!%p6732_p0)
}
  0x63   : > { %6481 = dma.hbm_to_vmem [thread:$0]  (!%p6974_p5), %s8143_s3, 64, %s356_s15, [#allocation5]  }
  0x64   : > { %s6885_s19 = smov [#allocation9]   ;;  %s6886_s18 = smov [#allocation12]  }
  0x65   : > { %s378_s27 = sshll.u32 %s6885_s19, 4  ;;  %s402_s30 = sshll.u32 %s6886_s18, 4  ;;  %s379_s27 = int_to_ptr.vmem [resolvable:$true] %s378_s27  ;;  %s403_s30 = int_to_ptr.vmem [resolvable:$true] %s402_s30 }
  0x66   : > { %s6747_s29 = scalar_lea.vmem %s379_s27, 32768  ;;  %p6755_p9 = scmp.lt.s32.totalorder %s379_s27, %s379_s27 }
  0x67   : > { %p6748_p4 = scmp.ne.s32.totalorder %s379_s27, %s6747_s29  ;;  %p6756_p11 = scmp.lt.s32.totalorder %s6747_s29, %s6747_s29 }
  0x69   : > { %p6750_p7 = pnand %p6748_p4, %p6984_p6  ;;  %p6757_p10 = por %p6756_p11, %p6755_p9 }
  0x6b   : > { %p6751_p8 = pneg %p6750_p7 }
  0x6d   : > { %p6758_p12 = pnand %p6757_p10, %p6751_p8 }
  0x6f   : > { %6761 = shalt.err (!%p6758_p12)
}
  0x70   : > { %s8164_s23 = smov 32   ;;  %s8165_s15 = smov 512  }
  0x71   : > { %6487 = dma.hbm_to_vmem [thread:$0]  (!%p6974_p5), %s8145_s5, 32768, %s379_s27, [#allocation8], %s8165_s15, %s8165_s15, %s8164_s23  }
  0x72   : > { %s6773_s16 = scalar_lea.vmem %s403_s30, 65536  ;;  %p6781_p4 = scmp.lt.s32.totalorder %s403_s30, %s403_s30 }
  0x73   : > { %p6774_p13 = scmp.ne.s32.totalorder %s403_s30, %s6773_s16  ;;  %p6782_p7 = scmp.lt.s32.totalorder %s6773_s16, %s6773_s16 }
  0x75   : > { %p6776_p1 = pnand %p6774_p13, %p6984_p6  ;;  %p6783_p9 = por %p6782_p7, %p6781_p4 }
  0x77   : > { %p6777_p0 = pneg %p6776_p1 }
  0x79   : > { %p6784_p8 = pnand %p6783_p9, %p6777_p0 }
  0x7b   : > { %6787 = shalt.err (!%p6784_p8)
}
  0x7c   : > { %6493 = dma.hbm_to_vmem [thread:$0]  (!%p6974_p5), %s8147_s7, 65536, %s403_s30, [#allocation11], %s6877_s20, %s6877_s20, %s6878_s22  }
  0x7d   : > { %s6887_s27 = smov [#allocation15]   ;;  %s6888_s29 = smov [#allocation18]  }
  0x7e   : > { %s429_s18 = sshll.u32 %s6887_s27, 4  ;;  %s453_s23 = sshll.u32 %s6888_s29, 4  ;;  %s430_s18 = int_to_ptr.vmem [resolvable:$true] %s429_s18  ;;  %s454_s23 = int_to_ptr.vmem [resolvable:$true] %s453_s23 }
  0x7f   : > { %s6799_s15 = scalar_lea.vmem %s430_s18, 64  ;;  %p6807_p13 = scmp.lt.s32.totalorder %s430_s18, %s430_s18 }
  0x80   : > { %p6800_p11 = scmp.ne.s32.totalorder %s430_s18, %s6799_s15  ;;  %p6808_p1 = scmp.lt.s32.totalorder %s6799_s15, %s6799_s15 }
  0x82   : > { %p6802_p10 = pnand %p6800_p11, %p6984_p6  ;;  %p6809_p0 = por %p6808_p1, %p6807_p13 }
  0x84   : > { %p6803_p12 = pneg %p6802_p10 }
  0x86   : > { %p6810_p4 = pnand %p6809_p0, %p6803_p12 }
  0x88   : > { %6813 = shalt.err (!%p6810_p4)
}
  0x89   : > { %6499 = dma.hbm_to_vmem [thread:$0]  (!%p6974_p5), %s8149_s9, 64, %s430_s18, [#allocation14]  }
  0x8a   : > { %s6825_s22 = scalar_lea.vmem %s454_s23, 16  ;;  %s6832_s30 = scalar_lea.vmem %s454_s23, 32 }
  0x8b   : > { %p6826_p7 = scmp.ne.s32.totalorder %s454_s23, %s6825_s22  ;;  %p6833_p11 = scmp.lt.s32.totalorder %s454_s23, %s454_s23 }
  0x8c   : > { %p6834_p10 = scmp.lt.s32.totalorder %s6832_s30, %s6825_s22 }
  0x8d   : > { %p6828_p9 = pnand %p6826_p7, %p6984_p6 }
  0x8e   : > { %p6835_p2 = por %p6834_p10, %p6833_p11 }
  0x8f   : > { %p6829_p8 = pneg %p6828_p9 }
  0x91   : > { %p6836_p3 = pnand %p6835_p2, %p6829_p8 }
  0x93   : > { %6839 = shalt.err (!%p6836_p3)
}
  0x94   : > { %6505 = dma.hbm_to_vmem [thread:$0]  (!%p6974_p5), %s8151_s11, 16, %s454_s23, [#allocation17]  }
  0x95   : > { %p8166_p12 = scmp.ne.s32.totalorder %s8161_s25, 0 }
  0x97   : > { %475 = sbr.rel (%p8166_p12) target bundleno = 1760 (0x6e0), region = 68 }
  0x9c   : > { %p8167_p13 = scmp.eq.s32.totalorder %s6961_s24, 0 }
  0x9e   : > { %6845 = dma.done.wait (%p8167_p13), [#allocation3], 16384   ;;  %p8168_p6 = pmov %p8167_p13 }
  0xa0   : > { %6847 = vsyncadd (%p8168_p6), [#allocation3], 4294950912  ;;  %p8169_p1 = pmov %p8168_p6 }
  0xa2   : > { %6849 = dma.done.wait (%p8169_p1), [#allocation5], 8256   ;;  %p8170_p2 = pmov %p8169_p1 }
  0xa3   : > { %p8171_p3 = pmov %p8169_p1 }
  0xa4   : > { %6851 = vsyncadd (%p8170_p2), [#allocation5], 4294959040 }
  0xa5   : > { %6853 = dma.done.wait (%p8171_p3), [#allocation8], 98304   ;;  %p8172_p5 = pmov %p8169_p1 }
  0xa6   : > { %p8173_p0 = pmov %p8169_p1 }
  0xa7   : > { %6855 = vsyncadd (%p8172_p5), [#allocation8], 4294868992 }
  0xa8   : > { %6857 = dma.done.wait (%p8173_p0), [#allocation11], 65600   ;;  %p8174_p4 = pmov %p8173_p0 }
  0xa9   : > { %p8175_p7 = pmov %p8173_p0 }
  0xaa   : > { %6859 = vsyncadd (%p8174_p4), [#allocation11], 4294901696 }
  0xab   : > { %6861 = dma.done.wait (%p8175_p7), [#allocation14], 32832   ;;  %p8176_p9 = pmov %p8173_p0 }
  0xac   : > { %p8177_p8 = pmov %p8173_p0 }
  0xad   : > { %6863 = vsyncadd (%p8176_p9), [#allocation14], 4294934464 }
  0xae   : > { %6865 = dma.done.wait (%p8177_p8), [#allocation17], 24592   ;;  %p8178_p11 = pmov %p8173_p0 }
  0xaf   : > { %v6889_v0 = vmov 0.0   ;;  %v707_v1 = vld [vmem:[#allocation2 + $0x3c8] sm:$0xff]  ;;  %v709_v2 = vld [vmem:[#allocation2 + $0x3d8] sm:$0xff]  ;;  %v706_v3 = vld [vmem:[#allocation2 + $0x3c0] sm:$0xff]  ;;  %s6062_s25 = sshll.u32 %s6961_s24, 1  ;;  %vm575_vm0 = vcmask 1043456  }
  0xb0   : > { %6867 = vsyncadd (%p8178_p11), [#allocation17], 4294942704  ;;  %778 = vmatprep.mubr.f32.mxu0 %v6889_v0  ;;  %849 = vmatprep.mubr.f32.mxu1 %v6889_v0  ;;  %v708_v4 = vld [vmem:[#allocation2 + $0x3d0] sm:$0xff]  ;;  %v699_v5 = vld [vmem:[#allocation2 + $0x388] sm:$0xff]  ;;  %p7124_p10 = scmp.lt.s32.totalorder %s6062_s25, 3  ;;  %vm580_vm1 = vcmask 1042432  }
  0xb1   : > { %714 = vmatprep.subr.mxu0 %v707_v1  ;;  %785 = vmatprep.subr.mxu1 %v709_v2  ;;  %v701_v6 = vld [vmem:[#allocation2 + $0x398] sm:$0xff]  ;;  %v698_v7 = vld [vmem:[#allocation2 + $0x380] sm:$0xff]  ;;  %v700_v8 = vld [vmem:[#allocation2 + $0x390] sm:$0xff]  ;;  %vm583_vm2 = vcmask 1046528   ;;  %vm4997_vm3 = vcmask 1040384   ;;  %vm5006_vm4 = vcmask 1044480  }
  0xb2   : > { %715 = vmatpush1.msra.mxu0 %v706_v3  ;;  %786 = vmatpush1.msra.mxu1 %v708_v4  ;;  %v691_v9 = vld [vmem:[#allocation2 + $0x348] sm:$0xff]  ;;  %v693_v10 = vld [vmem:[#allocation2 + $0x358] sm:$0xff]  ;;  %v690_v11 = vld [vmem:[#allocation2 + $0x340] sm:$0xff]  ;;  %s8245_s25 = smov (!%p7124_p10, %s6062_s25), 3  ;;  %s6064_s18 = sshll.u32 %s6961_s24, 3 }
  0xb3   : > { %716 = vmatprep.subr.mxu0 %v699_v5  ;;  %787 = vmatprep.subr.mxu1 %v701_v6  ;;  %v692_v12 = vld [vmem:[#allocation2 + $0x350] sm:$0xff]  ;;  %v683_v13 = vld [vmem:[#allocation2 + $0x308] sm:$0xff]  ;;  %v685_v14 = vld [vmem:[#allocation2 + $0x318] sm:$0xff]  ;;  %s6063_s13 = sshll.u32 %s8245_s25, 2  ;;  %p564_p12 = scmp.lt.s32.totalorder %s6064_s18, 15 }
  0xb4   : > { %717 = vmatpush1.msra.mxu0 %v698_v7  ;;  %788 = vmatpush1.msra.mxu1 %v700_v8  ;;  %v682_v15 = vld [vmem:[#allocation2 + $0x300] sm:$0xff]  ;;  %v684_v16 = vld [vmem:[#allocation2 + $0x310] sm:$0xff]  ;;  %v675_v17 = vld [vmem:[#allocation2 + $0x2c8] sm:$0xff]  ;;  %s7138_s27 = scalar_lea.vmem %s8140_s0, %s6063_s13 }
  0xb5   : > { %718 = vmatprep.subr.mxu0 %v691_v9  ;;  %789 = vmatprep.subr.mxu1 %v693_v10  ;;  %v677_v18 = vld [vmem:[#allocation2 + $0x2d8] sm:$0xff]  ;;  %v674_v19 = vld [vmem:[#allocation2 + $0x2c0] sm:$0xff]  ;;  %v676_v20 = vld [vmem:[#allocation2 + $0x2d0] sm:$0xff]  ;;  %s8247_s18 = smov (!%p564_p12, %s6064_s18), 15 }
  0xb6   : > { %719 = vmatpush1.msra.mxu0 %v690_v11  ;;  %790 = vmatpush1.msra.mxu1 %v692_v12  ;;  %v667_v21 = vld [vmem:[#allocation2 + $0x288] sm:$0xff]  ;;  %v669_v22 = vld [vmem:[#allocation2 + $0x298] sm:$0xff]  ;;  %v666_v23 = vld [vmem:[#allocation2 + $0x280] sm:$0xff]  ;;  %s6065_s24 = sshll.u32 %s8247_s18, 3 }
  0xb7   : > { %720 = vmatprep.subr.mxu0 %v683_v13  ;;  %791 = vmatprep.subr.mxu1 %v685_v14  ;;  %v668_v24 = vld [vmem:[#allocation2 + $0x290] sm:$0xff]  ;;  %v659_v25 = vld [vmem:[#allocation2 + $0x248] sm:$0xff]  ;;  %v661_v26 = vld [vmem:[#allocation2 + $0x258] sm:$0xff]  ;;  %s8084_s15 = scalar_lea.vmem %s8152_s12, %s6065_s24 }
  0xb8   : > { %721 = vmatpush1.msra.mxu0 %v682_v15  ;;  %792 = vmatpush1.msra.mxu1 %v684_v16  ;;  %v658_v27 = vld [vmem:[#allocation2 + $0x240] sm:$0xff]  ;;  %v660_v28 = vld [vmem:[#allocation2 + $0x250] sm:$0xff]  ;;  %v651_v29 = vld [vmem:[#allocation2 + $0x208] sm:$0xff] }
  0xb9   : > { %722 = vmatprep.subr.mxu0 %v675_v17  ;;  %793 = vmatprep.subr.mxu1 %v677_v18  ;;  %v653_v30 = vld [vmem:[#allocation2 + $0x218] sm:$0xff]  ;;  %v650_v31 = vld [vmem:[#allocation2 + $0x200] sm:$0xff]  ;;  %v652_v32 = vld [vmem:[#allocation2 + $0x210] sm:$0xff] }
  0xba   : > { %723 = vmatpush1.msra.mxu0 %v674_v19  ;;  %794 = vmatpush1.msra.mxu1 %v676_v20  ;;  %v643_v33 = vld [vmem:[#allocation2 + $0x1c8] sm:$0xff]  ;;  %v645_v34 = vld [vmem:[#allocation2 + $0x1d8] sm:$0xff]  ;;  %v642_v35 = vld [vmem:[#allocation2 + $0x1c0] sm:$0xff] }
  0xbb   : > { %724 = vmatprep.subr.mxu0 %v667_v21  ;;  %795 = vmatprep.subr.mxu1 %v669_v22  ;;  %v644_v36 = vld [vmem:[#allocation2 + $0x1d0] sm:$0xff]  ;;  %v635_v37 = vld [vmem:[#allocation2 + $0x188] sm:$0xff]  ;;  %v637_v38 = vld [vmem:[#allocation2 + $0x198] sm:$0xff] }
  0xbc   : > { %725 = vmatpush1.msra.mxu0 %v666_v23  ;;  %796 = vmatpush1.msra.mxu1 %v668_v24  ;;  %v634_v39 = vld [vmem:[#allocation2 + $0x180] sm:$0xff]  ;;  %v636_v40 = vld [vmem:[#allocation2 + $0x190] sm:$0xff]  ;;  %v627_v41 = vld [vmem:[#allocation2 + $0x148] sm:$0xff] }
  0xbd   : > { %726 = vmatprep.subr.mxu0 %v659_v25  ;;  %797 = vmatprep.subr.mxu1 %v661_v26  ;;  %v629_v42 = vld [vmem:[#allocation2 + $0x158] sm:$0xff]  ;;  %v626_v43 = vld [vmem:[#allocation2 + $0x140] sm:$0xff]  ;;  %v628_v44 = vld [vmem:[#allocation2 + $0x150] sm:$0xff] }
  0xbe   : > { %727 = vmatpush1.msra.mxu0 %v658_v27  ;;  %798 = vmatpush1.msra.mxu1 %v660_v28  ;;  %v619_v45 = vld [vmem:[#allocation2 + $0x108] sm:$0xff]  ;;  %v621_v46 = vld [vmem:[#allocation2 + $0x118] sm:$0xff]  ;;  %v618_v47 = vld [vmem:[#allocation2 + $0x100] sm:$0xff] }
  0xbf   : > { %728 = vmatprep.subr.mxu0 %v651_v29  ;;  %799 = vmatprep.subr.mxu1 %v653_v30  ;;  %v620_v48 = vld [vmem:[#allocation2 + $0x110] sm:$0xff]  ;;  %v611_v49 = vld [vmem:[#allocation2 + $0xc8] sm:$0xff]  ;;  %v613_v50 = vld [vmem:[#allocation2 + $0xd8] sm:$0xff] }
  0xc0   : > { %729 = vmatpush1.msra.mxu0 %v650_v31  ;;  %800 = vmatpush1.msra.mxu1 %v652_v32  ;;  %v610_v51 = vld [vmem:[#allocation2 + $0xc0] sm:$0xff]  ;;  %v612_v52 = vld [vmem:[#allocation2 + $0xd0] sm:$0xff]  ;;  %v603_v54 = vld [vmem:[#allocation2 + $0x88] sm:$0xff] }
  0xc1   : > { %730 = vmatprep.subr.mxu0 %v643_v33  ;;  %801 = vmatprep.subr.mxu1 %v645_v34  ;;  %v6066_v53 = vld [vmem:[%s7138_s27 + $0x4] sm:$0xf]  ;;  %v605_v55 = vld [vmem:[#allocation2 + $0x98] sm:$0xff]  ;;  %v604_v57 = vld [vmem:[#allocation2 + $0x90] sm:$0xff] }
  0xc2   : > { %731 = vmatpush1.msra.mxu0 %v642_v35  ;;  %802 = vmatpush1.msra.mxu1 %v644_v36  ;;  %v602_v56 = vld [vmem:[#allocation2 + $0x80] sm:$0xff]  ;;  %v595_v58 = vld [vmem:[#allocation2 + $0x48] sm:$0xff]  ;;  %v597_v59 = vld [vmem:[#allocation2 + $0x58] sm:$0xff]  ;;  %v573_v60 = vrot.slane %v6066_v53, 4 }
  0xc3   : > { %732 = vmatprep.subr.mxu0 %v635_v37  ;;  %803 = vmatprep.subr.mxu1 %v637_v38  ;;  %v594_v61 = vld [vmem:[#allocation2 + $0x40] sm:$0xff]  ;;  %v596_v62 = vld [vmem:[#allocation2 + $0x50] sm:$0xff]  ;;  %v587_v1 = vld [vmem:[#allocation2 + $0x8] sm:$0xff] }
  0xc4   : > { %733 = vmatpush1.msra.mxu0 %v634_v39  ;;  %804 = vmatpush1.msra.mxu1 %v636_v40  ;;  %v569_v63 = vld [vmem:[%s7138_s27] sm:$0xf]  ;;  %v589_v2 = vld [vmem:[#allocation2 + $0x18] sm:$0xff]  ;;  %v588_v4 = vld [vmem:[#allocation2 + $0x10] sm:$0xff] }
  0xc5   : > { %734 = vmatprep.subr.mxu0 %v627_v41  ;;  %805 = vmatprep.subr.mxu1 %v629_v42  ;;  %v586_v3 = vld [vmem:[#allocation2] sm:$0xff]  ;;  %v7143_v5 = vsel %vm575_vm0, %v569_v63, %v573_v60  ;;  %v711_v6 = vld [vmem:[#allocation2 + $0x3e8] sm:$0xff]  ;;  %v713_v7 = vld [vmem:[#allocation2 + $0x3f8] sm:$0xff] }
  0xc6   : > { %735 = vmatpush1.msra.mxu0 %v626_v43  ;;  %806 = vmatpush1.msra.mxu1 %v628_v44  ;;  %v710_v8 = vld [vmem:[#allocation2 + $0x3e0] sm:$0xff]  ;;  %v712_v9 = vld [vmem:[#allocation2 + $0x3f0] sm:$0xff]  ;;  %v703_v10 = vld [vmem:[#allocation2 + $0x3a8] sm:$0xff] }
  0xc7   : > { %736 = vmatprep.subr.mxu0 %v619_v45  ;;  %807 = vmatprep.subr.mxu1 %v621_v46  ;;  %v705_v11 = vld [vmem:[#allocation2 + $0x3b8] sm:$0xff]  ;;  %v702_v12 = vld [vmem:[#allocation2 + $0x3a0] sm:$0xff]  ;;  %v704_v13 = vld [vmem:[#allocation2 + $0x3b0] sm:$0xff] }
  0xc8   : > { %737 = vmatpush1.msra.mxu0 %v618_v47  ;;  %808 = vmatpush1.msra.mxu1 %v620_v48  ;;  %v695_v14 = vld [vmem:[#allocation2 + $0x368] sm:$0xff]  ;;  %v697_v15 = vld [vmem:[#allocation2 + $0x378] sm:$0xff]  ;;  %v694_v16 = vld [vmem:[#allocation2 + $0x360] sm:$0xff] }
  0xc9   : > { %738 = vmatprep.subr.mxu0 %v611_v49  ;;  %809 = vmatprep.subr.mxu1 %v613_v50  ;;  %v696_v17 = vld [vmem:[#allocation2 + $0x370] sm:$0xff]  ;;  %v687_v18 = vld [vmem:[#allocation2 + $0x328] sm:$0xff]  ;;  %v689_v19 = vld [vmem:[#allocation2 + $0x338] sm:$0xff] }
  0xca   : > { %739 = vmatpush1.msra.mxu0 %v610_v51  ;;  %810 = vmatpush1.msra.mxu1 %v612_v52  ;;  %v686_v20 = vld [vmem:[#allocation2 + $0x320] sm:$0xff]  ;;  %v688_v21 = vld [vmem:[#allocation2 + $0x330] sm:$0xff]  ;;  %v679_v22 = vld [vmem:[#allocation2 + $0x2e8] sm:$0xff] }
  0xcb   : > { %740 = vmatprep.subr.mxu0 %v603_v54  ;;  %811 = vmatprep.subr.mxu1 %v605_v55  ;;  %v681_v23 = vld [vmem:[#allocation2 + $0x2f8] sm:$0xff]  ;;  %v678_v24 = vld [vmem:[#allocation2 + $0x2e0] sm:$0xff]  ;;  %v680_v25 = vld [vmem:[#allocation2 + $0x2f0] sm:$0xff] }
  0xcc   : > { %741 = vmatpush1.msra.mxu0 %v602_v56  ;;  %812 = vmatpush1.msra.mxu1 %v604_v57  ;;  %v671_v26 = vld [vmem:[#allocation2 + $0x2a8] sm:$0xff]  ;;  %v673_v27 = vld [vmem:[#allocation2 + $0x2b8] sm:$0xff]  ;;  %v670_v28 = vld [vmem:[#allocation2 + $0x2a0] sm:$0xff] }
  0xcd   : > { %742 = vmatprep.subr.mxu0 %v595_v58  ;;  %813 = vmatprep.subr.mxu1 %v597_v59  ;;  %v672_v29 = vld [vmem:[#allocation2 + $0x2b0] sm:$0xff]  ;;  %v663_v30 = vld [vmem:[#allocation2 + $0x268] sm:$0xff]  ;;  %v665_v31 = vld [vmem:[#allocation2 + $0x278] sm:$0xff] }
  0xce   : > { %743 = vmatpush1.msra.mxu0 %v594_v61  ;;  %814 = vmatpush1.msra.mxu1 %v596_v62  ;;  %v662_v32 = vld [vmem:[#allocation2 + $0x260] sm:$0xff]  ;;  %v664_v33 = vld [vmem:[#allocation2 + $0x270] sm:$0xff]  ;;  %v655_v34 = vld [vmem:[#allocation2 + $0x228] sm:$0xff] }
  0xcf   : > { %744 = vmatprep.subr.mxu0 %v587_v1  ;;  %815 = vmatprep.subr.mxu1 %v589_v2  ;;  %v657_v35 = vld [vmem:[#allocation2 + $0x238] sm:$0xff]  ;;  %v654_v36 = vld [vmem:[#allocation2 + $0x220] sm:$0xff]  ;;  %v656_v37 = vld [vmem:[#allocation2 + $0x230] sm:$0xff] }
  0xd0   : > { %745 = vmatpush1.msra.mxu0 %v586_v3  ;;  %816 = vmatpush1.msra.mxu1 %v588_v4  ;;  %v647_v38 = vld [vmem:[#allocation2 + $0x1e8] sm:$0xff]  ;;  %v649_v39 = vld [vmem:[#allocation2 + $0x1f8] sm:$0xff]  ;;  %v646_v40 = vld [vmem:[#allocation2 + $0x1e0] sm:$0xff] }
  0xd1   : > { %779 = vmatmul.mubr.f32.vlgmr.msra.gmra.mxu0 %v7143_v5  ;;  %850 = vmatmul.mubr.f32.vlgmr.msra.gmra.mxu1 %v7143_v5  ;;  %v648_v41 = vld [vmem:[#allocation2 + $0x1f0] sm:$0xff]  ;;  %v639_v42 = vld [vmem:[#allocation2 + $0x1a8] sm:$0xff]  ;;  %v641_v43 = vld [vmem:[#allocation2 + $0x1b8] sm:$0xff] }
  0xd2   : > { %856 = vmatprep.subr.mxu0 %v711_v6  ;;  %927 = vmatprep.subr.mxu1 %v713_v7  ;;  %v638_v44 = vld [vmem:[#allocation2 + $0x1a0] sm:$0xff]  ;;  %v640_v45 = vld [vmem:[#allocation2 + $0x1b0] sm:$0xff]  ;;  %v631_v46 = vld [vmem:[#allocation2 + $0x168] sm:$0xff] }
  0xd3   : > { %857 = vmatpush1.msra.mxu0 %v710_v8  ;;  %928 = vmatpush1.msra.mxu1 %v712_v9  ;;  %v633_v47 = vld [vmem:[#allocation2 + $0x178] sm:$0xff]  ;;  %v630_v48 = vld [vmem:[#allocation2 + $0x160] sm:$0xff]  ;;  %v632_v49 = vld [vmem:[#allocation2 + $0x170] sm:$0xff] }
  0xd4   : > { %858 = vmatprep.subr.mxu0 %v703_v10  ;;  %929 = vmatprep.subr.mxu1 %v705_v11  ;;  %v623_v50 = vld [vmem:[#allocation2 + $0x128] sm:$0xff]  ;;  %v625_v51 = vld [vmem:[#allocation2 + $0x138] sm:$0xff]  ;;  %v622_v52 = vld [vmem:[#allocation2 + $0x120] sm:$0xff] }
  0xd5   : > { %859 = vmatpush1.msra.mxu0 %v702_v12  ;;  %930 = vmatpush1.msra.mxu1 %v704_v13  ;;  %v624_v53 = vld [vmem:[#allocation2 + $0x130] sm:$0xff]  ;;  %v615_v54 = vld [vmem:[#allocation2 + $0xe8] sm:$0xff]  ;;  %v617_v55 = vld [vmem:[#allocation2 + $0xf8] sm:$0xff] }
  0xd6   : > { %860 = vmatprep.subr.mxu0 %v695_v14  ;;  %931 = vmatprep.subr.mxu1 %v697_v15  ;;  %v614_v56 = vld [vmem:[#allocation2 + $0xe0] sm:$0xff]  ;;  %v616_v57 = vld [vmem:[#allocation2 + $0xf0] sm:$0xff]  ;;  %v607_v58 = vld [vmem:[#allocation2 + $0xa8] sm:$0xff] }
  0xd7   : > { %861 = vmatpush1.msra.mxu0 %v694_v16  ;;  %932 = vmatpush1.msra.mxu1 %v696_v17  ;;  %v609_v59 = vld [vmem:[#allocation2 + $0xb8] sm:$0xff]  ;;  %v606_v60 = vld [vmem:[#allocation2 + $0xa0] sm:$0xff]  ;;  %v608_v61 = vld [vmem:[#allocation2 + $0xb0] sm:$0xff] }
  0xd8   : > { %862 = vmatprep.subr.mxu0 %v687_v18  ;;  %933 = vmatprep.subr.mxu1 %v689_v19  ;;  %v599_v62 = vld [vmem:[#allocation2 + $0x68] sm:$0xff]  ;;  %v601_v63 = vld [vmem:[#allocation2 + $0x78] sm:$0xff]  ;;  %v598_v1 = vld [vmem:[#allocation2 + $0x60] sm:$0xff] }
  0xd9   : > { %863 = vmatpush1.msra.mxu0 %v686_v20  ;;  %934 = vmatpush1.msra.mxu1 %v688_v21  ;;  %v600_v2 = vld [vmem:[#allocation2 + $0x70] sm:$0xff]  ;;  %v591_v3 = vld [vmem:[#allocation2 + $0x28] sm:$0xff]  ;;  %v593_v4 = vld [vmem:[#allocation2 + $0x38] sm:$0xff] }
  0xda   : > { %864 = vmatprep.subr.mxu0 %v679_v22  ;;  %935 = vmatprep.subr.mxu1 %v681_v23  ;;  %v590_v6 = vld [vmem:[#allocation2 + $0x20] sm:$0xff]  ;;  %v592_v7 = vld [vmem:[#allocation2 + $0x30] sm:$0xff]  ;;  %v1088_v8 = vld [vmem:[#allocation4 + $0x1e8] sm:$0xff] }
  0xdb   : > { %865 = vmatpush1.msra.mxu0 %v678_v24  ;;  %936 = vmatpush1.msra.mxu1 %v680_v25  ;;  %v1090_v9 = vld [vmem:[#allocation4 + $0x1f8] sm:$0xff]  ;;  %v1087_v10 = vld [vmem:[#allocation4 + $0x1e0] sm:$0xff]  ;;  %v1089_v11 = vld [vmem:[#allocation4 + $0x1f0] sm:$0xff] }
  0xdc   : > { %866 = vmatprep.subr.mxu0 %v671_v26  ;;  %937 = vmatprep.subr.mxu1 %v673_v27  ;;  %v1084_v12 = vld [vmem:[#allocation4 + $0x1c8] sm:$0xff]  ;;  %v1086_v13 = vld [vmem:[#allocation4 + $0x1d8] sm:$0xff]  ;;  %v1083_v14 = vld [vmem:[#allocation4 + $0x1c0] sm:$0xff] }
  0xdd   : > { %867 = vmatpush1.msra.mxu0 %v670_v28  ;;  %938 = vmatpush1.msra.mxu1 %v672_v29  ;;  %v1085_v15 = vld [vmem:[#allocation4 + $0x1d0] sm:$0xff]  ;;  %v1080_v16 = vld [vmem:[#allocation4 + $0x1a8] sm:$0xff]  ;;  %v1082_v17 = vld [vmem:[#allocation4 + $0x1b8] sm:$0xff] }
  0xde   : > { %868 = vmatprep.subr.mxu0 %v663_v30  ;;  %939 = vmatprep.subr.mxu1 %v665_v31  ;;  %v1079_v18 = vld [vmem:[#allocation4 + $0x1a0] sm:$0xff]  ;;  %v1081_v19 = vld [vmem:[#allocation4 + $0x1b0] sm:$0xff]  ;;  %v1076_v20 = vld [vmem:[#allocation4 + $0x188] sm:$0xff] }
  0xdf   : > { %869 = vmatpush1.msra.mxu0 %v662_v32  ;;  %940 = vmatpush1.msra.mxu1 %v664_v33  ;;  %v1078_v21 = vld [vmem:[#allocation4 + $0x198] sm:$0xff]  ;;  %v1075_v22 = vld [vmem:[#allocation4 + $0x180] sm:$0xff]  ;;  %v1077_v23 = vld [vmem:[#allocation4 + $0x190] sm:$0xff] }
  0xe0   : > { %870 = vmatprep.subr.mxu0 %v655_v34  ;;  %941 = vmatprep.subr.mxu1 %v657_v35  ;;  %v1072_v24 = vld [vmem:[#allocation4 + $0x168] sm:$0xff]  ;;  %v1074_v25 = vld [vmem:[#allocation4 + $0x178] sm:$0xff]  ;;  %v1071_v26 = vld [vmem:[#allocation4 + $0x160] sm:$0xff] }
  0xe1   : > { %871 = vmatpush1.msra.mxu0 %v654_v36  ;;  %942 = vmatpush1.msra.mxu1 %v656_v37  ;;  %v1073_v27 = vld [vmem:[#allocation4 + $0x170] sm:$0xff]  ;;  %v1068_v28 = vld [vmem:[#allocation4 + $0x148] sm:$0xff]  ;;  %v1070_v29 = vld [vmem:[#allocation4 + $0x158] sm:$0xff] }
  0xe2   : > { %872 = vmatprep.subr.mxu0 %v647_v38  ;;  %943 = vmatprep.subr.mxu1 %v649_v39  ;;  %v1067_v30 = vld [vmem:[#allocation4 + $0x140] sm:$0xff]  ;;  %v1069_v31 = vld [vmem:[#allocation4 + $0x150] sm:$0xff]  ;;  %v1064_v32 = vld [vmem:[#allocation4 + $0x128] sm:$0xff] }
  0xe3   : > { %873 = vmatpush1.msra.mxu0 %v646_v40  ;;  %944 = vmatpush1.msra.mxu1 %v648_v41  ;;  %v1066_v33 = vld [vmem:[#allocation4 + $0x138] sm:$0xff]  ;;  %v1063_v34 = vld [vmem:[#allocation4 + $0x120] sm:$0xff]  ;;  %v1065_v35 = vld [vmem:[#allocation4 + $0x130] sm:$0xff] }
  0xe4   : > { %874 = vmatprep.subr.mxu0 %v639_v42  ;;  %945 = vmatprep.subr.mxu1 %v641_v43  ;;  %v1060_v36 = vld [vmem:[#allocation4 + $0x108] sm:$0xff]  ;;  %v1062_v37 = vld [vmem:[#allocation4 + $0x118] sm:$0xff]  ;;  %v1059_v38 = vld [vmem:[#allocation4 + $0x100] sm:$0xff] }
  0xe5   : > { %875 = vmatpush1.msra.mxu0 %v638_v44  ;;  %946 = vmatpush1.msra.mxu1 %v640_v45  ;;  %v1061_v39 = vld [vmem:[#allocation4 + $0x110] sm:$0xff]  ;;  %v1056_v40 = vld [vmem:[#allocation4 + $0xe8] sm:$0xff]  ;;  %v1058_v41 = vld [vmem:[#allocation4 + $0xf8] sm:$0xff] }
  0xe6   : > { %876 = vmatprep.subr.mxu0 %v631_v46  ;;  %947 = vmatprep.subr.mxu1 %v633_v47  ;;  %v1055_v42 = vld [vmem:[#allocation4 + $0xe0] sm:$0xff]  ;;  %v1057_v43 = vld [vmem:[#allocation4 + $0xf0] sm:$0xff]  ;;  %v1052_v44 = vld [vmem:[#allocation4 + $0xc8] sm:$0xff] }
  0xe7   : > { %877 = vmatpush1.msra.mxu0 %v630_v48  ;;  %948 = vmatpush1.msra.mxu1 %v632_v49  ;;  %v1054_v45 = vld [vmem:[#allocation4 + $0xd8] sm:$0xff]  ;;  %v1051_v46 = vld [vmem:[#allocation4 + $0xc0] sm:$0xff]  ;;  %v1053_v47 = vld [vmem:[#allocation4 + $0xd0] sm:$0xff] }
  0xe8   : > { %878 = vmatprep.subr.mxu0 %v623_v50  ;;  %949 = vmatprep.subr.mxu1 %v625_v51  ;;  %v1048_v48 = vld [vmem:[#allocation4 + $0xa8] sm:$0xff]  ;;  %v1050_v49 = vld [vmem:[#allocation4 + $0xb8] sm:$0xff]  ;;  %v1047_v50 = vld [vmem:[#allocation4 + $0xa0] sm:$0xff] }
  0xe9   : > { %879 = vmatpush1.msra.mxu0 %v622_v52  ;;  %950 = vmatpush1.msra.mxu1 %v624_v53  ;;  %v1049_v51 = vld [vmem:[#allocation4 + $0xb0] sm:$0xff]  ;;  %v1044_v52 = vld [vmem:[#allocation4 + $0x88] sm:$0xff]  ;;  %v1046_v53 = vld [vmem:[#allocation4 + $0x98] sm:$0xff] }
  0xea   : > { %880 = vmatprep.subr.mxu0 %v615_v54  ;;  %951 = vmatprep.subr.mxu1 %v617_v55  ;;  %v1043_v54 = vld [vmem:[#allocation4 + $0x80] sm:$0xff]  ;;  %v1045_v55 = vld [vmem:[#allocation4 + $0x90] sm:$0xff] }
  0xeb   : > { %881 = vmatpush1.msra.mxu0 %v614_v56  ;;  %952 = vmatpush1.msra.mxu1 %v616_v57  ;;  %v1040_v56 = vld [vmem:[#allocation4 + $0x68] sm:$0xff]  ;;  %v1042_v57 = vld [vmem:[#allocation4 + $0x78] sm:$0xff] }
  0xec   : > { %882 = vmatprep.subr.mxu0 %v607_v58  ;;  %953 = vmatprep.subr.mxu1 %v609_v59  ;;  %v1039_v58 = vld [vmem:[#allocation4 + $0x60] sm:$0xff]  ;;  %v1041_v59 = vld [vmem:[#allocation4 + $0x70] sm:$0xff] }
  0xed   : > { %883 = vmatpush1.msra.mxu0 %v606_v60  ;;  %954 = vmatpush1.msra.mxu1 %v608_v61  ;;  %v1036_v60 = vld [vmem:[#allocation4 + $0x48] sm:$0xff]  ;;  %v1038_v61 = vld [vmem:[#allocation4 + $0x58] sm:$0xff] }
  0xee   : > { %884 = vmatprep.subr.mxu0 %v599_v62  ;;  %955 = vmatprep.subr.mxu1 %v601_v63  ;;  %v578_v62 = vrot.slane %v7143_v5, 1  ;;  %v1035_v63 = vld [vmem:[#allocation4 + $0x40] sm:$0xff] }
  0xef   : > { %885 = vmatpush1.msra.mxu0 %v598_v1  ;;  %956 = vmatpush1.msra.mxu1 %v600_v2  ;;  %v1037_v1 = vld [vmem:[#allocation4 + $0x50] sm:$0xff]  ;;  %v1032_v2 = vld [vmem:[#allocation4 + $0x28] sm:$0xff] }
  0xf0   : > { %886 = vmatprep.subr.mxu0 %v591_v3  ;;  %957 = vmatprep.subr.mxu1 %v593_v4  ;;  %v1034_v3 = vld [vmem:[#allocation4 + $0x38] sm:$0xff]  ;;  %v1031_v4 = vld [vmem:[#allocation4 + $0x20] sm:$0xff] }
  0xf1   : > { %887 = vmatpush1.msra.mxu0 %v590_v6  ;;  %920 = vmatprep.mubr.f32.mxu0 %v6889_v0  ;;  %v1033_v6 = vld [vmem:[#allocation4 + $0x30] sm:$0xff] }
  0xf2   : > { %958 = vmatpush1.msra.mxu1 %v592_v7  ;;  %991 = vmatprep.mubr.f32.mxu1 %v6889_v0  ;;  %v1028_v7 = vld [vmem:[#allocation4 + $0x8] sm:$0xff] }
  0xf3   : > { %921 = vmatmul.mubr.f32.vlgmr.msra.gmra.mxu0 %v7143_v5  ;;  %992 = vmatmul.mubr.f32.vlgmr.msra.gmra.mxu1 %v7143_v5  ;;  %v1027_v5 = vld [vmem:[#allocation4] sm:$0xff] }
  0xf4   : > { %1091 = vmatprep.subr.mxu0 %v1088_v8  ;;  %1162 = vmatprep.subr.mxu1 %v1090_v9  ;;  %v1030_v8 = vld [vmem:[#allocation4 + $0x18] sm:$0xff]  ;;  %v581_v9 = vsel %vm580_vm1, %v578_v62, 0.0 }
  0xf5   : > { %1092 = vmatpush1.msra.mxu0 %v1087_v10  ;;  %1163 = vmatpush1.msra.mxu1 %v1089_v11  ;;  %v1029_v10 = vld [vmem:[#allocation4 + $0x10] sm:$0xff]  ;;  %v582_v11 = vsel %vm575_vm0, %v581_v9, %v578_v62  ;;  %v1550_v62 = vld [vmem:[#allocation7 + $0x8c0] sm:$0xff] }
  0xf6   : > { %1093 = vmatprep.subr.mxu0 %v1084_v12  ;;  %1164 = vmatprep.subr.mxu1 %v1086_v13  ;;  %v1391_v12 = vld [vmem:[#allocation7 + $0x3c8] sm:$0xff] }
  0xf7   : > { %1094 = vmatpush1.msra.mxu0 %v1083_v14  ;;  %1165 = vmatpush1.msra.mxu1 %v1085_v15  ;;  %v1647_v13 = vld [vmem:[#allocation7 + $0xbc8] sm:$0xff]  ;;  %v1390_v14 = vld [vmem:[#allocation7 + $0x3c0] sm:$0xff] }
  0xf8   : > { %1095 = vmatprep.subr.mxu0 %v1080_v16  ;;  %1166 = vmatprep.subr.mxu1 %v1082_v17  ;;  %v1646_v15 = vld [vmem:[#allocation7 + $0xbc0] sm:$0xff]  ;;  %v1383_v16 = vld [vmem:[#allocation7 + $0x388] sm:$0xff] }
  0xf9   : > { %1096 = vmatpush1.msra.mxu0 %v1079_v18  ;;  %1167 = vmatpush1.msra.mxu1 %v1081_v19  ;;  %v1639_v17 = vld [vmem:[#allocation7 + $0xb88] sm:$0xff]  ;;  %v1382_v18 = vld [vmem:[#allocation7 + $0x380] sm:$0xff] }
  0xfa   : > { %1097 = vmatprep.subr.mxu0 %v1076_v20  ;;  %1168 = vmatprep.subr.mxu1 %v1078_v21  ;;  %v1638_v19 = vld [vmem:[#allocation7 + $0xb80] sm:$0xff]  ;;  %v1375_v20 = vld [vmem:[#allocation7 + $0x348] sm:$0xff] }
  0xfb   : > { %1098 = vmatpush1.msra.mxu0 %v1075_v22  ;;  %1169 = vmatpush1.msra.mxu1 %v1077_v23  ;;  %v1631_v21 = vld [vmem:[#allocation7 + $0xb48] sm:$0xff]  ;;  %v1374_v22 = vld [vmem:[#allocation7 + $0x340] sm:$0xff] }
  0xfc   : > { %1099 = vmatprep.subr.mxu0 %v1072_v24  ;;  %1170 = vmatprep.subr.mxu1 %v1074_v25  ;;  %v1367_v23 = vld [vmem:[#allocation7 + $0x308] sm:$0xff]  ;;  %v1366_v25 = vld [vmem:[#allocation7 + $0x300] sm:$0xff] }
  0xfd   : > { %1100 = vmatpush1.msra.mxu0 %v1071_v26  ;;  %1171 = vmatpush1.msra.mxu1 %v1073_v27  ;;  %v1623_v24 = vld [vmem:[#allocation7 + $0xb08] sm:$0xff]  ;;  %v1622_v26 = vld [vmem:[#allocation7 + $0xb00] sm:$0xff] }
  0xfe   : > { %1101 = vmatprep.subr.mxu0 %v1068_v28  ;;  %1172 = vmatprep.subr.mxu1 %v1070_v29  ;;  %v1359_v27 = vld [vmem:[#allocation7 + $0x2c8] sm:$0xff]  ;;  %v1358_v29 = vld [vmem:[#allocation7 + $0x2c0] sm:$0xff] }
  0xff   : > { %1102 = vmatpush1.msra.mxu0 %v1067_v30  ;;  %1173 = vmatpush1.msra.mxu1 %v1069_v31  ;;  %v1615_v28 = vld [vmem:[#allocation7 + $0xac8] sm:$0xff]  ;;  %v1614_v30 = vld [vmem:[#allocation7 + $0xac0] sm:$0xff] }
 0x100   : > { %1103 = vmatprep.subr.mxu0 %v1064_v32  ;;  %1174 = vmatprep.subr.mxu1 %v1066_v33  ;;  %v1351_v31 = vld [vmem:[#allocation7 + $0x288] sm:$0xff]  ;;  %v1350_v33 = vld [vmem:[#allocation7 + $0x280] sm:$0xff] }
 0x101   : > { %1104 = vmatpush1.msra.mxu0 %v1063_v34  ;;  %1175 = vmatpush1.msra.mxu1 %v1065_v35  ;;  %v1607_v32 = vld [vmem:[#allocation7 + $0xa88] sm:$0xff]  ;;  %v1606_v34 = vld [vmem:[#allocation7 + $0xa80] sm:$0xff] }
 0x102   : > { %1105 = vmatprep.subr.mxu0 %v1060_v36  ;;  %1176 = vmatprep.subr.mxu1 %v1062_v37  ;;  %v1343_v35 = vld [vmem:[#allocation7 + $0x248] sm:$0xff]  ;;  %v1342_v37 = vld [vmem:[#allocation7 + $0x240] sm:$0xff] }
 0x103   : > { %1106 = vmatpush1.msra.mxu0 %v1059_v38  ;;  %1177 = vmatpush1.msra.mxu1 %v1061_v39  ;;  %v1599_v36 = vld [vmem:[#allocation7 + $0xa48] sm:$0xff]  ;;  %v1598_v38 = vld [vmem:[#allocation7 + $0xa40] sm:$0xff] }
 0x104   : > { %1107 = vmatprep.subr.mxu0 %v1056_v40  ;;  %1178 = vmatprep.subr.mxu1 %v1058_v41  ;;  %v1335_v39 = vld [vmem:[#allocation7 + $0x208] sm:$0xff]  ;;  %v1334_v41 = vld [vmem:[#allocation7 + $0x200] sm:$0xff] }
 0x105   : > { %1108 = vmatpush1.msra.mxu0 %v1055_v42  ;;  %1179 = vmatpush1.msra.mxu1 %v1057_v43  ;;  %v1591_v40 = vld [vmem:[#allocation7 + $0xa08] sm:$0xff]  ;;  %v1590_v42 = vld [vmem:[#allocation7 + $0xa00] sm:$0xff] }
 0x106   : > { %1109 = vmatprep.subr.mxu0 %v1052_v44  ;;  %1180 = vmatprep.subr.mxu1 %v1054_v45  ;;  %v1327_v43 = vld [vmem:[#allocation7 + $0x1c8] sm:$0xff]  ;;  %v1326_v45 = vld [vmem:[#allocation7 + $0x1c0] sm:$0xff] }
 0x107   : > { %1110 = vmatpush1.msra.mxu0 %v1051_v46  ;;  %1181 = vmatpush1.msra.mxu1 %v1053_v47  ;;  %v1583_v44 = vld [vmem:[#allocation7 + $0x9c8] sm:$0xff]  ;;  %v1582_v46 = vld [vmem:[#allocation7 + $0x9c0] sm:$0xff] }
 0x108   : > { %1111 = vmatprep.subr.mxu0 %v1048_v48  ;;  %1182 = vmatprep.subr.mxu1 %v1050_v49  ;;  %v1319_v47 = vld [vmem:[#allocation7 + $0x188] sm:$0xff]  ;;  %v1318_v49 = vld [vmem:[#allocation7 + $0x180] sm:$0xff] }
 0x109   : > { %1112 = vmatpush1.msra.mxu0 %v1047_v50  ;;  %1183 = vmatpush1.msra.mxu1 %v1049_v51  ;;  %v1575_v48 = vld [vmem:[#allocation7 + $0x988] sm:$0xff]  ;;  %v1574_v50 = vld [vmem:[#allocation7 + $0x980] sm:$0xff] }
 0x10a   : > { %1113 = vmatprep.subr.mxu0 %v1044_v52  ;;  %1184 = vmatprep.subr.mxu1 %v1046_v53  ;;  %v1311_v51 = vld [vmem:[#allocation7 + $0x148] sm:$0xff]  ;;  %v1310_v53 = vld [vmem:[#allocation7 + $0x140] sm:$0xff] }
 0x10b   : > { %1114 = vmatpush1.msra.mxu0 %v1043_v54  ;;  %1185 = vmatpush1.msra.mxu1 %v1045_v55  ;;  %v1567_v52 = vld [vmem:[#allocation7 + $0x948] sm:$0xff]  ;;  %v1566_v54 = vld [vmem:[#allocation7 + $0x940] sm:$0xff] }
 0x10c   : > { %1115 = vmatprep.subr.mxu0 %v1040_v56  ;;  %1186 = vmatprep.subr.mxu1 %v1042_v57  ;;  %v1303_v55 = vld [vmem:[#allocation7 + $0x108] sm:$0xff]  ;;  %v1302_v57 = vld [vmem:[#allocation7 + $0x100] sm:$0xff] }
 0x10d   : > { %1116 = vmatpush1.msra.mxu0 %v1039_v58  ;;  %1187 = vmatpush1.msra.mxu1 %v1041_v59  ;;  %v1559_v56 = vld [vmem:[#allocation7 + $0x908] sm:$0xff]  ;;  %v1558_v58 = vld [vmem:[#allocation7 + $0x900] sm:$0xff] }
 0x10e   : > { %1117 = vmatprep.subr.mxu0 %v1036_v60  ;;  %1188 = vmatprep.subr.mxu1 %v1038_v61  ;;  %v1295_v59 = vld [vmem:[#allocation7 + $0xc8] sm:$0xff]  ;;  %v1294_v61 = vld [vmem:[#allocation7 + $0xc0] sm:$0xff] }
 0x10f   : > { %1118 = vmatpush1.msra.mxu0 %v1035_v63  ;;  %1189 = vmatpush1.msra.mxu1 %v1037_v1  ;;  %v1551_v60 = vld [vmem:[#allocation7 + $0x8c8] sm:$0xff] }
 0x110   : > { %1119 = vmatprep.subr.mxu0 %v1032_v2  ;;  %1190 = vmatprep.subr.mxu1 %v1034_v3  ;;  %v1287_v63 = vld [vmem:[#allocation7 + $0x88] sm:$0xff]  ;;  %v1286_v2 = vld [vmem:[#allocation7 + $0x80] sm:$0xff] }
 0x111   : > { %1120 = vmatpush1.msra.mxu0 %v1031_v4  ;;  %1191 = vmatpush1.msra.mxu1 %v1033_v6  ;;  %v1543_v1 = vld [vmem:[#allocation7 + $0x888] sm:$0xff]  ;;  %v1542_v3 = vld [vmem:[#allocation7 + $0x880] sm:$0xff] }
 0x112   : > { %1121 = vmatprep.subr.mxu0 %v1028_v7  ;;  %1192 = vmatprep.subr.mxu1 %v1030_v8  ;;  %v1279_v4 = vld [vmem:[#allocation7 + $0x48] sm:$0xff]  ;;  %v1278_v7 = vld [vmem:[#allocation7 + $0x40] sm:$0xff] }
 0x113   : > { %1122 = vmatpush1.msra.mxu0 %v1027_v5  ;;  %1155 = vmatprep.mubr.f32.mxu0 %v6889_v0  ;;  %v1535_v6 = vld [vmem:[#allocation7 + $0x848] sm:$0xff]  ;;  %v1534_v8 = vld [vmem:[#allocation7 + $0x840] sm:$0xff] }
 0x114   : > { %1193 = vmatpush1.msra.mxu1 %v1029_v10  ;;  %1226 = vmatprep.mubr.f32.mxu1 %v6889_v0  ;;  %v1630_v0 = vld [vmem:[#allocation7 + $0xb40] sm:$0xff]  ;;  %v1271_v9 = vld [vmem:[#allocation7 + $0x8] sm:$0xff] }
 0x115   : > { %6067 = vmatmul.mubr.msk.f32.vlgmr.msra.gmra.mxu0 %vm583_vm2, %v582_v11  ;;  %6068 = vmatmul.mubr.msk.f32.vlgmr.msra.gmra.mxu1 %vm583_vm2, %v582_v11  ;;  %v1527_v5 = vld [vmem:[#allocation7 + $0x808] sm:$0xff]  ;;  %v1270_v10 = vld [vmem:[#allocation7] sm:$0xff] }
 0x116   : > { %1782 = vmatprep.subr.mxu0 %v1391_v12  ;;  %1859 = vmatprep.subr.mxu1 %v1647_v13  ;;  %v1526_v11 = vld [vmem:[#allocation7 + $0x800] sm:$0xff]  ;;  %v1519_v12 = vld [vmem:[#allocation7 + $0x7c8] sm:$0xff] }
 0x117   : > { %1783 = vmatpush1.msra.mxu0 %v1390_v14  ;;  %1860 = vmatpush1.msra.mxu1 %v1646_v15  ;;  %v1775_v13 = vld [vmem:[#allocation7 + $0xfc8] sm:$0xff]  ;;  %v1518_v14 = vld [vmem:[#allocation7 + $0x7c0] sm:$0xff] }
 0x118   : > { %1784 = vmatprep.subr.mxu0 %v1383_v16  ;;  %1861 = vmatprep.subr.mxu1 %v1639_v17  ;;  %v1774_v15 = vld [vmem:[#allocation7 + $0xfc0] sm:$0xff]  ;;  %v1511_v16 = vld [vmem:[#allocation7 + $0x788] sm:$0xff] }
 0x119   : > { %1785 = vmatpush1.msra.mxu0 %v1382_v18  ;;  %1862 = vmatpush1.msra.mxu1 %v1638_v19  ;;  %v1767_v17 = vld [vmem:[#allocation7 + $0xf88] sm:$0xff]  ;;  %v1510_v18 = vld [vmem:[#allocation7 + $0x780] sm:$0xff] }
 0x11a   : > { %1786 = vmatprep.subr.mxu0 %v1375_v20  ;;  %1863 = vmatprep.subr.mxu1 %v1631_v21  ;;  %v1766_v19 = vld [vmem:[#allocation7 + $0xf80] sm:$0xff]  ;;  %v1503_v20 = vld [vmem:[#allocation7 + $0x748] sm:$0xff] }
 0x11b   : > { %1787 = vmatpush1.msra.mxu0 %v1374_v22  ;;  %1864 = vmatpush1.msra.mxu1 %v1630_v0  ;;  %v1759_v21 = vld [vmem:[#allocation7 + $0xf48] sm:$0xff]  ;;  %v1502_v22 = vld [vmem:[#allocation7 + $0x740] sm:$0xff] }
 0x11c   : > { %1788 = vmatprep.subr.mxu0 %v1367_v23  ;;  %1865 = vmatprep.subr.mxu1 %v1623_v24  ;;  %v1758_v0 = vld [vmem:[#allocation7 + $0xf40] sm:$0xff]  ;;  %v1495_v23 = vld [vmem:[#allocation7 + $0x708] sm:$0xff] }
 0x11d   : > { %1789 = vmatpush1.msra.mxu0 %v1366_v25  ;;  %1866 = vmatpush1.msra.mxu1 %v1622_v26  ;;  %v1751_v24 = vld [vmem:[#allocation7 + $0xf08] sm:$0xff]  ;;  %v1494_v25 = vld [vmem:[#allocation7 + $0x700] sm:$0xff] }
 0x11e   : > { %1790 = vmatprep.subr.mxu0 %v1359_v27  ;;  %1867 = vmatprep.subr.mxu1 %v1615_v28  ;;  %v1750_v26 = vld [vmem:[#allocation7 + $0xf00] sm:$0xff]  ;;  %v1487_v27 = vld [vmem:[#allocation7 + $0x6c8] sm:$0xff] }
 0x11f   : > { %1791 = vmatpush1.msra.mxu0 %v1358_v29  ;;  %1868 = vmatpush1.msra.mxu1 %v1614_v30  ;;  %v1743_v28 = vld [vmem:[#allocation7 + $0xec8] sm:$0xff]  ;;  %v1486_v29 = vld [vmem:[#allocation7 + $0x6c0] sm:$0xff] }
 0x120   : > { %1792 = vmatprep.subr.mxu0 %v1351_v31  ;;  %1869 = vmatprep.subr.mxu1 %v1607_v32  ;;  %v1742_v30 = vld [vmem:[#allocation7 + $0xec0] sm:$0xff]  ;;  %v1479_v31 = vld [vmem:[#allocation7 + $0x688] sm:$0xff] }
 0x121   : > { %1793 = vmatpush1.msra.mxu0 %v1350_v33  ;;  %1870 = vmatpush1.msra.mxu1 %v1606_v34  ;;  %v1735_v32 = vld [vmem:[#allocation7 + $0xe88] sm:$0xff]  ;;  %v1478_v33 = vld [vmem:[#allocation7 + $0x680] sm:$0xff] }
 0x122   : > { %1794 = vmatprep.subr.mxu0 %v1343_v35  ;;  %1871 = vmatprep.subr.mxu1 %v1599_v36  ;;  %v1734_v34 = vld [vmem:[#allocation7 + $0xe80] sm:$0xff]  ;;  %v1471_v35 = vld [vmem:[#allocation7 + $0x648] sm:$0xff] }
 0x123   : > { %1795 = vmatpush1.msra.mxu0 %v1342_v37  ;;  %1872 = vmatpush1.msra.mxu1 %v1598_v38  ;;  %v1727_v36 = vld [vmem:[#allocation7 + $0xe48] sm:$0xff]  ;;  %v1470_v37 = vld [vmem:[#allocation7 + $0x640] sm:$0xff] }
 0x124   : > { %1796 = vmatprep.subr.mxu0 %v1335_v39  ;;  %1873 = vmatprep.subr.mxu1 %v1591_v40  ;;  %v1726_v38 = vld [vmem:[#allocation7 + $0xe40] sm:$0xff]  ;;  %v1463_v39 = vld [vmem:[#allocation7 + $0x608] sm:$0xff] }
 0x125   : > { %1797 = vmatpush1.msra.mxu0 %v1334_v41  ;;  %1874 = vmatpush1.msra.mxu1 %v1590_v42  ;;  %v1719_v40 = vld [vmem:[#allocation7 + $0xe08] sm:$0xff]  ;;  %v1462_v41 = vld [vmem:[#allocation7 + $0x600] sm:$0xff] }
 0x126   : > { %1798 = vmatprep.subr.mxu0 %v1327_v43  ;;  %1875 = vmatprep.subr.mxu1 %v1583_v44  ;;  %v1718_v42 = vld [vmem:[#allocation7 + $0xe00] sm:$0xff]  ;;  %v1455_v43 = vld [vmem:[#allocation7 + $0x5c8] sm:$0xff] }
 0x127   : > { %1799 = vmatpush1.msra.mxu0 %v1326_v45  ;;  %1876 = vmatpush1.msra.mxu1 %v1582_v46  ;;  %v1711_v44 = vld [vmem:[#allocation7 + $0xdc8] sm:$0xff]  ;;  %v1454_v45 = vld [vmem:[#allocation7 + $0x5c0] sm:$0xff] }
 0x128   : > { %1800 = vmatprep.subr.mxu0 %v1319_v47  ;;  %1877 = vmatprep.subr.mxu1 %v1575_v48  ;;  %v1710_v46 = vld [vmem:[#allocation7 + $0xdc0] sm:$0xff]  ;;  %v1447_v47 = vld [vmem:[#allocation7 + $0x588] sm:$0xff] }
 0x129   : > { %1801 = vmatpush1.msra.mxu0 %v1318_v49  ;;  %1878 = vmatpush1.msra.mxu1 %v1574_v50  ;;  %v1703_v48 = vld [vmem:[#allocation7 + $0xd88] sm:$0xff]  ;;  %v1446_v49 = vld [vmem:[#allocation7 + $0x580] sm:$0xff] }
 0x12a   : > { %1802 = vmatprep.subr.mxu0 %v1311_v51  ;;  %1879 = vmatprep.subr.mxu1 %v1567_v52  ;;  %v1702_v50 = vld [vmem:[#allocation7 + $0xd80] sm:$0xff]  ;;  %v1439_v51 = vld [vmem:[#allocation7 + $0x548] sm:$0xff] }
 0x12b   : > { %1803 = vmatpush1.msra.mxu0 %v1310_v53  ;;  %1880 = vmatpush1.msra.mxu1 %v1566_v54  ;;  %v1695_v52 = vld [vmem:[#allocation7 + $0xd48] sm:$0xff]  ;;  %v1438_v53 = vld [vmem:[#allocation7 + $0x540] sm:$0xff] }
 0x12c   : > { %1804 = vmatprep.subr.mxu0 %v1303_v55  ;;  %1881 = vmatprep.subr.mxu1 %v1559_v56  ;;  %v1694_v54 = vld [vmem:[#allocation7 + $0xd40] sm:$0xff]  ;;  %v1431_v55 = vld [vmem:[#allocation7 + $0x508] sm:$0xff] }
 0x12d   : > { %1805 = vmatpush1.msra.mxu0 %v1302_v57  ;;  %1882 = vmatpush1.msra.mxu1 %v1558_v58  ;;  %v1687_v56 = vld [vmem:[#allocation7 + $0xd08] sm:$0xff]  ;;  %v1430_v57 = vld [vmem:[#allocation7 + $0x500] sm:$0xff] }
 0x12e   : > { %1806 = vmatprep.subr.mxu0 %v1295_v59  ;;  %1883 = vmatprep.subr.mxu1 %v1551_v60  ;;  %v1686_v58 = vld [vmem:[#allocation7 + $0xd00] sm:$0xff]  ;;  %v1423_v59 = vld [vmem:[#allocation7 + $0x4c8] sm:$0xff] }
 0x12f   : > { %1807 = vmatpush1.msra.mxu0 %v1294_v61  ;;  %1884 = vmatpush1.msra.mxu1 %v1550_v62  ;;  %v1679_v60 = vld [vmem:[#allocation7 + $0xcc8] sm:$0xff]  ;;  %v1422_v61 = vld [vmem:[#allocation7 + $0x4c0] sm:$0xff] }
 0x130   : > { %1808 = vmatprep.subr.mxu0 %v1287_v63  ;;  %1885 = vmatprep.subr.mxu1 %v1543_v1  ;;  %v1678_v62 = vld [vmem:[#allocation7 + $0xcc0] sm:$0xff]  ;;  %v1415_v63 = vld [vmem:[#allocation7 + $0x488] sm:$0xff] }
 0x131   : > { %1809 = vmatpush1.msra.mxu0 %v1286_v2  ;;  %1886 = vmatpush1.msra.mxu1 %v1542_v3  ;;  %v1671_v1 = vld [vmem:[#allocation7 + $0xc88] sm:$0xff]  ;;  %v1414_v2 = vld [vmem:[#allocation7 + $0x480] sm:$0xff] }
 0x132   : > { %1810 = vmatprep.subr.mxu0 %v1279_v4  ;;  %1887 = vmatprep.subr.mxu1 %v1535_v6  ;;  %v1670_v3 = vld [vmem:[#allocation7 + $0xc80] sm:$0xff]  ;;  %v1407_v4 = vld [vmem:[#allocation7 + $0x448] sm:$0xff] }
 0x133   : > { %1811 = vmatpush1.msra.mxu0 %v1278_v7  ;;  %1888 = vmatpush1.msra.mxu1 %v1534_v8  ;;  %v1663_v6 = vld [vmem:[#allocation7 + $0xc48] sm:$0xff]  ;;  %v1406_v7 = vld [vmem:[#allocation7 + $0x440] sm:$0xff] }
 0x134   : > { %1812 = vmatprep.subr.mxu0 %v1271_v9  ;;  %1889 = vmatprep.subr.mxu1 %v1527_v5  ;;  %v1662_v8 = vld [vmem:[#allocation7 + $0xc40] sm:$0xff]  ;;  %v1399_v9 = vld [vmem:[#allocation7 + $0x408] sm:$0xff] }
 0x135   : > { %1813 = vmatpush1.msra.mxu0 %v1270_v10  ;;  %1890 = vmatpush1.msra.mxu1 %v1526_v11  ;;  %v1655_v5 = vld [vmem:[#allocation7 + $0xc08] sm:$0xff]  ;;  %v1398_v10 = vld [vmem:[#allocation7 + $0x400] sm:$0xff] }
 0x136   : > { %1814 = vmatprep.subr.mxu0 %v1519_v12  ;;  %1891 = vmatprep.subr.mxu1 %v1775_v13  ;;  %v1654_v11 = vld [vmem:[#allocation7 + $0xc00] sm:$0xff]  ;;  %v1393_v12 = vld [vmem:[#allocation7 + $0x3d8] sm:$0xff] }
 0x137   : > { %1815 = vmatpush2.msra.mxu0 %v1518_v14  ;;  %1892 = vmatpush2.msra.mxu1 %v1774_v15  ;;  %v1649_v13 = vld [vmem:[#allocation7 + $0xbd8] sm:$0xff]  ;;  %v999_v14 = vlaneseq }
 0x138   : > { %1816 = vmatprep.subr.mxu0 %v1511_v16  ;;  %1893 = vmatprep.subr.mxu1 %v1767_v17 }
 0x139   : > { %1817 = vmatpush2.msra.mxu0 %v1510_v18  ;;  %1894 = vmatpush2.msra.mxu1 %v1766_v19  ;;  %v1000_v15 = vshrl.u32 %v999_v14, 7  ;;  %v585_v18 = vld [vmem:[#allocation6] sm:$0xf]  ;;  %v1568_v14 = vld [vmem:[#allocation7 + $0x950] sm:$0xff] }
 0x13a   : > { %1818 = vmatprep.subr.mxu0 %v1503_v20  ;;  %1895 = vmatprep.subr.mxu1 %v1759_v21 }
 0x13b   : > { %1819 = vmatpush2.msra.mxu0 %v1502_v22  ;;  %1896 = vmatpush2.msra.mxu1 %v1758_v0  ;;  %v7158_v16 = vsub.s32 0, %v1000_v15  ;;  %v7160_v17 = vsub.s32 2, %v1000_v15  ;;  %v7162_v19 = vsub.s32 1, %v1000_v15  ;;  %v7164_v20 = vsub.s32 3, %v1000_v15  ;;  %v1305_v15 = vld [vmem:[#allocation7 + $0x118] sm:$0xff] }
 0x13c   : > { %1820 = vmatprep.subr.mxu0 %v1495_v23  ;;  %1897 = vmatprep.subr.mxu1 %v1751_v24 }
 0x13d   : > { %1821 = vmatpush2.msra.mxu0 %v1494_v25  ;;  %1898 = vmatpush2.msra.mxu1 %v1750_v26  ;;  %v7167_v21 = vrot.slane %v585_v18, %v7158_v16  ;;  %v7170_v22 = vrot.slane %v585_v18, %v7160_v17  ;;  %v7173_v0 = vrot.slane %v585_v18, %v7162_v19 }
 0x13e   : > { %1822 = vmatprep.subr.mxu0 %v1487_v27  ;;  %1899 = vmatprep.subr.mxu1 %v1743_v28  ;;  %v7176_v23 = vrot.slane %v585_v18, %v7164_v20  ;;  %v1561_v18 = vld [vmem:[#allocation7 + $0x918] sm:$0xff] }
 0x13f   : > { %1823 = vmatpush2.msra.mxu0 %v1486_v29  ;;  %1900 = vmatpush2.msra.mxu1 %v1742_v30 }
 0x140   : > { %1824 = vmatprep.subr.mxu0 %v1479_v31  ;;  %1901 = vmatprep.subr.mxu1 %v1735_v32 }
 0x141   : > { %1825 = vmatpush2.msra.mxu0 %v1478_v33  ;;  %1902 = vmatpush2.msra.mxu1 %v1734_v34 }
 0x142   : > { %1826 = vmatprep.subr.mxu0 %v1471_v35  ;;  %1903 = vmatprep.subr.mxu1 %v1727_v36  ;;  %v1392_v36 = vld [vmem:[#allocation7 + $0x3d0] sm:$0xff] }
 0x143   : > { %1827 = vmatpush2.msra.mxu0 %v1470_v37  ;;  %1904 = vmatpush2.msra.mxu1 %v1726_v38  ;;  %v1648_v37 = vld [vmem:[#allocation7 + $0xbd0] sm:$0xff]  ;;  %v1385_v38 = vld [vmem:[#allocation7 + $0x398] sm:$0xff] }
 0x144   : > { %1828 = vmatprep.subr.mxu0 %v1463_v39  ;;  %1905 = vmatprep.subr.mxu1 %v1719_v40  ;;  %v1641_v39 = vld [vmem:[#allocation7 + $0xb98] sm:$0xff]  ;;  %v1384_v40 = vld [vmem:[#allocation7 + $0x390] sm:$0xff] }
 0x145   : > { %1829 = vmatpush2.msra.mxu0 %v1462_v41  ;;  %1906 = vmatpush2.msra.mxu1 %v1718_v42  ;;  %v1640_v41 = vld [vmem:[#allocation7 + $0xb90] sm:$0xff]  ;;  %v1377_v42 = vld [vmem:[#allocation7 + $0x358] sm:$0xff] }
 0x146   : > { %1830 = vmatprep.subr.mxu0 %v1455_v43  ;;  %1907 = vmatprep.subr.mxu1 %v1711_v44  ;;  %v1633_v43 = vld [vmem:[#allocation7 + $0xb58] sm:$0xff]  ;;  %v1376_v44 = vld [vmem:[#allocation7 + $0x350] sm:$0xff] }
 0x147   : > { %1831 = vmatpush2.msra.mxu0 %v1454_v45  ;;  %1908 = vmatpush2.msra.mxu1 %v1710_v46  ;;  %v1632_v45 = vld [vmem:[#allocation7 + $0xb50] sm:$0xff]  ;;  %v1369_v46 = vld [vmem:[#allocation7 + $0x318] sm:$0xff] }
 0x148   : > { %1832 = vmatprep.subr.mxu0 %v1447_v47  ;;  %1909 = vmatprep.subr.mxu1 %v1703_v48  ;;  %v1625_v47 = vld [vmem:[#allocation7 + $0xb18] sm:$0xff]  ;;  %v1368_v48 = vld [vmem:[#allocation7 + $0x310] sm:$0xff] }
 0x149   : > { %1833 = vmatpush2.msra.mxu0 %v1446_v49  ;;  %1910 = vmatpush2.msra.mxu1 %v1702_v50  ;;  %v1624_v49 = vld [vmem:[#allocation7 + $0xb10] sm:$0xff]  ;;  %v1361_v50 = vld [vmem:[#allocation7 + $0x2d8] sm:$0xff] }
 0x14a   : > { %1834 = vmatprep.subr.mxu0 %v1439_v51  ;;  %1911 = vmatprep.subr.mxu1 %v1695_v52  ;;  %v1617_v51 = vld [vmem:[#allocation7 + $0xad8] sm:$0xff]  ;;  %v1360_v52 = vld [vmem:[#allocation7 + $0x2d0] sm:$0xff] }
 0x14b   : > { %1835 = vmatpush2.msra.mxu0 %v1438_v53  ;;  %1912 = vmatpush2.msra.mxu1 %v1694_v54  ;;  %v1616_v53 = vld [vmem:[#allocation7 + $0xad0] sm:$0xff]  ;;  %v1353_v54 = vld [vmem:[#allocation7 + $0x298] sm:$0xff] }
 0x14c   : > { %1836 = vmatprep.subr.mxu0 %v1431_v55  ;;  %1913 = vmatprep.subr.mxu1 %v1687_v56  ;;  %v1609_v55 = vld [vmem:[#allocation7 + $0xa98] sm:$0xff]  ;;  %v1352_v56 = vld [vmem:[#allocation7 + $0x290] sm:$0xff] }
 0x14d   : > { %1837 = vmatpush2.msra.mxu0 %v1430_v57  ;;  %1914 = vmatpush2.msra.mxu1 %v1686_v58  ;;  %v1608_v57 = vld [vmem:[#allocation7 + $0xa90] sm:$0xff]  ;;  %v1345_v58 = vld [vmem:[#allocation7 + $0x258] sm:$0xff] }
 0x14e   : > { %1838 = vmatprep.subr.mxu0 %v1423_v59  ;;  %1915 = vmatprep.subr.mxu1 %v1679_v60  ;;  %v1601_v59 = vld [vmem:[#allocation7 + $0xa58] sm:$0xff]  ;;  %v1344_v60 = vld [vmem:[#allocation7 + $0x250] sm:$0xff] }
 0x14f   : > { %1839 = vmatpush2.msra.mxu0 %v1422_v61  ;;  %1916 = vmatpush2.msra.mxu1 %v1678_v62  ;;  %v1600_v61 = vld [vmem:[#allocation7 + $0xa50] sm:$0xff]  ;;  %v1337_v62 = vld [vmem:[#allocation7 + $0x218] sm:$0xff] }
 0x150   : > { %1840 = vmatprep.subr.mxu0 %v1415_v63  ;;  %1917 = vmatprep.subr.mxu1 %v1671_v1  ;;  %v1593_v63 = vld [vmem:[#allocation7 + $0xa18] sm:$0xff]  ;;  %v1336_v1 = vld [vmem:[#allocation7 + $0x210] sm:$0xff] }
 0x151   : > { %1841 = vmatpush2.msra.mxu0 %v1414_v2  ;;  %1918 = vmatpush2.msra.mxu1 %v1670_v3  ;;  %v1592_v2 = vld [vmem:[#allocation7 + $0xa10] sm:$0xff]  ;;  %v1329_v3 = vld [vmem:[#allocation7 + $0x1d8] sm:$0xff] }
 0x152   : > { %1842 = vmatprep.subr.mxu0 %v1407_v4  ;;  %1919 = vmatprep.subr.mxu1 %v1663_v6  ;;  %v1585_v4 = vld [vmem:[#allocation7 + $0x9d8] sm:$0xff]  ;;  %v1328_v6 = vld [vmem:[#allocation7 + $0x1d0] sm:$0xff] }
 0x153   : > { %1843 = vmatpush2.msra.mxu0 %v1406_v7  ;;  %1920 = vmatpush2.msra.mxu1 %v1662_v8  ;;  %v1584_v7 = vld [vmem:[#allocation7 + $0x9d0] sm:$0xff]  ;;  %v1321_v8 = vld [vmem:[#allocation7 + $0x198] sm:$0xff] }
 0x154   : > { %1844 = vmatprep.subr.mxu0 %v1399_v9  ;;  %1921 = vmatprep.subr.mxu1 %v1655_v5  ;;  %v1577_v9 = vld [vmem:[#allocation7 + $0x998] sm:$0xff]  ;;  %v1320_v5 = vld [vmem:[#allocation7 + $0x190] sm:$0xff] }
 0x155   : > { %1845 = vmatpush2.msra.mxu0 %v1398_v10  ;;  %1922 = vmatpush2.msra.mxu1 %v1654_v11  ;;  %v1576_v10 = vld [vmem:[#allocation7 + $0x990] sm:$0xff]  ;;  %v1313_v11 = vld [vmem:[#allocation7 + $0x158] sm:$0xff] }
 0x156   : > { %1936 = vmatprep.subr.mxu0 %v1393_v12  ;;  %2013 = vmatprep.subr.mxu1 %v1649_v13  ;;  %v1569_v12 = vld [vmem:[#allocation7 + $0x958] sm:$0xff]  ;;  %v1312_v13 = vld [vmem:[#allocation7 + $0x150] sm:$0xff] }
 0x191   : > { %v780_v24 = vpop.f32.mrf.mxu0  ;;  %v851_v25 = vpop.f32.mrf.mxu1 }
 0x192   : > { %v1019_v26 = vadd.f32 %v7167_v21, %v780_v24  ;;  %v1021_v27 = vadd.f32 %v7170_v22, %v851_v25  ;;  %v1304_v24 = vld [vmem:[#allocation7 + $0x110] sm:$0xff] }
 0x193   : > { %v782_v28 = vpop.f32.mrf.mxu0  ;;  %v853_v29 = vpop.f32.mrf.mxu1  ;;  %v1560_v25 = vld [vmem:[#allocation7 + $0x910] sm:$0xff] }
 0x194   : > { %v1020_v30 = vadd.f32 %v7173_v0, %v782_v28  ;;  %v1022_v31 = vadd.f32 %v7176_v23, %v853_v29  ;;  %v7186_v34 = vmax.f32 %v1019_v26, 0.0  ;;  %v7188_v35 = vmax.f32 %v1021_v27, 0.0  ;;  %v1297_v26 = vld [vmem:[#allocation7 + $0xd8] sm:$0xff]  ;;  %v1296_v28 = vld [vmem:[#allocation7 + $0xd0] sm:$0xff] }
 0x195   : > { %v1553_v27 = vld [vmem:[#allocation7 + $0x8d8] sm:$0xff]  ;;  %v1552_v29 = vld [vmem:[#allocation7 + $0x8d0] sm:$0xff] }
 0x196   : > { %v7182_v32 = vmax.f32 %v1020_v30, 0.0  ;;  %v7184_v33 = vmax.f32 %v1022_v31, 0.0  ;;  %v1289_v30 = vld [vmem:[#allocation7 + $0x98] sm:$0xff] }
 0x197   : > { %v1545_v31 = vld [vmem:[#allocation7 + $0x898] sm:$0xff] }
 0x198   : > { %1846 = vmatprep.mubr.f32.mxu0 %v7182_v32  ;;  %1923 = vmatprep.mubr.f32.mxu1 %v7184_v33 }
 0x199   : > { %1847 = vmatmul.mubr.f32.vlgmr.msra.gmra.mxu0 %v7186_v34  ;;  %1924 = vmatmul.mubr.f32.vlgmr.msra.gmra.mxu1 %v7188_v35 }
 0x19a   : > { %1937 = vmatpush1.msra.mxu0 %v1392_v36  ;;  %2014 = vmatpush1.msra.mxu1 %v1648_v37  ;;  %v1288_v36 = vld [vmem:[#allocation7 + $0x90] sm:$0xff] }
 0x19b   : > { %1938 = vmatprep.subr.mxu0 %v1385_v38  ;;  %2015 = vmatprep.subr.mxu1 %v1641_v39  ;;  %v1544_v37 = vld [vmem:[#allocation7 + $0x890] sm:$0xff]  ;;  %v1281_v38 = vld [vmem:[#allocation7 + $0x58] sm:$0xff] }
 0x19c   : > { %1939 = vmatpush1.msra.mxu0 %v1384_v40  ;;  %2016 = vmatpush1.msra.mxu1 %v1640_v41  ;;  %v1537_v39 = vld [vmem:[#allocation7 + $0x858] sm:$0xff]  ;;  %v1280_v40 = vld [vmem:[#allocation7 + $0x50] sm:$0xff] }
 0x19d   : > { %1940 = vmatprep.subr.mxu0 %v1377_v42  ;;  %2017 = vmatprep.subr.mxu1 %v1633_v43  ;;  %v1536_v41 = vld [vmem:[#allocation7 + $0x850] sm:$0xff]  ;;  %v1273_v42 = vld [vmem:[#allocation7 + $0x18] sm:$0xff] }
 0x19e   : > { %1941 = vmatpush1.msra.mxu0 %v1376_v44  ;;  %2018 = vmatpush1.msra.mxu1 %v1632_v45  ;;  %v1529_v43 = vld [vmem:[#allocation7 + $0x818] sm:$0xff]  ;;  %v1272_v44 = vld [vmem:[#allocation7 + $0x10] sm:$0xff] }
 0x19f   : > { %1942 = vmatprep.subr.mxu0 %v1369_v46  ;;  %2019 = vmatprep.subr.mxu1 %v1625_v47  ;;  %v1528_v45 = vld [vmem:[#allocation7 + $0x810] sm:$0xff]  ;;  %v1521_v46 = vld [vmem:[#allocation7 + $0x7d8] sm:$0xff] }
 0x1a0   : > { %1943 = vmatpush1.msra.mxu0 %v1368_v48  ;;  %2020 = vmatpush1.msra.mxu1 %v1624_v49  ;;  %v1777_v47 = vld [vmem:[#allocation7 + $0xfd8] sm:$0xff]  ;;  %v1520_v48 = vld [vmem:[#allocation7 + $0x7d0] sm:$0xff] }
 0x1a1   : > { %1944 = vmatprep.subr.mxu0 %v1361_v50  ;;  %2021 = vmatprep.subr.mxu1 %v1617_v51  ;;  %v1776_v49 = vld [vmem:[#allocation7 + $0xfd0] sm:$0xff]  ;;  %v1513_v50 = vld [vmem:[#allocation7 + $0x798] sm:$0xff] }
 0x1a2   : > { %1945 = vmatpush1.msra.mxu0 %v1360_v52  ;;  %2022 = vmatpush1.msra.mxu1 %v1616_v53  ;;  %v1769_v51 = vld [vmem:[#allocation7 + $0xf98] sm:$0xff]  ;;  %v1512_v52 = vld [vmem:[#allocation7 + $0x790] sm:$0xff] }
 0x1a3   : > { %1946 = vmatprep.subr.mxu0 %v1353_v54  ;;  %2023 = vmatprep.subr.mxu1 %v1609_v55  ;;  %v1768_v53 = vld [vmem:[#allocation7 + $0xf90] sm:$0xff]  ;;  %v1505_v54 = vld [vmem:[#allocation7 + $0x758] sm:$0xff] }
 0x1a4   : > { %1947 = vmatpush1.msra.mxu0 %v1352_v56  ;;  %2024 = vmatpush1.msra.mxu1 %v1608_v57  ;;  %v1761_v55 = vld [vmem:[#allocation7 + $0xf58] sm:$0xff]  ;;  %v1504_v56 = vld [vmem:[#allocation7 + $0x750] sm:$0xff] }
 0x1a5   : > { %1948 = vmatprep.subr.mxu0 %v1345_v58  ;;  %2025 = vmatprep.subr.mxu1 %v1601_v59  ;;  %v1760_v57 = vld [vmem:[#allocation7 + $0xf50] sm:$0xff]  ;;  %v1497_v58 = vld [vmem:[#allocation7 + $0x718] sm:$0xff] }
 0x1a6   : > { %1949 = vmatpush1.msra.mxu0 %v1344_v60  ;;  %2026 = vmatpush1.msra.mxu1 %v1600_v61  ;;  %v1753_v59 = vld [vmem:[#allocation7 + $0xf18] sm:$0xff]  ;;  %v1496_v60 = vld [vmem:[#allocation7 + $0x710] sm:$0xff] }
 0x1a7   : > { %1950 = vmatprep.subr.mxu0 %v1337_v62  ;;  %2027 = vmatprep.subr.mxu1 %v1593_v63  ;;  %v1752_v61 = vld [vmem:[#allocation7 + $0xf10] sm:$0xff]  ;;  %v1489_v62 = vld [vmem:[#allocation7 + $0x6d8] sm:$0xff] }
 0x1a8   : > { %1951 = vmatpush1.msra.mxu0 %v1336_v1  ;;  %2028 = vmatpush1.msra.mxu1 %v1592_v2  ;;  %v1745_v63 = vld [vmem:[#allocation7 + $0xed8] sm:$0xff]  ;;  %v1488_v1 = vld [vmem:[#allocation7 + $0x6d0] sm:$0xff] }
 0x1a9   : > { %1952 = vmatprep.subr.mxu0 %v1329_v3  ;;  %2029 = vmatprep.subr.mxu1 %v1585_v4  ;;  %v1744_v2 = vld [vmem:[#allocation7 + $0xed0] sm:$0xff]  ;;  %v1481_v3 = vld [vmem:[#allocation7 + $0x698] sm:$0xff] }
 0x1aa   : > { %1953 = vmatpush1.msra.mxu0 %v1328_v6  ;;  %2030 = vmatpush1.msra.mxu1 %v1584_v7  ;;  %v1737_v4 = vld [vmem:[#allocation7 + $0xe98] sm:$0xff]  ;;  %v1480_v6 = vld [vmem:[#allocation7 + $0x690] sm:$0xff] }
 0x1ab   : > { %1954 = vmatprep.subr.mxu0 %v1321_v8  ;;  %2031 = vmatprep.subr.mxu1 %v1577_v9  ;;  %v1736_v7 = vld [vmem:[#allocation7 + $0xe90] sm:$0xff]  ;;  %v1473_v8 = vld [vmem:[#allocation7 + $0x658] sm:$0xff] }
 0x1ac   : > { %1955 = vmatpush1.msra.mxu0 %v1320_v5  ;;  %2032 = vmatpush1.msra.mxu1 %v1576_v10  ;;  %v1729_v9 = vld [vmem:[#allocation7 + $0xe58] sm:$0xff]  ;;  %v1472_v5 = vld [vmem:[#allocation7 + $0x650] sm:$0xff] }
 0x1ad   : > { %1956 = vmatprep.subr.mxu0 %v1313_v11  ;;  %2033 = vmatprep.subr.mxu1 %v1569_v12  ;;  %v1728_v10 = vld [vmem:[#allocation7 + $0xe50] sm:$0xff]  ;;  %v1465_v11 = vld [vmem:[#allocation7 + $0x618] sm:$0xff] }
 0x1ae   : > { %1957 = vmatpush1.msra.mxu0 %v1312_v13  ;;  %2034 = vmatpush1.msra.mxu1 %v1568_v14  ;;  %v1721_v12 = vld [vmem:[#allocation7 + $0xe18] sm:$0xff]  ;;  %v1464_v13 = vld [vmem:[#allocation7 + $0x610] sm:$0xff] }
 0x1af   : > { %1958 = vmatprep.subr.mxu0 %v1305_v15  ;;  %2035 = vmatprep.subr.mxu1 %v1561_v18  ;;  %v1720_v14 = vld [vmem:[#allocation7 + $0xe10] sm:$0xff]  ;;  %v1457_v15 = vld [vmem:[#allocation7 + $0x5d8] sm:$0xff] }
 0x1b0   : > { %1959 = vmatpush1.msra.mxu0 %v1304_v24  ;;  %2036 = vmatpush1.msra.mxu1 %v1560_v25  ;;  %v1713_v18 = vld [vmem:[#allocation7 + $0xdd8] sm:$0xff]  ;;  %v1456_v24 = vld [vmem:[#allocation7 + $0x5d0] sm:$0xff] }
 0x1b1   : > { %1960 = vmatprep.subr.mxu0 %v1297_v26  ;;  %2037 = vmatprep.subr.mxu1 %v1553_v27  ;;  %v1712_v25 = vld [vmem:[#allocation7 + $0xdd0] sm:$0xff]  ;;  %v1449_v26 = vld [vmem:[#allocation7 + $0x598] sm:$0xff] }
 0x1b2   : > { %1961 = vmatpush1.msra.mxu0 %v1296_v28  ;;  %2038 = vmatpush1.msra.mxu1 %v1552_v29  ;;  %v1705_v27 = vld [vmem:[#allocation7 + $0xd98] sm:$0xff]  ;;  %v1448_v28 = vld [vmem:[#allocation7 + $0x590] sm:$0xff] }
 0x1b3   : > { %1962 = vmatprep.subr.mxu0 %v1289_v30  ;;  %2039 = vmatprep.subr.mxu1 %v1545_v31  ;;  %v1704_v29 = vld [vmem:[#allocation7 + $0xd90] sm:$0xff]  ;;  %v1441_v30 = vld [vmem:[#allocation7 + $0x558] sm:$0xff] }
 0x1b4   : > { %1963 = vmatpush1.msra.mxu0 %v1288_v36  ;;  %2040 = vmatpush1.msra.mxu1 %v1544_v37  ;;  %v1697_v31 = vld [vmem:[#allocation7 + $0xd58] sm:$0xff]  ;;  %v1440_v36 = vld [vmem:[#allocation7 + $0x550] sm:$0xff] }
 0x1b5   : > { %1964 = vmatprep.subr.mxu0 %v1281_v38  ;;  %2041 = vmatprep.subr.mxu1 %v1537_v39  ;;  %v1696_v37 = vld [vmem:[#allocation7 + $0xd50] sm:$0xff]  ;;  %v1433_v38 = vld [vmem:[#allocation7 + $0x518] sm:$0xff] }
 0x1b6   : > { %1965 = vmatpush1.msra.mxu0 %v1280_v40  ;;  %2042 = vmatpush1.msra.mxu1 %v1536_v41  ;;  %v1689_v39 = vld [vmem:[#allocation7 + $0xd18] sm:$0xff]  ;;  %v1432_v40 = vld [vmem:[#allocation7 + $0x510] sm:$0xff] }
 0x1b7   : > { %1966 = vmatprep.subr.mxu0 %v1273_v42  ;;  %2043 = vmatprep.subr.mxu1 %v1529_v43  ;;  %v1688_v41 = vld [vmem:[#allocation7 + $0xd10] sm:$0xff]  ;;  %v1425_v42 = vld [vmem:[#allocation7 + $0x4d8] sm:$0xff] }
 0x1b8   : > { %1967 = vmatpush1.msra.mxu0 %v1272_v44  ;;  %2044 = vmatpush1.msra.mxu1 %v1528_v45  ;;  %v1681_v43 = vld [vmem:[#allocation7 + $0xcd8] sm:$0xff]  ;;  %v922_v44 = vpop.f32.mrf.mxu0  ;;  %v993_v45 = vpop.f32.mrf.mxu1 }
 0x1b9   : > { %1968 = vmatprep.subr.mxu0 %v1521_v46  ;;  %2045 = vmatprep.subr.mxu1 %v1777_v47  ;;  %v1424_v46 = vld [vmem:[#allocation7 + $0x4d0] sm:$0xff] }
 0x1ba   : > { %1969 = vmatpush2.msra.mxu0 %v1520_v48  ;;  %2046 = vmatpush2.msra.mxu1 %v1776_v49  ;;  %v1680_v47 = vld [vmem:[#allocation7 + $0xcd0] sm:$0xff]  ;;  %v1417_v48 = vld [vmem:[#allocation7 + $0x498] sm:$0xff] }
 0x1bb   : > { %1970 = vmatprep.subr.mxu0 %v1513_v50  ;;  %2047 = vmatprep.subr.mxu1 %v1769_v51  ;;  %v1673_v49 = vld [vmem:[#allocation7 + $0xc98] sm:$0xff]  ;;  %v1416_v50 = vld [vmem:[#allocation7 + $0x490] sm:$0xff] }
 0x1bc   : > { %1971 = vmatpush2.msra.mxu0 %v1512_v52  ;;  %2048 = vmatpush2.msra.mxu1 %v1768_v53  ;;  %v1672_v51 = vld [vmem:[#allocation7 + $0xc90] sm:$0xff]  ;;  %v1409_v52 = vld [vmem:[#allocation7 + $0x458] sm:$0xff] }
 0x1bd   : > { %1972 = vmatprep.subr.mxu0 %v1505_v54  ;;  %2049 = vmatprep.subr.mxu1 %v1761_v55  ;;  %v1665_v53 = vld [vmem:[#allocation7 + $0xc58] sm:$0xff]  ;;  %v924_v54 = vpop.f32.mrf.mxu0  ;;  %v995_v55 = vpop.f32.mrf.mxu1 }
 0x1be   : > { %1973 = vmatpush2.msra.mxu0 %v1504_v56  ;;  %2050 = vmatpush2.msra.mxu1 %v1760_v57  ;;  %v1408_v56 = vld [vmem:[#allocation7 + $0x450] sm:$0xff] }
 0x1bf   : > { %1974 = vmatprep.subr.mxu0 %v1497_v58  ;;  %2051 = vmatprep.subr.mxu1 %v1753_v59  ;;  %v1664_v57 = vld [vmem:[#allocation7 + $0xc50] sm:$0xff]  ;;  %v1401_v58 = vld [vmem:[#allocation7 + $0x418] sm:$0xff] }
 0x1c0   : > { %1975 = vmatpush2.msra.mxu0 %v1496_v60  ;;  %2052 = vmatpush2.msra.mxu1 %v1752_v61  ;;  %v1657_v59 = vld [vmem:[#allocation7 + $0xc18] sm:$0xff] }
 0x1c1   : > { %1976 = vmatprep.subr.mxu0 %v1489_v62  ;;  %2053 = vmatprep.subr.mxu1 %v1745_v63  ;;  %v1400_v62 = vld [vmem:[#allocation7 + $0x410] sm:$0xff] }
 0x1c2   : > { %1977 = vmatpush2.msra.mxu0 %v1488_v1  ;;  %2054 = vmatpush2.msra.mxu1 %v1744_v2  ;;  %v1656_v2 = vld [vmem:[#allocation7 + $0xc10] sm:$0xff] }
 0x1c3   : > { %1978 = vmatprep.subr.mxu0 %v1481_v3  ;;  %2055 = vmatprep.subr.mxu1 %v1737_v4  ;;  %v1395_v3 = vld [vmem:[#allocation7 + $0x3e8] sm:$0xff] }
 0x1c4   : > { %1979 = vmatpush2.msra.mxu0 %v1480_v6  ;;  %2056 = vmatpush2.msra.mxu1 %v1736_v7  ;;  %v1651_v7 = vld [vmem:[#allocation7 + $0xbe8] sm:$0xff] }
 0x1c5   : > { %1980 = vmatprep.subr.mxu0 %v1473_v8  ;;  %2057 = vmatprep.subr.mxu1 %v1729_v9 }
 0x1c6   : > { %1981 = vmatpush2.msra.mxu0 %v1472_v5  ;;  %2058 = vmatpush2.msra.mxu1 %v1728_v10 }
 0x1c7   : > { %1982 = vmatprep.subr.mxu0 %v1465_v11  ;;  %2059 = vmatprep.subr.mxu1 %v1721_v12 }
 0x1c8   : > { %1983 = vmatpush2.msra.mxu0 %v1464_v13  ;;  %2060 = vmatpush2.msra.mxu1 %v1720_v14 }
 0x1c9   : > { %1984 = vmatprep.subr.mxu0 %v1457_v15  ;;  %2061 = vmatprep.subr.mxu1 %v1713_v18 }
 0x1ca   : > { %1985 = vmatpush2.msra.mxu0 %v1456_v24  ;;  %2062 = vmatpush2.msra.mxu1 %v1712_v25  ;;  %v1386_v24 = vld [vmem:[#allocation7 + $0x3a0] sm:$0xff] }
 0x1cb   : > { %1986 = vmatprep.subr.mxu0 %v1449_v26  ;;  %2063 = vmatprep.subr.mxu1 %v1705_v27  ;;  %v1642_v25 = vld [vmem:[#allocation7 + $0xba0] sm:$0xff]  ;;  %v1379_v26 = vld [vmem:[#allocation7 + $0x368] sm:$0xff] }
 0x1cc   : > { %1987 = vmatpush2.msra.mxu0 %v1448_v28  ;;  %2064 = vmatpush2.msra.mxu1 %v1704_v29  ;;  %v1635_v27 = vld [vmem:[#allocation7 + $0xb68] sm:$0xff]  ;;  %v1378_v28 = vld [vmem:[#allocation7 + $0x360] sm:$0xff] }
 0x1cd   : > { %1988 = vmatprep.subr.mxu0 %v1441_v30  ;;  %2065 = vmatprep.subr.mxu1 %v1697_v31  ;;  %v1634_v29 = vld [vmem:[#allocation7 + $0xb60] sm:$0xff]  ;;  %v1371_v30 = vld [vmem:[#allocation7 + $0x328] sm:$0xff] }
 0x1ce   : > { %1989 = vmatpush2.msra.mxu0 %v1440_v36  ;;  %2066 = vmatpush2.msra.mxu1 %v1696_v37  ;;  %v1627_v31 = vld [vmem:[#allocation7 + $0xb28] sm:$0xff]  ;;  %v1370_v36 = vld [vmem:[#allocation7 + $0x320] sm:$0xff] }
 0x1cf   : > { %1990 = vmatprep.subr.mxu0 %v1433_v38  ;;  %2067 = vmatprep.subr.mxu1 %v1689_v39  ;;  %v1626_v37 = vld [vmem:[#allocation7 + $0xb20] sm:$0xff]  ;;  %v1363_v38 = vld [vmem:[#allocation7 + $0x2e8] sm:$0xff] }
 0x1d0   : > { %1991 = vmatpush2.msra.mxu0 %v1432_v40  ;;  %2068 = vmatpush2.msra.mxu1 %v1688_v41  ;;  %v1619_v39 = vld [vmem:[#allocation7 + $0xae8] sm:$0xff]  ;;  %v1362_v40 = vld [vmem:[#allocation7 + $0x2e0] sm:$0xff] }
 0x1d1   : > { %1992 = vmatprep.subr.mxu0 %v1425_v42  ;;  %2069 = vmatprep.subr.mxu1 %v1681_v43  ;;  %v1618_v41 = vld [vmem:[#allocation7 + $0xae0] sm:$0xff]  ;;  %v1355_v42 = vld [vmem:[#allocation7 + $0x2a8] sm:$0xff] }
 0x1d2   : > { %1993 = vmatpush2.msra.mxu0 %v1424_v46  ;;  %2070 = vmatpush2.msra.mxu1 %v1680_v47  ;;  %v1611_v43 = vld [vmem:[#allocation7 + $0xaa8] sm:$0xff] }
 0x1d3   : > { %1994 = vmatprep.subr.mxu0 %v1417_v48  ;;  %2071 = vmatprep.subr.mxu1 %v1673_v49  ;;  %v1347_v46 = vld [vmem:[#allocation7 + $0x268] sm:$0xff]  ;;  %v1346_v48 = vld [vmem:[#allocation7 + $0x260] sm:$0xff] }
 0x1d4   : > { %1995 = vmatpush2.msra.mxu0 %v1416_v50  ;;  %2072 = vmatpush2.msra.mxu1 %v1672_v51  ;;  %v1603_v47 = vld [vmem:[#allocation7 + $0xa68] sm:$0xff]  ;;  %v1602_v49 = vld [vmem:[#allocation7 + $0xa60] sm:$0xff] }
 0x1d5   : > { %v1157_v60 = vpop.f32.mrf.mxu0  ;;  %v1228_v61 = vpop.f32.mrf.mxu1  ;;  %1996 = vmatprep.subr.mxu0 %v1409_v52  ;;  %2073 = vmatprep.subr.mxu1 %v1665_v53  ;;  %v1339_v50 = vld [vmem:[#allocation7 + $0x228] sm:$0xff]  ;;  %v1338_v52 = vld [vmem:[#allocation7 + $0x220] sm:$0xff] }
 0x1d6   : > { %v1233_v63 = vadd.f32 %v1157_v60, %v922_v44  ;;  %v1235_v1 = vadd.f32 %v1228_v61, %v993_v45  ;;  %1997 = vmatpush2.msra.mxu0 %v1408_v56  ;;  %2074 = vmatpush2.msra.mxu1 %v1664_v57  ;;  %v1354_v44 = vld [vmem:[#allocation7 + $0x2a0] sm:$0xff]  ;;  %v1595_v51 = vld [vmem:[#allocation7 + $0xa28] sm:$0xff] }
 0x1d7   : > { %v1159_v4 = vpop.f32.mrf.mxu0  ;;  %v1230_v6 = vpop.f32.mrf.mxu1  ;;  %1998 = vmatprep.subr.mxu0 %v1401_v58  ;;  %2075 = vmatprep.subr.mxu1 %v1657_v59  ;;  %v1610_v45 = vld [vmem:[#allocation7 + $0xaa0] sm:$0xff]  ;;  %v1323_v58 = vld [vmem:[#allocation7 + $0x1a8] sm:$0xff] }
 0x1d8   : > { %v1234_v8 = vadd.f32 %v1159_v4, %v924_v54  ;;  %v1236_v9 = vadd.f32 %v1230_v6, %v995_v55  ;;  %1999 = vmatpush2.msra.mxu0 %v1400_v62  ;;  %v1237_v5 = vadd.f32 %v1233_v63, %v7167_v21  ;;  %v1239_v10 = vadd.f32 %v1235_v1, %v7170_v22  ;;  %v1394_v21 = vld [vmem:[#allocation7 + $0x3e0] sm:$0xff]  ;;  %v1331_v54 = vld [vmem:[#allocation7 + $0x1e8] sm:$0xff] }
 0x1d9   : > { %2076 = vmatpush2.msra.mxu1 %v1656_v2  ;;  %2090 = vmatprep.subr.mxu0 %v1395_v3  ;;  %v1650_v22 = vld [vmem:[#allocation7 + $0xbe0] sm:$0xff]  ;;  %v1587_v55 = vld [vmem:[#allocation7 + $0x9e8] sm:$0xff] }
 0x1da   : > { %v1238_v11 = vadd.f32 %v1234_v8, %v7173_v0  ;;  %v1240_v12 = vadd.f32 %v1236_v9, %v7176_v23  ;;  %2167 = vmatprep.subr.mxu1 %v1651_v7  ;;  %v7202_v15 = vmax.f32 %v1237_v5, 0.0  ;;  %v7204_v18 = vmax.f32 %v1239_v10, 0.0  ;;  %v1387_v0 = vld [vmem:[#allocation7 + $0x3a8] sm:$0xff]  ;;  %v1594_v53 = vld [vmem:[#allocation7 + $0xa20] sm:$0xff] }
 0x1db   : > { %v1643_v23 = vld [vmem:[#allocation7 + $0xba8] sm:$0xff]  ;;  %v1330_v56 = vld [vmem:[#allocation7 + $0x1e0] sm:$0xff] }
 0x1dc   : > { %v7198_v13 = vmax.f32 %v1238_v11, 0.0  ;;  %v7200_v14 = vmax.f32 %v1240_v12, 0.0  ;;  %v1586_v57 = vld [vmem:[#allocation7 + $0x9e0] sm:$0xff]  ;;  %v1579_v59 = vld [vmem:[#allocation7 + $0x9a8] sm:$0xff] }
 0x1dd   : > { %v1322_v60 = vld [vmem:[#allocation7 + $0x1a0] sm:$0xff]  ;;  %v1315_v62 = vld [vmem:[#allocation7 + $0x168] sm:$0xff] }
 0x1de   : > { %1852 = vmatprep.mubr.f32.mxu0 %v7198_v13  ;;  %1929 = vmatprep.mubr.f32.mxu1 %v7200_v14  ;;  %v1578_v61 = vld [vmem:[#allocation7 + $0x9a0] sm:$0xff]  ;;  %v1571_v63 = vld [vmem:[#allocation7 + $0x968] sm:$0xff] }
 0x1df   : > { %1853 = vmatmul.mubr.f32.gmra.mxu0 %v7202_v15  ;;  %1930 = vmatmul.mubr.f32.gmra.mxu1 %v7204_v18  ;;  %v1314_v1 = vld [vmem:[#allocation7 + $0x160] sm:$0xff]  ;;  %v1307_v3 = vld [vmem:[#allocation7 + $0x128] sm:$0xff] }
 0x1e0   : > { %2000 = vmatprep.mubr.f32.mxu0 %v7182_v32  ;;  %2077 = vmatprep.mubr.f32.mxu1 %v7184_v33  ;;  %v1570_v2 = vld [vmem:[#allocation7 + $0x960] sm:$0xff]  ;;  %v1563_v4 = vld [vmem:[#allocation7 + $0x928] sm:$0xff] }
 0x1e1   : > { %v1306_v6 = vld [vmem:[#allocation7 + $0x120] sm:$0xff]  ;;  %v1299_v8 = vld [vmem:[#allocation7 + $0xe8] sm:$0xff] }
 0x1e2   : > { %v1562_v7 = vld [vmem:[#allocation7 + $0x920] sm:$0xff]  ;;  %v1555_v9 = vld [vmem:[#allocation7 + $0x8e8] sm:$0xff] }
 0x1e3   : > { %2001 = vmatmul.mubr.f32.vlgmr.msra.gmra.mxu0 %v7186_v34  ;;  %2078 = vmatmul.mubr.f32.vlgmr.msra.gmra.mxu1 %v7188_v35  ;;  %v1298_v5 = vld [vmem:[#allocation7 + $0xe0] sm:$0xff]  ;;  %v1291_v11 = vld [vmem:[#allocation7 + $0xa8] sm:$0xff] }
 0x1e4   : > { %2091 = vmatpush1.msra.mxu0 %v1394_v21  ;;  %2168 = vmatpush1.msra.mxu1 %v1650_v22  ;;  %v1554_v10 = vld [vmem:[#allocation7 + $0x8e0] sm:$0xff]  ;;  %v1547_v12 = vld [vmem:[#allocation7 + $0x8a8] sm:$0xff] }
 0x1e5   : > { %2006 = vmatprep.mubr.f32.mxu0 %v7198_v13  ;;  %2083 = vmatprep.mubr.f32.mxu1 %v7200_v14  ;;  %v1290_v21 = vld [vmem:[#allocation7 + $0xa0] sm:$0xff] }
 0x1e6   : > { %2092 = vmatprep.subr.mxu0 %v1387_v0  ;;  %2169 = vmatprep.subr.mxu1 %v1643_v23  ;;  %v1546_v22 = vld [vmem:[#allocation7 + $0x8a0] sm:$0xff]  ;;  %v1283_v0 = vld [vmem:[#allocation7 + $0x68] sm:$0xff] }
 0x1e7   : > { %2093 = vmatpush1.msra.mxu0 %v1386_v24  ;;  %2170 = vmatpush1.msra.mxu1 %v1642_v25  ;;  %v1539_v23 = vld [vmem:[#allocation7 + $0x868] sm:$0xff]  ;;  %v1282_v24 = vld [vmem:[#allocation7 + $0x60] sm:$0xff] }
 0x1e8   : > { %2094 = vmatprep.subr.mxu0 %v1379_v26  ;;  %2171 = vmatprep.subr.mxu1 %v1635_v27  ;;  %v1538_v25 = vld [vmem:[#allocation7 + $0x860] sm:$0xff]  ;;  %v1275_v26 = vld [vmem:[#allocation7 + $0x28] sm:$0xff] }
 0x1e9   : > { %2007 = vmatmul.mubr.f32.gmra.mxu0 %v7202_v15  ;;  %2084 = vmatmul.mubr.f32.gmra.mxu1 %v7204_v18  ;;  %v1531_v27 = vld [vmem:[#allocation7 + $0x828] sm:$0xff] }
 0x1ea   : > { %2095 = vmatpush1.msra.mxu0 %v1378_v28  ;;  %2172 = vmatpush1.msra.mxu1 %v1634_v29  ;;  %v1274_v28 = vld [vmem:[#allocation7 + $0x20] sm:$0xff] }
 0x1eb   : > { %2096 = vmatprep.subr.mxu0 %v1371_v30  ;;  %2154 = vmatprep.mubr.f32.mxu0 %v7182_v32  ;;  %v1530_v29 = vld [vmem:[#allocation7 + $0x820] sm:$0xff]  ;;  %v1523_v30 = vld [vmem:[#allocation7 + $0x7e8] sm:$0xff] }
 0x1ec   : > { %2173 = vmatprep.subr.mxu1 %v1627_v31  ;;  %2231 = vmatprep.mubr.f32.mxu1 %v7184_v33  ;;  %v1779_v31 = vld [vmem:[#allocation7 + $0xfe8] sm:$0xff] }
 0x1ed   : > { %2097 = vmatpush1.msra.mxu0 %v1370_v36  ;;  %2174 = vmatpush1.msra.mxu1 %v1626_v37  ;;  %v1522_v36 = vld [vmem:[#allocation7 + $0x7e0] sm:$0xff] }
 0x1ee   : > { %2098 = vmatprep.subr.mxu0 %v1363_v38  ;;  %2175 = vmatprep.subr.mxu1 %v1619_v39  ;;  %v1778_v37 = vld [vmem:[#allocation7 + $0xfe0] sm:$0xff]  ;;  %v1515_v38 = vld [vmem:[#allocation7 + $0x7a8] sm:$0xff] }
 0x1ef   : > { %2099 = vmatpush1.msra.mxu0 %v1362_v40  ;;  %2176 = vmatpush1.msra.mxu1 %v1618_v41  ;;  %v1771_v39 = vld [vmem:[#allocation7 + $0xfa8] sm:$0xff]  ;;  %v1514_v40 = vld [vmem:[#allocation7 + $0x7a0] sm:$0xff] }
 0x1f0   : > { %2100 = vmatprep.subr.mxu0 %v1355_v42  ;;  %2177 = vmatprep.subr.mxu1 %v1611_v43  ;;  %v1770_v41 = vld [vmem:[#allocation7 + $0xfa0] sm:$0xff]  ;;  %v1507_v42 = vld [vmem:[#allocation7 + $0x768] sm:$0xff] }
 0x1f1   : > { %2101 = vmatpush1.msra.mxu0 %v1354_v44  ;;  %2178 = vmatpush1.msra.mxu1 %v1610_v45  ;;  %v1763_v43 = vld [vmem:[#allocation7 + $0xf68] sm:$0xff]  ;;  %v1506_v44 = vld [vmem:[#allocation7 + $0x760] sm:$0xff] }
 0x1f2   : > { %2102 = vmatprep.subr.mxu0 %v1347_v46  ;;  %2179 = vmatprep.subr.mxu1 %v1603_v47  ;;  %v1762_v45 = vld [vmem:[#allocation7 + $0xf60] sm:$0xff]  ;;  %v1499_v46 = vld [vmem:[#allocation7 + $0x728] sm:$0xff] }
 0x1f3   : > { %2103 = vmatpush1.msra.mxu0 %v1346_v48  ;;  %2180 = vmatpush1.msra.mxu1 %v1602_v49  ;;  %v1755_v47 = vld [vmem:[#allocation7 + $0xf28] sm:$0xff]  ;;  %v1498_v48 = vld [vmem:[#allocation7 + $0x720] sm:$0xff] }
 0x1f4   : > { %2104 = vmatprep.subr.mxu0 %v1339_v50  ;;  %2181 = vmatprep.subr.mxu1 %v1595_v51  ;;  %v1754_v49 = vld [vmem:[#allocation7 + $0xf20] sm:$0xff]  ;;  %v1491_v50 = vld [vmem:[#allocation7 + $0x6e8] sm:$0xff] }
 0x1f5   : > { %2105 = vmatpush1.msra.mxu0 %v1338_v52  ;;  %2182 = vmatpush1.msra.mxu1 %v1594_v53  ;;  %v1747_v51 = vld [vmem:[#allocation7 + $0xee8] sm:$0xff]  ;;  %v1490_v52 = vld [vmem:[#allocation7 + $0x6e0] sm:$0xff] }
 0x1f6   : > { %2106 = vmatprep.subr.mxu0 %v1331_v54  ;;  %2183 = vmatprep.subr.mxu1 %v1587_v55  ;;  %v1746_v53 = vld [vmem:[#allocation7 + $0xee0] sm:$0xff]  ;;  %v1483_v54 = vld [vmem:[#allocation7 + $0x6a8] sm:$0xff] }
 0x1f7   : > { %2107 = vmatpush1.msra.mxu0 %v1330_v56  ;;  %2184 = vmatpush1.msra.mxu1 %v1586_v57  ;;  %v1739_v55 = vld [vmem:[#allocation7 + $0xea8] sm:$0xff]  ;;  %v1482_v56 = vld [vmem:[#allocation7 + $0x6a0] sm:$0xff] }
 0x1f8   : > { %2108 = vmatprep.subr.mxu0 %v1323_v58  ;;  %2185 = vmatprep.subr.mxu1 %v1579_v59  ;;  %v1738_v57 = vld [vmem:[#allocation7 + $0xea0] sm:$0xff]  ;;  %v1475_v58 = vld [vmem:[#allocation7 + $0x668] sm:$0xff] }
 0x1f9   : > { %2109 = vmatpush1.msra.mxu0 %v1322_v60  ;;  %2186 = vmatpush1.msra.mxu1 %v1578_v61  ;;  %v1731_v59 = vld [vmem:[#allocation7 + $0xe68] sm:$0xff]  ;;  %v1474_v60 = vld [vmem:[#allocation7 + $0x660] sm:$0xff] }
 0x1fa   : > { %2110 = vmatprep.subr.mxu0 %v1315_v62  ;;  %2187 = vmatprep.subr.mxu1 %v1571_v63  ;;  %v1730_v61 = vld [vmem:[#allocation7 + $0xe60] sm:$0xff]  ;;  %v1467_v62 = vld [vmem:[#allocation7 + $0x628] sm:$0xff] }
 0x1fb   : > { %2111 = vmatpush1.msra.mxu0 %v1314_v1  ;;  %2188 = vmatpush1.msra.mxu1 %v1570_v2  ;;  %v1723_v63 = vld [vmem:[#allocation7 + $0xe28] sm:$0xff]  ;;  %v1466_v1 = vld [vmem:[#allocation7 + $0x620] sm:$0xff] }
 0x1fc   : > { %2112 = vmatprep.subr.mxu0 %v1307_v3  ;;  %2189 = vmatprep.subr.mxu1 %v1563_v4  ;;  %v1722_v2 = vld [vmem:[#allocation7 + $0xe20] sm:$0xff]  ;;  %v1459_v3 = vld [vmem:[#allocation7 + $0x5e8] sm:$0xff] }
 0x1fd   : > { %2113 = vmatpush1.msra.mxu0 %v1306_v6  ;;  %2190 = vmatpush1.msra.mxu1 %v1562_v7  ;;  %v1715_v4 = vld [vmem:[#allocation7 + $0xde8] sm:$0xff]  ;;  %v1458_v6 = vld [vmem:[#allocation7 + $0x5e0] sm:$0xff] }
 0x1fe   : > { %2114 = vmatprep.subr.mxu0 %v1299_v8  ;;  %2191 = vmatprep.subr.mxu1 %v1555_v9  ;;  %v1714_v7 = vld [vmem:[#allocation7 + $0xde0] sm:$0xff]  ;;  %v1451_v8 = vld [vmem:[#allocation7 + $0x5a8] sm:$0xff] }
 0x1ff   : > { %2115 = vmatpush1.msra.mxu0 %v1298_v5  ;;  %2192 = vmatpush1.msra.mxu1 %v1554_v10  ;;  %v1707_v9 = vld [vmem:[#allocation7 + $0xda8] sm:$0xff]  ;;  %v1450_v5 = vld [vmem:[#allocation7 + $0x5a0] sm:$0xff] }
 0x200   : > { %2116 = vmatprep.subr.mxu0 %v1291_v11  ;;  %2193 = vmatprep.subr.mxu1 %v1547_v12  ;;  %v1706_v10 = vld [vmem:[#allocation7 + $0xda0] sm:$0xff]  ;;  %v1443_v11 = vld [vmem:[#allocation7 + $0x568] sm:$0xff] }
 0x201   : > { %2117 = vmatpush1.msra.mxu0 %v1290_v21  ;;  %2194 = vmatpush1.msra.mxu1 %v1546_v22  ;;  %v1699_v12 = vld [vmem:[#allocation7 + $0xd68] sm:$0xff]  ;;  %v1442_v21 = vld [vmem:[#allocation7 + $0x560] sm:$0xff] }
 0x202   : > { %2118 = vmatprep.subr.mxu0 %v1283_v0  ;;  %2195 = vmatprep.subr.mxu1 %v1539_v23  ;;  %v1698_v22 = vld [vmem:[#allocation7 + $0xd60] sm:$0xff]  ;;  %v1435_v0 = vld [vmem:[#allocation7 + $0x528] sm:$0xff] }
 0x203   : > { %2119 = vmatpush1.msra.mxu0 %v1282_v24  ;;  %2196 = vmatpush1.msra.mxu1 %v1538_v25  ;;  %v1691_v23 = vld [vmem:[#allocation7 + $0xd28] sm:$0xff]  ;;  %v1434_v24 = vld [vmem:[#allocation7 + $0x520] sm:$0xff] }
 0x204   : > { %2120 = vmatprep.subr.mxu0 %v1275_v26  ;;  %2197 = vmatprep.subr.mxu1 %v1531_v27  ;;  %v1690_v25 = vld [vmem:[#allocation7 + $0xd20] sm:$0xff]  ;;  %v1427_v26 = vld [vmem:[#allocation7 + $0x4e8] sm:$0xff] }
 0x205   : > { %2121 = vmatpush1.msra.mxu0 %v1274_v28  ;;  %2198 = vmatpush1.msra.mxu1 %v1530_v29  ;;  %v1683_v27 = vld [vmem:[#allocation7 + $0xce8] sm:$0xff]  ;;  %v1426_v28 = vld [vmem:[#allocation7 + $0x4e0] sm:$0xff] }
 0x206   : > { %2122 = vmatprep.subr.mxu0 %v1523_v30  ;;  %2199 = vmatprep.subr.mxu1 %v1779_v31  ;;  %v1682_v29 = vld [vmem:[#allocation7 + $0xce0] sm:$0xff]  ;;  %v1419_v30 = vld [vmem:[#allocation7 + $0x4a8] sm:$0xff] }
 0x207   : > { %2123 = vmatpush2.msra.mxu0 %v1522_v36  ;;  %2200 = vmatpush2.msra.mxu1 %v1778_v37  ;;  %v1675_v31 = vld [vmem:[#allocation7 + $0xca8] sm:$0xff]  ;;  %v1418_v36 = vld [vmem:[#allocation7 + $0x4a0] sm:$0xff] }
 0x208   : > { %2124 = vmatprep.subr.mxu0 %v1515_v38  ;;  %2201 = vmatprep.subr.mxu1 %v1771_v39  ;;  %v1674_v37 = vld [vmem:[#allocation7 + $0xca0] sm:$0xff]  ;;  %v1411_v38 = vld [vmem:[#allocation7 + $0x468] sm:$0xff] }
 0x209   : > { %2125 = vmatpush2.msra.mxu0 %v1514_v40  ;;  %2202 = vmatpush2.msra.mxu1 %v1770_v41  ;;  %v1667_v39 = vld [vmem:[#allocation7 + $0xc68] sm:$0xff]  ;;  %v1410_v40 = vld [vmem:[#allocation7 + $0x460] sm:$0xff] }
 0x20a   : > { %2126 = vmatprep.subr.mxu0 %v1507_v42  ;;  %2203 = vmatprep.subr.mxu1 %v1763_v43  ;;  %v1666_v41 = vld [vmem:[#allocation7 + $0xc60] sm:$0xff]  ;;  %v1403_v42 = vld [vmem:[#allocation7 + $0x428] sm:$0xff] }
 0x20b   : > { %2127 = vmatpush2.msra.mxu0 %v1506_v44  ;;  %2204 = vmatpush2.msra.mxu1 %v1762_v45  ;;  %v1659_v43 = vld [vmem:[#allocation7 + $0xc28] sm:$0xff]  ;;  %v1402_v44 = vld [vmem:[#allocation7 + $0x420] sm:$0xff] }
 0x20c   : > { %2128 = vmatprep.subr.mxu0 %v1499_v46  ;;  %2205 = vmatprep.subr.mxu1 %v1755_v47  ;;  %v1658_v45 = vld [vmem:[#allocation7 + $0xc20] sm:$0xff]  ;;  %v1397_v46 = vld [vmem:[#allocation7 + $0x3f8] sm:$0xff] }
 0x20d   : > { %2129 = vmatpush2.msra.mxu0 %v1498_v48  ;;  %2206 = vmatpush2.msra.mxu1 %v1754_v49  ;;  %v1653_v47 = vld [vmem:[#allocation7 + $0xbf8] sm:$0xff]  ;;  %v1396_v48 = vld [vmem:[#allocation7 + $0x3f0] sm:$0xff] }
 0x20e   : > { %2130 = vmatprep.subr.mxu0 %v1491_v50  ;;  %2207 = vmatprep.subr.mxu1 %v1747_v51  ;;  %v1652_v49 = vld [vmem:[#allocation7 + $0xbf0] sm:$0xff]  ;;  %v1389_v50 = vld [vmem:[#allocation7 + $0x3b8] sm:$0xff] }
 0x20f   : > { %2131 = vmatpush2.msra.mxu0 %v1490_v52  ;;  %2208 = vmatpush2.msra.mxu1 %v1746_v53  ;;  %v1645_v51 = vld [vmem:[#allocation7 + $0xbb8] sm:$0xff]  ;;  %v1388_v52 = vld [vmem:[#allocation7 + $0x3b0] sm:$0xff] }
 0x210   : > { %2132 = vmatprep.subr.mxu0 %v1483_v54  ;;  %2209 = vmatprep.subr.mxu1 %v1739_v55  ;;  %v1644_v53 = vld [vmem:[#allocation7 + $0xbb0] sm:$0xff]  ;;  %v1381_v54 = vld [vmem:[#allocation7 + $0x378] sm:$0xff] }
 0x211   : > { %2133 = vmatpush2.msra.mxu0 %v1482_v56  ;;  %2210 = vmatpush2.msra.mxu1 %v1738_v57  ;;  %v1637_v55 = vld [vmem:[#allocation7 + $0xb78] sm:$0xff]  ;;  %v1380_v56 = vld [vmem:[#allocation7 + $0x370] sm:$0xff] }
 0x212   : > { %2134 = vmatprep.subr.mxu0 %v1475_v58  ;;  %2211 = vmatprep.subr.mxu1 %v1731_v59  ;;  %v1636_v57 = vld [vmem:[#allocation7 + $0xb70] sm:$0xff]  ;;  %v1373_v58 = vld [vmem:[#allocation7 + $0x338] sm:$0xff] }
 0x213   : > { %2135 = vmatpush2.msra.mxu0 %v1474_v60  ;;  %2212 = vmatpush2.msra.mxu1 %v1730_v61  ;;  %v1629_v59 = vld [vmem:[#allocation7 + $0xb38] sm:$0xff]  ;;  %v1372_v60 = vld [vmem:[#allocation7 + $0x330] sm:$0xff] }
 0x214   : > { %2136 = vmatprep.subr.mxu0 %v1467_v62  ;;  %2213 = vmatprep.subr.mxu1 %v1723_v63  ;;  %v1628_v61 = vld [vmem:[#allocation7 + $0xb30] sm:$0xff]  ;;  %v1365_v62 = vld [vmem:[#allocation7 + $0x2f8] sm:$0xff] }
 0x215   : > { %2137 = vmatpush2.msra.mxu0 %v1466_v1  ;;  %2214 = vmatpush2.msra.mxu1 %v1722_v2  ;;  %v1621_v63 = vld [vmem:[#allocation7 + $0xaf8] sm:$0xff]  ;;  %v1364_v1 = vld [vmem:[#allocation7 + $0x2f0] sm:$0xff] }
 0x216   : > { %2138 = vmatprep.subr.mxu0 %v1459_v3  ;;  %2215 = vmatprep.subr.mxu1 %v1715_v4  ;;  %v1620_v2 = vld [vmem:[#allocation7 + $0xaf0] sm:$0xff]  ;;  %v1357_v3 = vld [vmem:[#allocation7 + $0x2b8] sm:$0xff] }
 0x217   : > { %2139 = vmatpush2.msra.mxu0 %v1458_v6  ;;  %2216 = vmatpush2.msra.mxu1 %v1714_v7  ;;  %v1613_v4 = vld [vmem:[#allocation7 + $0xab8] sm:$0xff]  ;;  %v1356_v6 = vld [vmem:[#allocation7 + $0x2b0] sm:$0xff] }
 0x218   : > { %2140 = vmatprep.subr.mxu0 %v1451_v8  ;;  %2217 = vmatprep.subr.mxu1 %v1707_v9  ;;  %v1612_v7 = vld [vmem:[#allocation7 + $0xab0] sm:$0xff]  ;;  %v1349_v8 = vld [vmem:[#allocation7 + $0x278] sm:$0xff] }
 0x219   : > { %2141 = vmatpush2.msra.mxu0 %v1450_v5  ;;  %2218 = vmatpush2.msra.mxu1 %v1706_v10  ;;  %v1605_v9 = vld [vmem:[#allocation7 + $0xa78] sm:$0xff]  ;;  %v1348_v5 = vld [vmem:[#allocation7 + $0x270] sm:$0xff] }
 0x21a   : > { %2142 = vmatprep.subr.mxu0 %v1443_v11  ;;  %2219 = vmatprep.subr.mxu1 %v1699_v12  ;;  %v1604_v10 = vld [vmem:[#allocation7 + $0xa70] sm:$0xff]  ;;  %v1341_v11 = vld [vmem:[#allocation7 + $0x238] sm:$0xff] }
 0x21b   : > { %2143 = vmatpush2.msra.mxu0 %v1442_v21  ;;  %2220 = vmatpush2.msra.mxu1 %v1698_v22  ;;  %v1597_v12 = vld [vmem:[#allocation7 + $0xa38] sm:$0xff]  ;;  %v1340_v21 = vld [vmem:[#allocation7 + $0x230] sm:$0xff] }
 0x21c   : > { %2144 = vmatprep.subr.mxu0 %v1435_v0  ;;  %2221 = vmatprep.subr.mxu1 %v1691_v23  ;;  %v1596_v22 = vld [vmem:[#allocation7 + $0xa30] sm:$0xff]  ;;  %v1333_v0 = vld [vmem:[#allocation7 + $0x1f8] sm:$0xff] }
 0x21d   : > { %2145 = vmatpush2.msra.mxu0 %v1434_v24  ;;  %2222 = vmatpush2.msra.mxu1 %v1690_v25  ;;  %v1589_v23 = vld [vmem:[#allocation7 + $0x9f8] sm:$0xff]  ;;  %v1332_v24 = vld [vmem:[#allocation7 + $0x1f0] sm:$0xff] }
 0x21e   : > { %2146 = vmatprep.subr.mxu0 %v1427_v26  ;;  %2223 = vmatprep.subr.mxu1 %v1683_v27  ;;  %v1588_v25 = vld [vmem:[#allocation7 + $0x9f0] sm:$0xff]  ;;  %v1325_v26 = vld [vmem:[#allocation7 + $0x1b8] sm:$0xff] }
 0x21f   : > { %2147 = vmatpush2.msra.mxu0 %v1426_v28  ;;  %2224 = vmatpush2.msra.mxu1 %v1682_v29  ;;  %v1581_v27 = vld [vmem:[#allocation7 + $0x9b8] sm:$0xff]  ;;  %v1324_v28 = vld [vmem:[#allocation7 + $0x1b0] sm:$0xff] }
 0x220   : > { %2148 = vmatprep.subr.mxu0 %v1419_v30  ;;  %2225 = vmatprep.subr.mxu1 %v1675_v31  ;;  %v1580_v29 = vld [vmem:[#allocation7 + $0x9b0] sm:$0xff]  ;;  %v1317_v30 = vld [vmem:[#allocation7 + $0x178] sm:$0xff] }
 0x221   : > { %2149 = vmatpush2.msra.mxu0 %v1418_v36  ;;  %2226 = vmatpush2.msra.mxu1 %v1674_v37  ;;  %v1573_v31 = vld [vmem:[#allocation7 + $0x978] sm:$0xff]  ;;  %v1316_v36 = vld [vmem:[#allocation7 + $0x170] sm:$0xff] }
 0x222   : > { %2150 = vmatprep.subr.mxu0 %v1411_v38  ;;  %2227 = vmatprep.subr.mxu1 %v1667_v39  ;;  %v1572_v37 = vld [vmem:[#allocation7 + $0x970] sm:$0xff]  ;;  %v1309_v38 = vld [vmem:[#allocation7 + $0x138] sm:$0xff] }
 0x223   : > { %2151 = vmatpush2.msra.mxu0 %v1410_v40  ;;  %2228 = vmatpush2.msra.mxu1 %v1666_v41  ;;  %v1565_v39 = vld [vmem:[#allocation7 + $0x938] sm:$0xff]  ;;  %v1308_v40 = vld [vmem:[#allocation7 + $0x130] sm:$0xff] }
 0x224   : > { %2152 = vmatprep.subr.mxu0 %v1403_v42  ;;  %2229 = vmatprep.subr.mxu1 %v1659_v43  ;;  %v1564_v41 = vld [vmem:[#allocation7 + $0x930] sm:$0xff]  ;;  %v1301_v42 = vld [vmem:[#allocation7 + $0xf8] sm:$0xff] }
 0x225   : > { %2153 = vmatpush2.msra.mxu0 %v1402_v44  ;;  %2230 = vmatpush2.msra.mxu1 %v1658_v45  ;;  %v1557_v43 = vld [vmem:[#allocation7 + $0x8f8] sm:$0xff]  ;;  %v1300_v44 = vld [vmem:[#allocation7 + $0xf0] sm:$0xff] }
 0x226   : > { %2155 = vmatmul.mubr.f32.vlgmr.msra.gmra.mxu0 %v7186_v34  ;;  %2232 = vmatmul.mubr.f32.vlgmr.msra.gmra.mxu1 %v7188_v35  ;;  %v1556_v45 = vld [vmem:[#allocation7 + $0x8f0] sm:$0xff] }
 0x227   : > { %2244 = vmatprep.subr.mxu0 %v1397_v46  ;;  %2321 = vmatprep.subr.mxu1 %v1653_v47  ;;  %v1293_v46 = vld [vmem:[#allocation7 + $0xb8] sm:$0xff] }
 0x228   : > { %2160 = vmatprep.mubr.f32.mxu0 %v7198_v13  ;;  %2237 = vmatprep.mubr.f32.mxu1 %v7200_v14  ;;  %v1549_v47 = vld [vmem:[#allocation7 + $0x8b8] sm:$0xff] }
 0x229   : > { %2245 = vmatpush1.msra.mxu0 %v1396_v48  ;;  %2322 = vmatpush1.msra.mxu1 %v1652_v49  ;;  %v1292_v48 = vld [vmem:[#allocation7 + $0xb0] sm:$0xff] }
 0x22a   : > { %2246 = vmatprep.subr.mxu0 %v1389_v50  ;;  %2323 = vmatprep.subr.mxu1 %v1645_v51  ;;  %v1548_v49 = vld [vmem:[#allocation7 + $0x8b0] sm:$0xff]  ;;  %v1285_v50 = vld [vmem:[#allocation7 + $0x78] sm:$0xff] }
 0x22b   : > { %2247 = vmatpush1.msra.mxu0 %v1388_v52  ;;  %2324 = vmatpush1.msra.mxu1 %v1644_v53  ;;  %v1541_v51 = vld [vmem:[#allocation7 + $0x878] sm:$0xff]  ;;  %v1284_v52 = vld [vmem:[#allocation7 + $0x70] sm:$0xff] }
 0x22c   : > { %2161 = vmatmul.mubr.f32.gmra.mxu0 %v7202_v15  ;;  %2238 = vmatmul.mubr.f32.gmra.mxu1 %v7204_v18  ;;  %v1540_v53 = vld [vmem:[#allocation7 + $0x870] sm:$0xff] }
 0x22d   : > { %2248 = vmatprep.subr.mxu0 %v1381_v54  ;;  %2325 = vmatprep.subr.mxu1 %v1637_v55  ;;  %v1277_v54 = vld [vmem:[#allocation7 + $0x38] sm:$0xff] }
 0x22e   : > { %2249 = vmatpush1.msra.mxu0 %v1380_v56  ;;  %2308 = vmatprep.mubr.f32.mxu0 %v7182_v32  ;;  %v1533_v55 = vld [vmem:[#allocation7 + $0x838] sm:$0xff]  ;;  %v1276_v56 = vld [vmem:[#allocation7 + $0x30] sm:$0xff] }
 0x22f   : > { %2326 = vmatpush1.msra.mxu1 %v1636_v57  ;;  %2385 = vmatprep.mubr.f32.mxu1 %v7184_v33  ;;  %v1532_v57 = vld [vmem:[#allocation7 + $0x830] sm:$0xff] }
 0x230   : > { %2250 = vmatprep.subr.mxu0 %v1373_v58  ;;  %2327 = vmatprep.subr.mxu1 %v1629_v59  ;;  %v1525_v58 = vld [vmem:[#allocation7 + $0x7f8] sm:$0xff] }
 0x231   : > { %2251 = vmatpush1.msra.mxu0 %v1372_v60  ;;  %2328 = vmatpush1.msra.mxu1 %v1628_v61  ;;  %v1781_v59 = vld [vmem:[#allocation7 + $0xff8] sm:$0xff]  ;;  %v1524_v60 = vld [vmem:[#allocation7 + $0x7f0] sm:$0xff] }
 0x232   : > { %2252 = vmatprep.subr.mxu0 %v1365_v62  ;;  %2329 = vmatprep.subr.mxu1 %v1621_v63  ;;  %v1780_v61 = vld [vmem:[#allocation7 + $0xff0] sm:$0xff]  ;;  %v1517_v62 = vld [vmem:[#allocation7 + $0x7b8] sm:$0xff] }
 0x233   : > { %2253 = vmatpush1.msra.mxu0 %v1364_v1  ;;  %2330 = vmatpush1.msra.mxu1 %v1620_v2  ;;  %v1773_v63 = vld [vmem:[#allocation7 + $0xfb8] sm:$0xff]  ;;  %v1516_v1 = vld [vmem:[#allocation7 + $0x7b0] sm:$0xff] }
 0x234   : > { %2254 = vmatprep.subr.mxu0 %v1357_v3  ;;  %2331 = vmatprep.subr.mxu1 %v1613_v4  ;;  %v1772_v2 = vld [vmem:[#allocation7 + $0xfb0] sm:$0xff]  ;;  %v1509_v3 = vld [vmem:[#allocation7 + $0x778] sm:$0xff] }
 0x235   : > { %2255 = vmatpush1.msra.mxu0 %v1356_v6  ;;  %2332 = vmatpush1.msra.mxu1 %v1612_v7  ;;  %v1765_v4 = vld [vmem:[#allocation7 + $0xf78] sm:$0xff]  ;;  %v1508_v6 = vld [vmem:[#allocation7 + $0x770] sm:$0xff] }
 0x236   : > { %2256 = vmatprep.subr.mxu0 %v1349_v8  ;;  %2333 = vmatprep.subr.mxu1 %v1605_v9  ;;  %v1764_v7 = vld [vmem:[#allocation7 + $0xf70] sm:$0xff]  ;;  %v1501_v8 = vld [vmem:[#allocation7 + $0x738] sm:$0xff] }
 0x237   : > { %2257 = vmatpush1.msra.mxu0 %v1348_v5  ;;  %2334 = vmatpush1.msra.mxu1 %v1604_v10  ;;  %v1757_v9 = vld [vmem:[#allocation7 + $0xf38] sm:$0xff]  ;;  %v1500_v5 = vld [vmem:[#allocation7 + $0x730] sm:$0xff] }
 0x238   : > { %2258 = vmatprep.subr.mxu0 %v1341_v11  ;;  %2335 = vmatprep.subr.mxu1 %v1597_v12  ;;  %v1756_v10 = vld [vmem:[#allocation7 + $0xf30] sm:$0xff]  ;;  %v1493_v11 = vld [vmem:[#allocation7 + $0x6f8] sm:$0xff] }
 0x239   : > { %2259 = vmatpush1.msra.mxu0 %v1340_v21  ;;  %2336 = vmatpush1.msra.mxu1 %v1596_v22  ;;  %v1749_v12 = vld [vmem:[#allocation7 + $0xef8] sm:$0xff]  ;;  %v1492_v21 = vld [vmem:[#allocation7 + $0x6f0] sm:$0xff] }
 0x23a   : > { %2260 = vmatprep.subr.mxu0 %v1333_v0  ;;  %2337 = vmatprep.subr.mxu1 %v1589_v23  ;;  %v1748_v22 = vld [vmem:[#allocation7 + $0xef0] sm:$0xff]  ;;  %v1485_v0 = vld [vmem:[#allocation7 + $0x6b8] sm:$0xff] }
 0x23b   : > { %2261 = vmatpush1.msra.mxu0 %v1332_v24  ;;  %2338 = vmatpush1.msra.mxu1 %v1588_v25  ;;  %v1741_v23 = vld [vmem:[#allocation7 + $0xeb8] sm:$0xff]  ;;  %v1484_v24 = vld [vmem:[#allocation7 + $0x6b0] sm:$0xff] }
 0x23c   : > { %2262 = vmatprep.subr.mxu0 %v1325_v26  ;;  %2339 = vmatprep.subr.mxu1 %v1581_v27  ;;  %v1740_v25 = vld [vmem:[#allocation7 + $0xeb0] sm:$0xff]  ;;  %v1477_v26 = vld [vmem:[#allocation7 + $0x678] sm:$0xff] }
 0x23d   : > { %2263 = vmatpush1.msra.mxu0 %v1324_v28  ;;  %2340 = vmatpush1.msra.mxu1 %v1580_v29  ;;  %v1733_v27 = vld [vmem:[#allocation7 + $0xe78] sm:$0xff]  ;;  %v1476_v28 = vld [vmem:[#allocation7 + $0x670] sm:$0xff] }
 0x23e   : > { %2264 = vmatprep.subr.mxu0 %v1317_v30  ;;  %2341 = vmatprep.subr.mxu1 %v1573_v31  ;;  %v1732_v29 = vld [vmem:[#allocation7 + $0xe70] sm:$0xff]  ;;  %v1469_v30 = vld [vmem:[#allocation7 + $0x638] sm:$0xff] }
 0x23f   : > { %2265 = vmatpush1.msra.mxu0 %v1316_v36  ;;  %2342 = vmatpush1.msra.mxu1 %v1572_v37  ;;  %v1725_v31 = vld [vmem:[#allocation7 + $0xe38] sm:$0xff]  ;;  %v1468_v36 = vld [vmem:[#allocation7 + $0x630] sm:$0xff] }
 0x240   : > { %2266 = vmatprep.subr.mxu0 %v1309_v38  ;;  %2343 = vmatprep.subr.mxu1 %v1565_v39  ;;  %v1724_v37 = vld [vmem:[#allocation7 + $0xe30] sm:$0xff]  ;;  %v1461_v38 = vld [vmem:[#allocation7 + $0x5f8] sm:$0xff] }
 0x241   : > { %2267 = vmatpush1.msra.mxu0 %v1308_v40  ;;  %2344 = vmatpush1.msra.mxu1 %v1564_v41  ;;  %v1717_v39 = vld [vmem:[#allocation7 + $0xdf8] sm:$0xff]  ;;  %v1460_v40 = vld [vmem:[#allocation7 + $0x5f0] sm:$0xff] }
 0x242   : > { %2268 = vmatprep.subr.mxu0 %v1301_v42  ;;  %2345 = vmatprep.subr.mxu1 %v1557_v43  ;;  %v1716_v41 = vld [vmem:[#allocation7 + $0xdf0] sm:$0xff]  ;;  %v1453_v42 = vld [vmem:[#allocation7 + $0x5b8] sm:$0xff] }
 0x243   : > { %2269 = vmatpush1.msra.mxu0 %v1300_v44  ;;  %2346 = vmatpush1.msra.mxu1 %v1556_v45  ;;  %v1709_v43 = vld [vmem:[#allocation7 + $0xdb8] sm:$0xff] }
 0x244   : > { %2270 = vmatprep.subr.mxu0 %v1293_v46  ;;  %2347 = vmatprep.subr.mxu1 %v1549_v47  ;;  %v1452_v46 = vld [vmem:[#allocation7 + $0x5b0] sm:$0xff] }
 0x245   : > { %2271 = vmatpush1.msra.mxu0 %v1292_v48  ;;  %2348 = vmatpush1.msra.mxu1 %v1548_v49  ;;  %v1708_v47 = vld [vmem:[#allocation7 + $0xdb0] sm:$0xff]  ;;  %v1445_v49 = vld [vmem:[#allocation7 + $0x578] sm:$0xff] }
 0x246   : > { %2272 = vmatprep.subr.mxu0 %v1285_v50  ;;  %2349 = vmatprep.subr.mxu1 %v1541_v51  ;;  %v1701_v50 = vld [vmem:[#allocation7 + $0xd78] sm:$0xff]  ;;  %v1444_v51 = vld [vmem:[#allocation7 + $0x570] sm:$0xff] }
 0x247   : > { %2273 = vmatpush1.msra.mxu0 %v1284_v52  ;;  %2350 = vmatpush1.msra.mxu1 %v1540_v53  ;;  %v1700_v52 = vld [vmem:[#allocation7 + $0xd70] sm:$0xff]  ;;  %v1437_v53 = vld [vmem:[#allocation7 + $0x538] sm:$0xff] }
 0x248   : > { %2274 = vmatprep.subr.mxu0 %v1277_v54  ;;  %2351 = vmatprep.subr.mxu1 %v1533_v55  ;;  %v1693_v54 = vld [vmem:[#allocation7 + $0xd38] sm:$0xff]  ;;  %v1436_v55 = vld [vmem:[#allocation7 + $0x530] sm:$0xff] }
 0x249   : > { %2275 = vmatpush1.msra.mxu0 %v1276_v56  ;;  %2352 = vmatpush1.msra.mxu1 %v1532_v57  ;;  %v1692_v56 = vld [vmem:[#allocation7 + $0xd30] sm:$0xff]  ;;  %v1429_v57 = vld [vmem:[#allocation7 + $0x4f8] sm:$0xff] }
 0x24a   : > { %2276 = vmatprep.subr.mxu0 %v1525_v58  ;;  %2353 = vmatprep.subr.mxu1 %v1781_v59  ;;  %v1685_v58 = vld [vmem:[#allocation7 + $0xcf8] sm:$0xff]  ;;  %v1428_v59 = vld [vmem:[#allocation7 + $0x4f0] sm:$0xff] }
 0x24b   : > { %2277 = vmatpush2.msra.mxu0 %v1524_v60  ;;  %2354 = vmatpush2.msra.mxu1 %v1780_v61  ;;  %v1684_v60 = vld [vmem:[#allocation7 + $0xcf0] sm:$0xff]  ;;  %v1421_v61 = vld [vmem:[#allocation7 + $0x4b8] sm:$0xff] }
 0x24c   : > { %2278 = vmatprep.subr.mxu0 %v1517_v62  ;;  %2355 = vmatprep.subr.mxu1 %v1773_v63  ;;  %v1677_v62 = vld [vmem:[#allocation7 + $0xcb8] sm:$0xff]  ;;  %v1420_v63 = vld [vmem:[#allocation7 + $0x4b0] sm:$0xff] }
 0x24d   : > { %2279 = vmatpush2.msra.mxu0 %v1516_v1  ;;  %2356 = vmatpush2.msra.mxu1 %v1772_v2  ;;  %v1676_v1 = vld [vmem:[#allocation7 + $0xcb0] sm:$0xff]  ;;  %v1413_v2 = vld [vmem:[#allocation7 + $0x478] sm:$0xff] }
 0x24e   : > { %2280 = vmatprep.subr.mxu0 %v1509_v3  ;;  %2357 = vmatprep.subr.mxu1 %v1765_v4  ;;  %v1669_v3 = vld [vmem:[#allocation7 + $0xc78] sm:$0xff]  ;;  %v1412_v4 = vld [vmem:[#allocation7 + $0x470] sm:$0xff] }
 0x24f   : > { %2281 = vmatpush2.msra.mxu0 %v1508_v6  ;;  %2358 = vmatpush2.msra.mxu1 %v1764_v7  ;;  %v1668_v6 = vld [vmem:[#allocation7 + $0xc70] sm:$0xff]  ;;  %v1405_v7 = vld [vmem:[#allocation7 + $0x438] sm:$0xff] }
 0x250   : > { %2282 = vmatprep.subr.mxu0 %v1501_v8  ;;  %2359 = vmatprep.subr.mxu1 %v1757_v9  ;;  %v1661_v8 = vld [vmem:[#allocation7 + $0xc38] sm:$0xff]  ;;  %v1404_v9 = vld [vmem:[#allocation7 + $0x430] sm:$0xff] }
 0x251   : > { %2283 = vmatpush2.msra.mxu0 %v1500_v5  ;;  %2360 = vmatpush2.msra.mxu1 %v1756_v10  ;;  %v1660_v5 = vld [vmem:[#allocation7 + $0xc30] sm:$0xff]  ;;  %v2496_v10 = vld [vmem:[#allocation9 + $0x1e8] sm:$0xff] }
 0x252   : > { %2284 = vmatprep.subr.mxu0 %v1493_v11  ;;  %2361 = vmatprep.subr.mxu1 %v1749_v12  ;;  %v2624_v11 = vld [vmem:[#allocation9 + $0x5e8] sm:$0xff]  ;;  %v2495_v12 = vld [vmem:[#allocation9 + $0x1e0] sm:$0xff] }
 0x253   : > { %2285 = vmatpush2.msra.mxu0 %v1492_v21  ;;  %2362 = vmatpush2.msra.mxu1 %v1748_v22  ;;  %v2623_v21 = vld [vmem:[#allocation9 + $0x5e0] sm:$0xff]  ;;  %v2492_v22 = vld [vmem:[#allocation9 + $0x1c8] sm:$0xff] }
 0x254   : > { %2286 = vmatprep.subr.mxu0 %v1485_v0  ;;  %2363 = vmatprep.subr.mxu1 %v1741_v23  ;;  %v2620_v0 = vld [vmem:[#allocation9 + $0x5c8] sm:$0xff]  ;;  %v2491_v23 = vld [vmem:[#allocation9 + $0x1c0] sm:$0xff] }
 0x255   : > { %2287 = vmatpush2.msra.mxu0 %v1484_v24  ;;  %2364 = vmatpush2.msra.mxu1 %v1740_v25  ;;  %v2619_v24 = vld [vmem:[#allocation9 + $0x5c0] sm:$0xff]  ;;  %v2488_v25 = vld [vmem:[#allocation9 + $0x1a8] sm:$0xff] }
 0x256   : > { %2288 = vmatprep.subr.mxu0 %v1477_v26  ;;  %2365 = vmatprep.subr.mxu1 %v1733_v27  ;;  %v2616_v26 = vld [vmem:[#allocation9 + $0x5a8] sm:$0xff]  ;;  %v2487_v27 = vld [vmem:[#allocation9 + $0x1a0] sm:$0xff] }
 0x257   : > { %2289 = vmatpush2.msra.mxu0 %v1476_v28  ;;  %2366 = vmatpush2.msra.mxu1 %v1732_v29  ;;  %v2615_v28 = vld [vmem:[#allocation9 + $0x5a0] sm:$0xff]  ;;  %v2484_v29 = vld [vmem:[#allocation9 + $0x188] sm:$0xff] }
 0x258   : > { %2290 = vmatprep.subr.mxu0 %v1469_v30  ;;  %2367 = vmatprep.subr.mxu1 %v1725_v31  ;;  %v2612_v30 = vld [vmem:[#allocation9 + $0x588] sm:$0xff]  ;;  %v2483_v31 = vld [vmem:[#allocation9 + $0x180] sm:$0xff] }
 0x259   : > { %2291 = vmatpush2.msra.mxu0 %v1468_v36  ;;  %2368 = vmatpush2.msra.mxu1 %v1724_v37  ;;  %v1848_v44 = vpop.f32.mrf.mxu0  ;;  %v1925_v45 = vpop.f32.mrf.mxu1  ;;  %v2611_v36 = vld [vmem:[#allocation9 + $0x580] sm:$0xff]  ;;  %v2480_v37 = vld [vmem:[#allocation9 + $0x168] sm:$0xff] }
 0x25a   : > { %2292 = vmatprep.subr.mxu0 %v1461_v38  ;;  %2369 = vmatprep.subr.mxu1 %v1717_v39  ;;  %v7228_v48 = vadd.f32 %v1925_v45, %v1848_v44  ;;  %v2608_v38 = vld [vmem:[#allocation9 + $0x568] sm:$0xff]  ;;  %v2479_v39 = vld [vmem:[#allocation9 + $0x160] sm:$0xff] }
 0x25b   : > { %2293 = vmatpush2.msra.mxu0 %v1460_v40  ;;  %2370 = vmatpush2.msra.mxu1 %v1716_v41  ;;  %v2607_v40 = vld [vmem:[#allocation9 + $0x560] sm:$0xff]  ;;  %v2476_v41 = vld [vmem:[#allocation9 + $0x148] sm:$0xff] }
 0x25c   : > { %2294 = vmatprep.subr.mxu0 %v1453_v42  ;;  %2371 = vmatprep.subr.mxu1 %v1709_v43  ;;  %v2604_v42 = vld [vmem:[#allocation9 + $0x548] sm:$0xff]  ;;  %v2475_v43 = vld [vmem:[#allocation9 + $0x140] sm:$0xff] }
 0x25d   : > { %2295 = vmatpush2.msra.mxu0 %v1452_v46  ;;  %2372 = vmatpush2.msra.mxu1 %v1708_v47  ;;  %v2603_v44 = vld [vmem:[#allocation9 + $0x540] sm:$0xff]  ;;  %v2472_v45 = vld [vmem:[#allocation9 + $0x128] sm:$0xff] }
 0x25e   : > { %2296 = vmatprep.subr.mxu0 %v1445_v49  ;;  %2373 = vmatprep.subr.mxu1 %v1701_v50  ;;  %v2600_v46 = vld [vmem:[#allocation9 + $0x528] sm:$0xff]  ;;  %v2471_v47 = vld [vmem:[#allocation9 + $0x120] sm:$0xff] }
 0x25f   : > { %2297 = vmatpush2.msra.mxu0 %v1444_v51  ;;  %2374 = vmatpush2.msra.mxu1 %v1700_v52  ;;  %v2599_v49 = vld [vmem:[#allocation9 + $0x520] sm:$0xff]  ;;  %v2468_v50 = vld [vmem:[#allocation9 + $0x108] sm:$0xff] }
 0x260   : > { %2298 = vmatprep.subr.mxu0 %v1437_v53  ;;  %2375 = vmatprep.subr.mxu1 %v1693_v54  ;;  %v2596_v51 = vld [vmem:[#allocation9 + $0x508] sm:$0xff]  ;;  %v2467_v52 = vld [vmem:[#allocation9 + $0x100] sm:$0xff] }
 0x261   : > { %2299 = vmatpush2.msra.mxu0 %v1436_v55  ;;  %2376 = vmatpush2.msra.mxu1 %v1692_v56  ;;  %v2595_v53 = vld [vmem:[#allocation9 + $0x500] sm:$0xff]  ;;  %v2464_v54 = vld [vmem:[#allocation9 + $0xe8] sm:$0xff] }
 0x262   : > { %2300 = vmatprep.subr.mxu0 %v1429_v57  ;;  %2377 = vmatprep.subr.mxu1 %v1685_v58  ;;  %v2592_v55 = vld [vmem:[#allocation9 + $0x4e8] sm:$0xff]  ;;  %v2463_v56 = vld [vmem:[#allocation9 + $0xe0] sm:$0xff] }
 0x263   : > { %2301 = vmatpush2.msra.mxu0 %v1428_v59  ;;  %2378 = vmatpush2.msra.mxu1 %v1684_v60  ;;  %v2591_v57 = vld [vmem:[#allocation9 + $0x4e0] sm:$0xff]  ;;  %v2460_v58 = vld [vmem:[#allocation9 + $0xc8] sm:$0xff] }
 0x264   : > { %2302 = vmatprep.subr.mxu0 %v1421_v61  ;;  %2379 = vmatprep.subr.mxu1 %v1677_v62  ;;  %v2588_v59 = vld [vmem:[#allocation9 + $0x4c8] sm:$0xff]  ;;  %v2459_v60 = vld [vmem:[#allocation9 + $0xc0] sm:$0xff] }
 0x265   : > { %2303 = vmatpush2.msra.mxu0 %v1420_v63  ;;  %2380 = vmatpush2.msra.mxu1 %v1676_v1  ;;  %v2587_v61 = vld [vmem:[#allocation9 + $0x4c0] sm:$0xff]  ;;  %v2456_v62 = vld [vmem:[#allocation9 + $0xa8] sm:$0xff] }
 0x266   : > { %2304 = vmatprep.subr.mxu0 %v1413_v2  ;;  %2381 = vmatprep.subr.mxu1 %v1669_v3  ;;  %v2584_v63 = vld [vmem:[#allocation9 + $0x4a8] sm:$0xff]  ;;  %v2455_v1 = vld [vmem:[#allocation9 + $0xa0] sm:$0xff] }
 0x267   : > { %2305 = vmatpush2.msra.mxu0 %v1412_v4  ;;  %2382 = vmatpush2.msra.mxu1 %v1668_v6  ;;  %v2583_v2 = vld [vmem:[#allocation9 + $0x4a0] sm:$0xff]  ;;  %v2452_v3 = vld [vmem:[#allocation9 + $0x88] sm:$0xff] }
 0x268   : > { %2306 = vmatprep.subr.mxu0 %v1405_v7  ;;  %2383 = vmatprep.subr.mxu1 %v1661_v8  ;;  %v2580_v4 = vld [vmem:[#allocation9 + $0x488] sm:$0xff]  ;;  %v2451_v6 = vld [vmem:[#allocation9 + $0x80] sm:$0xff] }
 0x269   : > { %2307 = vmatpush2.msra.mxu0 %v1404_v9  ;;  %2384 = vmatpush2.msra.mxu1 %v1660_v5  ;;  %v2579_v7 = vld [vmem:[#allocation9 + $0x480] sm:$0xff]  ;;  %v2448_v8 = vld [vmem:[#allocation9 + $0x68] sm:$0xff] }
 0x26a   : > { %2309 = vmatmul.mubr.f32.vlgmr.msra.gmra.mxu0 %v7186_v34  ;;  %2386 = vmatmul.mubr.f32.vlgmr.msra.gmra.mxu1 %v7188_v35  ;;  %v2576_v9 = vld [vmem:[#allocation9 + $0x468] sm:$0xff]  ;;  %v2447_v5 = vld [vmem:[#allocation9 + $0x60] sm:$0xff] }
 0x26b   : > { %2691 = vmatprep.subr.mxu0 %v2496_v10  ;;  %2768 = vmatprep.subr.mxu1 %v2624_v11  ;;  %v2575_v10 = vld [vmem:[#allocation9 + $0x460] sm:$0xff]  ;;  %v2444_v11 = vld [vmem:[#allocation9 + $0x48] sm:$0xff] }
 0x26c   : > { %2314 = vmatprep.mubr.f32.mxu0 %v7198_v13  ;;  %2391 = vmatprep.mubr.f32.mxu1 %v7200_v14 }
 0x26d   : > { %2692 = vmatpush1.msra.mxu0 %v2495_v12  ;;  %2769 = vmatpush1.msra.mxu1 %v2623_v21  ;;  %v2572_v12 = vld [vmem:[#allocation9 + $0x448] sm:$0xff]  ;;  %v2443_v21 = vld [vmem:[#allocation9 + $0x40] sm:$0xff] }
 0x26e   : > { %2693 = vmatprep.subr.mxu0 %v2492_v22  ;;  %2770 = vmatprep.subr.mxu1 %v2620_v0  ;;  %v2571_v22 = vld [vmem:[#allocation9 + $0x440] sm:$0xff]  ;;  %v2440_v0 = vld [vmem:[#allocation9 + $0x28] sm:$0xff] }
 0x26f   : > { %2694 = vmatpush1.msra.mxu0 %v2491_v23  ;;  %2771 = vmatpush1.msra.mxu1 %v2619_v24  ;;  %v2568_v23 = vld [vmem:[#allocation9 + $0x428] sm:$0xff]  ;;  %v2439_v24 = vld [vmem:[#allocation9 + $0x20] sm:$0xff] }
 0x270   : > { %2315 = vmatmul.mubr.f32.gmra.mxu0 %v7202_v15  ;;  %2392 = vmatmul.mubr.f32.gmra.mxu1 %v7204_v18 }
 0x271   : > { %2695 = vmatprep.subr.mxu0 %v2488_v25  ;;  %2772 = vmatprep.subr.mxu1 %v2616_v26  ;;  %v2567_v25 = vld [vmem:[#allocation9 + $0x420] sm:$0xff]  ;;  %v2436_v26 = vld [vmem:[#allocation9 + $0x8] sm:$0xff] }
 0x272   : > { %2696 = vmatpush1.msra.mxu0 %v2487_v27  ;;  %2755 = vmatprep.mubr.f32.mxu0 %v7198_v13  ;;  %v2564_v27 = vld [vmem:[#allocation9 + $0x408] sm:$0xff] }
 0x273   : > { %2773 = vmatpush1.msra.mxu1 %v2615_v28  ;;  %2832 = vmatprep.mubr.f32.mxu1 %v7200_v14  ;;  %v2435_v28 = vld [vmem:[#allocation9] sm:$0xff] }
 0x274   : > { %2697 = vmatprep.subr.mxu0 %v2484_v29  ;;  %2774 = vmatprep.subr.mxu1 %v2612_v30  ;;  %v2563_v29 = vld [vmem:[#allocation9 + $0x400] sm:$0xff]  ;;  %v2560_v30 = vld [vmem:[#allocation9 + $0x3e8] sm:$0xff] }
 0x275   : > { %2698 = vmatpush1.msra.mxu0 %v2483_v31  ;;  %2775 = vmatpush1.msra.mxu1 %v2611_v36  ;;  %v2688_v31 = vld [vmem:[#allocation9 + $0x7e8] sm:$0xff]  ;;  %v2559_v36 = vld [vmem:[#allocation9 + $0x3e0] sm:$0xff] }
 0x276   : > { %2699 = vmatprep.subr.mxu0 %v2480_v37  ;;  %2776 = vmatprep.subr.mxu1 %v2608_v38  ;;  %v2687_v37 = vld [vmem:[#allocation9 + $0x7e0] sm:$0xff]  ;;  %v2556_v38 = vld [vmem:[#allocation9 + $0x3c8] sm:$0xff] }
 0x277   : > { %2700 = vmatpush1.msra.mxu0 %v2479_v39  ;;  %2777 = vmatpush1.msra.mxu1 %v2607_v40  ;;  %v2684_v39 = vld [vmem:[#allocation9 + $0x7c8] sm:$0xff]  ;;  %v2555_v40 = vld [vmem:[#allocation9 + $0x3c0] sm:$0xff] }
 0x278   : > { %2701 = vmatprep.subr.mxu0 %v2476_v41  ;;  %2778 = vmatprep.subr.mxu1 %v2604_v42  ;;  %v2683_v41 = vld [vmem:[#allocation9 + $0x7c0] sm:$0xff]  ;;  %v2552_v42 = vld [vmem:[#allocation9 + $0x3a8] sm:$0xff] }
 0x279   : > { %2702 = vmatpush1.msra.mxu0 %v2475_v43  ;;  %2779 = vmatpush1.msra.mxu1 %v2603_v44  ;;  %v2680_v43 = vld [vmem:[#allocation9 + $0x7a8] sm:$0xff]  ;;  %v2551_v44 = vld [vmem:[#allocation9 + $0x3a0] sm:$0xff] }
 0x27a   : > { %2703 = vmatprep.subr.mxu0 %v2472_v45  ;;  %2780 = vmatprep.subr.mxu1 %v2600_v46  ;;  %v2679_v45 = vld [vmem:[#allocation9 + $0x7a0] sm:$0xff]  ;;  %v2548_v46 = vld [vmem:[#allocation9 + $0x388] sm:$0xff] }
 0x27b   : > { %2704 = vmatpush1.msra.mxu0 %v2471_v47  ;;  %2781 = vmatpush1.msra.mxu1 %v2599_v49  ;;  %v2676_v47 = vld [vmem:[#allocation9 + $0x788] sm:$0xff]  ;;  %v2547_v49 = vld [vmem:[#allocation9 + $0x380] sm:$0xff] }
 0x27c   : > { %2705 = vmatprep.subr.mxu0 %v2468_v50  ;;  %2782 = vmatprep.subr.mxu1 %v2596_v51  ;;  %v2675_v50 = vld [vmem:[#allocation9 + $0x780] sm:$0xff]  ;;  %v2544_v51 = vld [vmem:[#allocation9 + $0x368] sm:$0xff] }
 0x27d   : > { %2706 = vmatpush1.msra.mxu0 %v2467_v52  ;;  %2783 = vmatpush1.msra.mxu1 %v2595_v53  ;;  %v2672_v52 = vld [vmem:[#allocation9 + $0x768] sm:$0xff]  ;;  %v2543_v53 = vld [vmem:[#allocation9 + $0x360] sm:$0xff] }
 0x27e   : > { %2707 = vmatprep.subr.mxu0 %v2464_v54  ;;  %2784 = vmatprep.subr.mxu1 %v2592_v55  ;;  %v2671_v54 = vld [vmem:[#allocation9 + $0x760] sm:$0xff]  ;;  %v2540_v55 = vld [vmem:[#allocation9 + $0x348] sm:$0xff] }
 0x27f   : > { %2708 = vmatpush1.msra.mxu0 %v2463_v56  ;;  %2785 = vmatpush1.msra.mxu1 %v2591_v57  ;;  %v2668_v56 = vld [vmem:[#allocation9 + $0x748] sm:$0xff]  ;;  %v2539_v57 = vld [vmem:[#allocation9 + $0x340] sm:$0xff] }
 0x280   : > { %2709 = vmatprep.subr.mxu0 %v2460_v58  ;;  %2786 = vmatprep.subr.mxu1 %v2588_v59  ;;  %v2667_v58 = vld [vmem:[#allocation9 + $0x740] sm:$0xff]  ;;  %v2536_v59 = vld [vmem:[#allocation9 + $0x328] sm:$0xff] }
 0x281   : > { %2710 = vmatpush1.msra.mxu0 %v2459_v60  ;;  %2787 = vmatpush1.msra.mxu1 %v2587_v61  ;;  %v2664_v60 = vld [vmem:[#allocation9 + $0x728] sm:$0xff]  ;;  %v2535_v61 = vld [vmem:[#allocation9 + $0x320] sm:$0xff] }
 0x282   : > { %2711 = vmatprep.subr.mxu0 %v2456_v62  ;;  %2788 = vmatprep.subr.mxu1 %v2584_v63  ;;  %v2663_v62 = vld [vmem:[#allocation9 + $0x720] sm:$0xff]  ;;  %v2532_v63 = vld [vmem:[#allocation9 + $0x308] sm:$0xff] }
 0x283   : > { %2712 = vmatpush1.msra.mxu0 %v2455_v1  ;;  %2789 = vmatpush1.msra.mxu1 %v2583_v2  ;;  %v2660_v1 = vld [vmem:[#allocation9 + $0x708] sm:$0xff]  ;;  %v2531_v2 = vld [vmem:[#allocation9 + $0x300] sm:$0xff] }
 0x284   : > { %2713 = vmatprep.subr.mxu0 %v2452_v3  ;;  %2790 = vmatprep.subr.mxu1 %v2580_v4  ;;  %v2659_v3 = vld [vmem:[#allocation9 + $0x700] sm:$0xff]  ;;  %v2528_v4 = vld [vmem:[#allocation9 + $0x2e8] sm:$0xff] }
 0x285   : > { %2714 = vmatpush1.msra.mxu0 %v2451_v6  ;;  %2791 = vmatpush1.msra.mxu1 %v2579_v7  ;;  %v2656_v6 = vld [vmem:[#allocation9 + $0x6e8] sm:$0xff]  ;;  %v2527_v7 = vld [vmem:[#allocation9 + $0x2e0] sm:$0xff] }
 0x286   : > { %2715 = vmatprep.subr.mxu0 %v2448_v8  ;;  %2792 = vmatprep.subr.mxu1 %v2576_v9  ;;  %v2655_v8 = vld [vmem:[#allocation9 + $0x6e0] sm:$0xff]  ;;  %v7238_v9 = vpop.f32.mrf.mxu0 }
 0x287   : > { %2716 = vmatpush1.msra.mxu0 %v2447_v5  ;;  %2793 = vmatpush1.msra.mxu1 %v2575_v10  ;;  %v7240_v5 = vpop.f32.mrf.mxu1  ;;  %v2524_v10 = vld [vmem:[#allocation9 + $0x2c8] sm:$0xff] }
 0x288   : > { %2717 = vmatprep.subr.mxu0 %v2444_v11  ;;  %2794 = vmatprep.subr.mxu1 %v2572_v12  ;;  %v2652_v11 = vld [vmem:[#allocation9 + $0x6c8] sm:$0xff]  ;;  %v2523_v12 = vld [vmem:[#allocation9 + $0x2c0] sm:$0xff] }
 0x289   : > { %2718 = vmatpush1.msra.mxu0 %v2443_v21  ;;  %2795 = vmatpush1.msra.mxu1 %v2571_v22  ;;  %v2651_v21 = vld [vmem:[#allocation9 + $0x6c0] sm:$0xff]  ;;  %v2520_v22 = vld [vmem:[#allocation9 + $0x2a8] sm:$0xff] }
 0x28a   : > { %2719 = vmatprep.subr.mxu0 %v2440_v0  ;;  %2796 = vmatprep.subr.mxu1 %v2568_v23  ;;  %v2648_v0 = vld [vmem:[#allocation9 + $0x6a8] sm:$0xff] }
 0x28b   : > { %2720 = vmatpush1.msra.mxu0 %v2439_v24  ;;  %2797 = vmatpush1.msra.mxu1 %v2567_v25  ;;  %v2519_v25 = vld [vmem:[#allocation9 + $0x2a0] sm:$0xff] }
 0x28c   : > { %2721 = vmatprep.subr.mxu0 %v2436_v26  ;;  %2798 = vmatprep.subr.mxu1 %v2564_v27  ;;  %v2647_v26 = vld [vmem:[#allocation9 + $0x6a0] sm:$0xff] }
 0x28d   : > { %2722 = vmatpush1.msra.mxu0 %v2435_v28  ;;  %2799 = vmatpush1.msra.mxu1 %v2563_v29  ;;  %v2516_v28 = vld [vmem:[#allocation9 + $0x288] sm:$0xff] }
 0x28e   : > { %2723 = vmatprep.subr.mxu0 %v2560_v30  ;;  %2800 = vmatprep.subr.mxu1 %v2688_v31  ;;  %v2644_v29 = vld [vmem:[#allocation9 + $0x688] sm:$0xff]  ;;  %v2515_v30 = vld [vmem:[#allocation9 + $0x280] sm:$0xff] }
 0x28f   : > { %2724 = vmatpush2.msra.mxu0 %v2559_v36  ;;  %2801 = vmatpush2.msra.mxu1 %v2687_v37  ;;  %v2643_v31 = vld [vmem:[#allocation9 + $0x680] sm:$0xff]  ;;  %v2512_v36 = vld [vmem:[#allocation9 + $0x268] sm:$0xff] }
 0x290   : > { %2725 = vmatprep.subr.mxu0 %v2556_v38  ;;  %2802 = vmatprep.subr.mxu1 %v2684_v39  ;;  %v2640_v37 = vld [vmem:[#allocation9 + $0x668] sm:$0xff]  ;;  %v2511_v38 = vld [vmem:[#allocation9 + $0x260] sm:$0xff] }
 0x291   : > { %2726 = vmatpush2.msra.mxu0 %v2555_v40  ;;  %2803 = vmatpush2.msra.mxu1 %v2683_v41  ;;  %v2639_v39 = vld [vmem:[#allocation9 + $0x660] sm:$0xff]  ;;  %v2508_v40 = vld [vmem:[#allocation9 + $0x248] sm:$0xff] }
 0x292   : > { %2727 = vmatprep.subr.mxu0 %v2552_v42  ;;  %2804 = vmatprep.subr.mxu1 %v2680_v43  ;;  %v2636_v41 = vld [vmem:[#allocation9 + $0x648] sm:$0xff]  ;;  %v2507_v42 = vld [vmem:[#allocation9 + $0x240] sm:$0xff] }
 0x293   : > { %2728 = vmatpush2.msra.mxu0 %v2551_v44  ;;  %2805 = vmatpush2.msra.mxu1 %v2679_v45  ;;  %v2635_v43 = vld [vmem:[#allocation9 + $0x640] sm:$0xff]  ;;  %v2504_v44 = vld [vmem:[#allocation9 + $0x228] sm:$0xff] }
 0x294   : > { %2729 = vmatprep.subr.mxu0 %v2548_v46  ;;  %2806 = vmatprep.subr.mxu1 %v2676_v47  ;;  %v2632_v45 = vld [vmem:[#allocation9 + $0x628] sm:$0xff]  ;;  %v2503_v46 = vld [vmem:[#allocation9 + $0x220] sm:$0xff] }
 0x295   : > { %2730 = vmatpush2.msra.mxu0 %v2547_v49  ;;  %2807 = vmatpush2.msra.mxu1 %v2675_v50  ;;  %v2631_v47 = vld [vmem:[#allocation9 + $0x620] sm:$0xff]  ;;  %v1250_v49 = vrot.slane %v7182_v32, 1  ;;  %v1252_v50 = vrot.slane %v7184_v33, 1  ;;  %v1249_v33 = vrot.slane %v7186_v34, 1  ;;  %v2622_v34 = vld [vmem:[#allocation9 + $0x5d8] sm:$0xff] }
 0x296   : > { %2731 = vmatprep.subr.mxu0 %v2544_v51  ;;  %2808 = vmatprep.subr.mxu1 %v2672_v52  ;;  %v2500_v51 = vld [vmem:[#allocation9 + $0x208] sm:$0xff] }
 0x297   : > { %2732 = vmatpush2.msra.mxu0 %v2543_v53  ;;  %2809 = vmatpush2.msra.mxu1 %v2671_v54  ;;  %v2628_v52 = vld [vmem:[#allocation9 + $0x608] sm:$0xff]  ;;  %v2499_v53 = vld [vmem:[#allocation9 + $0x200] sm:$0xff]  ;;  %v1260_v32 = vsel %vm580_vm1, %v1252_v50, 0.0 }
 0x298   : > { %2733 = vmatprep.subr.mxu0 %v2540_v55  ;;  %2810 = vmatprep.subr.mxu1 %v2668_v56  ;;  %v2627_v54 = vld [vmem:[#allocation9 + $0x600] sm:$0xff]  ;;  %v2498_v55 = vld [vmem:[#allocation9 + $0x1f8] sm:$0xff] }
 0x299   : > { %2734 = vmatpush2.msra.mxu0 %v2539_v57  ;;  %2811 = vmatpush2.msra.mxu1 %v2667_v58  ;;  %v2626_v56 = vld [vmem:[#allocation9 + $0x5f8] sm:$0xff]  ;;  %v1258_v57 = vsel %vm580_vm1, %v1250_v49, 0.0  ;;  %v1251_v58 = vrot.slane %v7188_v35, 1  ;;  %v2493_v35 = vld [vmem:[#allocation9 + $0x1d0] sm:$0xff] }
 0x29a   : > { %2735 = vmatprep.subr.mxu0 %v2536_v59  ;;  %2812 = vmatprep.subr.mxu1 %v2664_v60  ;;  %v2497_v59 = vld [vmem:[#allocation9 + $0x1f0] sm:$0xff] }
 0x29b   : > { %2736 = vmatpush2.msra.mxu0 %v2535_v61  ;;  %2813 = vmatpush2.msra.mxu1 %v2663_v62  ;;  %v2625_v60 = vld [vmem:[#allocation9 + $0x5f0] sm:$0xff]  ;;  %v7253_v61 = vsel %vm575_vm0, %v1258_v57, %v1250_v49  ;;  %v7256_v62 = vsel %vm575_vm0, %v1260_v32, %v1252_v50 }
 0x29c   : > { %2737 = vmatprep.subr.mxu0 %v2532_v63  ;;  %2814 = vmatprep.subr.mxu1 %v2660_v1  ;;  %v2494_v63 = vld [vmem:[#allocation9 + $0x1d8] sm:$0xff]  ;;  %v2621_v1 = vld [vmem:[#allocation9 + $0x5d0] sm:$0xff] }
 0x29d   : > { %2738 = vmatpush2.msra.mxu0 %v2531_v2  ;;  %2815 = vmatpush2.msra.mxu1 %v2659_v3  ;;  %v1257_v2 = vsel %vm580_vm1, %v1249_v33, 0.0  ;;  %v1259_v3 = vsel %vm580_vm1, %v1251_v58, 0.0  ;;  %v2461_v49 = vld [vmem:[#allocation9 + $0xd0] sm:$0xff] }
 0x29e   : > { %2739 = vmatprep.subr.mxu0 %v2528_v4  ;;  %2816 = vmatprep.subr.mxu1 %v2656_v6  ;;  %v2490_v4 = vld [vmem:[#allocation9 + $0x1b8] sm:$0xff]  ;;  %v2589_v50 = vld [vmem:[#allocation9 + $0x4d0] sm:$0xff] }
 0x29f   : > { %2740 = vmatpush2.msra.mxu0 %v2527_v7  ;;  %2817 = vmatpush2.msra.mxu1 %v2655_v8  ;;  %v1854_v23 = vpop.f32.mrf.mxu0  ;;  %v1931_v24 = vpop.f32.mrf.mxu1  ;;  %v2618_v6 = vld [vmem:[#allocation9 + $0x5b8] sm:$0xff]  ;;  %v7265_v7 = vsel %vm575_vm0, %v1257_v2, %v1249_v33  ;;  %v7268_v8 = vsel %vm575_vm0, %v1259_v3, %v1251_v58  ;;  %v2453_v57 = vld [vmem:[#allocation9 + $0x90] sm:$0xff] }
 0x2a0   : > { %2741 = vmatprep.subr.mxu0 %v2524_v10  ;;  %2818 = vmatprep.subr.mxu1 %v2652_v11  ;;  %v7242_v27 = vadd.f32 %v1931_v24, %v1854_v23  ;;  %v2489_v10 = vld [vmem:[#allocation9 + $0x1b0] sm:$0xff]  ;;  %v2482_v23 = vld [vmem:[#allocation9 + $0x178] sm:$0xff] }
 0x2a1   : > { %2742 = vmatpush2.msra.mxu0 %v2523_v12  ;;  %2819 = vmatpush2.msra.mxu1 %v2651_v21  ;;  %v2617_v11 = vld [vmem:[#allocation9 + $0x5b0] sm:$0xff]  ;;  %v2486_v12 = vld [vmem:[#allocation9 + $0x198] sm:$0xff] }
 0x2a2   : > { %2743 = vmatprep.subr.mxu0 %v2520_v22  ;;  %2820 = vmatprep.subr.mxu1 %v2648_v0  ;;  %v2614_v21 = vld [vmem:[#allocation9 + $0x598] sm:$0xff]  ;;  %v2485_v22 = vld [vmem:[#allocation9 + $0x190] sm:$0xff] }
 0x2a3   : > { %2744 = vmatpush2.msra.mxu0 %v2519_v25  ;;  %2821 = vmatpush2.msra.mxu1 %v2647_v26  ;;  %v2613_v0 = vld [vmem:[#allocation9 + $0x590] sm:$0xff]  ;;  %v2610_v24 = vld [vmem:[#allocation9 + $0x578] sm:$0xff] }
 0x2a4   : > { %2745 = vmatprep.subr.mxu0 %v2516_v28  ;;  %2822 = vmatprep.subr.mxu1 %v2644_v29  ;;  %v2481_v25 = vld [vmem:[#allocation9 + $0x170] sm:$0xff]  ;;  %v2478_v28 = vld [vmem:[#allocation9 + $0x158] sm:$0xff] }
 0x2a5   : > { %2746 = vmatpush2.msra.mxu0 %v2515_v30  ;;  %2823 = vmatpush2.msra.mxu1 %v2643_v31  ;;  %v2609_v26 = vld [vmem:[#allocation9 + $0x570] sm:$0xff]  ;;  %v2606_v29 = vld [vmem:[#allocation9 + $0x558] sm:$0xff] }
 0x2a6   : > { %2747 = vmatprep.subr.mxu0 %v2512_v36  ;;  %2824 = vmatprep.subr.mxu1 %v2640_v37  ;;  %v2477_v30 = vld [vmem:[#allocation9 + $0x150] sm:$0xff]  ;;  %v2602_v36 = vld [vmem:[#allocation9 + $0x538] sm:$0xff] }
 0x2a7   : > { %2748 = vmatpush2.msra.mxu0 %v2511_v38  ;;  %2825 = vmatpush2.msra.mxu1 %v2639_v39  ;;  %v2605_v31 = vld [vmem:[#allocation9 + $0x550] sm:$0xff]  ;;  %v2470_v38 = vld [vmem:[#allocation9 + $0x118] sm:$0xff] }
 0x2a8   : > { %2749 = vmatprep.subr.mxu0 %v2508_v40  ;;  %2826 = vmatprep.subr.mxu1 %v2636_v41  ;;  %v2601_v37 = vld [vmem:[#allocation9 + $0x530] sm:$0xff]  ;;  %v2598_v39 = vld [vmem:[#allocation9 + $0x518] sm:$0xff] }
 0x2a9   : > { %2750 = vmatpush2.msra.mxu0 %v2507_v42  ;;  %2827 = vmatpush2.msra.mxu1 %v2635_v43  ;;  %v2469_v40 = vld [vmem:[#allocation9 + $0x110] sm:$0xff]  ;;  %v2466_v42 = vld [vmem:[#allocation9 + $0xf8] sm:$0xff] }
 0x2aa   : > { %2751 = vmatprep.subr.mxu0 %v2504_v44  ;;  %2828 = vmatprep.subr.mxu1 %v2632_v45  ;;  %v2597_v41 = vld [vmem:[#allocation9 + $0x510] sm:$0xff]  ;;  %v2594_v43 = vld [vmem:[#allocation9 + $0x4f8] sm:$0xff] }
 0x2ab   : > { %2752 = vmatpush2.msra.mxu0 %v2503_v46  ;;  %2829 = vmatpush2.msra.mxu1 %v2631_v47  ;;  %v2465_v44 = vld [vmem:[#allocation9 + $0xf0] sm:$0xff]  ;;  %v2462_v46 = vld [vmem:[#allocation9 + $0xd8] sm:$0xff] }
 0x2ac   : > { %2753 = vmatprep.subr.mxu0 %v2500_v51  ;;  %2830 = vmatprep.subr.mxu1 %v2628_v52  ;;  %v2593_v45 = vld [vmem:[#allocation9 + $0x4f0] sm:$0xff]  ;;  %v2590_v47 = vld [vmem:[#allocation9 + $0x4d8] sm:$0xff] }
 0x2ad   : > { %2754 = vmatpush2.msra.mxu0 %v2499_v53  ;;  %2831 = vmatpush2.msra.mxu1 %v2627_v54  ;;  %v2458_v51 = vld [vmem:[#allocation9 + $0xb8] sm:$0xff]  ;;  %v2457_v53 = vld [vmem:[#allocation9 + $0xb0] sm:$0xff] }
 0x2ae   : > { %2756 = vmatmul.mubr.f32.vlgmr.msra.gmra.mxu0 %v7202_v15  ;;  %2833 = vmatmul.mubr.f32.vlgmr.msra.gmra.mxu1 %v7204_v18  ;;  %v2586_v52 = vld [vmem:[#allocation9 + $0x4b8] sm:$0xff]  ;;  %v2585_v54 = vld [vmem:[#allocation9 + $0x4b0] sm:$0xff] }
 0x2af   : > { %2845 = vmatprep.subr.mxu0 %v2498_v55  ;;  %2922 = vmatprep.subr.mxu1 %v2626_v56  ;;  %v2454_v55 = vld [vmem:[#allocation9 + $0x98] sm:$0xff]  ;;  %v2581_v32 = vld [vmem:[#allocation9 + $0x490] sm:$0xff] }
 0x2b0   : > { %6069 = vmatprep.mubr.msk.f32.mxu0 %vm583_vm2, %v7253_v61  ;;  %6071 = vmatprep.mubr.msk.f32.mxu1 %vm583_vm2, %v7256_v62  ;;  %v2582_v56 = vld [vmem:[#allocation9 + $0x498] sm:$0xff] }
 0x2b1   : > { %2846 = vmatpush1.msra.mxu0 %v2497_v59  ;;  %2923 = vmatpush1.msra.mxu1 %v2625_v60  ;;  %v2450_v33 = vld [vmem:[#allocation9 + $0x78] sm:$0xff]  ;;  %v2449_v59 = vld [vmem:[#allocation9 + $0x70] sm:$0xff] }
 0x2b2   : > { %2847 = vmatprep.subr.mxu0 %v2494_v63  ;;  %2924 = vmatprep.subr.mxu1 %v2622_v34  ;;  %v2578_v58 = vld [vmem:[#allocation9 + $0x478] sm:$0xff]  ;;  %v2577_v60 = vld [vmem:[#allocation9 + $0x470] sm:$0xff] }
 0x2b3   : > { %2848 = vmatpush1.msra.mxu0 %v2493_v35  ;;  %2925 = vmatpush1.msra.mxu1 %v2621_v1  ;;  %v2446_v63 = vld [vmem:[#allocation9 + $0x58] sm:$0xff]  ;;  %v2445_v35 = vld [vmem:[#allocation9 + $0x50] sm:$0xff] }
 0x2b4   : > { %6070 = vmatmul.mubr.msk.f32.gmra.mxu0 %vm583_vm2, %v7265_v7  ;;  %6072 = vmatmul.mubr.msk.f32.gmra.mxu1 %vm583_vm2, %v7268_v8  ;;  %v2574_v34 = vld [vmem:[#allocation9 + $0x458] sm:$0xff]  ;;  %v2573_v1 = vld [vmem:[#allocation9 + $0x450] sm:$0xff] }
 0x2b5   : > { %2849 = vmatprep.subr.mxu0 %v2490_v4  ;;  %2926 = vmatprep.subr.mxu1 %v2618_v6  ;;  %v2442_v2 = vld [vmem:[#allocation9 + $0x38] sm:$0xff]  ;;  %v2441_v4 = vld [vmem:[#allocation9 + $0x30] sm:$0xff] }
 0x2b6   : > { %2850 = vmatpush1.msra.mxu0 %v2489_v10  ;;  %2909 = vmatprep.mubr.f32.mxu0 %v7198_v13  ;;  %v2474_v13 = vld [vmem:[#allocation9 + $0x138] sm:$0xff]  ;;  %v2569_v6 = vld [vmem:[#allocation9 + $0x430] sm:$0xff] }
 0x2b7   : > { %2927 = vmatpush1.msra.mxu1 %v2617_v11  ;;  %2986 = vmatprep.mubr.f32.mxu1 %v7200_v14  ;;  %v2473_v14 = vld [vmem:[#allocation9 + $0x130] sm:$0xff]  ;;  %v2570_v3 = vld [vmem:[#allocation9 + $0x438] sm:$0xff] }
 0x2b8   : > { %2851 = vmatprep.subr.mxu0 %v2486_v12  ;;  %2928 = vmatprep.subr.mxu1 %v2614_v21  ;;  %v2438_v10 = vld [vmem:[#allocation9 + $0x18] sm:$0xff]  ;;  %v2437_v12 = vld [vmem:[#allocation9 + $0x10] sm:$0xff] }
 0x2b9   : > { %2852 = vmatpush1.msra.mxu0 %v2485_v22  ;;  %2929 = vmatpush1.msra.mxu1 %v2613_v0  ;;  %v2566_v11 = vld [vmem:[#allocation9 + $0x418] sm:$0xff]  ;;  %v2565_v21 = vld [vmem:[#allocation9 + $0x410] sm:$0xff] }
 0x2ba   : > { %2853 = vmatprep.subr.mxu0 %v2482_v23  ;;  %2930 = vmatprep.subr.mxu1 %v2610_v24  ;;  %v2562_v22 = vld [vmem:[#allocation9 + $0x3f8] sm:$0xff]  ;;  %v2561_v23 = vld [vmem:[#allocation9 + $0x3f0] sm:$0xff] }
 0x2bb   : > { %2854 = vmatpush1.msra.mxu0 %v2481_v25  ;;  %2931 = vmatpush1.msra.mxu1 %v2609_v26  ;;  %v2690_v0 = vld [vmem:[#allocation9 + $0x7f8] sm:$0xff]  ;;  %v2689_v24 = vld [vmem:[#allocation9 + $0x7f0] sm:$0xff] }
 0x2bc   : > { %2855 = vmatprep.subr.mxu0 %v2478_v28  ;;  %2932 = vmatprep.subr.mxu1 %v2606_v29  ;;  %v2558_v25 = vld [vmem:[#allocation9 + $0x3d8] sm:$0xff]  ;;  %v2557_v28 = vld [vmem:[#allocation9 + $0x3d0] sm:$0xff] }
 0x2bd   : > { %2856 = vmatpush1.msra.mxu0 %v2477_v30  ;;  %2933 = vmatpush1.msra.mxu1 %v2605_v31  ;;  %v2686_v26 = vld [vmem:[#allocation9 + $0x7d8] sm:$0xff]  ;;  %v2685_v29 = vld [vmem:[#allocation9 + $0x7d0] sm:$0xff] }
 0x2be   : > { %2857 = vmatprep.subr.mxu0 %v2474_v13  ;;  %2934 = vmatprep.subr.mxu1 %v2602_v36  ;;  %v2554_v30 = vld [vmem:[#allocation9 + $0x3b8] sm:$0xff]  ;;  %v2553_v13 = vld [vmem:[#allocation9 + $0x3b0] sm:$0xff] }
 0x2bf   : > { %2858 = vmatpush1.msra.mxu0 %v2473_v14  ;;  %2935 = vmatpush1.msra.mxu1 %v2601_v37  ;;  %v2682_v31 = vld [vmem:[#allocation9 + $0x7b8] sm:$0xff]  ;;  %v2681_v36 = vld [vmem:[#allocation9 + $0x7b0] sm:$0xff] }
 0x2c0   : > { %2859 = vmatprep.subr.mxu0 %v2470_v38  ;;  %2936 = vmatprep.subr.mxu1 %v2598_v39  ;;  %v2550_v14 = vld [vmem:[#allocation9 + $0x398] sm:$0xff]  ;;  %v2549_v38 = vld [vmem:[#allocation9 + $0x390] sm:$0xff] }
 0x2c1   : > { %2860 = vmatpush1.msra.mxu0 %v2469_v40  ;;  %2937 = vmatpush1.msra.mxu1 %v2597_v41  ;;  %v2678_v37 = vld [vmem:[#allocation9 + $0x798] sm:$0xff]  ;;  %v2677_v39 = vld [vmem:[#allocation9 + $0x790] sm:$0xff] }
 0x2c2   : > { %2861 = vmatprep.subr.mxu0 %v2466_v42  ;;  %2938 = vmatprep.subr.mxu1 %v2594_v43  ;;  %v2546_v40 = vld [vmem:[#allocation9 + $0x378] sm:$0xff]  ;;  %v2545_v42 = vld [vmem:[#allocation9 + $0x370] sm:$0xff] }
 0x2c3   : > { %2862 = vmatpush1.msra.mxu0 %v2465_v44  ;;  %2939 = vmatpush1.msra.mxu1 %v2593_v45  ;;  %v2674_v41 = vld [vmem:[#allocation9 + $0x778] sm:$0xff]  ;;  %v2673_v43 = vld [vmem:[#allocation9 + $0x770] sm:$0xff] }
 0x2c4   : > { %2863 = vmatprep.subr.mxu0 %v2462_v46  ;;  %2940 = vmatprep.subr.mxu1 %v2590_v47  ;;  %v2542_v44 = vld [vmem:[#allocation9 + $0x358] sm:$0xff]  ;;  %v2541_v46 = vld [vmem:[#allocation9 + $0x350] sm:$0xff] }
 0x2c5   : > { %2864 = vmatpush1.msra.mxu0 %v2461_v49  ;;  %2941 = vmatpush1.msra.mxu1 %v2589_v50  ;;  %v2670_v45 = vld [vmem:[#allocation9 + $0x758] sm:$0xff]  ;;  %v2669_v47 = vld [vmem:[#allocation9 + $0x750] sm:$0xff] }
 0x2c6   : > { %2865 = vmatprep.subr.mxu0 %v2458_v51  ;;  %2942 = vmatprep.subr.mxu1 %v2586_v52  ;;  %v2538_v49 = vld [vmem:[#allocation9 + $0x338] sm:$0xff]  ;;  %v2537_v51 = vld [vmem:[#allocation9 + $0x330] sm:$0xff] }
 0x2c7   : > { %2866 = vmatpush1.msra.mxu0 %v2457_v53  ;;  %2943 = vmatpush1.msra.mxu1 %v2585_v54  ;;  %v2666_v50 = vld [vmem:[#allocation9 + $0x738] sm:$0xff]  ;;  %v2665_v52 = vld [vmem:[#allocation9 + $0x730] sm:$0xff] }
 0x2c8   : > { %2867 = vmatprep.subr.mxu0 %v2454_v55  ;;  %2944 = vmatprep.subr.mxu1 %v2582_v56  ;;  %v2534_v53 = vld [vmem:[#allocation9 + $0x318] sm:$0xff]  ;;  %v2533_v55 = vld [vmem:[#allocation9 + $0x310] sm:$0xff] }
 0x2c9   : > { %2868 = vmatpush1.msra.mxu0 %v2453_v57  ;;  %2945 = vmatpush1.msra.mxu1 %v2581_v32  ;;  %v2662_v54 = vld [vmem:[#allocation9 + $0x718] sm:$0xff]  ;;  %v2661_v56 = vld [vmem:[#allocation9 + $0x710] sm:$0xff] }
 0x2ca   : > { %2869 = vmatprep.subr.mxu0 %v2450_v33  ;;  %2946 = vmatprep.subr.mxu1 %v2578_v58  ;;  %v2530_v57 = vld [vmem:[#allocation9 + $0x2f8] sm:$0xff]  ;;  %v2529_v33 = vld [vmem:[#allocation9 + $0x2f0] sm:$0xff] }
 0x2cb   : > { %2870 = vmatpush1.msra.mxu0 %v2449_v59  ;;  %2947 = vmatpush1.msra.mxu1 %v2577_v60  ;;  %v2658_v32 = vld [vmem:[#allocation9 + $0x6f8] sm:$0xff]  ;;  %v2657_v58 = vld [vmem:[#allocation9 + $0x6f0] sm:$0xff] }
 0x2cc   : > { %2871 = vmatprep.subr.mxu0 %v2446_v63  ;;  %2948 = vmatprep.subr.mxu1 %v2574_v34  ;;  %v2526_v59 = vld [vmem:[#allocation9 + $0x2d8] sm:$0xff]  ;;  %v2525_v63 = vld [vmem:[#allocation9 + $0x2d0] sm:$0xff] }
 0x2cd   : > { %2872 = vmatpush1.msra.mxu0 %v2445_v35  ;;  %2949 = vmatpush1.msra.mxu1 %v2573_v1  ;;  %v2654_v60 = vld [vmem:[#allocation9 + $0x6d8] sm:$0xff]  ;;  %v2653_v34 = vld [vmem:[#allocation9 + $0x6d0] sm:$0xff] }
 0x2ce   : > { %2873 = vmatprep.subr.mxu0 %v2442_v2  ;;  %2950 = vmatprep.subr.mxu1 %v2570_v3  ;;  %v2522_v35 = vld [vmem:[#allocation9 + $0x2b8] sm:$0xff]  ;;  %v2521_v2 = vld [vmem:[#allocation9 + $0x2b0] sm:$0xff] }
 0x2cf   : > { %2874 = vmatpush1.msra.mxu0 %v2441_v4  ;;  %2951 = vmatpush1.msra.mxu1 %v2569_v6  ;;  %v2650_v1 = vld [vmem:[#allocation9 + $0x6b8] sm:$0xff]  ;;  %v2649_v3 = vld [vmem:[#allocation9 + $0x6b0] sm:$0xff] }
 0x2d0   : > { %2875 = vmatprep.subr.mxu0 %v2438_v10  ;;  %2952 = vmatprep.subr.mxu1 %v2566_v11  ;;  %v2518_v4 = vld [vmem:[#allocation9 + $0x298] sm:$0xff]  ;;  %v7276_v10 = vpop.f32.mrf.mxu0  ;;  %v7278_v11 = vpop.f32.mrf.mxu1 }
 0x2d1   : > { %2876 = vmatpush1.msra.mxu0 %v2437_v12  ;;  %2953 = vmatpush1.msra.mxu1 %v2565_v21  ;;  %v2646_v6 = vld [vmem:[#allocation9 + $0x698] sm:$0xff]  ;;  %v2517_v12 = vld [vmem:[#allocation9 + $0x290] sm:$0xff] }
 0x2d2   : > { %2877 = vmatprep.subr.mxu0 %v2562_v22  ;;  %2954 = vmatprep.subr.mxu1 %v2690_v0  ;;  %v2645_v21 = vld [vmem:[#allocation9 + $0x690] sm:$0xff]  ;;  %v2514_v22 = vld [vmem:[#allocation9 + $0x278] sm:$0xff] }
 0x2d3   : > { %2878 = vmatpush2.msra.mxu0 %v2561_v23  ;;  %2955 = vmatpush2.msra.mxu1 %v2689_v24  ;;  %v2642_v0 = vld [vmem:[#allocation9 + $0x678] sm:$0xff]  ;;  %v2513_v23 = vld [vmem:[#allocation9 + $0x270] sm:$0xff] }
 0x2d4   : > { %2879 = vmatprep.subr.mxu0 %v2558_v25  ;;  %2956 = vmatprep.subr.mxu1 %v2686_v26  ;;  %v2641_v24 = vld [vmem:[#allocation9 + $0x670] sm:$0xff]  ;;  %v2510_v25 = vld [vmem:[#allocation9 + $0x258] sm:$0xff] }
 0x2d5   : > { %2880 = vmatpush2.msra.mxu0 %v2557_v28  ;;  %2957 = vmatpush2.msra.mxu1 %v2685_v29  ;;  %v2638_v26 = vld [vmem:[#allocation9 + $0x658] sm:$0xff]  ;;  %v7280_v28 = vpop.f32.mrf.mxu0  ;;  %v7282_v29 = vpop.f32.mrf.mxu1 }
 0x2d6   : > { %2881 = vmatprep.subr.mxu0 %v2554_v30  ;;  %2958 = vmatprep.subr.mxu1 %v2682_v31  ;;  %v2509_v30 = vld [vmem:[#allocation9 + $0x250] sm:$0xff] }
 0x2d7   : > { %2882 = vmatpush2.msra.mxu0 %v2553_v13  ;;  %2959 = vmatpush2.msra.mxu1 %v2681_v36  ;;  %v2637_v31 = vld [vmem:[#allocation9 + $0x650] sm:$0xff]  ;;  %v2506_v13 = vld [vmem:[#allocation9 + $0x238] sm:$0xff] }
 0x2d8   : > { %2883 = vmatprep.subr.mxu0 %v2550_v14  ;;  %2960 = vmatprep.subr.mxu1 %v2678_v37  ;;  %v2634_v36 = vld [vmem:[#allocation9 + $0x638] sm:$0xff]  ;;  %v2505_v14 = vld [vmem:[#allocation9 + $0x230] sm:$0xff] }
 0x2d9   : > { %2884 = vmatpush2.msra.mxu0 %v2549_v38  ;;  %2961 = vmatpush2.msra.mxu1 %v2677_v39  ;;  %v2633_v37 = vld [vmem:[#allocation9 + $0x630] sm:$0xff]  ;;  %v2502_v38 = vld [vmem:[#allocation9 + $0x218] sm:$0xff] }
 0x2da   : > { %2885 = vmatprep.subr.mxu0 %v2546_v40  ;;  %2962 = vmatprep.subr.mxu1 %v2674_v41  ;;  %v2630_v39 = vld [vmem:[#allocation9 + $0x618] sm:$0xff]  ;;  %v2004_v40 = vpop.f32.mrf.mxu0  ;;  %v2081_v41 = vpop.f32.mrf.mxu1 }
 0x2db   : > { %2886 = vmatpush2.msra.mxu0 %v2545_v42  ;;  %2963 = vmatpush2.msra.mxu1 %v2673_v43  ;;  %v2501_v42 = vld [vmem:[#allocation9 + $0x210] sm:$0xff] }
 0x2dc   : > { %2887 = vmatprep.subr.mxu0 %v2542_v44  ;;  %2964 = vmatprep.subr.mxu1 %v2670_v45  ;;  %v2629_v43 = vld [vmem:[#allocation9 + $0x610] sm:$0xff]  ;;  %v7284_v44 = vld [vmem:[#allocation10] sm:$0xf]  ;;  %v1928_v45 = vadd.f32 %v7240_v5, %v7238_v9  ;;  %v3168_v9 = vld [vmem:[#allocation12 + $0x3c0] sm:$0xff] }
 0x2dd   : > { %2888 = vmatpush2.msra.mxu0 %v2541_v46  ;;  %2965 = vmatpush2.msra.mxu1 %v2669_v47  ;;  %v7290_v46 = vrot.slane %v7284_v44, %v7162_v19  ;;  %v3169_v47 = vld [vmem:[#allocation12 + $0x3c8] sm:$0xff]  ;;  %v3424_v5 = vld [vmem:[#allocation12 + $0xbc0] sm:$0xff] }
 0x2de   : > { %2889 = vmatprep.subr.mxu0 %v2538_v49  ;;  %2966 = vmatprep.subr.mxu1 %v2666_v50  ;;  %v3425_v49 = vld [vmem:[#allocation12 + $0xbc8] sm:$0xff]  ;;  %v2082_v50 = vadd.f32 %v2081_v41, %v2004_v40  ;;  %v3088_v41 = vld [vmem:[#allocation12 + $0x140] sm:$0xff] }
 0x2df   : > { %2890 = vmatpush2.msra.mxu0 %v2537_v51  ;;  %2967 = vmatpush2.msra.mxu1 %v2665_v52  ;;  %v7294_v51 = vrot.slane %v7284_v44, %v7164_v20  ;;  %v3161_v52 = vld [vmem:[#allocation12 + $0x388] sm:$0xff] }
 0x2e0   : > { %2891 = vmatprep.subr.mxu0 %v2534_v53  ;;  %2968 = vmatprep.subr.mxu1 %v2662_v54  ;;  %v3417_v53 = vld [vmem:[#allocation12 + $0xb88] sm:$0xff]  ;;  %v2420_v54 = vadd.f32 %v7290_v46, %v1928_v45 }
 0x2e1   : > { %2892 = vmatpush2.msra.mxu0 %v2533_v55  ;;  %2969 = vmatpush2.msra.mxu1 %v2661_v56  ;;  %v3160_v55 = vld [vmem:[#allocation12 + $0x380] sm:$0xff]  ;;  %v3345_v40 = vld [vmem:[#allocation12 + $0x948] sm:$0xff] }
 0x2e2   : > { %2893 = vmatprep.subr.mxu0 %v2530_v57  ;;  %2970 = vmatprep.subr.mxu1 %v2658_v32  ;;  %v3416_v56 = vld [vmem:[#allocation12 + $0xb80] sm:$0xff]  ;;  %v3409_v57 = vld [vmem:[#allocation12 + $0xb48] sm:$0xff] }
 0x2e3   : > { %2894 = vmatpush2.msra.mxu0 %v2529_v33  ;;  %2971 = vmatpush2.msra.mxu1 %v2657_v58  ;;  %v3152_v32 = vld [vmem:[#allocation12 + $0x340] sm:$0xff]  ;;  %v7304_v33 = vmax.f32 %v2420_v54, 0.0  ;;  %v3145_v58 = vld [vmem:[#allocation12 + $0x308] sm:$0xff] }
 0x2e4   : > { %2895 = vmatprep.subr.mxu0 %v2526_v59  ;;  %2972 = vmatprep.subr.mxu1 %v2654_v60  ;;  %v3401_v59 = vld [vmem:[#allocation12 + $0xb08] sm:$0xff]  ;;  %v3144_v60 = vld [vmem:[#allocation12 + $0x300] sm:$0xff] }
 0x2e5   : > { %2896 = vmatpush2.msra.mxu0 %v2525_v63  ;;  %2973 = vmatpush2.msra.mxu1 %v2653_v34  ;;  %v3400_v63 = vld [vmem:[#allocation12 + $0xb00] sm:$0xff]  ;;  %v3137_v34 = vld [vmem:[#allocation12 + $0x2c8] sm:$0xff] }
 0x2e6   : > { %2897 = vmatprep.subr.mxu0 %v2522_v35  ;;  %2974 = vmatprep.subr.mxu1 %v2650_v1  ;;  %v3392_v35 = vld [vmem:[#allocation12 + $0xac0] sm:$0xff]  ;;  %v3129_v1 = vld [vmem:[#allocation12 + $0x288] sm:$0xff] }
 0x2e7   : > { %2898 = vmatpush2.msra.mxu0 %v2521_v2  ;;  %2975 = vmatpush2.msra.mxu1 %v2649_v3  ;;  %v3385_v2 = vld [vmem:[#allocation12 + $0xa88] sm:$0xff]  ;;  %v3128_v3 = vld [vmem:[#allocation12 + $0x280] sm:$0xff] }
 0x2e8   : > { %2899 = vmatprep.subr.mxu0 %v2518_v4  ;;  %2976 = vmatprep.subr.mxu1 %v2646_v6  ;;  %v3384_v4 = vld [vmem:[#allocation12 + $0xa80] sm:$0xff]  ;;  %v3121_v6 = vld [vmem:[#allocation12 + $0x248] sm:$0xff] }
 0x2e9   : > { %2900 = vmatpush2.msra.mxu0 %v2517_v12  ;;  %2977 = vmatpush2.msra.mxu1 %v2645_v21  ;;  %v3377_v12 = vld [vmem:[#allocation12 + $0xa48] sm:$0xff]  ;;  %v3120_v21 = vld [vmem:[#allocation12 + $0x240] sm:$0xff] }
 0x2ea   : > { %2901 = vmatprep.subr.mxu0 %v2514_v22  ;;  %2978 = vmatprep.subr.mxu1 %v2642_v0  ;;  %v3376_v22 = vld [vmem:[#allocation12 + $0xa40] sm:$0xff]  ;;  %v3113_v0 = vld [vmem:[#allocation12 + $0x208] sm:$0xff] }
 0x2eb   : > { %2902 = vmatpush2.msra.mxu0 %v2513_v23  ;;  %2979 = vmatpush2.msra.mxu1 %v2641_v24  ;;  %v3369_v23 = vld [vmem:[#allocation12 + $0xa08] sm:$0xff]  ;;  %v3112_v24 = vld [vmem:[#allocation12 + $0x200] sm:$0xff] }
 0x2ec   : > { %2903 = vmatprep.subr.mxu0 %v2510_v25  ;;  %2980 = vmatprep.subr.mxu1 %v2638_v26  ;;  %v3368_v25 = vld [vmem:[#allocation12 + $0xa00] sm:$0xff]  ;;  %v3105_v26 = vld [vmem:[#allocation12 + $0x1c8] sm:$0xff] }
 0x2ed   : > { %2904 = vmatpush2.msra.mxu0 %v2509_v30  ;;  %2981 = vmatpush2.msra.mxu1 %v2637_v31  ;;  %v3361_v30 = vld [vmem:[#allocation12 + $0x9c8] sm:$0xff]  ;;  %v3104_v31 = vld [vmem:[#allocation12 + $0x1c0] sm:$0xff] }
 0x2ee   : > { %2905 = vmatprep.subr.mxu0 %v2506_v13  ;;  %2982 = vmatprep.subr.mxu1 %v2634_v36  ;;  %v3360_v13 = vld [vmem:[#allocation12 + $0x9c0] sm:$0xff]  ;;  %v3097_v36 = vld [vmem:[#allocation12 + $0x188] sm:$0xff] }
 0x2ef   : > { %2906 = vmatpush2.msra.mxu0 %v2505_v14  ;;  %2983 = vmatpush2.msra.mxu1 %v2633_v37  ;;  %v3353_v14 = vld [vmem:[#allocation12 + $0x988] sm:$0xff]  ;;  %v3096_v37 = vld [vmem:[#allocation12 + $0x180] sm:$0xff] }
 0x2f0   : > { %2907 = vmatprep.subr.mxu0 %v2502_v38  ;;  %2984 = vmatprep.subr.mxu1 %v2630_v39  ;;  %v3352_v38 = vld [vmem:[#allocation12 + $0x980] sm:$0xff]  ;;  %v3089_v39 = vld [vmem:[#allocation12 + $0x148] sm:$0xff] }
 0x2f1   : > { %2908 = vmatpush2.msra.mxu0 %v2501_v42  ;;  %2985 = vmatpush2.msra.mxu1 %v2629_v43  ;;  %v3344_v42 = vld [vmem:[#allocation12 + $0x940] sm:$0xff]  ;;  %v3081_v43 = vld [vmem:[#allocation12 + $0x108] sm:$0xff] }
 0x2f2   : > { %2910 = vmatmul.mubr.f32.vlgmr.msra.gmra.mxu0 %v7202_v15  ;;  %2987 = vmatmul.mubr.f32.vlgmr.msra.gmra.mxu1 %v7204_v18  ;;  %v2422_v15 = vadd.f32 %v7294_v51, %v2082_v50  ;;  %v3153_v18 = vld [vmem:[#allocation12 + $0x348] sm:$0xff] }
 0x2f3   : > { %3560 = vmatprep.subr.mxu0 %v3169_v47  ;;  %3649 = vmatprep.subr.mxu1 %v3425_v49  ;;  %v3337_v45 = vld [vmem:[#allocation12 + $0x908] sm:$0xff]  ;;  %v3080_v47 = vld [vmem:[#allocation12 + $0x100] sm:$0xff] }
 0x2f4   : > { %6073 = vmatprep.mubr.msk.f32.mxu0 %vm583_vm2, %v7253_v61  ;;  %6075 = vmatprep.mubr.msk.f32.mxu1 %vm583_vm2, %v7256_v62  ;;  %v3408_v61 = vld [vmem:[#allocation12 + $0xb40] sm:$0xff]  ;;  %v7310_v62 = vmax.f32 %v2422_v15, 0.0  ;;  %v3073_v50 = vld [vmem:[#allocation12 + $0xc8] sm:$0xff] }
 0x2f5   : > { %3561 = vmatpush1.msra.mxu0 %v3168_v9  ;;  %3650 = vmatpush1.msra.mxu1 %v3424_v5  ;;  %v3336_v49 = vld [vmem:[#allocation12 + $0x900] sm:$0xff]  ;;  %v3329_v9 = vld [vmem:[#allocation12 + $0x8c8] sm:$0xff] }
 0x2f6   : > { %3562 = vmatprep.subr.mxu0 %v3161_v52  ;;  %3651 = vmatprep.subr.mxu1 %v3417_v53  ;;  %v3072_v5 = vld [vmem:[#allocation12 + $0xc0] sm:$0xff]  ;;  %v3065_v53 = vld [vmem:[#allocation12 + $0x88] sm:$0xff] }
 0x2f7   : > { %3563 = vmatpush1.msra.mxu0 %v3160_v55  ;;  %3652 = vmatpush1.msra.mxu1 %v3416_v56  ;;  %v3328_v52 = vld [vmem:[#allocation12 + $0x8c0] sm:$0xff]  ;;  %v3321_v54 = vld [vmem:[#allocation12 + $0x888] sm:$0xff] }
 0x2f8   : > { %6074 = vmatmul.mubr.msk.f32.gmra.mxu0 %vm583_vm2, %v7265_v7  ;;  %6076 = vmatmul.mubr.msk.f32.gmra.mxu1 %vm583_vm2, %v7268_v8  ;;  %v3393_v7 = vld [vmem:[#allocation12 + $0xac8] sm:$0xff]  ;;  %v3136_v8 = vld [vmem:[#allocation12 + $0x2c0] sm:$0xff] }
 0x2f9   : > { %3564 = vmatprep.subr.mxu0 %v3153_v18  ;;  %3653 = vmatprep.subr.mxu1 %v3409_v57  ;;  %v3064_v55 = vld [vmem:[#allocation12 + $0x80] sm:$0xff]  ;;  %v3057_v15 = vld [vmem:[#allocation12 + $0x48] sm:$0xff] }
 0x2fa   : > { %3565 = vmatpush1.msra.mxu0 %v3152_v32  ;;  %3624 = vmatprep.mubr.f32.mxu0 %v7304_v33  ;;  %v3320_v56 = vld [vmem:[#allocation12 + $0x880] sm:$0xff]  ;;  %v3313_v18 = vld [vmem:[#allocation12 + $0x848] sm:$0xff] }
 0x2fb   : > { %3654 = vmatpush1.msra.mxu1 %v3408_v61  ;;  %3713 = vmatprep.mubr.f32.mxu1 %v7310_v62  ;;  %v3056_v57 = vld [vmem:[#allocation12 + $0x40] sm:$0xff]  ;;  %v3049_v61 = vld [vmem:[#allocation12 + $0x8] sm:$0xff] }
 0x2fc   : > { %3566 = vmatprep.subr.mxu0 %v3145_v58  ;;  %3655 = vmatprep.subr.mxu1 %v3401_v59  ;;  %v3312_v32 = vld [vmem:[#allocation12 + $0x840] sm:$0xff]  ;;  %v3305_v58 = vld [vmem:[#allocation12 + $0x808] sm:$0xff] }
 0x2fd   : > { %3567 = vmatpush1.msra.mxu0 %v3144_v60  ;;  %3656 = vmatpush1.msra.mxu1 %v3400_v63  ;;  %v3048_v59 = vld [vmem:[#allocation12] sm:$0xff]  ;;  %v3297_v63 = vld [vmem:[#allocation12 + $0x7c8] sm:$0xff] }
 0x2fe   : > { %3568 = vmatprep.subr.mxu0 %v3137_v34  ;;  %3657 = vmatprep.subr.mxu1 %v3393_v7  ;;  %v3304_v60 = vld [vmem:[#allocation12 + $0x800] sm:$0xff]  ;;  %v3553_v34 = vld [vmem:[#allocation12 + $0xfc8] sm:$0xff] }
 0x2ff   : > { %3569 = vmatpush1.msra.mxu0 %v3136_v8  ;;  %3658 = vmatpush1.msra.mxu1 %v3392_v35  ;;  %v3296_v7 = vld [vmem:[#allocation12 + $0x7c0] sm:$0xff]  ;;  %v3289_v35 = vld [vmem:[#allocation12 + $0x788] sm:$0xff] }
 0x300   : > { %3570 = vmatprep.subr.mxu0 %v3129_v1  ;;  %3659 = vmatprep.subr.mxu1 %v3385_v2  ;;  %v3552_v8 = vld [vmem:[#allocation12 + $0xfc0] sm:$0xff]  ;;  %v3545_v1 = vld [vmem:[#allocation12 + $0xf88] sm:$0xff]  ;;  %v7314_v2 = vpop.f32.mrf.mxu0 }
 0x301   : > { %3571 = vmatpush1.msra.mxu0 %v3128_v3  ;;  %3660 = vmatpush1.msra.mxu1 %v3384_v4  ;;  %v7316_v3 = vpop.f32.mrf.mxu1  ;;  %v3288_v4 = vld [vmem:[#allocation12 + $0x780] sm:$0xff] }
 0x302   : > { %3572 = vmatprep.subr.mxu0 %v3121_v6  ;;  %3661 = vmatprep.subr.mxu1 %v3377_v12  ;;  %v3544_v6 = vld [vmem:[#allocation12 + $0xf80] sm:$0xff]  ;;  %v3281_v12 = vld [vmem:[#allocation12 + $0x748] sm:$0xff] }
 0x303   : > { %3573 = vmatpush1.msra.mxu0 %v3120_v21  ;;  %3662 = vmatpush1.msra.mxu1 %v3376_v22  ;;  %v3537_v21 = vld [vmem:[#allocation12 + $0xf48] sm:$0xff]  ;;  %v3280_v22 = vld [vmem:[#allocation12 + $0x740] sm:$0xff] }
 0x304   : > { %3574 = vmatprep.subr.mxu0 %v3113_v0  ;;  %3663 = vmatprep.subr.mxu1 %v3369_v23  ;;  %v3536_v0 = vld [vmem:[#allocation12 + $0xf40] sm:$0xff]  ;;  %v3273_v23 = vld [vmem:[#allocation12 + $0x708] sm:$0xff] }
 0x305   : > { %3575 = vmatpush1.msra.mxu0 %v3112_v24  ;;  %3664 = vmatpush1.msra.mxu1 %v3368_v25  ;;  %v3529_v24 = vld [vmem:[#allocation12 + $0xf08] sm:$0xff]  ;;  %v7318_v25 = vpop.f32.mrf.mxu0 }
 0x306   : > { %3576 = vmatprep.subr.mxu0 %v3105_v26  ;;  %3665 = vmatprep.subr.mxu1 %v3361_v30  ;;  %v7320_v26 = vpop.f32.mrf.mxu1  ;;  %v3272_v30 = vld [vmem:[#allocation12 + $0x700] sm:$0xff] }
 0x307   : > { %3577 = vmatpush1.msra.mxu0 %v3104_v31  ;;  %3666 = vmatpush1.msra.mxu1 %v3360_v13  ;;  %v3528_v31 = vld [vmem:[#allocation12 + $0xf00] sm:$0xff]  ;;  %v3265_v13 = vld [vmem:[#allocation12 + $0x6c8] sm:$0xff] }
 0x308   : > { %3578 = vmatprep.subr.mxu0 %v3097_v36  ;;  %3667 = vmatprep.subr.mxu1 %v3353_v14  ;;  %v3521_v36 = vld [vmem:[#allocation12 + $0xec8] sm:$0xff]  ;;  %v7322_v14 = vpop.f32.mrf.mxu0 }
 0x309   : > { %3579 = vmatpush1.msra.mxu0 %v3096_v37  ;;  %3668 = vmatpush1.msra.mxu1 %v3352_v38  ;;  %v7324_v37 = vpop.f32.mrf.mxu1  ;;  %v3264_v38 = vld [vmem:[#allocation12 + $0x6c0] sm:$0xff] }
 0x30a   : > { %3580 = vmatprep.subr.mxu0 %v3089_v39  ;;  %3669 = vmatprep.subr.mxu1 %v3345_v40  ;;  %v3520_v39 = vld [vmem:[#allocation12 + $0xec0] sm:$0xff]  ;;  %v3257_v40 = vld [vmem:[#allocation12 + $0x688] sm:$0xff] }
 0x30b   : > { %3581 = vmatpush1.msra.mxu0 %v3088_v41  ;;  %3670 = vmatpush1.msra.mxu1 %v3344_v42  ;;  %v3513_v41 = vld [vmem:[#allocation12 + $0xe88] sm:$0xff]  ;;  %v3256_v42 = vld [vmem:[#allocation12 + $0x680] sm:$0xff] }
 0x30c   : > { %3582 = vmatprep.subr.mxu0 %v3081_v43  ;;  %3671 = vmatprep.subr.mxu1 %v3337_v45  ;;  %v3512_v43 = vld [vmem:[#allocation12 + $0xe80] sm:$0xff]  ;;  %v3249_v45 = vld [vmem:[#allocation12 + $0x648] sm:$0xff] }
 0x30d   : > { %3583 = vmatpush1.msra.mxu0 %v3080_v47  ;;  %3672 = vmatpush1.msra.mxu1 %v3336_v49  ;;  %v3505_v47 = vld [vmem:[#allocation12 + $0xe48] sm:$0xff]  ;;  %v7326_v49 = vpop.f32.mrf.mxu0 }
 0x30e   : > { %3584 = vmatprep.subr.mxu0 %v3073_v50  ;;  %3673 = vmatprep.subr.mxu1 %v3329_v9  ;;  %v7328_v50 = vpop.f32.mrf.mxu1  ;;  %v3248_v9 = vld [vmem:[#allocation12 + $0x640] sm:$0xff] }
 0x30f   : > { %3585 = vmatpush1.msra.mxu0 %v3072_v5  ;;  %3674 = vmatpush1.msra.mxu1 %v3328_v52  ;;  %v3504_v5 = vld [vmem:[#allocation12 + $0xe40] sm:$0xff]  ;;  %v3241_v52 = vld [vmem:[#allocation12 + $0x608] sm:$0xff] }
 0x310   : > { %3586 = vmatprep.subr.mxu0 %v3065_v53  ;;  %3675 = vmatprep.subr.mxu1 %v3321_v54  ;;  %v3497_v53 = vld [vmem:[#allocation12 + $0xe08] sm:$0xff]  ;;  %v3240_v54 = vld [vmem:[#allocation12 + $0x600] sm:$0xff] }
 0x311   : > { %3587 = vmatpush1.msra.mxu0 %v3064_v55  ;;  %3676 = vmatpush1.msra.mxu1 %v3320_v56  ;;  %v3496_v55 = vld [vmem:[#allocation12 + $0xe00] sm:$0xff]  ;;  %v3233_v56 = vld [vmem:[#allocation12 + $0x5c8] sm:$0xff] }
 0x312   : > { %3588 = vmatprep.subr.mxu0 %v3057_v15  ;;  %3677 = vmatprep.subr.mxu1 %v3313_v18  ;;  %v3489_v15 = vld [vmem:[#allocation12 + $0xdc8] sm:$0xff]  ;;  %v7330_v18 = vpop.f32.mrf.mxu0 }
 0x313   : > { %3589 = vmatpush1.msra.mxu0 %v3056_v57  ;;  %3678 = vmatpush1.msra.mxu1 %v3312_v32  ;;  %v7332_v57 = vpop.f32.mrf.mxu1  ;;  %v3232_v32 = vld [vmem:[#allocation12 + $0x5c0] sm:$0xff] }
 0x314   : > { %3590 = vmatprep.subr.mxu0 %v3049_v61  ;;  %3679 = vmatprep.subr.mxu1 %v3305_v58  ;;  %v3488_v61 = vld [vmem:[#allocation12 + $0xdc0] sm:$0xff]  ;;  %v3225_v58 = vld [vmem:[#allocation12 + $0x588] sm:$0xff] }
 0x315   : > { %3591 = vmatpush1.msra.mxu0 %v3048_v59  ;;  %3680 = vmatpush1.msra.mxu1 %v3304_v60  ;;  %v3481_v59 = vld [vmem:[#allocation12 + $0xd88] sm:$0xff]  ;;  %v3224_v60 = vld [vmem:[#allocation12 + $0x580] sm:$0xff] }
 0x316   : > { %3592 = vmatprep.subr.mxu0 %v3297_v63  ;;  %3681 = vmatprep.subr.mxu1 %v3553_v34  ;;  %v3480_v63 = vld [vmem:[#allocation12 + $0xd80] sm:$0xff]  ;;  %v3217_v34 = vld [vmem:[#allocation12 + $0x548] sm:$0xff] }
 0x317   : > { %3593 = vmatpush2.msra.mxu0 %v3296_v7  ;;  %3682 = vmatpush2.msra.mxu1 %v3552_v8  ;;  %v3473_v7 = vld [vmem:[#allocation12 + $0xd48] sm:$0xff]  ;;  %v7334_v8 = vpop.f32.mrf.mxu0 }
 0x318   : > { %3594 = vmatprep.subr.mxu0 %v3289_v35  ;;  %3683 = vmatprep.subr.mxu1 %v3545_v1  ;;  %v7336_v35 = vpop.f32.mrf.mxu1  ;;  %v3216_v1 = vld [vmem:[#allocation12 + $0x540] sm:$0xff] }
 0x319   : > { %3595 = vmatpush2.msra.mxu0 %v3288_v4  ;;  %3684 = vmatpush2.msra.mxu1 %v3544_v6  ;;  %v3472_v4 = vld [vmem:[#allocation12 + $0xd40] sm:$0xff]  ;;  %v3209_v6 = vld [vmem:[#allocation12 + $0x508] sm:$0xff] }
 0x31a   : > { %3596 = vmatprep.subr.mxu0 %v3281_v12  ;;  %3685 = vmatprep.subr.mxu1 %v3537_v21  ;;  %v3465_v12 = vld [vmem:[#allocation12 + $0xd08] sm:$0xff]  ;;  %v3208_v21 = vld [vmem:[#allocation12 + $0x500] sm:$0xff] }
 0x31b   : > { %3597 = vmatpush2.msra.mxu0 %v3280_v22  ;;  %3686 = vmatpush2.msra.mxu1 %v3536_v0  ;;  %v3464_v22 = vld [vmem:[#allocation12 + $0xd00] sm:$0xff] }
 0x31c   : > { %3598 = vmatprep.subr.mxu0 %v3273_v23  ;;  %3687 = vmatprep.subr.mxu1 %v3529_v24  ;;  %v3201_v24 = vld [vmem:[#allocation12 + $0x4c8] sm:$0xff] }
 0x31d   : > { %3599 = vmatpush2.msra.mxu0 %v3272_v30  ;;  %3688 = vmatpush2.msra.mxu1 %v3528_v31  ;;  %v3457_v30 = vld [vmem:[#allocation12 + $0xcc8] sm:$0xff] }
 0x31e   : > { %3600 = vmatprep.subr.mxu0 %v3265_v13  ;;  %3689 = vmatprep.subr.mxu1 %v3521_v36  ;;  %v7342_v13 = vrot.slane %v7284_v44, %v7158_v16  ;;  %v2080_v36 = vadd.f32 %v7282_v29, %v7280_v28  ;;  %v3449_v28 = vld [vmem:[#allocation12 + $0xc88] sm:$0xff] }
 0x31f   : > { %3601 = vmatpush2.msra.mxu0 %v3264_v38  ;;  %3690 = vmatpush2.msra.mxu1 %v3520_v39  ;;  %v7348_v38 = vrot.slane %v7284_v44, %v7160_v17  ;;  %v3200_v39 = vld [vmem:[#allocation12 + $0x4c0] sm:$0xff] }
 0x320   : > { %3602 = vmatprep.subr.mxu0 %v3257_v40  ;;  %3691 = vmatprep.subr.mxu1 %v3513_v41  ;;  %v3456_v40 = vld [vmem:[#allocation12 + $0xcc0] sm:$0xff] }
 0x321   : > { %3603 = vmatpush2.msra.mxu0 %v3256_v42  ;;  %3692 = vmatpush2.msra.mxu1 %v3512_v43  ;;  %v1934_v43 = vadd.f32 %v7278_v11, %v7276_v10  ;;  %v3192_v44 = vld [vmem:[#allocation12 + $0x480] sm:$0xff]  ;;  %v2419_v10 = vadd.f32 %v7342_v13, %v7228_v48  ;;  %v2421_v11 = vadd.f32 %v7348_v38, %v2080_v36  ;;  %v3162_v36 = vld [vmem:[#allocation12 + $0x390] sm:$0xff] }
 0x322   : > { %3604 = vmatprep.subr.mxu0 %v3249_v45  ;;  %3693 = vmatprep.subr.mxu1 %v3505_v47  ;;  %v2088_v45 = vadd.f32 %v7320_v26, %v7318_v25  ;;  %v3193_v47 = vld [vmem:[#allocation12 + $0x488] sm:$0xff]  ;;  %v2086_v25 = vadd.f32 %v7316_v3, %v7314_v2  ;;  %v3184_v26 = vld [vmem:[#allocation12 + $0x440] sm:$0xff] }
 0x323   : > { %3605 = vmatpush2.msra.mxu0 %v3248_v9  ;;  %3694 = vmatpush2.msra.mxu1 %v3504_v5  ;;  %v3448_v9 = vld [vmem:[#allocation12 + $0xc80] sm:$0xff]  ;;  %v3185_v5 = vld [vmem:[#allocation12 + $0x448] sm:$0xff] }
 0x324   : > { %3606 = vmatprep.subr.mxu0 %v3241_v52  ;;  %3695 = vmatprep.subr.mxu1 %v3497_v53  ;;  %v3441_v52 = vld [vmem:[#allocation12 + $0xc48] sm:$0xff]  ;;  %v3440_v53 = vld [vmem:[#allocation12 + $0xc40] sm:$0xff] }
 0x325   : > { %3607 = vmatpush2.msra.mxu0 %v3240_v54  ;;  %3696 = vmatpush2.msra.mxu1 %v3496_v55  ;;  %v3432_v2 = vld [vmem:[#allocation12 + $0xc00] sm:$0xff] }
 0x326   : > { %3608 = vmatprep.subr.mxu0 %v3233_v56  ;;  %3697 = vmatprep.subr.mxu1 %v3489_v15  ;;  %v2424_v56 = vadd.f32 %v7290_v46, %v1934_v43  ;;  %v2426_v15 = vadd.f32 %v7294_v51, %v2088_v45  ;;  %v3410_v43 = vld [vmem:[#allocation12 + $0xb50] sm:$0xff]  ;;  %v3147_v45 = vld [vmem:[#allocation12 + $0x318] sm:$0xff] }
 0x327   : > { %3609 = vmatpush2.msra.mxu0 %v3232_v32  ;;  %3698 = vmatpush2.msra.mxu1 %v3488_v61  ;;  %v3177_v32 = vld [vmem:[#allocation12 + $0x408] sm:$0xff] }
 0x328   : > { %3610 = vmatprep.subr.mxu0 %v3225_v58  ;;  %3699 = vmatprep.subr.mxu1 %v3481_v59  ;;  %v3433_v61 = vld [vmem:[#allocation12 + $0xc08] sm:$0xff]  ;;  %v3176_v58 = vld [vmem:[#allocation12 + $0x400] sm:$0xff] }
 0x329   : > { %3611 = vmatpush2.msra.mxu0 %v3224_v60  ;;  %3700 = vmatpush2.msra.mxu1 %v3480_v63  ;;  %v7367_v63 = vmax.f32 %v2419_v10, 0.0  ;;  %v3394_v10 = vld [vmem:[#allocation12 + $0xad0] sm:$0xff] }
 0x32a   : > { %3612 = vmatprep.subr.mxu0 %v3217_v34  ;;  %3701 = vmatprep.subr.mxu1 %v3473_v7  ;;  %v2310_v0 = vpop.f32.mrf.mxu0  ;;  %v2387_v23 = vpop.f32.mrf.mxu1  ;;  %v2423_v34 = vadd.f32 %v7342_v13, %v7242_v27  ;;  %v7371_v7 = vmax.f32 %v2421_v11, 0.0  ;;  %v3426_v27 = vld [vmem:[#allocation12 + $0xbd0] sm:$0xff]  ;;  %v3131_v11 = vld [vmem:[#allocation12 + $0x298] sm:$0xff] }
 0x32b   : > { %3613 = vmatpush2.msra.mxu0 %v3216_v1  ;;  %3702 = vmatpush2.msra.mxu1 %v3472_v4  ;;  %v7338_v31 = vadd.f32 %v2387_v23, %v2310_v0  ;;  %v2425_v1 = vadd.f32 %v7348_v38, %v2086_v25  ;;  %v7374_v4 = vmax.f32 %v2424_v56, 0.0  ;;  %v3387_v25 = vld [vmem:[#allocation12 + $0xa98] sm:$0xff]  ;;  %v3122_v56 = vld [vmem:[#allocation12 + $0x250] sm:$0xff] }
 0x32c   : > { %3614 = vmatprep.subr.mxu0 %v3209_v6  ;;  %3703 = vmatprep.subr.mxu1 %v3465_v12  ;;  %v2312_v41 = vpop.f32.mrf.mxu0  ;;  %v2389_v42 = vpop.f32.mrf.mxu1  ;;  %v7376_v6 = vmax.f32 %v2426_v15, 0.0  ;;  %v3171_v12 = vld [vmem:[#allocation12 + $0x3d8] sm:$0xff]  ;;  %v7382_v0 = vmax.f32 %v2423_v34, 0.0  ;;  %v3378_v15 = vld [vmem:[#allocation12 + $0xa50] sm:$0xff] }
 0x32d   : > { %3615 = vmatpush2.msra.mxu0 %v3208_v21  ;;  %3704 = vmatpush2.msra.mxu1 %v3464_v22  ;;  %v7354_v29 = vadd.f32 %v2389_v42, %v2312_v41  ;;  %v3427_v21 = vld [vmem:[#allocation12 + $0xbd8] sm:$0xff]  ;;  %v3170_v22 = vld [vmem:[#allocation12 + $0x3d0] sm:$0xff]  ;;  %v7384_v23 = vmax.f32 %v2425_v1, 0.0 }
 0x32e   : > { %3616 = vmatprep.subr.mxu0 %v3201_v24  ;;  %3705 = vmatprep.subr.mxu1 %v3457_v30  ;;  %v3163_v24 = vld [vmem:[#allocation12 + $0x398] sm:$0xff]  ;;  %v3154_v42 = vld [vmem:[#allocation12 + $0x350] sm:$0xff] }
 0x32f   : > { %3617 = vmatpush2.msra.mxu0 %v3200_v39  ;;  %3706 = vmatpush2.msra.mxu1 %v3456_v40  ;;  %v3419_v30 = vld [vmem:[#allocation12 + $0xb98] sm:$0xff]  ;;  %v3418_v39 = vld [vmem:[#allocation12 + $0xb90] sm:$0xff] }
 0x330   : > { %3618 = vmatprep.subr.mxu0 %v3193_v47  ;;  %3707 = vmatprep.subr.mxu1 %v3449_v28  ;;  %v2316_v54 = vpop.f32.mrf.mxu0  ;;  %v2393_v55 = vpop.f32.mrf.mxu1  ;;  %v3155_v40 = vld [vmem:[#allocation12 + $0x358] sm:$0xff]  ;;  %v3146_v28 = vld [vmem:[#allocation12 + $0x310] sm:$0xff] }
 0x331   : > { %3619 = vmatpush2.msra.mxu0 %v3192_v44  ;;  %3708 = vmatpush2.msra.mxu1 %v3448_v9  ;;  %v7363_v48 = vadd.f32 %v2393_v55, %v2316_v54  ;;  %v3411_v41 = vld [vmem:[#allocation12 + $0xb58] sm:$0xff]  ;;  %v3402_v44 = vld [vmem:[#allocation12 + $0xb10] sm:$0xff] }
 0x332   : > { %3620 = vmatprep.subr.mxu0 %v3185_v5  ;;  %3709 = vmatprep.subr.mxu1 %v3441_v52  ;;  %v2318_v3 = vpop.f32.mrf.mxu0  ;;  %v2395_v59 = vpop.f32.mrf.mxu1  ;;  %v3403_v47 = vld [vmem:[#allocation12 + $0xb18] sm:$0xff]  ;;  %v3138_v52 = vld [vmem:[#allocation12 + $0x2d0] sm:$0xff] }
 0x333   : > { %3621 = vmatpush2.msra.mxu0 %v3184_v26  ;;  %3710 = vmatpush2.msra.mxu1 %v3440_v53  ;;  %v7365_v60 = vadd.f32 %v2395_v59, %v2318_v3  ;;  %v3139_v9 = vld [vmem:[#allocation12 + $0x2d8] sm:$0xff]  ;;  %v3130_v26 = vld [vmem:[#allocation12 + $0x290] sm:$0xff] }
 0x334   : > { %3622 = vmatprep.subr.mxu0 %v3177_v32  ;;  %3711 = vmatprep.subr.mxu1 %v3433_v61  ;;  %v3395_v5 = vld [vmem:[#allocation12 + $0xad8] sm:$0xff]  ;;  %v3386_v53 = vld [vmem:[#allocation12 + $0xa90] sm:$0xff] }
 0x335   : > { %3623 = vmatpush2.msra.mxu0 %v3176_v58  ;;  %3712 = vmatpush2.msra.mxu1 %v3432_v2  ;;  %v3123_v54 = vld [vmem:[#allocation12 + $0x258] sm:$0xff]  ;;  %v3114_v58 = vld [vmem:[#allocation12 + $0x210] sm:$0xff] }
 0x336   : > { %3625 = vmatmul.mubr.f32.vlgmr.msra.gmra.mxu0 %v7367_v63  ;;  %3714 = vmatmul.mubr.f32.vlgmr.msra.gmra.mxu1 %v7371_v7  ;;  %v3379_v55 = vld [vmem:[#allocation12 + $0xa58] sm:$0xff]  ;;  %v3370_v2 = vld [vmem:[#allocation12 + $0xa10] sm:$0xff] }
 0x337   : > { %3630 = vmatprep.mubr.f32.mxu0 %v7374_v4  ;;  %3719 = vmatprep.mubr.f32.mxu1 %v7376_v6  ;;  %v3115_v32 = vld [vmem:[#allocation12 + $0x218] sm:$0xff]  ;;  %v3106_v34 = vld [vmem:[#allocation12 + $0x1d0] sm:$0xff] }
 0x338   : > { %3738 = vmatprep.subr.mxu0 %v3171_v12  ;;  %3827 = vmatprep.subr.mxu1 %v3427_v21  ;;  %v3371_v61 = vld [vmem:[#allocation12 + $0xa18] sm:$0xff]  ;;  %v3362_v1 = vld [vmem:[#allocation12 + $0x9d0] sm:$0xff] }
 0x339   : > { %3739 = vmatpush1.msra.mxu0 %v3170_v22  ;;  %3828 = vmatpush1.msra.mxu1 %v3426_v27  ;;  %v3107_v3 = vld [vmem:[#allocation12 + $0x1d8] sm:$0xff]  ;;  %v3098_v22 = vld [vmem:[#allocation12 + $0x190] sm:$0xff] }
 0x33a   : > { %3631 = vmatmul.mubr.f32.gmra.mxu0 %v7382_v0  ;;  %3720 = vmatmul.mubr.f32.gmra.mxu1 %v7384_v23  ;;  %v3363_v59 = vld [vmem:[#allocation12 + $0x9d8] sm:$0xff]  ;;  %v3354_v27 = vld [vmem:[#allocation12 + $0x990] sm:$0xff] }
 0x33b   : > { %3740 = vmatprep.subr.mxu0 %v3163_v24  ;;  %3829 = vmatprep.subr.mxu1 %v3419_v30  ;;  %v3099_v12 = vld [vmem:[#allocation12 + $0x198] sm:$0xff] }
 0x33c   : > { %3741 = vmatpush1.msra.mxu0 %v3162_v36  ;;  %3830 = vmatpush1.msra.mxu1 %v3418_v39  ;;  %v3355_v21 = vld [vmem:[#allocation12 + $0x998] sm:$0xff]  ;;  %v3090_v36 = vld [vmem:[#allocation12 + $0x150] sm:$0xff] }
 0x33d   : > { %3742 = vmatprep.subr.mxu0 %v3155_v40  ;;  %3831 = vmatprep.subr.mxu1 %v3411_v41  ;;  %v3091_v24 = vld [vmem:[#allocation12 + $0x158] sm:$0xff]  ;;  %v3346_v39 = vld [vmem:[#allocation12 + $0x950] sm:$0xff] }
 0x33e   : > { %3743 = vmatpush1.msra.mxu0 %v3154_v42  ;;  %3832 = vmatpush1.msra.mxu1 %v3410_v43  ;;  %v3347_v30 = vld [vmem:[#allocation12 + $0x958] sm:$0xff]  ;;  %v3082_v42 = vld [vmem:[#allocation12 + $0x110] sm:$0xff] }
 0x33f   : > { %3744 = vmatprep.subr.mxu0 %v3147_v45  ;;  %3833 = vmatprep.subr.mxu1 %v3403_v47  ;;  %v3083_v40 = vld [vmem:[#allocation12 + $0x118] sm:$0xff]  ;;  %v3338_v43 = vld [vmem:[#allocation12 + $0x910] sm:$0xff] }
 0x340   : > { %3745 = vmatpush1.msra.mxu0 %v3146_v28  ;;  %3834 = vmatpush1.msra.mxu1 %v3402_v44  ;;  %v3339_v41 = vld [vmem:[#allocation12 + $0x918] sm:$0xff]  ;;  %v3074_v28 = vld [vmem:[#allocation12 + $0xd0] sm:$0xff] }
 0x341   : > { %3746 = vmatprep.subr.mxu0 %v3139_v9  ;;  %3835 = vmatprep.subr.mxu1 %v3395_v5  ;;  %v3075_v45 = vld [vmem:[#allocation12 + $0xd8] sm:$0xff]  ;;  %v3330_v44 = vld [vmem:[#allocation12 + $0x8d0] sm:$0xff] }
 0x342   : > { %3747 = vmatpush1.msra.mxu0 %v3138_v52  ;;  %3836 = vmatpush1.msra.mxu1 %v3394_v10  ;;  %v3331_v47 = vld [vmem:[#allocation12 + $0x8d8] sm:$0xff]  ;;  %v3066_v52 = vld [vmem:[#allocation12 + $0x90] sm:$0xff] }
 0x343   : > { %3748 = vmatprep.subr.mxu0 %v3131_v11  ;;  %3837 = vmatprep.subr.mxu1 %v3387_v25  ;;  %v3067_v9 = vld [vmem:[#allocation12 + $0x98] sm:$0xff]  ;;  %v3322_v10 = vld [vmem:[#allocation12 + $0x890] sm:$0xff] }
 0x344   : > { %3749 = vmatpush1.msra.mxu0 %v3130_v26  ;;  %3838 = vmatpush1.msra.mxu1 %v3386_v53  ;;  %v3323_v5 = vld [vmem:[#allocation12 + $0x898] sm:$0xff]  ;;  %v3058_v26 = vld [vmem:[#allocation12 + $0x50] sm:$0xff] }
 0x345   : > { %3750 = vmatprep.subr.mxu0 %v3123_v54  ;;  %3839 = vmatprep.subr.mxu1 %v3379_v55  ;;  %v3059_v11 = vld [vmem:[#allocation12 + $0x58] sm:$0xff]  ;;  %v3314_v53 = vld [vmem:[#allocation12 + $0x850] sm:$0xff] }
 0x346   : > { %3751 = vmatpush1.msra.mxu0 %v3122_v56  ;;  %3840 = vmatpush1.msra.mxu1 %v3378_v15  ;;  %v3315_v25 = vld [vmem:[#allocation12 + $0x858] sm:$0xff]  ;;  %v3050_v56 = vld [vmem:[#allocation12 + $0x10] sm:$0xff] }
 0x347   : > { %3752 = vmatprep.subr.mxu0 %v3115_v32  ;;  %3841 = vmatprep.subr.mxu1 %v3371_v61  ;;  %v3051_v54 = vld [vmem:[#allocation12 + $0x18] sm:$0xff]  ;;  %v3306_v15 = vld [vmem:[#allocation12 + $0x810] sm:$0xff] }
 0x348   : > { %3753 = vmatpush1.msra.mxu0 %v3114_v58  ;;  %3842 = vmatpush1.msra.mxu1 %v3370_v2  ;;  %v3307_v55 = vld [vmem:[#allocation12 + $0x818] sm:$0xff]  ;;  %v3298_v58 = vld [vmem:[#allocation12 + $0x7d0] sm:$0xff] }
 0x349   : > { %3754 = vmatprep.subr.mxu0 %v3107_v3  ;;  %3843 = vmatprep.subr.mxu1 %v3363_v59  ;;  %v3299_v32 = vld [vmem:[#allocation12 + $0x7d8] sm:$0xff]  ;;  %v3554_v2 = vld [vmem:[#allocation12 + $0xfd0] sm:$0xff] }
 0x34a   : > { %3755 = vmatpush1.msra.mxu0 %v3106_v34  ;;  %3844 = vmatpush1.msra.mxu1 %v3362_v1  ;;  %v3555_v61 = vld [vmem:[#allocation12 + $0xfd8] sm:$0xff]  ;;  %v3290_v34 = vld [vmem:[#allocation12 + $0x790] sm:$0xff] }
 0x34b   : > { %3756 = vmatprep.subr.mxu0 %v3099_v12  ;;  %3845 = vmatprep.subr.mxu1 %v3355_v21  ;;  %v3291_v3 = vld [vmem:[#allocation12 + $0x798] sm:$0xff]  ;;  %v3546_v1 = vld [vmem:[#allocation12 + $0xf90] sm:$0xff] }
 0x34c   : > { %3757 = vmatpush1.msra.mxu0 %v3098_v22  ;;  %3846 = vmatpush1.msra.mxu1 %v3354_v27  ;;  %v3547_v59 = vld [vmem:[#allocation12 + $0xf98] sm:$0xff]  ;;  %v3282_v22 = vld [vmem:[#allocation12 + $0x750] sm:$0xff] }
 0x34d   : > { %3758 = vmatprep.subr.mxu0 %v3091_v24  ;;  %3847 = vmatprep.subr.mxu1 %v3347_v30  ;;  %v3283_v12 = vld [vmem:[#allocation12 + $0x758] sm:$0xff]  ;;  %v3538_v27 = vld [vmem:[#allocation12 + $0xf50] sm:$0xff] }
 0x34e   : > { %3759 = vmatpush1.msra.mxu0 %v3090_v36  ;;  %3848 = vmatpush1.msra.mxu1 %v3346_v39  ;;  %v3539_v21 = vld [vmem:[#allocation12 + $0xf58] sm:$0xff]  ;;  %v3274_v36 = vld [vmem:[#allocation12 + $0x710] sm:$0xff] }
 0x34f   : > { %3760 = vmatprep.subr.mxu0 %v3083_v40  ;;  %3849 = vmatprep.subr.mxu1 %v3339_v41  ;;  %v3275_v24 = vld [vmem:[#allocation12 + $0x718] sm:$0xff]  ;;  %v3530_v39 = vld [vmem:[#allocation12 + $0xf10] sm:$0xff] }
 0x350   : > { %3761 = vmatpush1.msra.mxu0 %v3082_v42  ;;  %3850 = vmatpush1.msra.mxu1 %v3338_v43  ;;  %v3531_v30 = vld [vmem:[#allocation12 + $0xf18] sm:$0xff]  ;;  %v3266_v42 = vld [vmem:[#allocation12 + $0x6d0] sm:$0xff] }
 0x351   : > { %3762 = vmatprep.subr.mxu0 %v3075_v45  ;;  %3851 = vmatprep.subr.mxu1 %v3331_v47  ;;  %v3267_v40 = vld [vmem:[#allocation12 + $0x6d8] sm:$0xff]  ;;  %v3522_v43 = vld [vmem:[#allocation12 + $0xed0] sm:$0xff] }
 0x352   : > { %3763 = vmatpush1.msra.mxu0 %v3074_v28  ;;  %3852 = vmatpush1.msra.mxu1 %v3330_v44  ;;  %v3523_v41 = vld [vmem:[#allocation12 + $0xed8] sm:$0xff]  ;;  %v3258_v28 = vld [vmem:[#allocation12 + $0x690] sm:$0xff] }
 0x353   : > { %3764 = vmatprep.subr.mxu0 %v3067_v9  ;;  %3853 = vmatprep.subr.mxu1 %v3323_v5  ;;  %v3259_v45 = vld [vmem:[#allocation12 + $0x698] sm:$0xff]  ;;  %v3514_v44 = vld [vmem:[#allocation12 + $0xe90] sm:$0xff] }
 0x354   : > { %3765 = vmatpush1.msra.mxu0 %v3066_v52  ;;  %3854 = vmatpush1.msra.mxu1 %v3322_v10  ;;  %v3515_v47 = vld [vmem:[#allocation12 + $0xe98] sm:$0xff]  ;;  %v3250_v52 = vld [vmem:[#allocation12 + $0x650] sm:$0xff] }
 0x355   : > { %3766 = vmatprep.subr.mxu0 %v3059_v11  ;;  %3855 = vmatprep.subr.mxu1 %v3315_v25  ;;  %v3251_v9 = vld [vmem:[#allocation12 + $0x658] sm:$0xff]  ;;  %v3506_v10 = vld [vmem:[#allocation12 + $0xe50] sm:$0xff] }
 0x356   : > { %3767 = vmatpush1.msra.mxu0 %v3058_v26  ;;  %3856 = vmatpush1.msra.mxu1 %v3314_v53  ;;  %v3507_v5 = vld [vmem:[#allocation12 + $0xe58] sm:$0xff]  ;;  %v3242_v26 = vld [vmem:[#allocation12 + $0x610] sm:$0xff] }
 0x357   : > { %3768 = vmatprep.subr.mxu0 %v3051_v54  ;;  %3857 = vmatprep.subr.mxu1 %v3307_v55  ;;  %v3243_v11 = vld [vmem:[#allocation12 + $0x618] sm:$0xff]  ;;  %v3498_v53 = vld [vmem:[#allocation12 + $0xe10] sm:$0xff] }
 0x358   : > { %3769 = vmatpush1.msra.mxu0 %v3050_v56  ;;  %3858 = vmatpush1.msra.mxu1 %v3306_v15  ;;  %v3499_v25 = vld [vmem:[#allocation12 + $0xe18] sm:$0xff]  ;;  %v3234_v56 = vld [vmem:[#allocation12 + $0x5d0] sm:$0xff] }
 0x359   : > { %3770 = vmatprep.subr.mxu0 %v3299_v32  ;;  %3859 = vmatprep.subr.mxu1 %v3555_v61  ;;  %v3235_v54 = vld [vmem:[#allocation12 + $0x5d8] sm:$0xff]  ;;  %v3490_v15 = vld [vmem:[#allocation12 + $0xdd0] sm:$0xff] }
 0x35a   : > { %3771 = vmatpush2.msra.mxu0 %v3298_v58  ;;  %3860 = vmatpush2.msra.mxu1 %v3554_v2  ;;  %v3491_v55 = vld [vmem:[#allocation12 + $0xdd8] sm:$0xff]  ;;  %v3226_v58 = vld [vmem:[#allocation12 + $0x590] sm:$0xff] }
 0x35b   : > { %3772 = vmatprep.subr.mxu0 %v3291_v3  ;;  %3861 = vmatprep.subr.mxu1 %v3547_v59  ;;  %v3227_v32 = vld [vmem:[#allocation12 + $0x598] sm:$0xff]  ;;  %v3482_v2 = vld [vmem:[#allocation12 + $0xd90] sm:$0xff] }
 0x35c   : > { %3773 = vmatpush2.msra.mxu0 %v3290_v34  ;;  %3862 = vmatpush2.msra.mxu1 %v3546_v1  ;;  %v3483_v61 = vld [vmem:[#allocation12 + $0xd98] sm:$0xff]  ;;  %v3218_v34 = vld [vmem:[#allocation12 + $0x550] sm:$0xff] }
 0x35d   : > { %3774 = vmatprep.subr.mxu0 %v3283_v12  ;;  %3863 = vmatprep.subr.mxu1 %v3539_v21  ;;  %v3219_v3 = vld [vmem:[#allocation12 + $0x558] sm:$0xff]  ;;  %v3474_v1 = vld [vmem:[#allocation12 + $0xd50] sm:$0xff] }
 0x35e   : > { %3775 = vmatpush2.msra.mxu0 %v3282_v22  ;;  %3864 = vmatpush2.msra.mxu1 %v3538_v27  ;;  %v3475_v59 = vld [vmem:[#allocation12 + $0xd58] sm:$0xff]  ;;  %v3210_v22 = vld [vmem:[#allocation12 + $0x510] sm:$0xff] }
 0x35f   : > { %3776 = vmatprep.subr.mxu0 %v3275_v24  ;;  %3865 = vmatprep.subr.mxu1 %v3531_v30  ;;  %v3211_v12 = vld [vmem:[#allocation12 + $0x518] sm:$0xff]  ;;  %v3466_v27 = vld [vmem:[#allocation12 + $0xd10] sm:$0xff] }
 0x360   : > { %3777 = vmatpush2.msra.mxu0 %v3274_v36  ;;  %3866 = vmatpush2.msra.mxu1 %v3530_v39  ;;  %v3467_v21 = vld [vmem:[#allocation12 + $0xd18] sm:$0xff] }
 0x361   : > { %3778 = vmatprep.subr.mxu0 %v3267_v40  ;;  %3867 = vmatprep.subr.mxu1 %v3523_v41  ;;  %v3203_v36 = vld [vmem:[#allocation12 + $0x4d8] sm:$0xff]  ;;  %v2234_v40 = vadd.f32 %v7324_v37, %v7322_v14  ;;  %v3450_v14 = vld [vmem:[#allocation12 + $0xc90] sm:$0xff] }
 0x362   : > { %3779 = vmatpush2.msra.mxu0 %v3266_v42  ;;  %3868 = vmatpush2.msra.mxu1 %v3522_v43  ;;  %v3459_v39 = vld [vmem:[#allocation12 + $0xcd8] sm:$0xff]  ;;  %v3202_v42 = vld [vmem:[#allocation12 + $0x4d0] sm:$0xff] }
 0x363   : > { %3780 = vmatprep.subr.mxu0 %v3259_v45  ;;  %3869 = vmatprep.subr.mxu1 %v3515_v47  ;;  %v3458_v43 = vld [vmem:[#allocation12 + $0xcd0] sm:$0xff]  ;;  %v3187_v37 = vld [vmem:[#allocation12 + $0x458] sm:$0xff] }
 0x364   : > { %3781 = vmatpush2.msra.mxu0 %v3258_v28  ;;  %3870 = vmatpush2.msra.mxu1 %v3514_v44  ;;  %v3195_v28 = vld [vmem:[#allocation12 + $0x498] sm:$0xff] }
 0x365   : > { %3782 = vmatprep.subr.mxu0 %v3251_v9  ;;  %3871 = vmatprep.subr.mxu1 %v3507_v5  ;;  %v3451_v44 = vld [vmem:[#allocation12 + $0xc98] sm:$0xff]  ;;  %v2236_v9 = vadd.f32 %v7328_v50, %v7326_v49 }
 0x366   : > { %3783 = vmatpush2.msra.mxu0 %v3250_v52  ;;  %3872 = vmatpush2.msra.mxu1 %v3506_v10  ;;  %v3194_v10 = vld [vmem:[#allocation12 + $0x490] sm:$0xff]  ;;  %v3179_v49 = vld [vmem:[#allocation12 + $0x418] sm:$0xff] }
 0x367   : > { %3784 = vmatprep.subr.mxu0 %v3243_v11  ;;  %3873 = vmatprep.subr.mxu1 %v3499_v25  ;;  %v3443_v11 = vld [vmem:[#allocation12 + $0xc58] sm:$0xff] }
 0x368   : > { %3785 = vmatpush2.msra.mxu0 %v3242_v26  ;;  %3874 = vmatpush2.msra.mxu1 %v3498_v53  ;;  %v3186_v26 = vld [vmem:[#allocation12 + $0x450] sm:$0xff]  ;;  %v3435_v50 = vld [vmem:[#allocation12 + $0xc18] sm:$0xff] }
 0x369   : > { %3786 = vmatprep.subr.mxu0 %v3235_v54  ;;  %3875 = vmatprep.subr.mxu1 %v3491_v55  ;;  %v3442_v53 = vld [vmem:[#allocation12 + $0xc50] sm:$0xff] }
 0x36a   : > { %3787 = vmatpush2.msra.mxu0 %v3234_v56  ;;  %3876 = vmatpush2.msra.mxu1 %v3490_v15  ;;  %v2240_v15 = vadd.f32 %v7332_v57, %v7330_v18  ;;  %v3429_v18 = vld [vmem:[#allocation12 + $0xbe8] sm:$0xff] }
 0x36b   : > { %3788 = vmatprep.subr.mxu0 %v3227_v32  ;;  %3877 = vmatprep.subr.mxu1 %v3483_v61 }
 0x36c   : > { %3789 = vmatpush2.msra.mxu0 %v3226_v58  ;;  %3878 = vmatpush2.msra.mxu1 %v3482_v2  ;;  %v3178_v58 = vld [vmem:[#allocation12 + $0x410] sm:$0xff] }
 0x36d   : > { %3790 = vmatprep.subr.mxu0 %v3219_v3  ;;  %3879 = vmatprep.subr.mxu1 %v3475_v59  ;;  %v3434_v2 = vld [vmem:[#allocation12 + $0xc10] sm:$0xff] }
 0x36e   : > { %v2757_v24 = vpop.f32.mrf.mxu0  ;;  %v2834_v30 = vpop.f32.mrf.mxu1  ;;  %3791 = vmatpush2.msra.mxu0 %v3218_v34  ;;  %3880 = vmatpush2.msra.mxu1 %v3474_v1  ;;  %v3173_v34 = vld [vmem:[#allocation12 + $0x3e8] sm:$0xff]  ;;  %v2242_v1 = vadd.f32 %v7336_v35, %v7334_v8 }
 0x36f   : > { %v2835_v41 = vadd.f32 %v2834_v30, %v2757_v24  ;;  %3792 = vmatprep.subr.mxu0 %v3211_v12  ;;  %3881 = vmatprep.subr.mxu1 %v3467_v21 }
 0x370   : > { %v2759_v45 = vpop.f32.mrf.mxu0  ;;  %v2836_v47 = vpop.f32.mrf.mxu1  ;;  %3793 = vmatpush2.msra.mxu0 %v3210_v22  ;;  %3882 = vmatpush2.msra.mxu1 %v3466_v27 }
 0x371   : > { %v2999_v5 = vadd.f32 %v2835_v41, %v2234_v40  ;;  %v2837_v52 = vadd.f32 %v2836_v47, %v2759_v45  ;;  %3794 = vmatprep.subr.mxu0 %v3203_v36  ;;  %3883 = vmatprep.subr.mxu1 %v3459_v39  ;;  %v3172_v36 = vld [vmem:[#allocation12 + $0x3e0] sm:$0xff]  ;;  %v3165_v39 = vld [vmem:[#allocation12 + $0x3a8] sm:$0xff] }
 0x372   : > { %3795 = vmatpush2.msra.mxu0 %v3202_v42  ;;  %3884 = vmatpush2.msra.mxu1 %v3458_v43  ;;  %v3157_v40 = vld [vmem:[#allocation12 + $0x368] sm:$0xff]  ;;  %v3148_v42 = vld [vmem:[#allocation12 + $0x320] sm:$0xff] }
 0x373   : > { %v3000_v25 = vadd.f32 %v2837_v52, %v2236_v9  ;;  %3796 = vmatprep.subr.mxu0 %v3195_v28  ;;  %3885 = vmatprep.subr.mxu1 %v3451_v44  ;;  %v3007_v54 = vadd.f32 %v2999_v5, %v7342_v13  ;;  %v3149_v41 = vld [vmem:[#allocation12 + $0x328] sm:$0xff]  ;;  %v3140_v45 = vld [vmem:[#allocation12 + $0x2e0] sm:$0xff] }
 0x374   : > { %v2763_v55 = vpop.f32.mrf.mxu0  ;;  %v2840_v56 = vpop.f32.mrf.mxu1  ;;  %3797 = vmatpush2.msra.mxu0 %v3194_v10  ;;  %3886 = vmatpush2.msra.mxu1 %v3450_v14  ;;  %v3141_v43 = vld [vmem:[#allocation12 + $0x2e8] sm:$0xff]  ;;  %v3132_v28 = vld [vmem:[#allocation12 + $0x2a0] sm:$0xff] }
 0x375   : > { %v3008_v32 = vadd.f32 %v3000_v25, %v7290_v46  ;;  %v2841_v61 = vadd.f32 %v2840_v56, %v2763_v55  ;;  %3798 = vmatprep.subr.mxu0 %v3187_v37  ;;  %3887 = vmatprep.subr.mxu1 %v3443_v11  ;;  %v7400_v57 = vmax.f32 %v3007_v54, 0.0  ;;  %v3133_v47 = vld [vmem:[#allocation12 + $0x2a8] sm:$0xff]  ;;  %v3124_v9 = vld [vmem:[#allocation12 + $0x260] sm:$0xff] }
 0x376   : > { %v2765_v3 = vpop.f32.mrf.mxu0  ;;  %v2842_v59 = vpop.f32.mrf.mxu1  ;;  %3799 = vmatpush2.msra.mxu0 %v3186_v26  ;;  %3888 = vmatpush2.msra.mxu1 %v3442_v53  ;;  %v3125_v44 = vld [vmem:[#allocation12 + $0x268] sm:$0xff]  ;;  %v3116_v52 = vld [vmem:[#allocation12 + $0x220] sm:$0xff] }
 0x377   : > { %v7398_v12 = vmax.f32 %v3008_v32, 0.0  ;;  %v3003_v21 = vadd.f32 %v2841_v61, %v2240_v15  ;;  %v2843_v22 = vadd.f32 %v2842_v59, %v2765_v3  ;;  %3800 = vmatprep.subr.mxu0 %v3179_v49  ;;  %3889 = vmatprep.subr.mxu1 %v3435_v50  ;;  %v3117_v5 = vld [vmem:[#allocation12 + $0x228] sm:$0xff]  ;;  %v3108_v14 = vld [vmem:[#allocation12 + $0x1e0] sm:$0xff] }
 0x378   : > { %3801 = vmatpush2.msra.mxu0 %v3178_v58  ;;  %3890 = vmatpush2.msra.mxu1 %v3434_v2  ;;  %v3109_v10 = vld [vmem:[#allocation12 + $0x1e8] sm:$0xff]  ;;  %v3100_v11 = vld [vmem:[#allocation12 + $0x1a0] sm:$0xff] }
 0x379   : > { %v3004_v27 = vadd.f32 %v2843_v22, %v2242_v1  ;;  %3636 = vmatprep.mubr.f32.mxu0 %v7398_v12  ;;  %3916 = vmatprep.subr.mxu0 %v3173_v34  ;;  %v3011_v24 = vadd.f32 %v3003_v21, %v7342_v13  ;;  %v3164_v13 = vld [vmem:[#allocation12 + $0x3a0] sm:$0xff]  ;;  %v3101_v37 = vld [vmem:[#allocation12 + $0x1a8] sm:$0xff] }
 0x37a   : > { %3637 = vmatmul.mubr.f32.gmra.mxu0 %v7400_v57  ;;  %4005 = vmatprep.subr.mxu1 %v3429_v18  ;;  %v3093_v25 = vld [vmem:[#allocation12 + $0x168] sm:$0xff]  ;;  %v3092_v26 = vld [vmem:[#allocation12 + $0x160] sm:$0xff] }
 0x37b   : > { %v3012_v8 = vadd.f32 %v3004_v27, %v7290_v46  ;;  %v7408_v30 = vmax.f32 %v3011_v24, 0.0  ;;  %v3156_v46 = vld [vmem:[#allocation12 + $0x360] sm:$0xff]  ;;  %v3085_v53 = vld [vmem:[#allocation12 + $0x128] sm:$0xff] }
 0x37c   : > { %v3084_v54 = vld [vmem:[#allocation12 + $0x120] sm:$0xff]  ;;  %v3077_v55 = vld [vmem:[#allocation12 + $0xe8] sm:$0xff] }
 0x37d   : > { %v7406_v35 = vmax.f32 %v3012_v8, 0.0  ;;  %v3076_v56 = vld [vmem:[#allocation12 + $0xe0] sm:$0xff]  ;;  %v3069_v49 = vld [vmem:[#allocation12 + $0xa8] sm:$0xff] }
 0x37e   : > { %v3068_v50 = vld [vmem:[#allocation12 + $0xa0] sm:$0xff]  ;;  %v3061_v15 = vld [vmem:[#allocation12 + $0x68] sm:$0xff] }
 0x37f   : > { %3642 = vmatprep.mubr.f32.mxu0 %v7406_v35  ;;  %v3060_v32 = vld [vmem:[#allocation12 + $0x60] sm:$0xff]  ;;  %v3053_v61 = vld [vmem:[#allocation12 + $0x28] sm:$0xff] }
 0x380   : > { %3643 = vmatmul.mubr.f32.gmra.mxu0 %v7408_v30  ;;  %v3052_v58 = vld [vmem:[#allocation12 + $0x20] sm:$0xff]  ;;  %v3301_v2 = vld [vmem:[#allocation12 + $0x7e8] sm:$0xff] }
 0x381   : > { %3802 = vmatprep.mubr.f32.mxu0 %v7304_v33  ;;  %v3300_v3 = vld [vmem:[#allocation12 + $0x7e0] sm:$0xff]  ;;  %v3293_v59 = vld [vmem:[#allocation12 + $0x7a8] sm:$0xff] }
 0x382   : > { %v3292_v34 = vld [vmem:[#allocation12 + $0x7a0] sm:$0xff]  ;;  %v3285_v1 = vld [vmem:[#allocation12 + $0x768] sm:$0xff] }
 0x383   : > { %v3284_v21 = vld [vmem:[#allocation12 + $0x760] sm:$0xff]  ;;  %v3277_v22 = vld [vmem:[#allocation12 + $0x728] sm:$0xff] }
 0x384   : > { %3803 = vmatmul.mubr.f32.vlgmr.msra.gmra.mxu0 %v7367_v63  ;;  %v3276_v18 = vld [vmem:[#allocation12 + $0x720] sm:$0xff]  ;;  %v3269_v27 = vld [vmem:[#allocation12 + $0x6e8] sm:$0xff] }
 0x385   : > { %3917 = vmatpush1.msra.mxu0 %v3172_v36  ;;  %3808 = vmatprep.mubr.f32.mxu0 %v7374_v4  ;;  %v3268_v24 = vld [vmem:[#allocation12 + $0x6e0] sm:$0xff]  ;;  %v3261_v8 = vld [vmem:[#allocation12 + $0x6a8] sm:$0xff] }
 0x386   : > { %3918 = vmatprep.subr.mxu0 %v3165_v39  ;;  %v3260_v36 = vld [vmem:[#allocation12 + $0x6a0] sm:$0xff]  ;;  %v3253_v39 = vld [vmem:[#allocation12 + $0x668] sm:$0xff] }
 0x387   : > { %3919 = vmatpush1.msra.mxu0 %v3164_v13  ;;  %v3252_v13 = vld [vmem:[#allocation12 + $0x660] sm:$0xff] }
 0x388   : > { %3920 = vmatprep.subr.mxu0 %v3157_v40  ;;  %3809 = vmatmul.mubr.f32.gmra.mxu0 %v7382_v0  ;;  %v3245_v40 = vld [vmem:[#allocation12 + $0x628] sm:$0xff] }
 0x389   : > { %3921 = vmatpush1.msra.mxu0 %v3156_v46  ;;  %3814 = vmatprep.mubr.f32.mxu0 %v7398_v12  ;;  %v3244_v46 = vld [vmem:[#allocation12 + $0x620] sm:$0xff] }
 0x38a   : > { %3922 = vmatprep.subr.mxu0 %v3149_v41  ;;  %v3237_v41 = vld [vmem:[#allocation12 + $0x5e8] sm:$0xff] }
 0x38b   : > { %3923 = vmatpush1.msra.mxu0 %v3148_v42 }
 0x38c   : > { %3924 = vmatprep.subr.mxu0 %v3141_v43  ;;  %3815 = vmatmul.mubr.f32.gmra.mxu0 %v7400_v57 }
 0x38d   : > { %3925 = vmatpush1.msra.mxu0 %v3140_v45  ;;  %3820 = vmatprep.mubr.f32.mxu0 %v7406_v35  ;;  %v3236_v45 = vld [vmem:[#allocation12 + $0x5e0] sm:$0xff] }
 0x38e   : > { %3926 = vmatprep.subr.mxu0 %v3133_v47 }
 0x38f   : > { %3927 = vmatpush1.msra.mxu0 %v3132_v28  ;;  %v3229_v28 = vld [vmem:[#allocation12 + $0x5a8] sm:$0xff] }
 0x390   : > { %3928 = vmatprep.subr.mxu0 %v3125_v44  ;;  %3821 = vmatmul.mubr.f32.gmra.mxu0 %v7408_v30 }
 0x391   : > { %3929 = vmatpush1.msra.mxu0 %v3124_v9  ;;  %3980 = vmatprep.mubr.f32.mxu0 %v7304_v33 }
 0x392   : > { %3930 = vmatprep.subr.mxu0 %v3117_v5  ;;  %v3228_v5 = vld [vmem:[#allocation12 + $0x5a0] sm:$0xff] }
 0x393   : > { %3931 = vmatpush1.msra.mxu0 %v3116_v52 }
 0x394   : > { %3932 = vmatprep.subr.mxu0 %v3109_v10 }
 0x395   : > { %3933 = vmatpush1.msra.mxu0 %v3108_v14  ;;  %v3221_v14 = vld [vmem:[#allocation12 + $0x568] sm:$0xff] }
 0x396   : > { %3934 = vmatprep.subr.mxu0 %v3101_v37  ;;  %v3220_v37 = vld [vmem:[#allocation12 + $0x560] sm:$0xff] }
 0x397   : > { %3935 = vmatpush1.msra.mxu0 %v3100_v11 }
 0x398   : > { %3936 = vmatprep.subr.mxu0 %v3093_v25  ;;  %v3213_v25 = vld [vmem:[#allocation12 + $0x528] sm:$0xff] }
 0x399   : > { %3937 = vmatpush1.msra.mxu0 %v3092_v26 }
 0x39a   : > { %3938 = vmatprep.subr.mxu0 %v3085_v53 }
 0x39b   : > { %3939 = vmatpush1.msra.mxu0 %v3084_v54 }
 0x39c   : > { %3940 = vmatprep.subr.mxu0 %v3077_v55  ;;  %v3212_v55 = vld [vmem:[#allocation12 + $0x520] sm:$0xff] }
 0x39d   : > { %3941 = vmatpush1.msra.mxu0 %v3076_v56 }
 0x39e   : > { %3942 = vmatprep.subr.mxu0 %v3069_v49 }
 0x39f   : > { %3943 = vmatpush1.msra.mxu0 %v3068_v50 }
 0x3a0   : > { %3944 = vmatprep.subr.mxu0 %v3061_v15 }
 0x3a1   : > { %3945 = vmatpush1.msra.mxu0 %v3060_v32  ;;  %v3204_v32 = vld [vmem:[#allocation12 + $0x4e0] sm:$0xff] }
 0x3a2   : > { %3946 = vmatprep.subr.mxu0 %v3053_v61 }
 0x3a3   : > { %3947 = vmatpush1.msra.mxu0 %v3052_v58 }
 0x3a4   : > { %3948 = vmatprep.subr.mxu0 %v3301_v2  ;;  %v3197_v2 = vld [vmem:[#allocation12 + $0x4a8] sm:$0xff] }
 0x3a5   : > { %3949 = vmatpush2.msra.mxu0 %v3300_v3 }
 0x3a6   : > { %3950 = vmatprep.subr.mxu0 %v3293_v59  ;;  %v3196_v59 = vld [vmem:[#allocation12 + $0x4a0] sm:$0xff] }
 0x3a7   : > { %3951 = vmatpush2.msra.mxu0 %v3292_v34 }
 0x3a8   : > { %3952 = vmatprep.subr.mxu0 %v3285_v1  ;;  %v3189_v1 = vld [vmem:[#allocation12 + $0x468] sm:$0xff] }
 0x3a9   : > { %3953 = vmatpush2.msra.mxu0 %v3284_v21 }
 0x3aa   : > { %3954 = vmatprep.subr.mxu0 %v3277_v22  ;;  %v3188_v22 = vld [vmem:[#allocation12 + $0x460] sm:$0xff] }
 0x3ab   : > { %3955 = vmatpush2.msra.mxu0 %v3276_v18  ;;  %v3181_v18 = vld [vmem:[#allocation12 + $0x428] sm:$0xff] }
 0x3ac   : > { %3956 = vmatprep.subr.mxu0 %v3269_v27  ;;  %v3180_v27 = vld [vmem:[#allocation12 + $0x420] sm:$0xff] }
 0x3ad   : > { %3957 = vmatpush2.msra.mxu0 %v3268_v24 }
 0x3ae   : > { %3958 = vmatprep.subr.mxu0 %v3261_v8  ;;  %v3175_v8 = vld [vmem:[#allocation12 + $0x3f8] sm:$0xff] }
 0x3af   : > { %3959 = vmatpush2.msra.mxu0 %v3260_v36  ;;  %v3166_v36 = vld [vmem:[#allocation12 + $0x3b0] sm:$0xff] }
 0x3b0   : > { %3960 = vmatprep.subr.mxu0 %v3253_v39  ;;  %v3428_v39 = vld [vmem:[#allocation12 + $0xbe0] sm:$0xff] }
 0x3b1   : > { %3961 = vmatpush2.msra.mxu0 %v3252_v13  ;;  %v3421_v13 = vld [vmem:[#allocation12 + $0xba8] sm:$0xff] }
 0x3b2   : > { %v2911_v42 = vpop.f32.mrf.mxu0  ;;  %v2988_v43 = vpop.f32.mrf.mxu1  ;;  %3962 = vmatprep.subr.mxu0 %v3245_v40  ;;  %v3420_v40 = vld [vmem:[#allocation12 + $0xba0] sm:$0xff] }
 0x3b3   : > { %v2989_v47 = vadd.f32 %v2988_v43, %v2911_v42  ;;  %3963 = vmatpush2.msra.mxu0 %v3244_v46  ;;  %v3159_v46 = vld [vmem:[#allocation12 + $0x378] sm:$0xff]  ;;  %v3412_v42 = vld [vmem:[#allocation12 + $0xb60] sm:$0xff]  ;;  %v3158_v43 = vld [vmem:[#allocation12 + $0x370] sm:$0xff] }
 0x3b4   : > { %v2913_v44 = vpop.f32.mrf.mxu0  ;;  %v2990_v9 = vpop.f32.mrf.mxu1  ;;  %3964 = vmatprep.subr.mxu0 %v3237_v41  ;;  %v3413_v41 = vld [vmem:[#allocation12 + $0xb68] sm:$0xff] }
 0x3b5   : > { %v3001_v52 = vadd.f32 %v2989_v47, %v7338_v31  ;;  %v2991_v10 = vadd.f32 %v2990_v9, %v2913_v44  ;;  %3965 = vmatpush2.msra.mxu0 %v3236_v45  ;;  %v3205_v31 = vld [vmem:[#allocation12 + $0x4e8] sm:$0xff]  ;;  %v3151_v47 = vld [vmem:[#allocation12 + $0x338] sm:$0xff]  ;;  %v3150_v44 = vld [vmem:[#allocation12 + $0x330] sm:$0xff] }
 0x3b6   : > { %3966 = vmatprep.subr.mxu0 %v3229_v28  ;;  %v3405_v45 = vld [vmem:[#allocation12 + $0xb28] sm:$0xff]  ;;  %v3404_v28 = vld [vmem:[#allocation12 + $0xb20] sm:$0xff] }
 0x3b7   : > { %v3002_v11 = vadd.f32 %v2991_v10, %v7354_v29  ;;  %3967 = vmatpush2.msra.mxu0 %v3228_v5  ;;  %v3009_v26 = vadd.f32 %v3001_v52, %v7348_v38  ;;  %v3397_v9 = vld [vmem:[#allocation12 + $0xae8] sm:$0xff]  ;;  %v3143_v5 = vld [vmem:[#allocation12 + $0x2f8] sm:$0xff]  ;;  %v3396_v52 = vld [vmem:[#allocation12 + $0xae0] sm:$0xff] }
 0x3b8   : > { %v2917_v53 = vpop.f32.mrf.mxu0  ;;  %v2994_v54 = vpop.f32.mrf.mxu1  ;;  %3968 = vmatprep.subr.mxu0 %v3221_v14  ;;  %v3142_v10 = vld [vmem:[#allocation12 + $0x2f0] sm:$0xff]  ;;  %v3389_v14 = vld [vmem:[#allocation12 + $0xaa8] sm:$0xff] }
 0x3b9   : > { %v3010_v56 = vadd.f32 %v3002_v11, %v7294_v51  ;;  %v2995_v49 = vadd.f32 %v2994_v54, %v2917_v53  ;;  %3969 = vmatpush2.msra.mxu0 %v3220_v37  ;;  %v7428_v3 = vmax.f32 %v3009_v26, 0.0  ;;  %v3135_v37 = vld [vmem:[#allocation12 + $0x2b8] sm:$0xff]  ;;  %v3388_v11 = vld [vmem:[#allocation12 + $0xaa0] sm:$0xff]  ;;  %v3381_v26 = vld [vmem:[#allocation12 + $0xa68] sm:$0xff] }
 0x3ba   : > { %v2919_v50 = vpop.f32.mrf.mxu0  ;;  %v2996_v15 = vpop.f32.mrf.mxu1  ;;  %3970 = vmatprep.subr.mxu0 %v3213_v25  ;;  %v3134_v25 = vld [vmem:[#allocation12 + $0x2b0] sm:$0xff]  ;;  %v3127_v53 = vld [vmem:[#allocation12 + $0x278] sm:$0xff]  ;;  %v3380_v54 = vld [vmem:[#allocation12 + $0xa60] sm:$0xff] }
 0x3bb   : > { %v7425_v61 = vmax.f32 %v3010_v56, 0.0  ;;  %v3005_v29 = vadd.f32 %v2995_v49, %v7363_v48  ;;  %v2997_v58 = vadd.f32 %v2996_v15, %v2919_v50  ;;  %3971 = vmatpush2.msra.mxu0 %v3212_v55  ;;  %v3126_v55 = vld [vmem:[#allocation12 + $0x270] sm:$0xff]  ;;  %v3373_v56 = vld [vmem:[#allocation12 + $0xa28] sm:$0xff]  ;;  %v3119_v49 = vld [vmem:[#allocation12 + $0x238] sm:$0xff] }
 0x3bc   : > { %3972 = vmatprep.subr.mxu0 %v3205_v31  ;;  %v3372_v31 = vld [vmem:[#allocation12 + $0xa20] sm:$0xff]  ;;  %v3118_v50 = vld [vmem:[#allocation12 + $0x230] sm:$0xff]  ;;  %v3365_v15 = vld [vmem:[#allocation12 + $0x9e8] sm:$0xff] }
 0x3bd   : > { %v3006_v34 = vadd.f32 %v2997_v58, %v7365_v60  ;;  %3725 = vmatprep.mubr.f32.mxu1 %v7425_v61  ;;  %3973 = vmatpush2.msra.mxu0 %v3204_v32  ;;  %v3013_v21 = vadd.f32 %v3005_v29, %v7348_v38  ;;  %v3174_v38 = vld [vmem:[#allocation12 + $0x3f0] sm:$0xff]  ;;  %v3111_v32 = vld [vmem:[#allocation12 + $0x1f8] sm:$0xff]  ;;  %v3364_v29 = vld [vmem:[#allocation12 + $0x9e0] sm:$0xff] }
 0x3be   : > { %3726 = vmatmul.mubr.f32.gmra.mxu1 %v7428_v3  ;;  %3974 = vmatprep.subr.mxu0 %v3197_v2  ;;  %v3110_v58 = vld [vmem:[#allocation12 + $0x1f0] sm:$0xff]  ;;  %v3357_v2 = vld [vmem:[#allocation12 + $0x9a8] sm:$0xff] }
 0x3bf   : > { %v3014_v48 = vadd.f32 %v3006_v34, %v7294_v51  ;;  %3975 = vmatpush2.msra.mxu0 %v3196_v59  ;;  %v7437_v60 = vmax.f32 %v3013_v21, 0.0  ;;  %v3167_v51 = vld [vmem:[#allocation12 + $0x3b8] sm:$0xff]  ;;  %v3356_v34 = vld [vmem:[#allocation12 + $0x9a0] sm:$0xff]  ;;  %v3349_v21 = vld [vmem:[#allocation12 + $0x968] sm:$0xff] }
 0x3c0   : > { %3976 = vmatprep.subr.mxu0 %v3189_v1  ;;  %v3103_v59 = vld [vmem:[#allocation12 + $0x1b8] sm:$0xff]  ;;  %v3102_v1 = vld [vmem:[#allocation12 + $0x1b0] sm:$0xff] }
 0x3c1   : > { %v7435_v24 = vmax.f32 %v3014_v48, 0.0  ;;  %3977 = vmatpush2.msra.mxu0 %v3188_v22  ;;  %v3095_v22 = vld [vmem:[#allocation12 + $0x178] sm:$0xff]  ;;  %v3348_v48 = vld [vmem:[#allocation12 + $0x960] sm:$0xff] }
 0x3c2   : > { %3978 = vmatprep.subr.mxu0 %v3181_v18  ;;  %v3094_v18 = vld [vmem:[#allocation12 + $0x170] sm:$0xff] }
 0x3c3   : > { %3731 = vmatprep.mubr.f32.mxu1 %v7435_v24  ;;  %3979 = vmatpush2.msra.mxu0 %v3180_v27  ;;  %v3341_v27 = vld [vmem:[#allocation12 + $0x928] sm:$0xff] }
 0x3c4   : > { %3732 = vmatmul.mubr.f32.gmra.mxu1 %v7437_v60  ;;  %3981 = vmatmul.mubr.f32.vlgmr.msra.gmra.mxu0 %v7367_v63 }
 0x3c5   : > { %3891 = vmatprep.mubr.f32.mxu1 %v7310_v62  ;;  %4094 = vmatprep.subr.mxu0 %v3175_v8  ;;  %v3087_v8 = vld [vmem:[#allocation12 + $0x138] sm:$0xff] }
 0x3c6   : > { %3986 = vmatprep.mubr.f32.mxu0 %v7374_v4  ;;  %4095 = vmatpush1.msra.mxu0 %v3174_v38  ;;  %v3340_v38 = vld [vmem:[#allocation12 + $0x920] sm:$0xff] }
 0x3c7   : > { %4096 = vmatprep.subr.mxu0 %v3167_v51  ;;  %v3086_v51 = vld [vmem:[#allocation12 + $0x130] sm:$0xff] }
 0x3c8   : > { %3892 = vmatmul.mubr.f32.vlgmr.msra.gmra.mxu1 %v7371_v7  ;;  %4097 = vmatpush1.msra.mxu0 %v3166_v36  ;;  %v3333_v36 = vld [vmem:[#allocation12 + $0x8e8] sm:$0xff] }
 0x3c9   : > { %4006 = vmatpush1.msra.mxu1 %v3428_v39  ;;  %3897 = vmatprep.mubr.f32.mxu1 %v7376_v6  ;;  %v3079_v39 = vld [vmem:[#allocation12 + $0xf8] sm:$0xff] }
 0x3ca   : > { %4007 = vmatprep.subr.mxu1 %v3421_v13  ;;  %3987 = vmatmul.mubr.f32.gmra.mxu0 %v7382_v0  ;;  %v3332_v13 = vld [vmem:[#allocation12 + $0x8e0] sm:$0xff] }
 0x3cb   : > { %4008 = vmatpush1.msra.mxu1 %v3420_v40  ;;  %4098 = vmatprep.subr.mxu0 %v3159_v46  ;;  %v3078_v40 = vld [vmem:[#allocation12 + $0xf0] sm:$0xff]  ;;  %v3325_v46 = vld [vmem:[#allocation12 + $0x8a8] sm:$0xff] }
 0x3cc   : > { %4009 = vmatprep.subr.mxu1 %v3413_v41  ;;  %3898 = vmatmul.mubr.f32.gmra.mxu1 %v7384_v23  ;;  %v3071_v41 = vld [vmem:[#allocation12 + $0xb8] sm:$0xff] }
 0x3cd   : > { %3992 = vmatprep.mubr.f32.mxu0 %v7398_v12  ;;  %4010 = vmatpush1.msra.mxu1 %v3412_v42  ;;  %v3324_v42 = vld [vmem:[#allocation12 + $0x8a0] sm:$0xff] }
 0x3ce   : > { %4099 = vmatpush1.msra.mxu0 %v3158_v43  ;;  %3903 = vmatprep.mubr.f32.mxu1 %v7425_v61  ;;  %v3070_v43 = vld [vmem:[#allocation12 + $0xb0] sm:$0xff] }
 0x3cf   : > { %4011 = vmatprep.subr.mxu1 %v3405_v45  ;;  %4100 = vmatprep.subr.mxu0 %v3151_v47  ;;  %v3317_v45 = vld [vmem:[#allocation12 + $0x868] sm:$0xff]  ;;  %v3063_v47 = vld [vmem:[#allocation12 + $0x78] sm:$0xff] }
 0x3d0   : > { %4012 = vmatpush1.msra.mxu1 %v3404_v28  ;;  %4101 = vmatpush1.msra.mxu0 %v3150_v44  ;;  %v3316_v28 = vld [vmem:[#allocation12 + $0x860] sm:$0xff]  ;;  %v3062_v44 = vld [vmem:[#allocation12 + $0x70] sm:$0xff] }
 0x3d1   : > { %3993 = vmatmul.mubr.f32.gmra.mxu0 %v7400_v57  ;;  %4013 = vmatprep.subr.mxu1 %v3397_v9  ;;  %v3309_v9 = vld [vmem:[#allocation12 + $0x828] sm:$0xff] }
 0x3d2   : > { %4102 = vmatprep.subr.mxu0 %v3143_v5  ;;  %3904 = vmatmul.mubr.f32.gmra.mxu1 %v7428_v3  ;;  %v3055_v5 = vld [vmem:[#allocation12 + $0x38] sm:$0xff] }
 0x3d3   : > { %3998 = vmatprep.mubr.f32.mxu0 %v7406_v35  ;;  %4014 = vmatpush1.msra.mxu1 %v3396_v52  ;;  %v3308_v52 = vld [vmem:[#allocation12 + $0x820] sm:$0xff] }
 0x3d4   : > { %4103 = vmatpush1.msra.mxu0 %v3142_v10  ;;  %3909 = vmatprep.mubr.f32.mxu1 %v7435_v24  ;;  %v3054_v10 = vld [vmem:[#allocation12 + $0x30] sm:$0xff] }
 0x3d5   : > { %4015 = vmatprep.subr.mxu1 %v3389_v14  ;;  %4104 = vmatprep.subr.mxu0 %v3135_v37  ;;  %v3557_v14 = vld [vmem:[#allocation12 + $0xfe8] sm:$0xff]  ;;  %v3303_v37 = vld [vmem:[#allocation12 + $0x7f8] sm:$0xff] }
 0x3d6   : > { %4016 = vmatpush1.msra.mxu1 %v3388_v11  ;;  %4105 = vmatpush1.msra.mxu0 %v3134_v25  ;;  %v3556_v11 = vld [vmem:[#allocation12 + $0xfe0] sm:$0xff]  ;;  %v3302_v25 = vld [vmem:[#allocation12 + $0x7f0] sm:$0xff] }
 0x3d7   : > { %3999 = vmatmul.mubr.f32.gmra.mxu0 %v7408_v30  ;;  %4017 = vmatprep.subr.mxu1 %v3381_v26  ;;  %v3549_v26 = vld [vmem:[#allocation12 + $0xfa8] sm:$0xff] }
 0x3d8   : > { %4106 = vmatprep.subr.mxu0 %v3127_v53  ;;  %3910 = vmatmul.mubr.f32.gmra.mxu1 %v7437_v60  ;;  %v3295_v53 = vld [vmem:[#allocation12 + $0x7b8] sm:$0xff] }
 0x3d9   : > { %4018 = vmatpush1.msra.mxu1 %v3380_v54  ;;  %4107 = vmatpush1.msra.mxu0 %v3126_v55  ;;  %v3548_v54 = vld [vmem:[#allocation12 + $0xfa0] sm:$0xff]  ;;  %v3294_v55 = vld [vmem:[#allocation12 + $0x7b0] sm:$0xff] }
 0x3da   : > { %4158 = vmatprep.mubr.f32.mxu0 %v7304_v33  ;;  %4019 = vmatprep.subr.mxu1 %v3373_v56  ;;  %v3541_v56 = vld [vmem:[#allocation12 + $0xf68] sm:$0xff] }
 0x3db   : > { %4069 = vmatprep.mubr.f32.mxu1 %v7310_v62  ;;  %4108 = vmatprep.subr.mxu0 %v3119_v49  ;;  %v3287_v49 = vld [vmem:[#allocation12 + $0x778] sm:$0xff] }
 0x3dc   : > { %4020 = vmatpush1.msra.mxu1 %v3372_v31  ;;  %4109 = vmatpush1.msra.mxu0 %v3118_v50  ;;  %v3540_v31 = vld [vmem:[#allocation12 + $0xf60] sm:$0xff]  ;;  %v3286_v50 = vld [vmem:[#allocation12 + $0x770] sm:$0xff] }
 0x3dd   : > { %4021 = vmatprep.subr.mxu1 %v3365_v15  ;;  %4110 = vmatprep.subr.mxu0 %v3111_v32  ;;  %v3533_v15 = vld [vmem:[#allocation12 + $0xf28] sm:$0xff]  ;;  %v3279_v32 = vld [vmem:[#allocation12 + $0x738] sm:$0xff] }
 0x3de   : > { %4022 = vmatpush1.msra.mxu1 %v3364_v29  ;;  %4111 = vmatpush1.msra.mxu0 %v3110_v58  ;;  %v3532_v29 = vld [vmem:[#allocation12 + $0xf20] sm:$0xff]  ;;  %v3278_v58 = vld [vmem:[#allocation12 + $0x730] sm:$0xff] }
 0x3df   : > { %4023 = vmatprep.subr.mxu1 %v3357_v2  ;;  %4112 = vmatprep.subr.mxu0 %v3103_v59  ;;  %v3525_v2 = vld [vmem:[#allocation12 + $0xee8] sm:$0xff]  ;;  %v3271_v59 = vld [vmem:[#allocation12 + $0x6f8] sm:$0xff] }
 0x3e0   : > { %4024 = vmatpush1.msra.mxu1 %v3356_v34  ;;  %4113 = vmatpush1.msra.mxu0 %v3102_v1  ;;  %v3524_v34 = vld [vmem:[#allocation12 + $0xee0] sm:$0xff]  ;;  %v3270_v1 = vld [vmem:[#allocation12 + $0x6f0] sm:$0xff] }
 0x3e1   : > { %4025 = vmatprep.subr.mxu1 %v3349_v21  ;;  %4114 = vmatprep.subr.mxu0 %v3095_v22  ;;  %v3517_v21 = vld [vmem:[#allocation12 + $0xea8] sm:$0xff]  ;;  %v3263_v22 = vld [vmem:[#allocation12 + $0x6b8] sm:$0xff] }
 0x3e2   : > { %4026 = vmatpush1.msra.mxu1 %v3348_v48  ;;  %4115 = vmatpush1.msra.mxu0 %v3094_v18  ;;  %v3516_v48 = vld [vmem:[#allocation12 + $0xea0] sm:$0xff]  ;;  %v3262_v18 = vld [vmem:[#allocation12 + $0x6b0] sm:$0xff] }
 0x3e3   : > { %4027 = vmatprep.subr.mxu1 %v3341_v27  ;;  %4116 = vmatprep.subr.mxu0 %v3087_v8  ;;  %v3509_v27 = vld [vmem:[#allocation12 + $0xe68] sm:$0xff]  ;;  %v3255_v8 = vld [vmem:[#allocation12 + $0x678] sm:$0xff] }
 0x3e4   : > { %4028 = vmatpush1.msra.mxu1 %v3340_v38  ;;  %4117 = vmatpush1.msra.mxu0 %v3086_v51 }
 0x3e5   : > { %4029 = vmatprep.subr.mxu1 %v3333_v36  ;;  %4118 = vmatprep.subr.mxu0 %v3079_v39  ;;  %v3508_v39 = vld [vmem:[#allocation12 + $0xe60] sm:$0xff] }
 0x3e6   : > { %4030 = vmatpush1.msra.mxu1 %v3332_v13  ;;  %4119 = vmatpush1.msra.mxu0 %v3078_v40  ;;  %v3254_v13 = vld [vmem:[#allocation12 + $0x670] sm:$0xff]  ;;  %v3501_v40 = vld [vmem:[#allocation12 + $0xe28] sm:$0xff] }
 0x3e7   : > { %4031 = vmatprep.subr.mxu1 %v3325_v46  ;;  %4120 = vmatprep.subr.mxu0 %v3071_v41  ;;  %v3247_v46 = vld [vmem:[#allocation12 + $0x638] sm:$0xff] }
 0x3e8   : > { %4032 = vmatpush1.msra.mxu1 %v3324_v42  ;;  %4121 = vmatpush1.msra.mxu0 %v3070_v43 }
 0x3e9   : > { %4033 = vmatprep.subr.mxu1 %v3317_v45  ;;  %4122 = vmatprep.subr.mxu0 %v3063_v47  ;;  %v3500_v45 = vld [vmem:[#allocation12 + $0xe20] sm:$0xff]  ;;  %v3246_v47 = vld [vmem:[#allocation12 + $0x630] sm:$0xff] }
 0x3ea   : > { %4034 = vmatpush1.msra.mxu1 %v3316_v28  ;;  %4123 = vmatpush1.msra.mxu0 %v3062_v44  ;;  %v3493_v28 = vld [vmem:[#allocation12 + $0xde8] sm:$0xff]  ;;  %v3239_v44 = vld [vmem:[#allocation12 + $0x5f8] sm:$0xff] }
 0x3eb   : > { %4035 = vmatprep.subr.mxu1 %v3309_v9  ;;  %4124 = vmatprep.subr.mxu0 %v3055_v5 }
 0x3ec   : > { %4036 = vmatpush1.msra.mxu1 %v3308_v52  ;;  %4125 = vmatpush1.msra.mxu0 %v3054_v10  ;;  %v3492_v10 = vld [vmem:[#allocation12 + $0xde0] sm:$0xff] }
 0x3ed   : > { %4037 = vmatprep.subr.mxu1 %v3557_v14  ;;  %4126 = vmatprep.subr.mxu0 %v3303_v37  ;;  %v3238_v14 = vld [vmem:[#allocation12 + $0x5f0] sm:$0xff]  ;;  %v3485_v37 = vld [vmem:[#allocation12 + $0xda8] sm:$0xff] }
 0x3ee   : > { %4038 = vmatpush2.msra.mxu1 %v3556_v11  ;;  %4127 = vmatpush2.msra.mxu0 %v3302_v25  ;;  %v3231_v11 = vld [vmem:[#allocation12 + $0x5b8] sm:$0xff]  ;;  %v3484_v25 = vld [vmem:[#allocation12 + $0xda0] sm:$0xff] }
 0x3ef   : > { %4039 = vmatprep.subr.mxu1 %v3549_v26  ;;  %4128 = vmatprep.subr.mxu0 %v3295_v53  ;;  %v3230_v26 = vld [vmem:[#allocation12 + $0x5b0] sm:$0xff]  ;;  %v3477_v53 = vld [vmem:[#allocation12 + $0xd68] sm:$0xff] }
 0x3f0   : > { %4040 = vmatpush2.msra.mxu1 %v3548_v54  ;;  %4129 = vmatpush2.msra.mxu0 %v3294_v55  ;;  %v3223_v54 = vld [vmem:[#allocation12 + $0x578] sm:$0xff]  ;;  %v3476_v55 = vld [vmem:[#allocation12 + $0xd60] sm:$0xff] }
 0x3f1   : > { %4041 = vmatprep.subr.mxu1 %v3541_v56  ;;  %4130 = vmatprep.subr.mxu0 %v3287_v49  ;;  %v3222_v56 = vld [vmem:[#allocation12 + $0x570] sm:$0xff]  ;;  %v3469_v49 = vld [vmem:[#allocation12 + $0xd28] sm:$0xff] }
 0x3f2   : > { %4042 = vmatpush2.msra.mxu1 %v3540_v31  ;;  %4131 = vmatpush2.msra.mxu0 %v3286_v50  ;;  %v3215_v31 = vld [vmem:[#allocation12 + $0x538] sm:$0xff]  ;;  %v3468_v50 = vld [vmem:[#allocation12 + $0xd20] sm:$0xff] }
 0x3f3   : > { %4043 = vmatprep.subr.mxu1 %v3533_v15  ;;  %4132 = vmatprep.subr.mxu0 %v3279_v32  ;;  %v3214_v15 = vld [vmem:[#allocation12 + $0x530] sm:$0xff]  ;;  %v3461_v32 = vld [vmem:[#allocation12 + $0xce8] sm:$0xff] }
 0x3f4   : > { %4044 = vmatpush2.msra.mxu1 %v3532_v29  ;;  %4133 = vmatpush2.msra.mxu0 %v3278_v58  ;;  %v3207_v29 = vld [vmem:[#allocation12 + $0x4f8] sm:$0xff]  ;;  %v3460_v58 = vld [vmem:[#allocation12 + $0xce0] sm:$0xff] }
 0x3f5   : > { %4045 = vmatprep.subr.mxu1 %v3525_v2  ;;  %4134 = vmatprep.subr.mxu0 %v3271_v59  ;;  %v3206_v2 = vld [vmem:[#allocation12 + $0x4f0] sm:$0xff]  ;;  %v3453_v59 = vld [vmem:[#allocation12 + $0xca8] sm:$0xff] }
 0x3f6   : > { %4046 = vmatpush2.msra.mxu1 %v3524_v34  ;;  %4135 = vmatpush2.msra.mxu0 %v3270_v1  ;;  %v3626_v38 = vpop.f32.mrf.mxu0  ;;  %v3715_v51 = vpop.f32.mrf.mxu1  ;;  %v3199_v34 = vld [vmem:[#allocation12 + $0x4b8] sm:$0xff]  ;;  %v3452_v1 = vld [vmem:[#allocation12 + $0xca0] sm:$0xff] }
 0x3f7   : > { %4047 = vmatprep.subr.mxu1 %v3517_v21  ;;  %4136 = vmatprep.subr.mxu0 %v3263_v22  ;;  %v7458_v36 = vadd.f32 %v3715_v51, %v3626_v38  ;;  %v3198_v21 = vld [vmem:[#allocation12 + $0x4b0] sm:$0xff]  ;;  %v3445_v22 = vld [vmem:[#allocation12 + $0xc68] sm:$0xff]  ;;  %v3183_v38 = vld [vmem:[#allocation12 + $0x438] sm:$0xff] }
 0x3f8   : > { %4048 = vmatpush2.msra.mxu1 %v3516_v48  ;;  %4137 = vmatpush2.msra.mxu0 %v3262_v18  ;;  %v3628_v41 = vpop.f32.mrf.mxu0  ;;  %v3717_v42 = vpop.f32.mrf.mxu1  ;;  %v3191_v48 = vld [vmem:[#allocation12 + $0x478] sm:$0xff]  ;;  %v3444_v18 = vld [vmem:[#allocation12 + $0xc60] sm:$0xff] }
 0x3f9   : > { %4049 = vmatprep.subr.mxu1 %v3509_v27  ;;  %4138 = vmatprep.subr.mxu0 %v3255_v8  ;;  %v7460_v43 = vadd.f32 %v3717_v42, %v3628_v41  ;;  %v3190_v27 = vld [vmem:[#allocation12 + $0x470] sm:$0xff]  ;;  %v3437_v8 = vld [vmem:[#allocation12 + $0xc28] sm:$0xff]  ;;  %v3436_v51 = vld [vmem:[#allocation12 + $0xc20] sm:$0xff] }
 0x3fa   : > { %4050 = vmatpush2.msra.mxu1 %v3508_v39  ;;  %4139 = vmatpush2.msra.mxu0 %v3254_v13  ;;  %v3632_v9 = vpop.f32.mrf.mxu0  ;;  %v3721_v5 = vpop.f32.mrf.mxu1  ;;  %v3182_v39 = vld [vmem:[#allocation12 + $0x430] sm:$0xff]  ;;  %v3431_v13 = vld [vmem:[#allocation12 + $0xbf8] sm:$0xff]  ;;  %v4385_v41 = vld [vmem:[#allocation13 + $0x1e0] sm:$0xff] }
 0x3fb   : > { %4051 = vmatprep.subr.mxu1 %v3501_v40  ;;  %4140 = vmatprep.subr.mxu0 %v3247_v46  ;;  %v7462_v52 = vadd.f32 %v3721_v5, %v3632_v9  ;;  %v4386_v40 = vld [vmem:[#allocation13 + $0x1e8] sm:$0xff]  ;;  %v3430_v46 = vld [vmem:[#allocation12 + $0xbf0] sm:$0xff]  ;;  %v3423_v42 = vld [vmem:[#allocation12 + $0xbb8] sm:$0xff] }
 0x3fc   : > { %4052 = vmatpush2.msra.mxu1 %v3500_v45  ;;  %4141 = vmatpush2.msra.mxu0 %v3246_v47  ;;  %v4382_v45 = vld [vmem:[#allocation13 + $0x1c8] sm:$0xff]  ;;  %v3422_v47 = vld [vmem:[#allocation12 + $0xbb0] sm:$0xff] }
 0x3fd   : > { %4053 = vmatprep.subr.mxu1 %v3493_v28  ;;  %4142 = vmatprep.subr.mxu0 %v3239_v44  ;;  %v4381_v28 = vld [vmem:[#allocation13 + $0x1c0] sm:$0xff]  ;;  %v3415_v44 = vld [vmem:[#allocation12 + $0xb78] sm:$0xff]  ;;  %v4378_v9 = vld [vmem:[#allocation13 + $0x1a8] sm:$0xff] }
 0x3fe   : > { %4054 = vmatpush2.msra.mxu1 %v3492_v10  ;;  %4143 = vmatpush2.msra.mxu0 %v3238_v14  ;;  %v3414_v5 = vld [vmem:[#allocation12 + $0xb70] sm:$0xff]  ;;  %v4377_v10 = vld [vmem:[#allocation13 + $0x1a0] sm:$0xff]  ;;  %v3407_v14 = vld [vmem:[#allocation12 + $0xb38] sm:$0xff] }
 0x3ff   : > { %4055 = vmatprep.subr.mxu1 %v3485_v37  ;;  %4144 = vmatprep.subr.mxu0 %v3231_v11  ;;  %v4374_v37 = vld [vmem:[#allocation13 + $0x188] sm:$0xff]  ;;  %v3406_v11 = vld [vmem:[#allocation12 + $0xb30] sm:$0xff] }
 0x400   : > { %4056 = vmatpush2.msra.mxu1 %v3484_v25  ;;  %4145 = vmatpush2.msra.mxu0 %v3230_v26  ;;  %v4373_v25 = vld [vmem:[#allocation13 + $0x180] sm:$0xff]  ;;  %v3399_v26 = vld [vmem:[#allocation12 + $0xaf8] sm:$0xff] }
 0x401   : > { %4057 = vmatprep.subr.mxu1 %v3477_v53  ;;  %4146 = vmatprep.subr.mxu0 %v3223_v54  ;;  %v4370_v53 = vld [vmem:[#allocation13 + $0x168] sm:$0xff]  ;;  %v3398_v54 = vld [vmem:[#allocation12 + $0xaf0] sm:$0xff] }
 0x402   : > { %4058 = vmatpush2.msra.mxu1 %v3476_v55  ;;  %4147 = vmatpush2.msra.mxu0 %v3222_v56  ;;  %v4369_v55 = vld [vmem:[#allocation13 + $0x160] sm:$0xff]  ;;  %v3391_v56 = vld [vmem:[#allocation12 + $0xab8] sm:$0xff] }
 0x403   : > { %4059 = vmatprep.subr.mxu1 %v3469_v49  ;;  %4148 = vmatprep.subr.mxu0 %v3215_v31  ;;  %v4366_v49 = vld [vmem:[#allocation13 + $0x148] sm:$0xff]  ;;  %v3390_v31 = vld [vmem:[#allocation12 + $0xab0] sm:$0xff] }
 0x404   : > { %4060 = vmatpush2.msra.mxu1 %v3468_v50  ;;  %4149 = vmatpush2.msra.mxu0 %v3214_v15  ;;  %v4365_v50 = vld [vmem:[#allocation13 + $0x140] sm:$0xff]  ;;  %v3383_v15 = vld [vmem:[#allocation12 + $0xa78] sm:$0xff] }
 0x405   : > { %4061 = vmatprep.subr.mxu1 %v3461_v32  ;;  %4150 = vmatprep.subr.mxu0 %v3207_v29  ;;  %v4362_v32 = vld [vmem:[#allocation13 + $0x128] sm:$0xff]  ;;  %v3382_v29 = vld [vmem:[#allocation12 + $0xa70] sm:$0xff] }
 0x406   : > { %4062 = vmatpush2.msra.mxu1 %v3460_v58  ;;  %4151 = vmatpush2.msra.mxu0 %v3206_v2  ;;  %v4361_v58 = vld [vmem:[#allocation13 + $0x120] sm:$0xff]  ;;  %v3375_v2 = vld [vmem:[#allocation12 + $0xa38] sm:$0xff] }
 0x407   : > { %4063 = vmatprep.subr.mxu1 %v3453_v59  ;;  %4152 = vmatprep.subr.mxu0 %v3199_v34  ;;  %v4358_v59 = vld [vmem:[#allocation13 + $0x108] sm:$0xff]  ;;  %v3374_v34 = vld [vmem:[#allocation12 + $0xa30] sm:$0xff] }
 0x408   : > { %4064 = vmatpush2.msra.mxu1 %v3452_v1  ;;  %4153 = vmatpush2.msra.mxu0 %v3198_v21  ;;  %v4357_v1 = vld [vmem:[#allocation13 + $0x100] sm:$0xff]  ;;  %v3367_v21 = vld [vmem:[#allocation12 + $0x9f8] sm:$0xff] }
 0x409   : > { %4065 = vmatprep.subr.mxu1 %v3445_v22  ;;  %4154 = vmatprep.subr.mxu0 %v3191_v48  ;;  %v4354_v22 = vld [vmem:[#allocation13 + $0xe8] sm:$0xff]  ;;  %v3366_v48 = vld [vmem:[#allocation12 + $0x9f0] sm:$0xff] }
 0x40a   : > { %4066 = vmatpush2.msra.mxu1 %v3444_v18  ;;  %4155 = vmatpush2.msra.mxu0 %v3190_v27  ;;  %v4353_v18 = vld [vmem:[#allocation13 + $0xe0] sm:$0xff]  ;;  %v3359_v27 = vld [vmem:[#allocation12 + $0x9b8] sm:$0xff] }
 0x40b   : > { %4067 = vmatprep.subr.mxu1 %v3437_v8  ;;  %4156 = vmatprep.subr.mxu0 %v3183_v38  ;;  %v4350_v8 = vld [vmem:[#allocation13 + $0xc8] sm:$0xff]  ;;  %v3358_v38 = vld [vmem:[#allocation12 + $0x9b0] sm:$0xff] }
 0x40c   : > { %4068 = vmatpush2.msra.mxu1 %v3436_v51  ;;  %4157 = vmatpush2.msra.mxu0 %v3182_v39  ;;  %v4349_v51 = vld [vmem:[#allocation13 + $0xc0] sm:$0xff]  ;;  %v3351_v39 = vld [vmem:[#allocation12 + $0x978] sm:$0xff] }
 0x40d   : > { %4070 = vmatmul.mubr.f32.vlgmr.msra.gmra.mxu1 %v7371_v7  ;;  %4159 = vmatmul.mubr.f32.vlgmr.msra.gmra.mxu0 %v7367_v63 }
 0x40e   : > { %4183 = vmatprep.subr.mxu1 %v3431_v13  ;;  %4581 = vmatprep.subr.mxu0 %v4386_v40  ;;  %v4346_v13 = vld [vmem:[#allocation13 + $0xa8] sm:$0xff]  ;;  %v3350_v40 = vld [vmem:[#allocation12 + $0x970] sm:$0xff] }
 0x40f   : > { %4075 = vmatprep.mubr.f32.mxu1 %v7376_v6  ;;  %4164 = vmatprep.mubr.f32.mxu0 %v7374_v4 }
 0x410   : > { %4184 = vmatpush1.msra.mxu1 %v3430_v46  ;;  %4582 = vmatpush1.msra.mxu0 %v4385_v41  ;;  %v4345_v46 = vld [vmem:[#allocation13 + $0xa0] sm:$0xff]  ;;  %v3343_v41 = vld [vmem:[#allocation12 + $0x938] sm:$0xff] }
 0x411   : > { %4185 = vmatprep.subr.mxu1 %v3423_v42  ;;  %4583 = vmatprep.subr.mxu0 %v4382_v45  ;;  %v4342_v42 = vld [vmem:[#allocation13 + $0x88] sm:$0xff]  ;;  %v3342_v45 = vld [vmem:[#allocation12 + $0x930] sm:$0xff] }
 0x412   : > { %4186 = vmatpush1.msra.mxu1 %v3422_v47  ;;  %4584 = vmatpush1.msra.mxu0 %v4381_v28  ;;  %v4341_v47 = vld [vmem:[#allocation13 + $0x80] sm:$0xff]  ;;  %v3335_v28 = vld [vmem:[#allocation12 + $0x8f8] sm:$0xff] }
 0x413   : > { %4076 = vmatmul.mubr.f32.gmra.mxu1 %v7384_v23  ;;  %4165 = vmatmul.mubr.f32.gmra.mxu0 %v7382_v0 }
 0x414   : > { %4187 = vmatprep.subr.mxu1 %v3415_v44  ;;  %4585 = vmatprep.subr.mxu0 %v4378_v9  ;;  %v4338_v44 = vld [vmem:[#allocation13 + $0x68] sm:$0xff]  ;;  %v3334_v9 = vld [vmem:[#allocation12 + $0x8f0] sm:$0xff] }
 0x415   : > { %4081 = vmatprep.mubr.f32.mxu1 %v7425_v61  ;;  %4170 = vmatprep.mubr.f32.mxu0 %v7398_v12 }
 0x416   : > { %4188 = vmatpush1.msra.mxu1 %v3414_v5  ;;  %4586 = vmatpush1.msra.mxu0 %v4377_v10  ;;  %v4337_v5 = vld [vmem:[#allocation13 + $0x60] sm:$0xff]  ;;  %v3327_v10 = vld [vmem:[#allocation12 + $0x8b8] sm:$0xff] }
 0x417   : > { %4189 = vmatprep.subr.mxu1 %v3407_v14  ;;  %4587 = vmatprep.subr.mxu0 %v4374_v37  ;;  %v4334_v14 = vld [vmem:[#allocation13 + $0x48] sm:$0xff]  ;;  %v3326_v37 = vld [vmem:[#allocation12 + $0x8b0] sm:$0xff] }
 0x418   : > { %4190 = vmatpush1.msra.mxu1 %v3406_v11  ;;  %4588 = vmatpush1.msra.mxu0 %v4373_v25  ;;  %v4333_v11 = vld [vmem:[#allocation13 + $0x40] sm:$0xff]  ;;  %v3319_v25 = vld [vmem:[#allocation12 + $0x878] sm:$0xff] }
 0x419   : > { %4082 = vmatmul.mubr.f32.gmra.mxu1 %v7428_v3  ;;  %4171 = vmatmul.mubr.f32.gmra.mxu0 %v7400_v57 }
 0x41a   : > { %4191 = vmatprep.subr.mxu1 %v3399_v26  ;;  %4589 = vmatprep.subr.mxu0 %v4370_v53  ;;  %v4330_v26 = vld [vmem:[#allocation13 + $0x28] sm:$0xff]  ;;  %v3318_v53 = vld [vmem:[#allocation12 + $0x870] sm:$0xff] }
 0x41b   : > { %4087 = vmatprep.mubr.f32.mxu1 %v7435_v24  ;;  %4176 = vmatprep.mubr.f32.mxu0 %v7406_v35 }
 0x41c   : > { %4192 = vmatpush1.msra.mxu1 %v3398_v54  ;;  %4590 = vmatpush1.msra.mxu0 %v4369_v55  ;;  %v4329_v54 = vld [vmem:[#allocation13 + $0x20] sm:$0xff]  ;;  %v3311_v55 = vld [vmem:[#allocation12 + $0x838] sm:$0xff] }
 0x41d   : > { %4193 = vmatprep.subr.mxu1 %v3391_v56  ;;  %4591 = vmatprep.subr.mxu0 %v4366_v49  ;;  %v4326_v56 = vld [vmem:[#allocation13 + $0x8] sm:$0xff]  ;;  %v3310_v49 = vld [vmem:[#allocation12 + $0x830] sm:$0xff] }
 0x41e   : > { %4194 = vmatpush1.msra.mxu1 %v3390_v31  ;;  %4592 = vmatpush1.msra.mxu0 %v4365_v50  ;;  %v4325_v31 = vld [vmem:[#allocation13] sm:$0xff]  ;;  %v3559_v50 = vld [vmem:[#allocation12 + $0xff8] sm:$0xff] }
 0x41f   : > { %4088 = vmatmul.mubr.f32.gmra.mxu1 %v7437_v60  ;;  %4177 = vmatmul.mubr.f32.gmra.mxu0 %v7408_v30 }
 0x420   : > { %4195 = vmatprep.subr.mxu1 %v3383_v15  ;;  %4593 = vmatprep.subr.mxu0 %v4362_v32  ;;  %v4450_v15 = vld [vmem:[#allocation13 + $0x3e8] sm:$0xff]  ;;  %v3558_v32 = vld [vmem:[#allocation12 + $0xff0] sm:$0xff] }
 0x421   : > { %4196 = vmatpush1.msra.mxu1 %v3382_v29  ;;  %4247 = vmatprep.mubr.f32.mxu1 %v7310_v62  ;;  %v4449_v29 = vld [vmem:[#allocation13 + $0x3e0] sm:$0xff] }
 0x422   : > { %4594 = vmatpush1.msra.mxu0 %v4361_v58  ;;  %4645 = vmatprep.mubr.f32.mxu0 %v7398_v12  ;;  %v3551_v58 = vld [vmem:[#allocation12 + $0xfb8] sm:$0xff] }
 0x423   : > { %4197 = vmatprep.subr.mxu1 %v3375_v2  ;;  %4595 = vmatprep.subr.mxu0 %v4358_v59  ;;  %v4446_v2 = vld [vmem:[#allocation13 + $0x3c8] sm:$0xff]  ;;  %v3550_v59 = vld [vmem:[#allocation12 + $0xfb0] sm:$0xff] }
 0x424   : > { %4198 = vmatpush1.msra.mxu1 %v3374_v34  ;;  %4596 = vmatpush1.msra.mxu0 %v4357_v1  ;;  %v4445_v34 = vld [vmem:[#allocation13 + $0x3c0] sm:$0xff]  ;;  %v3543_v1 = vld [vmem:[#allocation12 + $0xf78] sm:$0xff] }
 0x425   : > { %4199 = vmatprep.subr.mxu1 %v3367_v21  ;;  %4597 = vmatprep.subr.mxu0 %v4354_v22  ;;  %v4442_v21 = vld [vmem:[#allocation13 + $0x3a8] sm:$0xff]  ;;  %v3542_v22 = vld [vmem:[#allocation12 + $0xf70] sm:$0xff] }
 0x426   : > { %4200 = vmatpush1.msra.mxu1 %v3366_v48  ;;  %4598 = vmatpush1.msra.mxu0 %v4353_v18  ;;  %v4441_v48 = vld [vmem:[#allocation13 + $0x3a0] sm:$0xff]  ;;  %v3535_v18 = vld [vmem:[#allocation12 + $0xf38] sm:$0xff] }
 0x427   : > { %4201 = vmatprep.subr.mxu1 %v3359_v27  ;;  %4599 = vmatprep.subr.mxu0 %v4350_v8  ;;  %v4438_v27 = vld [vmem:[#allocation13 + $0x388] sm:$0xff]  ;;  %v3534_v8 = vld [vmem:[#allocation12 + $0xf30] sm:$0xff] }
 0x428   : > { %4202 = vmatpush1.msra.mxu1 %v3358_v38  ;;  %4600 = vmatpush1.msra.mxu0 %v4349_v51  ;;  %v4437_v38 = vld [vmem:[#allocation13 + $0x380] sm:$0xff]  ;;  %v3527_v51 = vld [vmem:[#allocation12 + $0xef8] sm:$0xff] }
 0x429   : > { %4203 = vmatprep.subr.mxu1 %v3351_v39  ;;  %4601 = vmatprep.subr.mxu0 %v4346_v13  ;;  %v4434_v39 = vld [vmem:[#allocation13 + $0x368] sm:$0xff]  ;;  %v3526_v13 = vld [vmem:[#allocation12 + $0xef0] sm:$0xff] }
 0x42a   : > { %4204 = vmatpush1.msra.mxu1 %v3350_v40  ;;  %4602 = vmatpush1.msra.mxu0 %v4345_v46  ;;  %v4433_v40 = vld [vmem:[#allocation13 + $0x360] sm:$0xff]  ;;  %v3519_v46 = vld [vmem:[#allocation12 + $0xeb8] sm:$0xff] }
 0x42b   : > { %4205 = vmatprep.subr.mxu1 %v3343_v41  ;;  %4603 = vmatprep.subr.mxu0 %v4342_v42  ;;  %v4430_v41 = vld [vmem:[#allocation13 + $0x348] sm:$0xff]  ;;  %v3518_v42 = vld [vmem:[#allocation12 + $0xeb0] sm:$0xff] }
 0x42c   : > { %4206 = vmatpush1.msra.mxu1 %v3342_v45  ;;  %4604 = vmatpush1.msra.mxu0 %v4341_v47  ;;  %v4429_v45 = vld [vmem:[#allocation13 + $0x340] sm:$0xff]  ;;  %v3511_v47 = vld [vmem:[#allocation12 + $0xe78] sm:$0xff] }
 0x42d   : > { %4207 = vmatprep.subr.mxu1 %v3335_v28  ;;  %4605 = vmatprep.subr.mxu0 %v4338_v44  ;;  %v4426_v28 = vld [vmem:[#allocation13 + $0x328] sm:$0xff]  ;;  %v3510_v44 = vld [vmem:[#allocation12 + $0xe70] sm:$0xff] }
 0x42e   : > { %4208 = vmatpush1.msra.mxu1 %v3334_v9  ;;  %4606 = vmatpush1.msra.mxu0 %v4337_v5  ;;  %v4425_v9 = vld [vmem:[#allocation13 + $0x320] sm:$0xff]  ;;  %v3503_v5 = vld [vmem:[#allocation12 + $0xe38] sm:$0xff] }
 0x42f   : > { %4209 = vmatprep.subr.mxu1 %v3327_v10  ;;  %4607 = vmatprep.subr.mxu0 %v4334_v14  ;;  %v4422_v10 = vld [vmem:[#allocation13 + $0x308] sm:$0xff]  ;;  %v3502_v14 = vld [vmem:[#allocation12 + $0xe30] sm:$0xff] }
 0x430   : > { %4210 = vmatpush1.msra.mxu1 %v3326_v37  ;;  %4608 = vmatpush1.msra.mxu0 %v4333_v11  ;;  %v4421_v37 = vld [vmem:[#allocation13 + $0x300] sm:$0xff]  ;;  %v3495_v11 = vld [vmem:[#allocation12 + $0xdf8] sm:$0xff] }
 0x431   : > { %4211 = vmatprep.subr.mxu1 %v3319_v25  ;;  %4609 = vmatprep.subr.mxu0 %v4330_v26  ;;  %v4418_v25 = vld [vmem:[#allocation13 + $0x2e8] sm:$0xff]  ;;  %v3494_v26 = vld [vmem:[#allocation12 + $0xdf0] sm:$0xff] }
 0x432   : > { %4212 = vmatpush1.msra.mxu1 %v3318_v53  ;;  %4610 = vmatpush1.msra.mxu0 %v4329_v54  ;;  %v4417_v53 = vld [vmem:[#allocation13 + $0x2e0] sm:$0xff]  ;;  %v3487_v54 = vld [vmem:[#allocation12 + $0xdb8] sm:$0xff] }
 0x433   : > { %4213 = vmatprep.subr.mxu1 %v3311_v55  ;;  %4611 = vmatprep.subr.mxu0 %v4326_v56  ;;  %v4414_v55 = vld [vmem:[#allocation13 + $0x2c8] sm:$0xff]  ;;  %v3486_v56 = vld [vmem:[#allocation12 + $0xdb0] sm:$0xff] }
 0x434   : > { %4214 = vmatpush1.msra.mxu1 %v3310_v49  ;;  %4612 = vmatpush1.msra.mxu0 %v4325_v31  ;;  %v4413_v49 = vld [vmem:[#allocation13 + $0x2c0] sm:$0xff]  ;;  %v3479_v31 = vld [vmem:[#allocation12 + $0xd78] sm:$0xff] }
 0x435   : > { %4215 = vmatprep.subr.mxu1 %v3559_v50  ;;  %4613 = vmatprep.subr.mxu0 %v4450_v15  ;;  %v4410_v50 = vld [vmem:[#allocation13 + $0x2a8] sm:$0xff]  ;;  %v3478_v15 = vld [vmem:[#allocation12 + $0xd70] sm:$0xff] }
 0x436   : > { %4216 = vmatpush2.msra.mxu1 %v3558_v32  ;;  %4614 = vmatpush2.msra.mxu0 %v4449_v29  ;;  %v4409_v32 = vld [vmem:[#allocation13 + $0x2a0] sm:$0xff]  ;;  %v3471_v29 = vld [vmem:[#allocation12 + $0xd38] sm:$0xff] }
 0x437   : > { %4217 = vmatprep.subr.mxu1 %v3551_v58  ;;  %4615 = vmatprep.subr.mxu0 %v4446_v2  ;;  %v4406_v58 = vld [vmem:[#allocation13 + $0x288] sm:$0xff]  ;;  %v3470_v2 = vld [vmem:[#allocation12 + $0xd30] sm:$0xff] }
 0x438   : > { %4218 = vmatpush2.msra.mxu1 %v3550_v59  ;;  %4616 = vmatpush2.msra.mxu0 %v4445_v34  ;;  %v4405_v59 = vld [vmem:[#allocation13 + $0x280] sm:$0xff]  ;;  %v3463_v34 = vld [vmem:[#allocation12 + $0xcf8] sm:$0xff] }
 0x439   : > { %4219 = vmatprep.subr.mxu1 %v3543_v1  ;;  %4617 = vmatprep.subr.mxu0 %v4442_v21  ;;  %v4402_v1 = vld [vmem:[#allocation13 + $0x268] sm:$0xff]  ;;  %v3462_v21 = vld [vmem:[#allocation12 + $0xcf0] sm:$0xff] }
 0x43a   : > { %4220 = vmatpush2.msra.mxu1 %v3542_v22  ;;  %4618 = vmatpush2.msra.mxu0 %v4441_v48  ;;  %v4401_v22 = vld [vmem:[#allocation13 + $0x260] sm:$0xff]  ;;  %v3455_v48 = vld [vmem:[#allocation12 + $0xcb8] sm:$0xff] }
 0x43b   : > { %4221 = vmatprep.subr.mxu1 %v3535_v18  ;;  %4619 = vmatprep.subr.mxu0 %v4438_v27  ;;  %v4398_v18 = vld [vmem:[#allocation13 + $0x248] sm:$0xff]  ;;  %v3454_v27 = vld [vmem:[#allocation12 + $0xcb0] sm:$0xff] }
 0x43c   : > { %4222 = vmatpush2.msra.mxu1 %v3534_v8  ;;  %4620 = vmatpush2.msra.mxu0 %v4437_v38  ;;  %v4397_v8 = vld [vmem:[#allocation13 + $0x240] sm:$0xff]  ;;  %v3447_v38 = vld [vmem:[#allocation12 + $0xc78] sm:$0xff] }
 0x43d   : > { %4223 = vmatprep.subr.mxu1 %v3527_v51  ;;  %4621 = vmatprep.subr.mxu0 %v4434_v39  ;;  %v4394_v51 = vld [vmem:[#allocation13 + $0x228] sm:$0xff]  ;;  %v3446_v39 = vld [vmem:[#allocation12 + $0xc70] sm:$0xff] }
 0x43e   : > { %4224 = vmatpush2.msra.mxu1 %v3526_v13  ;;  %4622 = vmatpush2.msra.mxu0 %v4433_v40  ;;  %v4393_v13 = vld [vmem:[#allocation13 + $0x220] sm:$0xff]  ;;  %v3439_v40 = vld [vmem:[#allocation12 + $0xc38] sm:$0xff] }
 0x43f   : > { %4225 = vmatprep.subr.mxu1 %v3519_v46  ;;  %4623 = vmatprep.subr.mxu0 %v4430_v41  ;;  %v4390_v46 = vld [vmem:[#allocation13 + $0x208] sm:$0xff]  ;;  %v3438_v41 = vld [vmem:[#allocation12 + $0xc30] sm:$0xff] }
 0x440   : > { %4226 = vmatpush2.msra.mxu1 %v3518_v42  ;;  %4624 = vmatpush2.msra.mxu0 %v4429_v45  ;;  %v4389_v42 = vld [vmem:[#allocation13 + $0x200] sm:$0xff]  ;;  %v4514_v45 = vld [vmem:[#allocation13 + $0x5e8] sm:$0xff] }
 0x441   : > { %4227 = vmatprep.subr.mxu1 %v3511_v47  ;;  %4625 = vmatprep.subr.mxu0 %v4426_v28  ;;  %v4388_v47 = vld [vmem:[#allocation13 + $0x1f8] sm:$0xff]  ;;  %v4513_v28 = vld [vmem:[#allocation13 + $0x5e0] sm:$0xff] }
 0x442   : > { %4228 = vmatpush2.msra.mxu1 %v3510_v44  ;;  %4626 = vmatpush2.msra.mxu0 %v4425_v9  ;;  %v4387_v44 = vld [vmem:[#allocation13 + $0x1f0] sm:$0xff]  ;;  %v4510_v9 = vld [vmem:[#allocation13 + $0x5c8] sm:$0xff] }
 0x443   : > { %4229 = vmatprep.subr.mxu1 %v3503_v5  ;;  %4627 = vmatprep.subr.mxu0 %v4422_v10  ;;  %v4384_v5 = vld [vmem:[#allocation13 + $0x1d8] sm:$0xff]  ;;  %v4509_v10 = vld [vmem:[#allocation13 + $0x5c0] sm:$0xff] }
 0x444   : > { %4230 = vmatpush2.msra.mxu1 %v3502_v14  ;;  %4628 = vmatpush2.msra.mxu0 %v4421_v37  ;;  %v4383_v14 = vld [vmem:[#allocation13 + $0x1d0] sm:$0xff]  ;;  %v4506_v37 = vld [vmem:[#allocation13 + $0x5a8] sm:$0xff] }
 0x445   : > { %4231 = vmatprep.subr.mxu1 %v3495_v11  ;;  %4629 = vmatprep.subr.mxu0 %v4418_v25  ;;  %v4380_v11 = vld [vmem:[#allocation13 + $0x1b8] sm:$0xff]  ;;  %v4505_v25 = vld [vmem:[#allocation13 + $0x5a0] sm:$0xff] }
 0x446   : > { %4232 = vmatpush2.msra.mxu1 %v3494_v26  ;;  %4630 = vmatpush2.msra.mxu0 %v4417_v53  ;;  %v4379_v26 = vld [vmem:[#allocation13 + $0x1b0] sm:$0xff]  ;;  %v3028_v53 = vrot.slane %v7304_v33, 1  ;;  %v3027_v33 = vrot.slane %v7367_v63, 1  ;;  %v4493_v63 = vld [vmem:[#allocation13 + $0x540] sm:$0xff] }
 0x447   : > { %4233 = vmatprep.subr.mxu1 %v3487_v54  ;;  %4631 = vmatprep.subr.mxu0 %v4414_v55  ;;  %v4502_v54 = vld [vmem:[#allocation13 + $0x588] sm:$0xff]  ;;  %v4376_v55 = vld [vmem:[#allocation13 + $0x198] sm:$0xff] }
 0x448   : > { %4234 = vmatpush2.msra.mxu1 %v3486_v56  ;;  %4632 = vmatpush2.msra.mxu0 %v4413_v49  ;;  %v4501_v56 = vld [vmem:[#allocation13 + $0x580] sm:$0xff]  ;;  %v4375_v49 = vld [vmem:[#allocation13 + $0x190] sm:$0xff] }
 0x449   : > { %4235 = vmatprep.subr.mxu1 %v3479_v31  ;;  %4633 = vmatprep.subr.mxu0 %v4410_v50  ;;  %v4498_v31 = vld [vmem:[#allocation13 + $0x568] sm:$0xff]  ;;  %v4372_v50 = vld [vmem:[#allocation13 + $0x178] sm:$0xff] }
 0x44a   : > { %4236 = vmatpush2.msra.mxu1 %v3478_v15  ;;  %4634 = vmatpush2.msra.mxu0 %v4409_v32  ;;  %v3036_v15 = vsel %vm580_vm1, %v3028_v53, 0.0  ;;  %v4497_v32 = vld [vmem:[#allocation13 + $0x560] sm:$0xff] }
 0x44b   : > { %4237 = vmatprep.subr.mxu1 %v3471_v29  ;;  %4635 = vmatprep.subr.mxu0 %v4406_v58  ;;  %v4371_v29 = vld [vmem:[#allocation13 + $0x170] sm:$0xff]  ;;  %v7494_v58 = vsel %vm575_vm0, %v3036_v15, %v3028_v53  ;;  %v4461_v15 = vld [vmem:[#allocation13 + $0x440] sm:$0xff] }
 0x44c   : > { %4238 = vmatpush2.msra.mxu1 %v3470_v2  ;;  %4636 = vmatpush2.msra.mxu0 %v4405_v59  ;;  %v4494_v2 = vld [vmem:[#allocation13 + $0x548] sm:$0xff]  ;;  %v4368_v59 = vld [vmem:[#allocation13 + $0x158] sm:$0xff] }
 0x44d   : > { %4239 = vmatprep.subr.mxu1 %v3463_v34  ;;  %4637 = vmatprep.subr.mxu0 %v4402_v1  ;;  %v4367_v34 = vld [vmem:[#allocation13 + $0x150] sm:$0xff]  ;;  %v3035_v1 = vsel %vm580_vm1, %v3027_v33, 0.0 }
 0x44e   : > { %4240 = vmatpush2.msra.mxu1 %v3462_v21  ;;  %4638 = vmatpush2.msra.mxu0 %v4401_v22  ;;  %v4490_v21 = vld [vmem:[#allocation13 + $0x528] sm:$0xff]  ;;  %v4364_v22 = vld [vmem:[#allocation13 + $0x138] sm:$0xff] }
 0x44f   : > { %4241 = vmatprep.subr.mxu1 %v3455_v48  ;;  %4639 = vmatprep.subr.mxu0 %v4398_v18  ;;  %v7501_v48 = vsel %vm575_vm0, %v3035_v1, %v3027_v33  ;;  %v4489_v18 = vld [vmem:[#allocation13 + $0x520] sm:$0xff]  ;;  %v4335_v33 = vld [vmem:[#allocation13 + $0x50] sm:$0xff]  ;;  %v4328_v1 = vld [vmem:[#allocation13 + $0x18] sm:$0xff] }
 0x450   : > { %4242 = vmatpush2.msra.mxu1 %v3454_v27  ;;  %4640 = vmatpush2.msra.mxu0 %v4397_v8  ;;  %v4363_v27 = vld [vmem:[#allocation13 + $0x130] sm:$0xff]  ;;  %v4486_v8 = vld [vmem:[#allocation13 + $0x508] sm:$0xff] }
 0x451   : > { %4243 = vmatprep.subr.mxu1 %v3447_v38  ;;  %4641 = vmatprep.subr.mxu0 %v4394_v51  ;;  %v4360_v38 = vld [vmem:[#allocation13 + $0x118] sm:$0xff]  ;;  %v4485_v51 = vld [vmem:[#allocation13 + $0x500] sm:$0xff] }
 0x452   : > { %4244 = vmatpush2.msra.mxu1 %v3446_v39  ;;  %4642 = vmatpush2.msra.mxu0 %v4393_v13  ;;  %v4359_v39 = vld [vmem:[#allocation13 + $0x110] sm:$0xff]  ;;  %v4482_v13 = vld [vmem:[#allocation13 + $0x4e8] sm:$0xff] }
 0x453   : > { %4245 = vmatprep.subr.mxu1 %v3439_v40  ;;  %4643 = vmatprep.subr.mxu0 %v4390_v46  ;;  %v4356_v40 = vld [vmem:[#allocation13 + $0xf8] sm:$0xff]  ;;  %v4481_v46 = vld [vmem:[#allocation13 + $0x4e0] sm:$0xff] }
 0x454   : > { %4246 = vmatpush2.msra.mxu1 %v3438_v41  ;;  %4644 = vmatpush2.msra.mxu0 %v4389_v42  ;;  %v4355_v41 = vld [vmem:[#allocation13 + $0xf0] sm:$0xff]  ;;  %v7508_v42 = vpop.f32.mrf.mxu0 }
 0x455   : > { %4248 = vmatmul.mubr.f32.vlgmr.msra.gmra.mxu1 %v7371_v7  ;;  %4646 = vmatmul.mubr.f32.vlgmr.msra.gmra.mxu0 %v7400_v57 }
 0x456   : > { %4670 = vmatprep.subr.mxu1 %v4514_v45  ;;  %4759 = vmatprep.subr.mxu0 %v4388_v47  ;;  %v4478_v45 = vld [vmem:[#allocation13 + $0x4c8] sm:$0xff]  ;;  %v4352_v47 = vld [vmem:[#allocation13 + $0xd8] sm:$0xff] }
 0x457   : > { %4253 = vmatprep.mubr.f32.mxu1 %v7376_v6  ;;  %4651 = vmatprep.mubr.f32.mxu0 %v7406_v35 }
 0x458   : > { %4671 = vmatpush1.msra.mxu1 %v4513_v28  ;;  %4760 = vmatpush1.msra.mxu0 %v4387_v44  ;;  %v4477_v28 = vld [vmem:[#allocation13 + $0x4c0] sm:$0xff]  ;;  %v4351_v44 = vld [vmem:[#allocation13 + $0xd0] sm:$0xff] }
 0x459   : > { %4672 = vmatprep.subr.mxu1 %v4510_v9  ;;  %4761 = vmatprep.subr.mxu0 %v4384_v5  ;;  %v7510_v9 = vpop.f32.mrf.mxu0  ;;  %v4348_v5 = vld [vmem:[#allocation13 + $0xb8] sm:$0xff] }
 0x45a   : > { %4673 = vmatpush1.msra.mxu1 %v4509_v10  ;;  %4762 = vmatpush1.msra.mxu0 %v4383_v14  ;;  %v4473_v10 = vld [vmem:[#allocation13 + $0x4a0] sm:$0xff]  ;;  %v4347_v14 = vld [vmem:[#allocation13 + $0xb0] sm:$0xff] }
 0x45b   : > { %4254 = vmatmul.mubr.f32.gmra.mxu1 %v7384_v23  ;;  %4652 = vmatmul.mubr.f32.gmra.mxu0 %v7408_v30  ;;  %v7512_v53 = vpop.f32.mrf.mxu0 }
 0x45c   : > { %4674 = vmatprep.subr.mxu1 %v4506_v37  ;;  %4763 = vmatprep.subr.mxu0 %v4380_v11  ;;  %v4470_v37 = vld [vmem:[#allocation13 + $0x488] sm:$0xff]  ;;  %v4344_v11 = vld [vmem:[#allocation13 + $0x98] sm:$0xff] }
 0x45d   : > { %4259 = vmatprep.mubr.f32.mxu1 %v7425_v61  ;;  %4657 = vmatprep.mubr.f32.mxu0 %v7374_v4 }
 0x45e   : > { %4675 = vmatpush1.msra.mxu1 %v4505_v25  ;;  %4764 = vmatpush1.msra.mxu0 %v4379_v26  ;;  %v4469_v25 = vld [vmem:[#allocation13 + $0x480] sm:$0xff]  ;;  %v4343_v26 = vld [vmem:[#allocation13 + $0x90] sm:$0xff] }
 0x45f   : > { %4676 = vmatprep.subr.mxu1 %v4502_v54  ;;  %4765 = vmatprep.subr.mxu0 %v4376_v55  ;;  %v4466_v54 = vld [vmem:[#allocation13 + $0x468] sm:$0xff]  ;;  %v4340_v55 = vld [vmem:[#allocation13 + $0x78] sm:$0xff] }
 0x460   : > { %4677 = vmatpush1.msra.mxu1 %v4501_v56  ;;  %4766 = vmatpush1.msra.mxu0 %v4375_v49  ;;  %v4465_v56 = vld [vmem:[#allocation13 + $0x460] sm:$0xff]  ;;  %v4339_v49 = vld [vmem:[#allocation13 + $0x70] sm:$0xff] }
 0x461   : > { %4260 = vmatmul.mubr.f32.gmra.mxu1 %v7428_v3  ;;  %4658 = vmatmul.mubr.f32.gmra.mxu0 %v7382_v0 }
 0x462   : > { %4678 = vmatprep.subr.mxu1 %v4498_v31  ;;  %4767 = vmatprep.subr.mxu0 %v4372_v50  ;;  %v4462_v31 = vld [vmem:[#allocation13 + $0x448] sm:$0xff]  ;;  %v4336_v50 = vld [vmem:[#allocation13 + $0x58] sm:$0xff] }
 0x463   : > { %4265 = vmatprep.mubr.f32.mxu1 %v7435_v24  ;;  %6077 = vmatprep.mubr.msk.f32.mxu0 %vm583_vm2, %v7494_v58 }
 0x464   : > { %4679 = vmatpush1.msra.mxu1 %v4497_v32  ;;  %4768 = vmatpush1.msra.mxu0 %v4371_v29  ;;  %v7514_v32 = vpop.f32.mrf.mxu0  ;;  %v4458_v29 = vld [vmem:[#allocation13 + $0x428] sm:$0xff] }
 0x465   : > { %4680 = vmatprep.subr.mxu1 %v4494_v2  ;;  %4769 = vmatprep.subr.mxu0 %v4368_v59  ;;  %v4332_v2 = vld [vmem:[#allocation13 + $0x38] sm:$0xff]  ;;  %v4457_v59 = vld [vmem:[#allocation13 + $0x420] sm:$0xff] }
 0x466   : > { %4681 = vmatpush1.msra.mxu1 %v4493_v63  ;;  %4770 = vmatpush1.msra.mxu0 %v4367_v34  ;;  %v4331_v63 = vld [vmem:[#allocation13 + $0x30] sm:$0xff]  ;;  %v4454_v34 = vld [vmem:[#allocation13 + $0x408] sm:$0xff] }
 0x467   : > { %4266 = vmatmul.mubr.f32.gmra.mxu1 %v7437_v60  ;;  %6078 = vmatmul.mubr.msk.f32.gmra.mxu0 %vm583_vm2, %v7501_v48 }
 0x468   : > { %4682 = vmatprep.subr.mxu1 %v4490_v21  ;;  %4771 = vmatprep.subr.mxu0 %v4364_v22  ;;  %v4453_v21 = vld [vmem:[#allocation13 + $0x400] sm:$0xff]  ;;  %v4327_v22 = vld [vmem:[#allocation13 + $0x10] sm:$0xff] }
 0x469   : > { %4683 = vmatpush1.msra.mxu1 %v4489_v18  ;;  %4734 = vmatprep.mubr.f32.mxu1 %v7425_v61  ;;  %v7516_v18 = vpop.f32.mrf.mxu0 }
 0x46a   : > { %4772 = vmatpush1.msra.mxu0 %v4363_v27  ;;  %4823 = vmatprep.mubr.f32.mxu0 %v7398_v12  ;;  %v4474_v12 = vld [vmem:[#allocation13 + $0x4a8] sm:$0xff] }
 0x46b   : > { %4684 = vmatprep.subr.mxu1 %v4486_v8  ;;  %4773 = vmatprep.subr.mxu0 %v4360_v38  ;;  %v4578_v27 = vld [vmem:[#allocation13 + $0x7e8] sm:$0xff]  ;;  %v4452_v8 = vld [vmem:[#allocation13 + $0x3f8] sm:$0xff]  ;;  %v4577_v38 = vld [vmem:[#allocation13 + $0x7e0] sm:$0xff] }
 0x46c   : > { %4685 = vmatpush1.msra.mxu1 %v4485_v51  ;;  %4774 = vmatpush1.msra.mxu0 %v4359_v39  ;;  %v4451_v51 = vld [vmem:[#allocation13 + $0x3f0] sm:$0xff]  ;;  %v7518_v39 = vpop.f32.mrf.mxu1 }
 0x46d   : > { %4686 = vmatprep.subr.mxu1 %v4482_v13  ;;  %4775 = vmatprep.subr.mxu0 %v4356_v40  ;;  %v4574_v13 = vld [vmem:[#allocation13 + $0x7c8] sm:$0xff]  ;;  %v4448_v40 = vld [vmem:[#allocation13 + $0x3d8] sm:$0xff] }
 0x46e   : > { %4687 = vmatpush1.msra.mxu1 %v4481_v46  ;;  %4776 = vmatpush1.msra.mxu0 %v4355_v41  ;;  %v4573_v46 = vld [vmem:[#allocation13 + $0x7c0] sm:$0xff]  ;;  %v4447_v41 = vld [vmem:[#allocation13 + $0x3d0] sm:$0xff] }
 0x46f   : > { %4688 = vmatprep.subr.mxu1 %v4478_v45  ;;  %4777 = vmatprep.subr.mxu0 %v4352_v47  ;;  %v3804_v45 = vpop.f32.mrf.mxu0  ;;  %v4570_v47 = vld [vmem:[#allocation13 + $0x7a8] sm:$0xff] }
 0x470   : > { %4689 = vmatpush1.msra.mxu1 %v4477_v28  ;;  %4778 = vmatpush1.msra.mxu0 %v4351_v44  ;;  %v4444_v28 = vld [vmem:[#allocation13 + $0x3b8] sm:$0xff] }
 0x471   : > { %4690 = vmatprep.subr.mxu1 %v4474_v12  ;;  %4779 = vmatprep.subr.mxu0 %v4348_v5  ;;  %v4569_v12 = vld [vmem:[#allocation13 + $0x7a0] sm:$0xff]  ;;  %v4443_v5 = vld [vmem:[#allocation13 + $0x3b0] sm:$0xff] }
 0x472   : > { %4691 = vmatpush1.msra.mxu1 %v4473_v10  ;;  %4780 = vmatpush1.msra.mxu0 %v4347_v14  ;;  %v4566_v10 = vld [vmem:[#allocation13 + $0x788] sm:$0xff]  ;;  %v4440_v14 = vld [vmem:[#allocation13 + $0x398] sm:$0xff] }
 0x473   : > { %4692 = vmatprep.subr.mxu1 %v4470_v37  ;;  %4781 = vmatprep.subr.mxu0 %v4344_v11  ;;  %v4565_v11 = vld [vmem:[#allocation13 + $0x780] sm:$0xff] }
 0x474   : > { %4693 = vmatpush1.msra.mxu1 %v4469_v25  ;;  %4782 = vmatpush1.msra.mxu0 %v4343_v26  ;;  %v4439_v25 = vld [vmem:[#allocation13 + $0x390] sm:$0xff]  ;;  %v3806_v26 = vpop.f32.mrf.mxu0 }
 0x475   : > { %4694 = vmatprep.subr.mxu1 %v4466_v54  ;;  %4783 = vmatprep.subr.mxu0 %v4340_v55  ;;  %v4562_v54 = vld [vmem:[#allocation13 + $0x768] sm:$0xff]  ;;  %v4436_v55 = vld [vmem:[#allocation13 + $0x378] sm:$0xff] }
 0x476   : > { %4695 = vmatpush1.msra.mxu1 %v4465_v56  ;;  %4784 = vmatpush1.msra.mxu0 %v4339_v49  ;;  %v4561_v56 = vld [vmem:[#allocation13 + $0x760] sm:$0xff]  ;;  %v4435_v49 = vld [vmem:[#allocation13 + $0x370] sm:$0xff] }
 0x477   : > { %4696 = vmatprep.subr.mxu1 %v4462_v31  ;;  %4785 = vmatprep.subr.mxu0 %v4336_v50  ;;  %v4558_v31 = vld [vmem:[#allocation13 + $0x748] sm:$0xff]  ;;  %v4432_v50 = vld [vmem:[#allocation13 + $0x358] sm:$0xff] }
 0x478   : > { %4697 = vmatpush1.msra.mxu1 %v4461_v15  ;;  %4786 = vmatpush1.msra.mxu0 %v4335_v33  ;;  %v4557_v33 = vld [vmem:[#allocation13 + $0x740] sm:$0xff] }
 0x479   : > { %4698 = vmatprep.subr.mxu1 %v4458_v29  ;;  %4787 = vmatprep.subr.mxu0 %v4332_v2  ;;  %v4431_v29 = vld [vmem:[#allocation13 + $0x350] sm:$0xff]  ;;  %v7526_v2 = vld [vmem:[#allocation15] sm:$0xf] }
 0x47a   : > { %4699 = vmatpush1.msra.mxu1 %v4457_v59  ;;  %4788 = vmatpush1.msra.mxu0 %v4331_v63  ;;  %v3810_v59 = vpop.f32.mrf.mxu0  ;;  %v4554_v63 = vld [vmem:[#allocation13 + $0x728] sm:$0xff] }
 0x47b   : > { %4700 = vmatprep.subr.mxu1 %v4454_v34  ;;  %4789 = vmatprep.subr.mxu0 %v4328_v1  ;;  %v4428_v34 = vld [vmem:[#allocation13 + $0x338] sm:$0xff] }
 0x47c   : > { %4701 = vmatpush1.msra.mxu1 %v4453_v21  ;;  %4790 = vmatpush1.msra.mxu0 %v4327_v22  ;;  %v7532_v21 = vrot.slane %v7526_v2, %v7160_v17  ;;  %v4553_v22 = vld [vmem:[#allocation13 + $0x720] sm:$0xff]  ;;  %v3812_v17 = vpop.f32.mrf.mxu0 }
 0x47d   : > { %4702 = vmatprep.subr.mxu1 %v4578_v27  ;;  %4791 = vmatprep.subr.mxu0 %v4452_v8  ;;  %v4427_v27 = vld [vmem:[#allocation13 + $0x330] sm:$0xff]  ;;  %v4550_v8 = vld [vmem:[#allocation13 + $0x708] sm:$0xff] }
 0x47e   : > { %4703 = vmatpush2.msra.mxu1 %v4577_v38  ;;  %4792 = vmatpush2.msra.mxu0 %v4451_v51  ;;  %v7520_v44 = vpop.f32.mrf.mxu1  ;;  %8180 = vst [vmem:[#allocation25_spill] sm:$0xff] %v7532_v21  ;;  %v4424_v38 = vld [vmem:[#allocation13 + $0x318] sm:$0xff] }
 0x47f   : > { %4704 = vmatprep.subr.mxu1 %v4574_v13  ;;  %4793 = vmatprep.subr.mxu0 %v4448_v40  ;;  %v7536_v13 = vrot.slane %v7526_v2, %v7164_v20  ;;  %v4549_v40 = vld [vmem:[#allocation13 + $0x700] sm:$0xff] }
 0x480   : > { %4705 = vmatpush2.msra.mxu1 %v4573_v46  ;;  %4794 = vmatpush2.msra.mxu0 %v4447_v41  ;;  %v7522_v37 = vpop.f32.mrf.mxu1  ;;  %v4423_v46 = vld [vmem:[#allocation13 + $0x310] sm:$0xff] }
 0x481   : > { %4706 = vmatprep.subr.mxu1 %v4570_v47  ;;  %4795 = vmatprep.subr.mxu0 %v4444_v28  ;;  %8181 = vst [vmem:[#allocation26_spill] sm:$0xff] %v7536_v13  ;;  %v4546_v47 = vld [vmem:[#allocation13 + $0x6e8] sm:$0xff]  ;;  %v4420_v28 = vld [vmem:[#allocation13 + $0x2f8] sm:$0xff] }
 0x482   : > { %4707 = vmatpush2.msra.mxu1 %v4569_v12  ;;  %4796 = vmatpush2.msra.mxu0 %v4443_v5  ;;  %v4545_v5 = vld [vmem:[#allocation13 + $0x6e0] sm:$0xff] }
 0x483   : > { %4708 = vmatprep.subr.mxu1 %v4566_v10  ;;  %4797 = vmatprep.subr.mxu0 %v4440_v14  ;;  %v4419_v10 = vld [vmem:[#allocation13 + $0x2f0] sm:$0xff] }
 0x484   : > { %4709 = vmatpush2.msra.mxu1 %v4565_v11  ;;  %4798 = vmatpush2.msra.mxu0 %v4439_v25  ;;  %v7524_v15 = vpop.f32.mrf.mxu1  ;;  %v4542_v11 = vld [vmem:[#allocation13 + $0x6c8] sm:$0xff]  ;;  %v4416_v25 = vld [vmem:[#allocation13 + $0x2d8] sm:$0xff] }
 0x485   : > { %4710 = vmatprep.subr.mxu1 %v4562_v54  ;;  %4799 = vmatprep.subr.mxu0 %v4436_v55  ;;  %v4415_v55 = vld [vmem:[#allocation13 + $0x2d0] sm:$0xff] }
 0x486   : > { %4711 = vmatpush2.msra.mxu1 %v4561_v56  ;;  %4800 = vmatpush2.msra.mxu0 %v4435_v49  ;;  %v7528_v1 = vpop.f32.mrf.mxu1 }
 0x487   : > { %4712 = vmatprep.subr.mxu1 %v4558_v31  ;;  %4801 = vmatprep.subr.mxu0 %v4432_v50  ;;  %v3816_v31 = vpop.f32.mrf.mxu0  ;;  %v4538_v50 = vld [vmem:[#allocation13 + $0x6a8] sm:$0xff] }
 0x488   : > { %4713 = vmatpush2.msra.mxu1 %v4557_v33  ;;  %4802 = vmatpush2.msra.mxu0 %v4431_v29  ;;  %v3893_v51 = vpop.f32.mrf.mxu1  ;;  %v4412_v33 = vld [vmem:[#allocation13 + $0x2b8] sm:$0xff] }
 0x489   : > { %4714 = vmatprep.subr.mxu1 %v4554_v63  ;;  %4803 = vmatprep.subr.mxu0 %v4428_v34  ;;  %v3894_v41 = vadd.f32 %v3893_v51, %v3804_v45  ;;  %v4541_v45 = vld [vmem:[#allocation13 + $0x6c0] sm:$0xff]  ;;  %v4411_v63 = vld [vmem:[#allocation13 + $0x2b0] sm:$0xff] }
 0x48a   : > { %4715 = vmatpush2.msra.mxu1 %v4553_v22  ;;  %4804 = vmatpush2.msra.mxu0 %v4427_v27  ;;  %v3895_v12 = vpop.f32.mrf.mxu1  ;;  %v4534_v27 = vld [vmem:[#allocation13 + $0x688] sm:$0xff] }
 0x48b   : > { %4716 = vmatprep.subr.mxu1 %v4550_v8  ;;  %4805 = vmatprep.subr.mxu0 %v4424_v38  ;;  %v7539_v14 = vadd.f32 %v7532_v21, %v3894_v41  ;;  %v3896_v20 = vadd.f32 %v3895_v12, %v3806_v26  ;;  %v4537_v26 = vld [vmem:[#allocation13 + $0x6a0] sm:$0xff]  ;;  %v4408_v8 = vld [vmem:[#allocation13 + $0x298] sm:$0xff]  ;;  %v4407_v38 = vld [vmem:[#allocation13 + $0x290] sm:$0xff] }
 0x48c   : > { %4717 = vmatpush2.msra.mxu1 %v4549_v40  ;;  %4806 = vmatpush2.msra.mxu0 %v4423_v46  ;;  %v3899_v54 = vpop.f32.mrf.mxu1  ;;  %v3818_v40 = vpop.f32.mrf.mxu0  ;;  %v4530_v46 = vld [vmem:[#allocation13 + $0x668] sm:$0xff]  ;;  %v4404_v41 = vld [vmem:[#allocation13 + $0x278] sm:$0xff] }
 0x48d   : > { %8182 = vst [vmem:[#allocation27_spill] sm:$0xff] %v7539_v14  ;;  %4718 = vmatprep.subr.mxu1 %v4546_v47  ;;  %4807 = vmatprep.subr.mxu0 %v4420_v28  ;;  %v7542_v56 = vadd.f32 %v7536_v13, %v3896_v20  ;;  %v3900_v49 = vadd.f32 %v3899_v54, %v3810_v59  ;;  %v4533_v59 = vld [vmem:[#allocation13 + $0x680] sm:$0xff]  ;;  %v4403_v28 = vld [vmem:[#allocation13 + $0x270] sm:$0xff] }
 0x48e   : > { %4719 = vmatpush2.msra.mxu1 %v4545_v5  ;;  %4808 = vmatpush2.msra.mxu0 %v4419_v10  ;;  %v3901_v29 = vpop.f32.mrf.mxu1  ;;  %v4526_v5 = vld [vmem:[#allocation13 + $0x648] sm:$0xff]  ;;  %v4400_v10 = vld [vmem:[#allocation13 + $0x258] sm:$0xff] }
 0x48f   : > { %8183 = vst [vmem:[#allocation28_spill] sm:$0xff] %v7542_v56  ;;  %4720 = vmatprep.subr.mxu1 %v4542_v11  ;;  %4809 = vmatprep.subr.mxu0 %v4416_v25  ;;  %v7545_v34 = vadd.f32 %v7532_v21, %v3900_v49  ;;  %v3902_v22 = vadd.f32 %v3901_v29, %v3812_v17  ;;  %v4529_v17 = vld [vmem:[#allocation13 + $0x660] sm:$0xff]  ;;  %v4399_v25 = vld [vmem:[#allocation13 + $0x250] sm:$0xff]  ;;  %v4522_v49 = vld [vmem:[#allocation13 + $0x628] sm:$0xff] }
 0x490   : > { %4721 = vmatpush2.msra.mxu1 %v4541_v45  ;;  %4810 = vmatpush2.msra.mxu0 %v4415_v55  ;;  %v4525_v11 = vld [vmem:[#allocation13 + $0x640] sm:$0xff]  ;;  %v3822_v55 = vpop.f32.mrf.mxu0 }
 0x491   : > { %8184 = vst [vmem:[#allocation29_spill] sm:$0xff] %v7545_v34  ;;  %4722 = vmatprep.subr.mxu1 %v4538_v50  ;;  %4811 = vmatprep.subr.mxu0 %v4412_v33  ;;  %v7548_v51 = vadd.f32 %v7536_v13, %v3902_v22  ;;  %v4396_v50 = vld [vmem:[#allocation13 + $0x238] sm:$0xff]  ;;  %v4395_v33 = vld [vmem:[#allocation13 + $0x230] sm:$0xff]  ;;  %v5087_v34 = vld [vmem:[#allocation16 + $0x1a0] sm:$0xff] }
 0x492   : > { %4723 = vmatpush2.msra.mxu1 %v4537_v26  ;;  %4812 = vmatpush2.msra.mxu0 %v4411_v63  ;;  %v3905_v47 = vpop.f32.mrf.mxu1  ;;  %v4518_v26 = vld [vmem:[#allocation13 + $0x608] sm:$0xff]  ;;  %v4392_v63 = vld [vmem:[#allocation13 + $0x218] sm:$0xff] }
 0x493   : > { %8185 = vst [vmem:[#allocation30_spill] sm:$0xff] %v7548_v51  ;;  %4724 = vmatprep.subr.mxu1 %v4534_v27  ;;  %4813 = vmatprep.subr.mxu0 %v4408_v8  ;;  %v3906_v12 = vadd.f32 %v3905_v47, %v3816_v31  ;;  %v4521_v31 = vld [vmem:[#allocation13 + $0x620] sm:$0xff]  ;;  %v4391_v8 = vld [vmem:[#allocation13 + $0x210] sm:$0xff] }
 0x494   : > { %4725 = vmatpush2.msra.mxu1 %v4533_v59  ;;  %4814 = vmatpush2.msra.mxu0 %v4407_v38  ;;  %v3907_v20 = vpop.f32.mrf.mxu1  ;;  %v4517_v27 = vld [vmem:[#allocation13 + $0x600] sm:$0xff]  ;;  %v3824_v38 = vpop.f32.mrf.mxu0 }
 0x495   : > { %4726 = vmatprep.subr.mxu1 %v4530_v46  ;;  %4815 = vmatprep.subr.mxu0 %v4404_v41  ;;  %v7551_v54 = vadd.f32 %v7532_v21, %v3906_v12  ;;  %v3908_v45 = vadd.f32 %v3907_v20, %v3818_v40  ;;  %v4516_v46 = vld [vmem:[#allocation13 + $0x5f8] sm:$0xff]  ;;  %v3030_v20 = vrot.slane %v7310_v62, 1  ;;  %v4499_v62 = vld [vmem:[#allocation13 + $0x570] sm:$0xff] }
 0x496   : > { %4727 = vmatpush2.msra.mxu1 %v4529_v17  ;;  %4816 = vmatpush2.msra.mxu0 %v4403_v28  ;;  %v4515_v17 = vld [vmem:[#allocation13 + $0x5f0] sm:$0xff]  ;;  %v4512_v28 = vld [vmem:[#allocation13 + $0x5d8] sm:$0xff] }
 0x497   : > { %8186 = vst [vmem:[#allocation31_spill] sm:$0xff] %v7551_v54  ;;  %4728 = vmatprep.subr.mxu1 %v4526_v5  ;;  %4817 = vmatprep.subr.mxu0 %v4400_v10  ;;  %v7554_v29 = vadd.f32 %v7536_v13, %v3908_v45  ;;  %v4511_v5 = vld [vmem:[#allocation13 + $0x5d0] sm:$0xff]  ;;  %v4508_v10 = vld [vmem:[#allocation13 + $0x5b8] sm:$0xff] }
 0x498   : > { %4729 = vmatpush2.msra.mxu1 %v4525_v11  ;;  %4818 = vmatpush2.msra.mxu0 %v4399_v25  ;;  %v3911_v22 = vpop.f32.mrf.mxu1  ;;  %v4507_v11 = vld [vmem:[#allocation13 + $0x5b0] sm:$0xff]  ;;  %v4500_v45 = vld [vmem:[#allocation13 + $0x578] sm:$0xff] }
 0x499   : > { %8187 = vst [vmem:[#allocation32_spill] sm:$0xff] %v7554_v29  ;;  %4730 = vmatprep.subr.mxu1 %v4522_v49  ;;  %4819 = vmatprep.subr.mxu0 %v4396_v50  ;;  %v3912_v59 = vadd.f32 %v3911_v22, %v3822_v55  ;;  %v4503_v25 = vld [vmem:[#allocation13 + $0x590] sm:$0xff]  ;;  %v3038_v55 = vsel %vm580_vm1, %v3030_v20, 0.0  ;;  %v4484_v22 = vld [vmem:[#allocation13 + $0x4f8] sm:$0xff] }
 0x49a   : > { %4731 = vmatpush2.msra.mxu1 %v4521_v31  ;;  %4820 = vmatpush2.msra.mxu0 %v4395_v33  ;;  %v3913_v40 = vpop.f32.mrf.mxu1  ;;  %v4488_v31 = vld [vmem:[#allocation13 + $0x518] sm:$0xff] }
 0x49b   : > { %4732 = vmatprep.subr.mxu1 %v4518_v26  ;;  %4821 = vmatprep.subr.mxu0 %v4392_v63  ;;  %v7557_v41 = vadd.f32 %v7532_v21, %v3912_v59  ;;  %v3914_v47 = vadd.f32 %v3913_v40, %v3824_v38  ;;  %v5066_v33 = vld [vmem:[#allocation16 + $0xf8] sm:$0xff]  ;;  %v4487_v26 = vld [vmem:[#allocation13 + $0x510] sm:$0xff] }
 0x49c   : > { %4733 = vmatpush2.msra.mxu1 %v4517_v27  ;;  %4822 = vmatpush2.msra.mxu0 %v4391_v8  ;;  %v5050_v63 = vld [vmem:[#allocation16 + $0x78] sm:$0xff]  ;;  %v5065_v27 = vld [vmem:[#allocation16 + $0xf0] sm:$0xff] }
 0x49d   : > { %8188 = vst [vmem:[#allocation33_spill] sm:$0xff] %v7557_v41  ;;  %4735 = vmatmul.mubr.f32.vlgmr.msra.gmra.mxu1 %v7428_v3  ;;  %4824 = vmatmul.mubr.f32.vlgmr.msra.gmra.mxu0 %v7400_v57  ;;  %v7562_v12 = vadd.f32 %v7536_v13, %v3914_v47  ;;  %v4504_v57 = vld [vmem:[#allocation13 + $0x598] sm:$0xff]  ;;  %v4479_v59 = vld [vmem:[#allocation13 + $0x4d0] sm:$0xff] }
 0x49e   : > { %4848 = vmatprep.subr.mxu1 %v4516_v46  ;;  %4740 = vmatprep.mubr.f32.mxu1 %v7435_v24  ;;  %v4480_v8 = vld [vmem:[#allocation13 + $0x4d8] sm:$0xff]  ;;  %v4475_v40 = vld [vmem:[#allocation13 + $0x4b0] sm:$0xff] }
 0x49f   : > { %8189 = vst [vmem:[#allocation34_spill] sm:$0xff] %v7562_v12  ;;  %4829 = vmatprep.mubr.f32.mxu0 %v7406_v35  ;;  %4849 = vmatpush1.msra.mxu1 %v4515_v17  ;;  %v3029_v35 = vrot.slane %v7371_v7, 1  ;;  %v4495_v7 = vld [vmem:[#allocation13 + $0x550] sm:$0xff]  ;;  %v4476_v38 = vld [vmem:[#allocation13 + $0x4b8] sm:$0xff]  ;;  %v5091_v12 = vld [vmem:[#allocation16 + $0x1c0] sm:$0xff] }
 0x4a0   : > { %4850 = vmatprep.subr.mxu1 %v4512_v28  ;;  %6092 = vmatprep.subr.mxu0 %v5066_v33  ;;  %v4472_v46 = vld [vmem:[#allocation13 + $0x498] sm:$0xff]  ;;  %v4471_v47 = vld [vmem:[#allocation13 + $0x490] sm:$0xff] }
 0x4a1   : > { %4851 = vmatpush1.msra.mxu1 %v4511_v5  ;;  %4830 = vmatmul.mubr.f32.gmra.mxu0 %v7408_v30  ;;  %v4496_v30 = vld [vmem:[#allocation13 + $0x558] sm:$0xff]  ;;  %v3037_v49 = vsel %vm580_vm1, %v3029_v35, 0.0  ;;  %v4467_v17 = vld [vmem:[#allocation13 + $0x470] sm:$0xff] }
 0x4a2   : > { %4741 = vmatmul.mubr.f32.gmra.mxu1 %v7437_v60  ;;  %4852 = vmatprep.subr.mxu1 %v4508_v10  ;;  %v7586_v50 = vsel %vm575_vm0, %v3037_v49, %v3029_v35  ;;  %v4464_v28 = vld [vmem:[#allocation13 + $0x458] sm:$0xff]  ;;  %v4463_v5 = vld [vmem:[#allocation13 + $0x450] sm:$0xff] }
 0x4a3   : > { %4746 = vmatprep.mubr.f32.mxu1 %v7376_v6  ;;  %4835 = vmatprep.mubr.f32.mxu0 %v7374_v4  ;;  %v7578_v4 = vsel %vm575_vm0, %v3038_v55, %v3030_v20  ;;  %v4460_v10 = vld [vmem:[#allocation13 + $0x438] sm:$0xff]  ;;  %v4459_v20 = vld [vmem:[#allocation13 + $0x430] sm:$0xff] }
 0x4a4   : > { %4853 = vmatpush1.msra.mxu1 %v4507_v11  ;;  %6093 = vmatpush3.msra.mxu0 %v5050_v63  ;;  %v4456_v11 = vld [vmem:[#allocation13 + $0x418] sm:$0xff]  ;;  %v4579_v35 = vld [vmem:[#allocation13 + $0x7f0] sm:$0xff] }
 0x4a5   : > { %4854 = vmatprep.subr.mxu1 %v4504_v57  ;;  %4836 = vmatmul.mubr.f32.gmra.mxu0 %v7382_v0  ;;  %v4492_v0 = vld [vmem:[#allocation13 + $0x538] sm:$0xff]  ;;  %v4455_v57 = vld [vmem:[#allocation13 + $0x410] sm:$0xff] }
 0x4a6   : > { %4855 = vmatpush1.msra.mxu1 %v4503_v25  ;;  %6081 = vmatprep.mubr.msk.f32.mxu0 %vm583_vm2, %v7494_v58  ;;  %v4491_v58 = vld [vmem:[#allocation13 + $0x530] sm:$0xff]  ;;  %v4580_v25 = vld [vmem:[#allocation13 + $0x7f8] sm:$0xff] }
 0x4a7   : > { %4747 = vmatmul.mubr.f32.gmra.mxu1 %v7384_v23  ;;  %4856 = vmatprep.subr.mxu1 %v4500_v45  ;;  %v4576_v45 = vld [vmem:[#allocation13 + $0x7d8] sm:$0xff]  ;;  %v4575_v55 = vld [vmem:[#allocation13 + $0x7d0] sm:$0xff] }
 0x4a8   : > { %6079 = vmatprep.mubr.msk.f32.mxu1 %vm583_vm2, %v7578_v4  ;;  %4857 = vmatpush1.msra.mxu1 %v4499_v62  ;;  %v4572_v62 = vld [vmem:[#allocation13 + $0x7b8] sm:$0xff]  ;;  %v4567_v49 = vld [vmem:[#allocation13 + $0x790] sm:$0xff] }
 0x4a9   : > { %4858 = vmatprep.subr.mxu1 %v4496_v30  ;;  %6082 = vmatmul.mubr.msk.f32.gmra.mxu0 %vm583_vm2, %v7501_v48  ;;  %v4483_v48 = vld [vmem:[#allocation13 + $0x4f0] sm:$0xff]  ;;  %v5090_v54 = vld [vmem:[#allocation16 + $0x1b8] sm:$0xff] }
 0x4aa   : > { %4859 = vmatpush1.msra.mxu1 %v4495_v7  ;;  %6094 = vmatprep.subr.mxu0 %v5065_v27  ;;  %v4571_v30 = vld [vmem:[#allocation13 + $0x7b0] sm:$0xff]  ;;  %v4568_v7 = vld [vmem:[#allocation13 + $0x798] sm:$0xff] }
 0x4ab   : > { %6080 = vmatmul.mubr.msk.f32.gmra.mxu1 %vm583_vm2, %v7586_v50  ;;  %4860 = vmatprep.subr.mxu1 %v4492_v0  ;;  %v4564_v0 = vld [vmem:[#allocation13 + $0x778] sm:$0xff]  ;;  %v4559_v33 = vld [vmem:[#allocation13 + $0x750] sm:$0xff] }
 0x4ac   : > { %4861 = vmatpush1.msra.mxu1 %v4491_v58  ;;  %4912 = vmatprep.mubr.f32.mxu1 %v7425_v61  ;;  %v4468_v61 = vld [vmem:[#allocation13 + $0x478] sm:$0xff]  ;;  %v4563_v58 = vld [vmem:[#allocation13 + $0x770] sm:$0xff] }
 0x4ad   : > { %4862 = vmatprep.subr.mxu1 %v4488_v31  ;;  %v4560_v31 = vld [vmem:[#allocation13 + $0x758] sm:$0xff]  ;;  %v4555_v63 = vld [vmem:[#allocation13 + $0x730] sm:$0xff] }
 0x4ae   : > { %4863 = vmatpush1.msra.mxu1 %v4487_v26  ;;  %v4556_v26 = vld [vmem:[#allocation13 + $0x738] sm:$0xff]  ;;  %v4551_v27 = vld [vmem:[#allocation13 + $0x710] sm:$0xff] }
 0x4af   : > { %4864 = vmatprep.subr.mxu1 %v4484_v22  ;;  %v4552_v22 = vld [vmem:[#allocation13 + $0x718] sm:$0xff] }
 0x4b0   : > { %4865 = vmatpush1.msra.mxu1 %v4483_v48  ;;  %v4548_v48 = vld [vmem:[#allocation13 + $0x6f8] sm:$0xff] }
 0x4b1   : > { %4866 = vmatprep.subr.mxu1 %v4480_v8  ;;  %v4547_v8 = vld [vmem:[#allocation13 + $0x6f0] sm:$0xff] }
 0x4b2   : > { %4867 = vmatpush1.msra.mxu1 %v4479_v59  ;;  %v4544_v59 = vld [vmem:[#allocation13 + $0x6d8] sm:$0xff] }
 0x4b3   : > { %4868 = vmatprep.subr.mxu1 %v4476_v38  ;;  %v4543_v38 = vld [vmem:[#allocation13 + $0x6d0] sm:$0xff] }
 0x4b4   : > { %4869 = vmatpush1.msra.mxu1 %v4475_v40  ;;  %v4540_v40 = vld [vmem:[#allocation13 + $0x6b8] sm:$0xff] }
 0x4b5   : > { %4870 = vmatprep.subr.mxu1 %v4472_v46  ;;  %v4539_v46 = vld [vmem:[#allocation13 + $0x6b0] sm:$0xff] }
 0x4b6   : > { %4871 = vmatpush1.msra.mxu1 %v4471_v47  ;;  %v4536_v47 = vld [vmem:[#allocation13 + $0x698] sm:$0xff] }
 0x4b7   : > { %4872 = vmatprep.subr.mxu1 %v4468_v61  ;;  %v4535_v61 = vld [vmem:[#allocation13 + $0x690] sm:$0xff] }
 0x4b8   : > { %4873 = vmatpush1.msra.mxu1 %v4467_v17  ;;  %v4532_v17 = vld [vmem:[#allocation13 + $0x678] sm:$0xff] }
 0x4b9   : > { %4874 = vmatprep.subr.mxu1 %v4464_v28  ;;  %v4531_v28 = vld [vmem:[#allocation13 + $0x670] sm:$0xff] }
 0x4ba   : > { %4875 = vmatpush1.msra.mxu1 %v4463_v5  ;;  %v4528_v5 = vld [vmem:[#allocation13 + $0x658] sm:$0xff] }
 0x4bb   : > { %4876 = vmatprep.subr.mxu1 %v4460_v10  ;;  %v4527_v10 = vld [vmem:[#allocation13 + $0x650] sm:$0xff] }
 0x4bc   : > { %4877 = vmatpush1.msra.mxu1 %v4459_v20  ;;  %v4524_v20 = vld [vmem:[#allocation13 + $0x638] sm:$0xff] }
 0x4bd   : > { %4878 = vmatprep.subr.mxu1 %v4456_v11  ;;  %v4523_v11 = vld [vmem:[#allocation13 + $0x630] sm:$0xff] }
 0x4be   : > { %4879 = vmatpush1.msra.mxu1 %v4455_v57  ;;  %v4520_v57 = vld [vmem:[#allocation13 + $0x618] sm:$0xff] }
 0x4bf   : > { %4880 = vmatprep.subr.mxu1 %v4580_v25  ;;  %v4519_v25 = vld [vmem:[#allocation13 + $0x610] sm:$0xff] }
 0x4c0   : > { %4881 = vmatpush2.msra.mxu1 %v4579_v35  ;;  %v5049_v35 = vld [vmem:[#allocation16 + $0x70] sm:$0xff] }
 0x4c1   : > { %4882 = vmatprep.subr.mxu1 %v4576_v45  ;;  %6095 = vmatpush3.msra.mxu0 %v5049_v35  ;;  %v5064_v45 = vld [vmem:[#allocation16 + $0xe8] sm:$0xff]  ;;  %v5073_v29 = vld [vmem:[#allocation16 + $0x130] sm:$0xff] }
 0x4c2   : > { %4883 = vmatpush2.msra.mxu1 %v4575_v55  ;;  %6096 = vmatprep.subr.mxu0 %v5064_v45  ;;  %v5048_v55 = vld [vmem:[#allocation16 + $0x68] sm:$0xff] }
 0x4c3   : > { %4884 = vmatprep.subr.mxu1 %v4572_v62  ;;  %6097 = vmatpush3.msra.mxu0 %v5048_v55  ;;  %v5063_v62 = vld [vmem:[#allocation16 + $0xe0] sm:$0xff] }
 0x4c4   : > { %4885 = vmatpush2.msra.mxu1 %v4571_v30  ;;  %6098 = vmatprep.subr.mxu0 %v5063_v62  ;;  %v5047_v30 = vld [vmem:[#allocation16 + $0x60] sm:$0xff] }
 0x4c5   : > { %4886 = vmatprep.subr.mxu1 %v4568_v7  ;;  %6099 = vmatpush3.msra.mxu0 %v5047_v30  ;;  %v5062_v7 = vld [vmem:[#allocation16 + $0xd8] sm:$0xff] }
 0x4c6   : > { %4887 = vmatpush2.msra.mxu1 %v4567_v49  ;;  %6100 = vmatprep.subr.mxu0 %v5062_v7  ;;  %v5046_v49 = vld [vmem:[#allocation16 + $0x58] sm:$0xff] }
 0x4c7   : > { %4888 = vmatprep.subr.mxu1 %v4564_v0  ;;  %6101 = vmatpush3.msra.mxu0 %v5046_v49  ;;  %v5045_v0 = vld [vmem:[#allocation16 + $0x50] sm:$0xff] }
 0x4c8   : > { %4889 = vmatpush2.msra.mxu1 %v4563_v58  ;;  %v5044_v58 = vld [vmem:[#allocation16 + $0x48] sm:$0xff] }
 0x4c9   : > { %4890 = vmatprep.subr.mxu1 %v4560_v31  ;;  %v5043_v31 = vld [vmem:[#allocation16 + $0x40] sm:$0xff] }
 0x4ca   : > { %4891 = vmatpush2.msra.mxu1 %v4559_v33  ;;  %v5042_v33 = vld [vmem:[#allocation16 + $0x38] sm:$0xff] }
 0x4cb   : > { %4892 = vmatprep.subr.mxu1 %v4556_v26  ;;  %v5041_v26 = vld [vmem:[#allocation16 + $0x30] sm:$0xff] }
 0x4cc   : > { %4893 = vmatpush2.msra.mxu1 %v4555_v63  ;;  %v7600_v63 = vpop.f32.mrf.mxu0 }
 0x4cd   : > { %4894 = vmatprep.subr.mxu1 %v4552_v22  ;;  %v5040_v22 = vld [vmem:[#allocation16 + $0x28] sm:$0xff] }
 0x4ce   : > { %4895 = vmatpush2.msra.mxu1 %v4551_v27  ;;  %v5055_v27 = vld [vmem:[#allocation16 + $0xa0] sm:$0xff] }
 0x4cf   : > { %4896 = vmatprep.subr.mxu1 %v4548_v48  ;;  %v5039_v48 = vld [vmem:[#allocation16 + $0x20] sm:$0xff] }
 0x4d0   : > { %4897 = vmatpush2.msra.mxu1 %v4547_v8  ;;  %v7602_v8 = vpop.f32.mrf.mxu0 }
 0x4d1   : > { %4898 = vmatprep.subr.mxu1 %v4544_v59  ;;  %v5038_v59 = vld [vmem:[#allocation16 + $0x18] sm:$0xff] }
 0x4d2   : > { %4899 = vmatpush2.msra.mxu1 %v4543_v38  ;;  %v5053_v38 = vld [vmem:[#allocation16 + $0x90] sm:$0xff] }
 0x4d3   : > { %4900 = vmatprep.subr.mxu1 %v4540_v40  ;;  %v5037_v40 = vld [vmem:[#allocation16 + $0x10] sm:$0xff] }
 0x4d4   : > { %4901 = vmatpush2.msra.mxu1 %v4539_v46  ;;  %v5052_v46 = vld [vmem:[#allocation16 + $0x88] sm:$0xff] }
 0x4d5   : > { %4902 = vmatprep.subr.mxu1 %v4536_v47  ;;  %v5036_v47 = vld [vmem:[#allocation16 + $0x8] sm:$0xff] }
 0x4d6   : > { %4903 = vmatpush2.msra.mxu1 %v4535_v61  ;;  %v7604_v61 = vpop.f32.mrf.mxu0 }
 0x4d7   : > { %4904 = vmatprep.subr.mxu1 %v4532_v17  ;;  %v7606_v17 = vpop.f32.mrf.mxu1 }
 0x4d8   : > { %4905 = vmatpush2.msra.mxu1 %v4531_v28  ;;  %v5051_v28 = vld [vmem:[#allocation16 + $0x80] sm:$0xff] }
 0x4d9   : > { %4906 = vmatprep.subr.mxu1 %v4528_v5  ;;  %v5035_v5 = vld [vmem:[#allocation16] sm:$0xff] }
 0x4da   : > { %4907 = vmatpush2.msra.mxu1 %v4527_v10  ;;  %v7608_v10 = vpop.f32.mrf.mxu0 }
 0x4db   : > { %4908 = vmatprep.subr.mxu1 %v4524_v20  ;;  %v7610_v20 = vpop.f32.mrf.mxu1 }
 0x4dc   : > { %4909 = vmatpush2.msra.mxu1 %v4523_v11  ;;  %v5130_v11 = vld [vmem:[#allocation16 + $0x2f8] sm:$0xff] }
 0x4dd   : > { %4910 = vmatprep.subr.mxu1 %v4520_v57  ;;  %v7612_v57 = vpop.f32.mrf.mxu0 }
 0x4de   : > { %4911 = vmatpush2.msra.mxu1 %v4519_v25  ;;  %v7614_v25 = vpop.f32.mrf.mxu1 }
 0x4df   : > { %4913 = vmatmul.mubr.f32.vlgmr.msra.gmra.mxu1 %v7428_v3  ;;  %v5061_v3 = vld [vmem:[#allocation16 + $0xd0] sm:$0xff]  ;;  %v7616_v35 = vpop.f32.mrf.mxu0 }
 0x4e0   : > { %4918 = vmatprep.mubr.f32.mxu1 %v7435_v24  ;;  %6102 = vmatprep.subr.mxu0 %v5061_v3  ;;  %v5060_v24 = vld [vmem:[#allocation16 + $0xc8] sm:$0xff]  ;;  %v7618_v45 = vpop.f32.mrf.mxu1 }
 0x4e1   : > { %6103 = vmatpush3.msra.mxu0 %v5045_v0  ;;  %v7620_v55 = vpop.f32.mrf.mxu0 }
 0x4e2   : > { %6104 = vmatprep.subr.mxu0 %v5060_v24  ;;  %v7622_v62 = vpop.f32.mrf.mxu1 }
 0x4e3   : > { %4919 = vmatmul.mubr.f32.gmra.mxu1 %v7437_v60  ;;  %6105 = vmatpush3.msra.mxu0 %v5044_v58  ;;  %v5059_v60 = vld [vmem:[#allocation16 + $0xc0] sm:$0xff]  ;;  %v7624_v30 = vpop.f32.mrf.mxu0 }
 0x4e4   : > { %4924 = vmatprep.mubr.f32.mxu1 %v7376_v6  ;;  %6106 = vmatprep.subr.mxu0 %v5059_v60  ;;  %v5058_v6 = vld [vmem:[#allocation16 + $0xb8] sm:$0xff]  ;;  %v7626_v7 = vpop.f32.mrf.mxu1 }
 0x4e5   : > { %6107 = vmatpush3.msra.mxu0 %v5043_v31  ;;  %v7628_v49 = vpop.f32.mrf.mxu0 }
 0x4e6   : > { %6108 = vmatprep.subr.mxu0 %v5058_v6  ;;  %v7630_v3 = vpop.f32.mrf.mxu1 }
 0x4e7   : > { %4925 = vmatmul.mubr.f32.gmra.mxu1 %v7384_v23  ;;  %6109 = vmatpush3.msra.mxu0 %v5042_v33  ;;  %v5057_v23 = vld [vmem:[#allocation16 + $0xb0] sm:$0xff]  ;;  %v7632_v0 = vpop.f32.mrf.mxu0  ;;  %v5098_v33 = vld [vmem:[#allocation16 + $0x1f8] sm:$0xff] }
 0x4e8   : > { %6083 = vmatprep.mubr.msk.f32.mxu1 %vm583_vm2, %v7578_v4  ;;  %6110 = vmatprep.subr.mxu0 %v5057_v23  ;;  %v5056_v4 = vld [vmem:[#allocation16 + $0xa8] sm:$0xff]  ;;  %v7634_v24 = vpop.f32.mrf.mxu1 }
 0x4e9   : > { %6111 = vmatpush3.msra.mxu0 %v5041_v26  ;;  %v7636_v58 = vpop.f32.mrf.mxu0  ;;  %6148 = vmatprep.subr.mxu1 %v5098_v33  ;;  %v5082_v26 = vld [vmem:[#allocation16 + $0x178] sm:$0xff] }
 0x4ea   : > { %6112 = vmatprep.subr.mxu0 %v5056_v4  ;;  %6149 = vmatpush3.msra.mxu1 %v5082_v26  ;;  %v5097_v4 = vld [vmem:[#allocation16 + $0x1f0] sm:$0xff] }
 0x4eb   : > { %6084 = vmatmul.mubr.msk.f32.gmra.mxu1 %vm583_vm2, %v7586_v50  ;;  %6113 = vmatpush3.msra.mxu0 %v5040_v22  ;;  %v5054_v50 = vld [vmem:[#allocation16 + $0x98] sm:$0xff]  ;;  %v7642_v6 = vpop.f32.mrf.mxu0  ;;  %v5093_v26 = vld [vmem:[#allocation16 + $0x1d0] sm:$0xff] }
 0x4ec   : > { %6114 = vmatprep.subr.mxu0 %v5055_v27  ;;  %8190 = vst [vmem:[#allocation35_spill] sm:$0xff] %v7642_v6  ;;  %6150 = vmatprep.subr.mxu1 %v5097_v4  ;;  %v5077_v4 = vld [vmem:[#allocation16 + $0x150] sm:$0xff] }
 0x4ed   : > { %6115 = vmatpush3.msra.mxu0 %v5039_v48  ;;  %v7646_v22 = vpop.f32.mrf.mxu0  ;;  %v5081_v48 = vld [vmem:[#allocation16 + $0x170] sm:$0xff] }
 0x4ee   : > { %6116 = vmatprep.subr.mxu0 %v5054_v50  ;;  %8191 = vst [vmem:[#allocation36_spill] sm:$0xff] %v7646_v22  ;;  %6151 = vmatpush3.msra.mxu1 %v5081_v48  ;;  %v5096_v50 = vld [vmem:[#allocation16 + $0x1e8] sm:$0xff] }
 0x4ef   : > { %6117 = vmatpush3.msra.mxu0 %v5038_v59  ;;  %6152 = vmatprep.subr.mxu1 %v5096_v50  ;;  %v5080_v59 = vld [vmem:[#allocation16 + $0x168] sm:$0xff] }
 0x4f0   : > { %6118 = vmatprep.subr.mxu0 %v5053_v38  ;;  %v7650_v38 = vpop.f32.mrf.mxu0  ;;  %6153 = vmatpush3.msra.mxu1 %v5080_v59  ;;  %v5092_v50 = vld [vmem:[#allocation16 + $0x1c8] sm:$0xff] }
 0x4f1   : > { %6119 = vmatpush3.msra.mxu0 %v5037_v40  ;;  %8193 = vst [vmem:[#allocation38_spill] sm:$0xff] %v7650_v38  ;;  %v5076_v59 = vld [vmem:[#allocation16 + $0x148] sm:$0xff]  ;;  %v4092_v38 = vadd.f32 %v7634_v24, %v7624_v30  ;;  %v4084_v24 = vadd.f32 %v7622_v62, %v7612_v57  ;;  %v4072_v57 = vadd.f32 %v7606_v17, %v7600_v63 }
 0x4f2   : > { %6120 = vmatprep.subr.mxu0 %v5052_v46  ;;  %v5095_v46 = vld [vmem:[#allocation16 + $0x1e0] sm:$0xff]  ;;  %v7656_v33 = vpop.f32.mrf.mxu0 }
 0x4f3   : > { %6121 = vmatpush3.msra.mxu0 %v5036_v47  ;;  %6154 = vmatprep.subr.mxu1 %v5095_v46  ;;  %v5079_v47 = vld [vmem:[#allocation16 + $0x160] sm:$0xff]  ;;  %8196 = vst [vmem:[#allocation41_spill] sm:$0xff] %v7656_v33 }
 0x4f4   : > { %6122 = vmatprep.subr.mxu0 %v5051_v28  ;;  %6155 = vmatpush3.msra.mxu1 %v5079_v47  ;;  %v4180_v46 = vpop.f32.mrf.mxu0 }
 0x4f5   : > { %6123 = vmatpush3.msra.mxu0 %v5035_v5  ;;  %v5094_v5 = vld [vmem:[#allocation16 + $0x1d8] sm:$0xff] }
 0x4f6   : > { %6204 = vmatprep.subr.mxu0 %v5130_v11  ;;  %6156 = vmatprep.subr.mxu1 %v5094_v5  ;;  %v5078_v11 = vld [vmem:[#allocation16 + $0x158] sm:$0xff]  ;;  %v5075_v5 = vld [vmem:[#allocation16 + $0x140] sm:$0xff] }
 0x4f7   : > { %6157 = vmatpush3.msra.mxu1 %v5078_v11  ;;  %v5074_v11 = vld [vmem:[#allocation16 + $0x138] sm:$0xff] }
 0x4f8   : > { %6158 = vmatprep.subr.mxu1 %v5093_v26  ;;  %v5089_v26 = vld [vmem:[#allocation16 + $0x1b0] sm:$0xff] }
 0x4f9   : > { %6159 = vmatpush3.msra.mxu1 %v5077_v4  ;;  %v5088_v4 = vld [vmem:[#allocation16 + $0x1a8] sm:$0xff] }
 0x4fa   : > { %6160 = vmatprep.subr.mxu1 %v5092_v50  ;;  %v5072_v50 = vld [vmem:[#allocation16 + $0x128] sm:$0xff] }
 0x4fb   : > { %6161 = vmatpush3.msra.mxu1 %v5076_v59  ;;  %v5071_v59 = vld [vmem:[#allocation16 + $0x120] sm:$0xff] }
 0x4fc   : > { %6162 = vmatprep.subr.mxu1 %v5091_v12  ;;  %v5070_v12 = vld [vmem:[#allocation16 + $0x118] sm:$0xff] }
 0x4fd   : > { %6163 = vmatpush3.msra.mxu1 %v5075_v5  ;;  %v5084_v5 = vld [vmem:[#allocation16 + $0x188] sm:$0xff] }
 0x4fe   : > { %6164 = vmatprep.subr.mxu1 %v5090_v54  ;;  %v5069_v54 = vld [vmem:[#allocation16 + $0x110] sm:$0xff] }
 0x4ff   : > { %6165 = vmatpush3.msra.mxu1 %v5074_v11  ;;  %v5068_v11 = vld [vmem:[#allocation16 + $0x108] sm:$0xff] }
 0x500   : > { %6166 = vmatprep.subr.mxu1 %v5089_v26  ;;  %v5067_v26 = vld [vmem:[#allocation16 + $0x100] sm:$0xff] }
 0x501   : > { %6167 = vmatpush3.msra.mxu1 %v5073_v29  ;;  %v5083_v29 = vld [vmem:[#allocation16 + $0x180] sm:$0xff] }
 0x502   : > { %6168 = vmatprep.subr.mxu1 %v5088_v4  ;;  %v5162_v4 = vld [vmem:[#allocation16 + $0x3f8] sm:$0xff] }
 0x503   : > { %6169 = vmatpush3.msra.mxu1 %v5072_v50 }
 0x504   : > { %6170 = vmatprep.subr.mxu1 %v5087_v34 }
 0x505   : > { %6171 = vmatpush3.msra.mxu1 %v5071_v59 }
 0x515   : > { %v7638_v60 = vpop.f32.mrf.mxu1  ;;  %v4647_v34 = vpop.f32.mrf.mxu0 }
 0x517   : > { %v7640_v31 = vpop.f32.mrf.mxu1  ;;  %v4649_v50 = vpop.f32.mrf.mxu0 }
 0x51b   : > { %v7644_v23 = vpop.f32.mrf.mxu1  ;;  %v4653_v59 = vpop.f32.mrf.mxu0 }
 0x51d   : > { %v7648_v27 = vpop.f32.mrf.mxu1 }
 0x51e   : > { %8192 = vst [vmem:[#allocation37_spill] sm:$0xff] %v7648_v27  ;;  %v7672_v27 = vrot.slane %v7526_v2, %v7162_v19 }
 0x521   : > { %v7652_v40 = vpop.f32.mrf.mxu1 }
 0x522   : > { %8194 = vst [vmem:[#allocation39_spill] sm:$0xff] %v7652_v40 }
 0x523   : > { %v7654_v28 = vpop.f32.mrf.mxu1 }
 0x524   : > { %8195 = vst [vmem:[#allocation40_spill] sm:$0xff] %v7654_v28  ;;  %v7666_v28 = vrot.slane %v7526_v2, %v7158_v16 }
 0x527   : > { %v7658_v48 = vpop.f32.mrf.mxu1 }
 0x528   : > { %8197 = vst [vmem:[#allocation42_spill] sm:$0xff] %v7658_v48 }
 0x529   : > { %v4269_v41 = vpop.f32.mrf.mxu1 }
 0x52a   : > { %v7660_v47 = vadd.f32 %v4269_v41, %v4180_v46  ;;  %v5086_v41 = vld [vmem:[#allocation16 + $0x198] sm:$0xff]  ;;  %v5085_v46 = vld [vmem:[#allocation16 + $0x190] sm:$0xff] }
 0x52b   : > { %6172 = vmatprep.subr.mxu1 %v5086_v41  ;;  %v4655_v41 = vpop.f32.mrf.mxu0 }
 0x52c   : > { %8198 = vst [vmem:[#allocation43_spill] sm:$0xff] %v7660_v47  ;;  %6173 = vmatpush3.msra.mxu1 %v5070_v12 }
 0x52d   : > { %6174 = vmatprep.subr.mxu1 %v5085_v46  ;;  %v4659_v12 = vpop.f32.mrf.mxu0 }
 0x52e   : > { %6175 = vmatpush3.msra.mxu1 %v5069_v54 }
 0x52f   : > { %6176 = vmatprep.subr.mxu1 %v5084_v5  ;;  %v4661_v47 = vpop.f32.mrf.mxu0 }
 0x530   : > { %6177 = vmatpush3.msra.mxu1 %v5068_v11  ;;  %v4090_v11 = vadd.f32 %v7630_v3, %v7620_v55  ;;  %v4086_v3 = vadd.f32 %v7626_v7, %v7616_v35 }
 0x531   : > { %6178 = vmatprep.subr.mxu1 %v5083_v29  ;;  %v4665_v48 = vpop.f32.mrf.mxu0 }
 0x532   : > { %6179 = vmatpush3.msra.mxu1 %v5067_v26 }
 0x533   : > { %6260 = vmatprep.subr.mxu1 %v5162_v4  ;;  %v4667_v26 = vpop.f32.mrf.mxu0 }
 0x55d   : > { %v4736_v51 = vpop.f32.mrf.mxu1 }
 0x55f   : > { %v4738_v14 = vpop.f32.mrf.mxu1 }
 0x560   : > { %v4739_v21 = vadd.f32 %v4738_v14, %v4649_v50  ;;  %v5114_v50 = vld [vmem:[#allocation16 + $0x278] sm:$0xff] }
 0x562   : > { %v4742_v56 = vpop.f32.mrf.mxu1 }
 0x564   : > { %v4744_v46 = vpop.f32.mrf.mxu1 }
 0x565   : > { %v4745_v14 = vadd.f32 %v4744_v46, %v4655_v41  ;;  %v5129_v46 = vld [vmem:[#allocation16 + $0x2f0] sm:$0xff] }
 0x567   : > { %v4748_v54 = vpop.f32.mrf.mxu1 }
 0x569   : > { %v4750_v5 = vpop.f32.mrf.mxu1 }
 0x56a   : > { %v4751_v13 = vadd.f32 %v4750_v5, %v4661_v47 }
 0x56b   : > { %v4754_v33 = vpop.f32.mrf.mxu1 }
 0x56c   : > { %v4755_v29 = vadd.f32 %v4754_v33, %v4665_v48  ;;  %v4749_v33 = vadd.f32 %v4748_v54, %v4659_v12  ;;  %v4946_v30 = vadd.f32 %v4751_v13, %v4086_v3 }
 0x56d   : > { %v4756_v4 = vpop.f32.mrf.mxu1 }
 0x56e   : > { %v4949_v40 = vadd.f32 %v4755_v29, %v4090_v11  ;;  %v4757_v22 = vadd.f32 %v4756_v4, %v4667_v26  ;;  %v4945_v35 = vadd.f32 %v4749_v33, %v4084_v24  ;;  %v4962_v13 = vadd.f32 %v4946_v30, %v7672_v27  ;;  %v5112_v11 = vld [vmem:[#allocation16 + $0x268] sm:$0xff]  ;;  %v5127_v4 = vld [vmem:[#allocation16 + $0x2e0] sm:$0xff]  ;;  %v5110_v33 = vld [vmem:[#allocation16 + $0x258] sm:$0xff] }
 0x56f   : > { %v4294_v30 = vadd.f32 %v7672_v27, %v7460_v43  ;;  %v3724_v24 = vadd.f32 %v7518_v39, %v7508_v42 }
 0x570   : > { %v4965_v6 = vadd.f32 %v4949_v40, %v7666_v28  ;;  %v4950_v55 = vadd.f32 %v4757_v22, %v4092_v38  ;;  %v4074_v22 = vadd.f32 %v7610_v20, %v7602_v8  ;;  %v4737_v38 = vadd.f32 %v4736_v51, %v4647_v34 }
 0x571   : > { %v4080_v51 = vadd.f32 %v7618_v45, %v7608_v10  ;;  %v4743_v34 = vadd.f32 %v4742_v56, %v4653_v59  ;;  %v4961_v41 = vadd.f32 %v4945_v35, %v7666_v28  ;;  %v7700_v17 = vmax.f32 %v4962_v13, 0.0  ;;  %v5113_v45 = vld [vmem:[#allocation16 + $0x270] sm:$0xff]  ;;  %v5128_v56 = vld [vmem:[#allocation16 + $0x2e8] sm:$0xff]  ;;  %v5107_v13 = vld [vmem:[#allocation16 + $0x240] sm:$0xff] }
 0x572   : > { %v7677_v48 = vmax.f32 %v4965_v6, 0.0  ;;  %v4966_v16 = vadd.f32 %v4950_v55, %v7672_v27  ;;  %v4938_v40 = vadd.f32 %v4739_v21, %v4074_v22  ;;  %v4937_v20 = vadd.f32 %v4737_v38, %v4072_v57  ;;  %v5125_v22 = vld [vmem:[#allocation16 + $0x2d0] sm:$0xff]  ;;  %v5124_v35 = vld [vmem:[#allocation16 + $0x2c8] sm:$0xff] }
 0x573   : > { %v4942_v12 = vadd.f32 %v4745_v14, %v4080_v51  ;;  %v4078_v10 = vadd.f32 %v7614_v25, %v7604_v61  ;;  %v7706_v5 = vmax.f32 %v4961_v41, 0.0  ;;  %v5111_v61 = vld [vmem:[#allocation16 + $0x260] sm:$0xff]  ;;  %v5126_v25 = vld [vmem:[#allocation16 + $0x2d8] sm:$0xff]  ;;  %v5109_v38 = vld [vmem:[#allocation16 + $0x250] sm:$0xff]  ;;  %v7729_v42 = vmax.f32 %v4294_v30, 0.0 }
 0x574   : > { %v4989_v19 = vrot.slane %v7677_v48, 7  ;;  %v7683_v2 = vmax.f32 %v4966_v16, 0.0  ;;  %v4954_v54 = vadd.f32 %v4938_v40, %v7672_v27  ;;  %v4953_v29 = vadd.f32 %v4937_v20, %v7666_v28  ;;  %v5123_v14 = vld [vmem:[#allocation16 + $0x2c0] sm:$0xff]  ;;  %v5121_v20 = vld [vmem:[#allocation16 + $0x2b0] sm:$0xff] }
 0x575   : > { %v4941_v59 = vadd.f32 %v4743_v34, %v4078_v10  ;;  %v4958_v55 = vadd.f32 %v4942_v12, %v7672_v27  ;;  %v4298_v39 = vadd.f32 %v7672_v27, %v3724_v24  ;;  %v3730_v40 = vadd.f32 %v7522_v37, %v7512_v53  ;;  %v5106_v53 = vld [vmem:[#allocation16 + $0x238] sm:$0xff]  ;;  %v5105_v34 = vld [vmem:[#allocation16 + $0x230] sm:$0xff]  ;;  %v5119_v41 = vld [vmem:[#allocation16 + $0x2a0] sm:$0xff] }
 0x576   : > { %v4990_v7 = vrot.slane %v7683_v2, 7  ;;  %v4998_v6 = vsel %vm4997_vm3, 0.0, %v4989_v19  ;;  %v7709_v26 = vmax.f32 %v4954_v54, 0.0  ;;  %v7714_v3 = vmax.f32 %v4953_v29, 0.0  ;;  %v5103_v12 = vld [vmem:[#allocation16 + $0x220] sm:$0xff]  ;;  %v5100_v29 = vld [vmem:[#allocation16 + $0x208] sm:$0xff] }
 0x577   : > { %v5002_v47 = vsel %vm575_vm0, %v4998_v6, 0.0  ;;  %v4957_v16 = vadd.f32 %v4941_v59, %v7666_v28  ;;  %v5108_v6 = vld [vmem:[#allocation16 + $0x248] sm:$0xff]  ;;  %v7742_v37 = vmax.f32 %v4298_v39, 0.0  ;;  %v4302_v51 = vadd.f32 %v7672_v27, %v3730_v40  ;;  %v5175_v39 = vld [vmem:[#allocation16 + $0x460] sm:$0xff] }
 0x578   : > { %v4999_v62 = vsel %vm4997_vm3, 0.0, %v4990_v7  ;;  %v5007_v63 = vsel %vm5006_vm4, %v5002_v47, %v4989_v19  ;;  %v7721_v19 = vmax.f32 %v4958_v55, 0.0  ;;  %v3728_v47 = vadd.f32 %v7520_v44, %v7510_v9  ;;  %v5116_v59 = vld [vmem:[#allocation16 + $0x288] sm:$0xff] }
 0x579   : > { %v5003_v8 = vsel %vm575_vm0, %v4999_v62, 0.0  ;;  %v7727_v43 = vmax.f32 %v4957_v16, 0.0  ;;  %v4297_v62 = vadd.f32 %v7666_v28, %v7462_v52  ;;  %v5120_v52 = vld [vmem:[#allocation16 + $0x2a8] sm:$0xff]  ;;  %v5177_v16 = vld [vmem:[#allocation16 + $0x470] sm:$0xff] }
 0x57a   : > { %v5008_v21 = vsel %vm5006_vm4, %v5003_v8, %v4990_v7  ;;  %v4293_v7 = vadd.f32 %v7666_v28, %v7458_v36  ;;  %v5122_v36 = vld [vmem:[#allocation16 + $0x2b8] sm:$0xff]  ;;  %v3736_v8 = vadd.f32 %v7528_v1, %v7516_v18  ;;  %v4301_v44 = vadd.f32 %v7666_v28, %v3728_v47  ;;  %v5192_v24 = vld [vmem:[#allocation16 + $0x4e8] sm:$0xff] }
 0x57b   : > { %5298 = vmatprep.mubr.f32.mxu0 %v5008_v21  ;;  %v7749_v9 = vmax.f32 %v4297_v62, 0.0  ;;  %v3734_v21 = vadd.f32 %v7524_v15, %v7514_v32  ;;  %v7754_v18 = vmax.f32 %v4302_v51, 0.0  ;;  %v5102_v15 = vld [vmem:[#allocation16 + $0x218] sm:$0xff]  ;;  %v5189_v51 = vld [vmem:[#allocation16 + $0x4d0] sm:$0xff] }
 0x57c   : > { %5299 = vmatmul.mubr.f32.vlgmr.msra.gmra.mxu0 %v5007_v63  ;;  %v7736_v57 = vmax.f32 %v4293_v7, 0.0  ;;  %v4306_v1 = vadd.f32 %v7672_v27, %v3736_v8  ;;  %v4825_v63 = vpop.f32.mrf.mxu0  ;;  %v7759_v54 = vmax.f32 %v4301_v44, 0.0  ;;  %v5117_v27 = vld [vmem:[#allocation16 + $0x290] sm:$0xff]  ;;  %v4250_v7 = vadd.f32 %v7638_v60, %v7628_v49 }
 0x57d   : > { %5303 = vmatprep.mubr.f32.mxu0 %v7700_v17  ;;  %6205 = vmatpush3.msra.mxu0 %v5114_v50  ;;  %v5104_v50 = vld [vmem:[#allocation16 + $0x228] sm:$0xff]  ;;  %v4305_v32 = vadd.f32 %v7666_v28, %v3734_v21  ;;  %v5115_v28 = vld [vmem:[#allocation16 + $0x280] sm:$0xff]  ;;  %v4256_v49 = vadd.f32 %v7644_v23, %v7636_v58 }
 0x57e   : > { %6206 = vmatprep.subr.mxu0 %v5129_v46  ;;  %v5118_v46 = vld [vmem:[#allocation16 + $0x298] sm:$0xff]  ;;  %v7762_v10 = vmax.f32 %v4306_v1, 0.0  ;;  %v5188_v21 = vld [vmem:[#allocation16 + $0x4c8] sm:$0xff] }
 0x57f   : > { %6207 = vmatpush3.msra.mxu0 %v5113_v45  ;;  %v5101_v45 = vld [vmem:[#allocation16 + $0x210] sm:$0xff]  ;;  %v8201_v58 = vld [vmem:[#allocation37_spill] sm:$0xff] }
 0x580   : > { %5304 = vmatmul.mubr.f32.gmra.mxu0 %v7706_v5  ;;  %6208 = vmatprep.subr.mxu0 %v5128_v56  ;;  %v4827_v56 = vpop.f32.mrf.mxu0 }
 0x581   : > { %5308 = vmatprep.mubr.f32.mxu0 %v7709_v26  ;;  %6209 = vmatpush3.msra.mxu0 %v5112_v11  ;;  %v7766_v11 = vmax.f32 %v4305_v32, 0.0  ;;  %v8203_v32 = vld [vmem:[#allocation36_spill] sm:$0xff] }
 0x582   : > { %6210 = vmatprep.subr.mxu0 %v5127_v4  ;;  %v5099_v4 = vld [vmem:[#allocation16 + $0x200] sm:$0xff]  ;;  %v4831_v55 = vpop.f32.mrf.mxu0 }
 0x583   : > { %6211 = vmatpush3.msra.mxu0 %v5111_v61  ;;  %v5194_v61 = vld [vmem:[#allocation16 + $0x4f8] sm:$0xff] }
 0x584   : > { %5309 = vmatmul.mubr.f32.gmra.mxu0 %v7714_v3  ;;  %6212 = vmatprep.subr.mxu0 %v5126_v25  ;;  %v5178_v25 = vld [vmem:[#allocation16 + $0x478] sm:$0xff]  ;;  %v4833_v30 = vpop.f32.mrf.mxu0 }
 0x585   : > { %5313 = vmatprep.mubr.f32.mxu0 %v7721_v19  ;;  %6213 = vmatpush3.msra.mxu0 %v5110_v33  ;;  %v5193_v33 = vld [vmem:[#allocation16 + $0x4f0] sm:$0xff] }
 0x586   : > { %6214 = vmatprep.subr.mxu0 %v5125_v22  ;;  %v5176_v22 = vld [vmem:[#allocation16 + $0x468] sm:$0xff]  ;;  %v4837_v40 = vpop.f32.mrf.mxu0 }
 0x587   : > { %6215 = vmatpush3.msra.mxu0 %v5109_v38 }
 0x588   : > { %5314 = vmatmul.mubr.f32.gmra.mxu0 %v7727_v43  ;;  %6216 = vmatprep.subr.mxu0 %v5124_v35  ;;  %v5191_v35 = vld [vmem:[#allocation16 + $0x4e0] sm:$0xff] }
 0x589   : > { %5318 = vmatprep.mubr.f32.mxu0 %v7729_v42  ;;  %6217 = vmatpush3.msra.mxu0 %v5108_v6 }
 0x58a   : > { %6218 = vmatprep.subr.mxu0 %v5123_v14 }
 0x58b   : > { %6219 = vmatpush3.msra.mxu0 %v5107_v13  ;;  %v5190_v13 = vld [vmem:[#allocation16 + $0x4d8] sm:$0xff] }
 0x58c   : > { %5319 = vmatmul.mubr.f32.gmra.mxu0 %v7736_v57  ;;  %6220 = vmatprep.subr.mxu0 %v5122_v36  ;;  %v4252_v36 = vadd.f32 %v7640_v31, %v7632_v0  ;;  %v4839_v0 = vpop.f32.mrf.mxu0 }
 0x58d   : > { %5323 = vmatprep.mubr.f32.mxu0 %v7742_v37  ;;  %6221 = vmatpush3.msra.mxu0 %v5106_v53  ;;  %v5174_v53 = vld [vmem:[#allocation16 + $0x458] sm:$0xff] }
 0x58e   : > { %6222 = vmatprep.subr.mxu0 %v5121_v20 }
 0x58f   : > { %6223 = vmatpush3.msra.mxu0 %v5105_v34  ;;  %v5173_v34 = vld [vmem:[#allocation16 + $0x450] sm:$0xff] }
 0x590   : > { %5324 = vmatmul.mubr.f32.gmra.mxu0 %v7749_v9  ;;  %6224 = vmatprep.subr.mxu0 %v5120_v52  ;;  %v8199_v52 = vld [vmem:[#allocation25_spill] sm:$0xff] }
 0x591   : > { %5328 = vmatprep.mubr.f32.mxu0 %v7754_v18  ;;  %6225 = vmatpush3.msra.mxu0 %v5104_v50  ;;  %v8200_v50 = vld [vmem:[#allocation35_spill] sm:$0xff] }
 0x592   : > { %6226 = vmatprep.subr.mxu0 %v5119_v41  ;;  %v4258_v23 = vadd.f32 %v8201_v58, %v8200_v50  ;;  %v5167_v58 = vld [vmem:[#allocation16 + $0x420] sm:$0xff] }
 0x593   : > { %6227 = vmatpush3.msra.mxu0 %v5103_v12  ;;  %v5172_v12 = vld [vmem:[#allocation16 + $0x448] sm:$0xff] }
 0x594   : > { %5329 = vmatmul.mubr.f32.gmra.mxu0 %v7759_v54  ;;  %6228 = vmatprep.subr.mxu0 %v5118_v46 }
 0x595   : > { %5333 = vmatprep.mubr.f32.mxu0 %v7762_v10  ;;  %6229 = vmatpush3.msra.mxu0 %v5102_v15  ;;  %v8204_v15 = vld [vmem:[#allocation39_spill] sm:$0xff] }
 0x596   : > { %6230 = vmatprep.subr.mxu0 %v5117_v27  ;;  %v4262_v27 = vadd.f32 %v8204_v15, %v8203_v32  ;;  %v5181_v32 = vld [vmem:[#allocation16 + $0x490] sm:$0xff] }
 0x597   : > { %6231 = vmatpush3.msra.mxu0 %v5101_v45 }
 0x598   : > { %5334 = vmatmul.mubr.f32.gmra.mxu0 %v7766_v11  ;;  %6232 = vmatprep.subr.mxu0 %v5116_v59 }
 0x599   : > { %6233 = vmatpush3.msra.mxu0 %v5100_v29  ;;  %5508 = vmatprep.mubr.f32.mxu0 %v7729_v42 }
 0x59a   : > { %6234 = vmatprep.subr.mxu0 %v5115_v28  ;;  %v5171_v28 = vld [vmem:[#allocation16 + $0x440] sm:$0xff] }
 0x59b   : > { %6235 = vmatpush3.msra.mxu0 %v5099_v4 }
 0x59c   : > { %5509 = vmatmul.mubr.f32.vlgmr.msra.gmra.mxu0 %v7736_v57  ;;  %6316 = vmatprep.subr.mxu0 %v5194_v61 }
 0x59d   : > { %5513 = vmatprep.mubr.f32.mxu0 %v7742_v37  ;;  %6317 = vmatpush3.msra.mxu0 %v5178_v25  ;;  %v5186_v25 = vld [vmem:[#allocation16 + $0x4b8] sm:$0xff] }
 0x59e   : > { %6318 = vmatprep.subr.mxu0 %v5193_v33  ;;  %v8205_v33 = vld [vmem:[#allocation38_spill] sm:$0xff] }
 0x59f   : > { %v4914_v38 = vpop.f32.mrf.mxu1  ;;  %6319 = vmatpush3.msra.mxu0 %v5177_v16  ;;  %v8206_v16 = vld [vmem:[#allocation40_spill] sm:$0xff] }
 0x5a0   : > { %v4915_v6 = vadd.f32 %v4914_v38, %v4825_v63  ;;  %5514 = vmatmul.mubr.f32.gmra.mxu0 %v7749_v9  ;;  %6320 = vmatprep.subr.mxu0 %v5192_v24  ;;  %v8202_v63 = vld [vmem:[#allocation26_spill] sm:$0xff]  ;;  %v5170_v38 = vld [vmem:[#allocation16 + $0x438] sm:$0xff] }
 0x5a1   : > { %v4916_v14 = vpop.f32.mrf.mxu1  ;;  %5518 = vmatprep.mubr.f32.mxu0 %v7754_v18  ;;  %6321 = vmatpush3.msra.mxu0 %v5176_v22 }
 0x5a2   : > { %v4939_v62 = vadd.f32 %v4915_v6, %v4250_v7  ;;  %v4917_v47 = vadd.f32 %v4916_v14, %v4827_v56  ;;  %6322 = vmatprep.subr.mxu0 %v5191_v35  ;;  %v5187_v56 = vld [vmem:[#allocation16 + $0x4c0] sm:$0xff]  ;;  %v8208_v6 = vld [vmem:[#allocation42_spill] sm:$0xff] }
 0x5a3   : > { %v4920_v60 = vpop.f32.mrf.mxu1  ;;  %6323 = vmatpush3.msra.mxu0 %v5175_v39  ;;  %v8207_v7 = vld [vmem:[#allocation41_spill] sm:$0xff]  ;;  %v5185_v14 = vld [vmem:[#allocation16 + $0x4b0] sm:$0xff] }
 0x5a4   : > { %v4940_v8 = vadd.f32 %v4917_v47, %v4252_v36  ;;  %v4921_v20 = vadd.f32 %v4920_v60, %v4831_v55  ;;  %5519 = vmatmul.mubr.f32.gmra.mxu0 %v7759_v54  ;;  %6324 = vmatprep.subr.mxu0 %v5190_v13  ;;  %v7782_v44 = vadd.f32 %v4939_v62, %v8199_v52  ;;  %v4843_v55 = vpop.f32.mrf.mxu0  ;;  %v5169_v62 = vld [vmem:[#allocation16 + $0x430] sm:$0xff]  ;;  %v5184_v60 = vld [vmem:[#allocation16 + $0x4a8] sm:$0xff] }
 0x5a5   : > { %v4922_v31 = vpop.f32.mrf.mxu1  ;;  %5523 = vmatprep.mubr.f32.mxu0 %v7762_v10  ;;  %6325 = vmatpush3.msra.mxu0 %v5174_v53  ;;  %v4268_v39 = vadd.f32 %v8208_v6, %v8207_v7  ;;  %v5144_v6 = vld [vmem:[#allocation16 + $0x368] sm:$0xff] }
 0x5a6   : > { %v4943_v1 = vadd.f32 %v4921_v20, %v4256_v49  ;;  %v4923_v41 = vadd.f32 %v4922_v31, %v4833_v30  ;;  %6326 = vmatprep.subr.mxu0 %v5189_v51  ;;  %v7788_v46 = vadd.f32 %v4940_v8, %v8202_v63  ;;  %v4264_v30 = vadd.f32 %v8206_v16, %v8205_v33  ;;  %v4845_v53 = vpop.f32.mrf.mxu0  ;;  %v5168_v20 = vld [vmem:[#allocation16 + $0x428] sm:$0xff]  ;;  %v5146_v16 = vld [vmem:[#allocation16 + $0x378] sm:$0xff] }
 0x5a7   : > { %v4926_v45 = vpop.f32.mrf.mxu1  ;;  %6327 = vmatpush3.msra.mxu0 %v5173_v34 }
 0x5a8   : > { %v4944_v59 = vadd.f32 %v4923_v41, %v4258_v23  ;;  %v4927_v29 = vadd.f32 %v4926_v45, %v4837_v40  ;;  %5524 = vmatmul.mubr.f32.gmra.mxu0 %v7766_v11  ;;  %6328 = vmatprep.subr.mxu0 %v5188_v21  ;;  %v7794_v4 = vadd.f32 %v4943_v1, %v8199_v52  ;;  %v8209_v21 = vld [vmem:[#allocation43_spill] sm:$0xff]  ;;  %v5180_v45 = vld [vmem:[#allocation16 + $0x488] sm:$0xff] }
 0x5a9   : > { %v4928_v61 = vpop.f32.mrf.mxu1  ;;  %5528 = vmatprep.mubr.f32.mxu0 %v7709_v26  ;;  %6329 = vmatpush3.msra.mxu0 %v5172_v12  ;;  %v5182_v23 = vld [vmem:[#allocation16 + $0x498] sm:$0xff] }
 0x5aa   : > { %v4947_v24 = vadd.f32 %v4927_v29, %v4262_v27  ;;  %v4929_v22 = vadd.f32 %v4928_v61, %v4839_v0  ;;  %6330 = vmatprep.subr.mxu0 %v5187_v56  ;;  %v7800_v35 = vadd.f32 %v4944_v59, %v8202_v63  ;;  %v5183_v0 = vld [vmem:[#allocation16 + $0x4a0] sm:$0xff]  ;;  %v5166_v12 = vld [vmem:[#allocation16 + $0x418] sm:$0xff]  ;;  %v5165_v27 = vld [vmem:[#allocation16 + $0x410] sm:$0xff] }
 0x5ab   : > { %v4932_v40 = vpop.f32.mrf.mxu1  ;;  %6331 = vmatpush3.msra.mxu0 %v5171_v28  ;;  %v5164_v56 = vld [vmem:[#allocation16 + $0x408] sm:$0xff]  ;;  %v5179_v29 = vld [vmem:[#allocation16 + $0x480] sm:$0xff] }
 0x5ac   : > { %v4948_v13 = vadd.f32 %v4929_v22, %v4264_v30  ;;  %v4933_v36 = vadd.f32 %v4932_v40, %v4843_v55  ;;  %5529 = vmatmul.mubr.f32.gmra.mxu0 %v7714_v3  ;;  %6332 = vmatprep.subr.mxu0 %v5186_v25  ;;  %v7806_v47 = vadd.f32 %v4947_v24, %v8199_v52  ;;  %v5163_v55 = vld [vmem:[#allocation16 + $0x400] sm:$0xff]  ;;  %v5161_v22 = vld [vmem:[#allocation16 + $0x3f0] sm:$0xff]  ;;  %v7841_v40 = vmax.f32 %v7788_v46, 0.0 }
 0x5ad   : > { %v4934_v49 = vpop.f32.mrf.mxu1  ;;  %5533 = vmatprep.mubr.f32.mxu0 %v7721_v19  ;;  %6333 = vmatpush3.msra.mxu0 %v5170_v38  ;;  %v5145_v38 = vld [vmem:[#allocation16 + $0x370] sm:$0xff]  ;;  %v7851_v46 = vmax.f32 %v7800_v35, 0.0  ;;  %v5139_v35 = vld [vmem:[#allocation16 + $0x340] sm:$0xff] }
 0x5ae   : > { %v4951_v51 = vadd.f32 %v4933_v36, %v4268_v39  ;;  %v4935_v8 = vadd.f32 %v4934_v49, %v4845_v53  ;;  %6334 = vmatprep.subr.mxu0 %v5185_v14  ;;  %v4964_v34 = vadd.f32 %v4948_v13, %v8202_v63  ;;  %v7837_v7 = vmax.f32 %v7806_v47, 0.0  ;;  %v5159_v39 = vld [vmem:[#allocation16 + $0x3e0] sm:$0xff]  ;;  %v5158_v14 = vld [vmem:[#allocation16 + $0x3d8] sm:$0xff]  ;;  %v5157_v36 = vld [vmem:[#allocation16 + $0x3d0] sm:$0xff] }
 0x5af   : > { %6335 = vmatpush3.msra.mxu0 %v5169_v62  ;;  %v5142_v13 = vld [vmem:[#allocation16 + $0x358] sm:$0xff]  ;;  %v5141_v62 = vld [vmem:[#allocation16 + $0x350] sm:$0xff]  ;;  %v5155_v47 = vld [vmem:[#allocation16 + $0x3c0] sm:$0xff] }
 0x5b0   : > { %v4967_v31 = vadd.f32 %v4951_v51, %v8199_v52  ;;  %v4952_v50 = vadd.f32 %v4935_v8, %v8209_v21  ;;  %5534 = vmatmul.mubr.f32.gmra.mxu0 %v7727_v43  ;;  %6336 = vmatprep.subr.mxu0 %v5184_v60  ;;  %v7831_v24 = vmax.f32 %v4964_v34, 0.0  ;;  %v8210_v53 = vld [vmem:[#allocation28_spill] sm:$0xff]  ;;  %v8211_v60 = vld [vmem:[#allocation27_spill] sm:$0xff]  ;;  %v8212_v8 = vld [vmem:[#allocation30_spill] sm:$0xff]  ;;  %v5016_v21 = vrot.slane %v7729_v42, 1 }
 0x5b1   : > { %5538 = vmatprep.mubr.f32.mxu0 %v7700_v17  ;;  %6337 = vmatpush3.msra.mxu0 %v5168_v20  ;;  %v7860_v49 = vmax.f32 %v8210_v53, 0.0  ;;  %v7865_v51 = vmax.f32 %v8211_v60, 0.0  ;;  %v7870_v20 = vmax.f32 %v8212_v8, 0.0  ;;  %v5137_v34 = vld [vmem:[#allocation16 + $0x330] sm:$0xff]  ;;  %v5134_v42 = vld [vmem:[#allocation16 + $0x318] sm:$0xff]  ;;  %v5216_v60 = vld [vmem:[#allocation16 + $0x5a8] sm:$0xff] }
 0x5b2   : > { %v7814_v1 = vmax.f32 %v4967_v31, 0.0  ;;  %v4968_v41 = vadd.f32 %v4952_v50, %v8202_v63  ;;  %6338 = vmatprep.subr.mxu0 %v5183_v0  ;;  %v8213_v0 = vld [vmem:[#allocation29_spill] sm:$0xff]  ;;  %v5202_v53 = vld [vmem:[#allocation16 + $0x538] sm:$0xff] }
 0x5b3   : > { %6339 = vmatpush3.msra.mxu0 %v5167_v58  ;;  %v7875_v31 = vmax.f32 %v8213_v0, 0.0  ;;  %v5151_v50 = vld [vmem:[#allocation16 + $0x3a0] sm:$0xff]  ;;  %v5213_v0 = vld [vmem:[#allocation16 + $0x590] sm:$0xff] }
 0x5b4   : > { %v4991_v52 = vrot.slane %v7814_v1, 7  ;;  %v7818_v15 = vmax.f32 %v4968_v41, 0.0  ;;  %5539 = vmatmul.mubr.f32.gmra.mxu0 %v7706_v5  ;;  %6340 = vmatprep.subr.mxu0 %v5182_v23  ;;  %v8214_v58 = vld [vmem:[#allocation32_spill] sm:$0xff]  ;;  %v5015_v41 = vrot.slane %v7736_v57, 1  ;;  %v5133_v57 = vld [vmem:[#allocation16 + $0x310] sm:$0xff] }
 0x5b5   : > { %5543 = vmatprep.mubr.f32.mxu0 %v7683_v2  ;;  %6341 = vmatpush3.msra.mxu0 %v5166_v12  ;;  %v7881_v23 = vmax.f32 %v8214_v58, 0.0  ;;  %v5150_v12 = vld [vmem:[#allocation16 + $0x398] sm:$0xff]  ;;  %v5199_v8 = vld [vmem:[#allocation16 + $0x520] sm:$0xff] }
 0x5b6   : > { %6342 = vmatprep.subr.mxu0 %v5181_v32  ;;  %v4992_v63 = vrot.slane %v7818_v15, 7  ;;  %v5000_v59 = vsel %vm4997_vm3, 0.0, %v4991_v52  ;;  %v8215_v32 = vld [vmem:[#allocation31_spill] sm:$0xff]  ;;  %v5211_v58 = vld [vmem:[#allocation16 + $0x580] sm:$0xff] }
 0x5b7   : > { %6343 = vmatpush3.msra.mxu0 %v5165_v27  ;;  %v5004_v61 = vsel %vm575_vm0, %v5000_v59, 0.0  ;;  %v5024_v27 = vsel %vm580_vm1, %v5016_v21, 0.0  ;;  %v8217_v59 = vld [vmem:[#allocation33_spill] sm:$0xff] }
 0x5b8   : > { %5544 = vmatmul.mubr.f32.gmra.mxu0 %v7677_v48  ;;  %6344 = vmatprep.subr.mxu0 %v5180_v45  ;;  %v5001_v28 = vsel %vm4997_vm3, 0.0, %v4992_v63  ;;  %v5009_v30 = vsel %vm5006_vm4, %v5004_v61, %v4991_v52  ;;  %v7887_v52 = vmax.f32 %v8215_v32, 0.0  ;;  %v8216_v45 = vld [vmem:[#allocation34_spill] sm:$0xff]  ;;  %v5131_v61 = vld [vmem:[#allocation16 + $0x300] sm:$0xff] }
 0x5b9   : > { %6345 = vmatpush3.msra.mxu0 %v5164_v56  ;;  %5718 = vmatprep.mubr.f32.mxu0 %v7709_v26  ;;  %v5005_v25 = vsel %vm575_vm0, %v5001_v28, 0.0  ;;  %v5160_v26 = vld [vmem:[#allocation16 + $0x3e8] sm:$0xff]  ;;  %v7893_v56 = vmax.f32 %v8216_v45, 0.0 }
 0x5ba   : > { %6346 = vmatprep.subr.mxu0 %v5179_v29  ;;  %v5010_v33 = vsel %vm5006_vm4, %v5005_v25, %v4992_v63  ;;  %v5023_v63 = vsel %vm580_vm1, %v5015_v41, 0.0  ;;  %v7899_v29 = vmax.f32 %v8217_v59, 0.0  ;;  %v5132_v28 = vld [vmem:[#allocation16 + $0x308] sm:$0xff]  ;;  %v5226_v25 = vld [vmem:[#allocation16 + $0x5f8] sm:$0xff] }
 0x5bb   : > { %5403 = vmatprep.mubr.f32.mxu1 %v5010_v33  ;;  %6347 = vmatpush3.msra.mxu0 %v5163_v55  ;;  %v5147_v55 = vld [vmem:[#allocation16 + $0x380] sm:$0xff]  ;;  %v5210_v33 = vld [vmem:[#allocation16 + $0x578] sm:$0xff] }
 0x5bc   : > { %5404 = vmatmul.mubr.f32.vlgmr.msra.gmra.mxu1 %v5009_v30  ;;  %5719 = vmatmul.mubr.f32.vlgmr.msra.gmra.mxu0 %v7714_v3  ;;  %v5143_v3 = vld [vmem:[#allocation16 + $0x360] sm:$0xff]  ;;  %v5209_v30 = vld [vmem:[#allocation16 + $0x570] sm:$0xff] }
 0x5bd   : > { %6261 = vmatpush3.msra.mxu1 %v5146_v16  ;;  %5408 = vmatprep.mubr.f32.mxu1 %v7831_v24  ;;  %v5225_v16 = vld [vmem:[#allocation16 + $0x5f0] sm:$0xff] }
 0x5be   : > { %6262 = vmatprep.subr.mxu1 %v5161_v22  ;;  %5723 = vmatprep.mubr.f32.mxu0 %v7721_v19  ;;  %v7846_v19 = vmax.f32 %v7782_v44, 0.0  ;;  %v7856_v44 = vmax.f32 %v7794_v4, 0.0  ;;  %v5153_v4 = vld [vmem:[#allocation16 + $0x3b0] sm:$0xff]  ;;  %v5224_v22 = vld [vmem:[#allocation16 + $0x5e8] sm:$0xff] }
 0x5bf   : > { %6263 = vmatpush3.msra.mxu1 %v5145_v38  ;;  %v5208_v38 = vld [vmem:[#allocation16 + $0x568] sm:$0xff] }
 0x5c0   : > { %6264 = vmatprep.subr.mxu1 %v5160_v26  ;;  %5409 = vmatmul.mubr.f32.gmra.mxu1 %v7837_v7  ;;  %v5223_v26 = vld [vmem:[#allocation16 + $0x5e0] sm:$0xff] }
 0x5c1   : > { %6265 = vmatpush3.msra.mxu1 %v5144_v6  ;;  %5724 = vmatmul.mubr.f32.gmra.mxu0 %v7727_v43  ;;  %v5156_v43 = vld [vmem:[#allocation16 + $0x3c8] sm:$0xff]  ;;  %v5207_v6 = vld [vmem:[#allocation16 + $0x560] sm:$0xff] }
 0x5c2   : > { %5413 = vmatprep.mubr.f32.mxu1 %v7841_v40  ;;  %6266 = vmatprep.subr.mxu1 %v5159_v39  ;;  %v5222_v39 = vld [vmem:[#allocation16 + $0x5d8] sm:$0xff] }
 0x5c3   : > { %5728 = vmatprep.mubr.f32.mxu0 %v7700_v17  ;;  %6267 = vmatpush3.msra.mxu1 %v5143_v3  ;;  %v5140_v17 = vld [vmem:[#allocation16 + $0x348] sm:$0xff]  ;;  %v5206_v3 = vld [vmem:[#allocation16 + $0x558] sm:$0xff] }
 0x5c4   : > { %6268 = vmatprep.subr.mxu1 %v5158_v14  ;;  %5414 = vmatmul.mubr.f32.gmra.mxu1 %v7846_v19  ;;  %v5221_v14 = vld [vmem:[#allocation16 + $0x5d0] sm:$0xff] }
 0x5c5   : > { %6269 = vmatpush3.msra.mxu1 %v5142_v13  ;;  %5729 = vmatmul.mubr.f32.gmra.mxu0 %v7706_v5  ;;  %v5154_v5 = vld [vmem:[#allocation16 + $0x3b8] sm:$0xff]  ;;  %v5205_v13 = vld [vmem:[#allocation16 + $0x550] sm:$0xff] }
 0x5c6   : > { %5418 = vmatprep.mubr.f32.mxu1 %v7851_v46  ;;  %6270 = vmatprep.subr.mxu1 %v5157_v36  ;;  %v5220_v36 = vld [vmem:[#allocation16 + $0x5c8] sm:$0xff] }
 0x5c7   : > { %5733 = vmatprep.mubr.f32.mxu0 %v7683_v2  ;;  %6271 = vmatpush3.msra.mxu1 %v5141_v62  ;;  %v5138_v2 = vld [vmem:[#allocation16 + $0x338] sm:$0xff]  ;;  %v5204_v62 = vld [vmem:[#allocation16 + $0x548] sm:$0xff] }
 0x5c8   : > { %6272 = vmatprep.subr.mxu1 %v5156_v43  ;;  %5419 = vmatmul.mubr.f32.gmra.mxu1 %v7856_v44  ;;  %v5219_v43 = vld [vmem:[#allocation16 + $0x5c0] sm:$0xff] }
 0x5c9   : > { %6273 = vmatpush3.msra.mxu1 %v5140_v17  ;;  %5734 = vmatmul.mubr.f32.gmra.mxu0 %v7677_v48  ;;  %v5152_v48 = vld [vmem:[#allocation16 + $0x3a8] sm:$0xff]  ;;  %v5203_v17 = vld [vmem:[#allocation16 + $0x540] sm:$0xff] }
 0x5ca   : > { %5423 = vmatprep.mubr.f32.mxu1 %v7860_v49  ;;  %6274 = vmatprep.subr.mxu1 %v5155_v47  ;;  %v5218_v47 = vld [vmem:[#allocation16 + $0x5b8] sm:$0xff] }
 0x5cb   : > { %5738 = vmatprep.mubr.f32.mxu0 %v7754_v18  ;;  %6275 = vmatpush3.msra.mxu1 %v5139_v35  ;;  %v5136_v18 = vld [vmem:[#allocation16 + $0x328] sm:$0xff]  ;;  %v5217_v35 = vld [vmem:[#allocation16 + $0x5b0] sm:$0xff] }
 0x5cc   : > { %6276 = vmatprep.subr.mxu1 %v5154_v5  ;;  %5424 = vmatmul.mubr.f32.gmra.mxu1 %v7865_v51  ;;  %v5201_v5 = vld [vmem:[#allocation16 + $0x530] sm:$0xff] }
 0x5cd   : > { %6277 = vmatpush3.msra.mxu1 %v5138_v2  ;;  %5739 = vmatmul.mubr.f32.gmra.mxu0 %v7759_v54  ;;  %v5135_v54 = vld [vmem:[#allocation16 + $0x320] sm:$0xff]  ;;  %v5200_v2 = vld [vmem:[#allocation16 + $0x528] sm:$0xff] }
 0x5ce   : > { %5428 = vmatprep.mubr.f32.mxu1 %v7870_v20  ;;  %6278 = vmatprep.subr.mxu1 %v5153_v4  ;;  %v5215_v4 = vld [vmem:[#allocation16 + $0x5a0] sm:$0xff] }
 0x5cf   : > { %5743 = vmatprep.mubr.f32.mxu0 %v7762_v10  ;;  %6279 = vmatpush3.msra.mxu1 %v5137_v34  ;;  %v5149_v10 = vld [vmem:[#allocation16 + $0x390] sm:$0xff]  ;;  %v5214_v34 = vld [vmem:[#allocation16 + $0x598] sm:$0xff] }
 0x5d0   : > { %6280 = vmatprep.subr.mxu1 %v5152_v48  ;;  %5429 = vmatmul.mubr.f32.gmra.mxu1 %v7875_v31  ;;  %v5198_v48 = vld [vmem:[#allocation16 + $0x518] sm:$0xff] }
 0x5d1   : > { %6281 = vmatpush3.msra.mxu1 %v5136_v18  ;;  %5744 = vmatmul.mubr.f32.gmra.mxu0 %v7766_v11  ;;  %v5148_v11 = vld [vmem:[#allocation16 + $0x388] sm:$0xff]  ;;  %v5197_v18 = vld [vmem:[#allocation16 + $0x510] sm:$0xff] }
 0x5d2   : > { %5433 = vmatprep.mubr.f32.mxu1 %v7881_v23  ;;  %6282 = vmatprep.subr.mxu1 %v5151_v50  ;;  %v5196_v50 = vld [vmem:[#allocation16 + $0x508] sm:$0xff] }
 0x5d3   : > { %5748 = vmatprep.mubr.f32.mxu0 %v7742_v37  ;;  %6283 = vmatpush3.msra.mxu1 %v5135_v54  ;;  %v5028_v37 = vsel %vm575_vm0, %v5024_v27, %v5016_v21  ;;  %v5212_v21 = vld [vmem:[#allocation16 + $0x588] sm:$0xff]  ;;  %v5195_v54 = vld [vmem:[#allocation16 + $0x500] sm:$0xff] }
 0x5d4   : > { %6284 = vmatprep.subr.mxu1 %v5150_v12  ;;  %5434 = vmatmul.mubr.f32.gmra.mxu1 %v7887_v52 }
 0x5d5   : > { %6285 = vmatpush3.msra.mxu1 %v5134_v42  ;;  %5749 = vmatmul.mubr.f32.gmra.mxu0 %v7749_v9  ;;  %v5027_v9 = vsel %vm575_vm0, %v5023_v63, %v5015_v41 }
 0x5d6   : > { %5438 = vmatprep.mubr.f32.mxu1 %v7893_v56  ;;  %6286 = vmatprep.subr.mxu1 %v5149_v10 }
 0x5d7   : > { %6086 = vmatprep.mubr.msk.f32.mxu0 %vm583_vm2, %v5028_v37  ;;  %6287 = vmatpush3.msra.mxu1 %v5133_v57 }
 0x5d8   : > { %6288 = vmatprep.subr.mxu1 %v5148_v11  ;;  %5439 = vmatmul.mubr.f32.gmra.mxu1 %v7899_v29 }
 0x5d9   : > { %6289 = vmatpush3.msra.mxu1 %v5132_v28  ;;  %6087 = vmatmul.mubr.msk.f32.gmra.mxu0 %vm583_vm2, %v5027_v9 }
 0x5da   : > { %6290 = vmatprep.subr.mxu1 %v5147_v55  ;;  %5613 = vmatprep.mubr.f32.mxu1 %v7860_v49 }
 0x5db   : > { %6291 = vmatpush3.msra.mxu1 %v5131_v61 }
 0x5dc   : > { %6372 = vmatprep.subr.mxu1 %v5226_v25  ;;  %5614 = vmatmul.mubr.f32.vlgmr.msra.gmra.mxu1 %v7865_v51 }
 0x5dd   : > { %6373 = vmatpush3.msra.mxu1 %v5210_v33  ;;  %5618 = vmatprep.mubr.f32.mxu1 %v7870_v20 }
 0x5de   : > { %6374 = vmatprep.subr.mxu1 %v5225_v16 }
 0x5df   : > { %6375 = vmatpush3.msra.mxu1 %v5209_v30 }
 0x5e0   : > { %6376 = vmatprep.subr.mxu1 %v5224_v22  ;;  %5619 = vmatmul.mubr.f32.gmra.mxu1 %v7875_v31 }
 0x5e1   : > { %6377 = vmatpush3.msra.mxu1 %v5208_v38  ;;  %5623 = vmatprep.mubr.f32.mxu1 %v7881_v23 }
 0x5e2   : > { %6378 = vmatprep.subr.mxu1 %v5223_v26 }
 0x5e3   : > { %6379 = vmatpush3.msra.mxu1 %v5207_v6 }
 0x5e4   : > { %6380 = vmatprep.subr.mxu1 %v5222_v39  ;;  %5624 = vmatmul.mubr.f32.gmra.mxu1 %v7887_v52 }
 0x5e5   : > { %6381 = vmatpush3.msra.mxu1 %v5206_v3  ;;  %5628 = vmatprep.mubr.f32.mxu1 %v7893_v56 }
 0x5e6   : > { %6382 = vmatprep.subr.mxu1 %v5221_v14 }
 0x5e7   : > { %6383 = vmatpush3.msra.mxu1 %v5205_v13 }
 0x5e8   : > { %6384 = vmatprep.subr.mxu1 %v5220_v36  ;;  %5629 = vmatmul.mubr.f32.gmra.mxu1 %v7899_v29 }
 0x5e9   : > { %6385 = vmatpush3.msra.mxu1 %v5204_v62  ;;  %5633 = vmatprep.mubr.f32.mxu1 %v7841_v40 }
 0x5ea   : > { %6386 = vmatprep.subr.mxu1 %v5219_v43 }
 0x5eb   : > { %6387 = vmatpush3.msra.mxu1 %v5203_v17 }
 0x5ec   : > { %6388 = vmatprep.subr.mxu1 %v5218_v47  ;;  %5634 = vmatmul.mubr.f32.gmra.mxu1 %v7846_v19 }
 0x5ed   : > { %6389 = vmatpush3.msra.mxu1 %v5202_v53  ;;  %5638 = vmatprep.mubr.f32.mxu1 %v7851_v46 }
 0x5ee   : > { %6390 = vmatprep.subr.mxu1 %v5217_v35 }
 0x5ef   : > { %6391 = vmatpush3.msra.mxu1 %v5201_v5 }
 0x5f0   : > { %6392 = vmatprep.subr.mxu1 %v5216_v60  ;;  %5639 = vmatmul.mubr.f32.gmra.mxu1 %v7856_v44 }
 0x5f1   : > { %6393 = vmatpush3.msra.mxu1 %v5200_v2  ;;  %5643 = vmatprep.mubr.f32.mxu1 %v7831_v24 }
 0x5f2   : > { %6394 = vmatprep.subr.mxu1 %v5215_v4 }
 0x5f3   : > { %6395 = vmatpush3.msra.mxu1 %v5199_v8 }
 0x5f4   : > { %6396 = vmatprep.subr.mxu1 %v5214_v34  ;;  %5644 = vmatmul.mubr.f32.gmra.mxu1 %v7837_v7 }
 0x5f5   : > { %6397 = vmatpush3.msra.mxu1 %v5198_v48  ;;  %5648 = vmatprep.mubr.f32.mxu1 %v7818_v15 }
 0x5f6   : > { %6398 = vmatprep.subr.mxu1 %v5213_v0 }
 0x5f7   : > { %6399 = vmatpush3.msra.mxu1 %v5197_v18 }
 0x5f8   : > { %6400 = vmatprep.subr.mxu1 %v5212_v21  ;;  %5649 = vmatmul.mubr.f32.gmra.mxu1 %v7814_v1 }
 0x5f9   : > { %6401 = vmatpush3.msra.mxu1 %v5196_v50  ;;  %5823 = vmatprep.mubr.f32.mxu1 %v7841_v40  ;;  %v5018_v40 = vrot.slane %v7860_v49, 1 }
 0x5fa   : > { %6402 = vmatprep.subr.mxu1 %v5211_v58 }
 0x5fb   : > { %6403 = vmatpush3.msra.mxu1 %v5195_v54 }
 0x5fc   : > { %5824 = vmatmul.mubr.f32.vlgmr.msra.gmra.mxu1 %v7846_v19  ;;  %v5017_v19 = vrot.slane %v7865_v51, 1 }
 0x5fd   : > { %5828 = vmatprep.mubr.f32.mxu1 %v7851_v46 }
 0x600   : > { %5829 = vmatmul.mubr.f32.gmra.mxu1 %v7856_v44 }
 0x601   : > { %5833 = vmatprep.mubr.f32.mxu1 %v7831_v24  ;;  %v5026_v24 = vsel %vm580_vm1, %v5018_v40, 0.0 }
 0x604   : > { %5834 = vmatmul.mubr.f32.gmra.mxu1 %v7837_v7 }
 0x605   : > { %5838 = vmatprep.mubr.f32.mxu1 %v7818_v15  ;;  %v5025_v15 = vsel %vm580_vm1, %v5017_v19, 0.0 }
 0x606   : > { %v5029_v7 = vsel %vm575_vm0, %v5025_v15, %v5017_v19 }
 0x608   : > { %5839 = vmatmul.mubr.f32.gmra.mxu1 %v7814_v1  ;;  %v5030_v1 = vsel %vm575_vm0, %v5026_v24, %v5018_v40 }
 0x609   : > { %5843 = vmatprep.mubr.f32.mxu1 %v7881_v23 }
 0x60c   : > { %5844 = vmatmul.mubr.f32.gmra.mxu1 %v7887_v52 }
 0x60d   : > { %5848 = vmatprep.mubr.f32.mxu1 %v7893_v56 }
 0x610   : > { %5849 = vmatmul.mubr.f32.gmra.mxu1 %v7899_v29 }
 0x611   : > { %5853 = vmatprep.mubr.f32.mxu1 %v7870_v20 }
 0x614   : > { %5854 = vmatmul.mubr.f32.gmra.mxu1 %v7875_v31 }
 0x615   : > { %6088 = vmatprep.mubr.msk.f32.mxu1 %vm583_vm2, %v5030_v1 }
 0x618   : > { %6089 = vmatmul.mubr.msk.f32.gmra.mxu1 %vm583_vm2, %v5029_v7 }
 0x63c   : > { %v7945_v46 = vpop.f32.mrf.mxu0 }
 0x63e   : > { %v7947_v44 = vpop.f32.mrf.mxu0 }
 0x640   : > { %v7949_v49 = vpop.f32.mrf.mxu0 }
 0x642   : > { %v7951_v51 = vpop.f32.mrf.mxu0 }
 0x644   : > { %v7953_v20 = vpop.f32.mrf.mxu0 }
 0x646   : > { %v7955_v31 = vpop.f32.mrf.mxu0 }
 0x648   : > { %v7957_v23 = vpop.f32.mrf.mxu0 }
 0x64a   : > { %v7959_v41 = vpop.f32.mrf.mxu0 }
 0x64c   : > { %v7961_v12 = vpop.f32.mrf.mxu0 }
 0x64e   : > { %v7963_v32 = vpop.f32.mrf.mxu0 }
 0x650   : > { %v7965_v52 = vpop.f32.mrf.mxu0 }
 0x652   : > { %v7967_v42 = vpop.f32.mrf.mxu0 }
 0x654   : > { %v7969_v10 = vpop.f32.mrf.mxu0 }
 0x656   : > { %v7971_v27 = vpop.f32.mrf.mxu0 }
 0x658   : > { %v7973_v45 = vpop.f32.mrf.mxu0 }
 0x659   : > { %8218 = vst [vmem:[#allocation25_spill] sm:$0xff] %v7973_v45 }
 0x65a   : > { %v7975_v56 = vpop.f32.mrf.mxu0 }
 0x65b   : > { %8219 = vst [vmem:[#allocation35_spill] sm:$0xff] %v7975_v56 }
 0x65c   : > { %v7977_v57 = vpop.f32.mrf.mxu0 }
 0x65e   : > { %v7979_v11 = vpop.f32.mrf.mxu0 }
 0x660   : > { %v7981_v63 = vpop.f32.mrf.mxu0 }
 0x662   : > { %v7983_v59 = vpop.f32.mrf.mxu0 }
 0x664   : > { %v7985_v29 = vpop.f32.mrf.mxu0 }
 0x666   : > { %v7987_v37 = vpop.f32.mrf.mxu0 }
 0x668   : > { %v7989_v28 = vpop.f32.mrf.mxu0 }
 0x66a   : > { %v7991_v55 = vpop.f32.mrf.mxu0 }
 0x66c   : > { %v7993_v9 = vpop.f32.mrf.mxu0 }
 0x66e   : > { %v7995_v25 = vpop.f32.mrf.mxu0 }
 0x670   : > { %v7997_v30 = vpop.f32.mrf.mxu0 }
 0x671   : > { %8220 = vst [vmem:[#allocation37_spill] sm:$0xff] %v7997_v30  ;;  %v6129_v30 = vadd.f32 %v7951_v51, %v7949_v49 }
 0x672   : > { %v7999_v26 = vpop.f32.mrf.mxu0 }
 0x673   : > { %8221 = vst [vmem:[#allocation26_spill] sm:$0xff] %v7999_v26 }
 0x674   : > { %v8003_v3 = vpop.f32.mrf.mxu0 }
 0x675   : > { %8222 = vst [vmem:[#allocation36_spill] sm:$0xff] %v8003_v3 }
 0x676   : > { %v8007_v36 = vpop.f32.mrf.mxu0 }
 0x677   : > { %8223 = vst [vmem:[#allocation39_spill] sm:$0xff] %v8007_v36 }
 0x678   : > { %v8013_v17 = vpop.f32.mrf.mxu0 }
 0x679   : > { %8224 = vst [vmem:[#allocation38_spill] sm:$0xff] %v8013_v17  ;;  %v8041_v17 = vld [vmem:[#allocation18] ss:$0 sm:$0xff] }
 0x67a   : > { %v8019_v35 = vpop.f32.mrf.mxu0 }
 0x67b   : > { %8225 = vst [vmem:[#allocation40_spill] sm:$0xff] %v8019_v35  ;;  %v6126_v35 = vadd.f32 %v7947_v44, %v7945_v46 }
 0x67c   : > { %v6180_v61 = vpop.f32.mrf.mxu1  ;;  %v6348_v2 = vpop.f32.mrf.mxu0 }
 0x67d   : > { %v5301_v26 = vadd.f32 %v6126_v35, %v8041_v17  ;;  %v6238_v35 = vadd.f32 %v7979_v11, %v7977_v57 }
 0x67e   : > { %v6181_v33 = vpop.f32.mrf.mxu1  ;;  %v6349_v34 = vpop.f32.mrf.mxu0 }
 0x67f   : > { %v6182_v3 = vadd.f32 %v6181_v33, %v6180_v61  ;;  %v5306_v61 = vadd.f32 %v6129_v30, %v8041_v17  ;;  %v6132_v33 = vadd.f32 %v7955_v31, %v7953_v20  ;;  %v6241_v20 = vadd.f32 %v7983_v59, %v7981_v63 }
 0x680   : > { %v6183_v16 = vpop.f32.mrf.mxu1 }
 0x681   : > { %v6351_v18 = vpop.f32.mrf.mxu0  ;;  %v5406_v45 = vadd.f32 %v6182_v3, %v5301_v26  ;;  %v5311_v30 = vadd.f32 %v6132_v33, %v8041_v17 }
 0x682   : > { %v6184_v22 = vpop.f32.mrf.mxu1 }
 0x683   : > { %v6352_v58 = vpop.f32.mrf.mxu0  ;;  %v5511_v26 = vadd.f32 %v6238_v35, %v5406_v45 }
 0x684   : > { %v6186_v38 = vpop.f32.mrf.mxu1 }
 0x685   : > { %v8029_v19 = vpop.f32.mrf.mxu0 }
 0x686   : > { %v6187_v6 = vpop.f32.mrf.mxu1 }
 0x687   : > { %v8035_v15 = vpop.f32.mrf.mxu0  ;;  %v6188_v51 = vadd.f32 %v6187_v6, %v6186_v38  ;;  %v6244_v6 = vadd.f32 %v7987_v37, %v7985_v29 }
 0x688   : > { %v8001_v39 = vpop.f32.mrf.mxu1 }
 0x68a   : > { %v6190_v14 = vpop.f32.mrf.mxu1 }
 0x68b   : > { %v6191_v45 = vadd.f32 %v6190_v14, %v8001_v39 }
 0x68c   : > { %v8005_v13 = vpop.f32.mrf.mxu1 }
 0x68e   : > { %v8009_v62 = vpop.f32.mrf.mxu1 }
 0x690   : > { %v8011_v43 = vpop.f32.mrf.mxu1 }
 0x692   : > { %v8015_v47 = vpop.f32.mrf.mxu1 }
 0x694   : > { %v8017_v53 = vpop.f32.mrf.mxu1 }
 0x696   : > { %v8021_v5 = vpop.f32.mrf.mxu1 }
 0x697   : > { %8226 = vst [vmem:[#allocation41_spill] sm:$0xff] %v8021_v5  ;;  %v6185_v5 = vadd.f32 %v6184_v22, %v6183_v16  ;;  %v6135_v16 = vadd.f32 %v7959_v41, %v7957_v23  ;;  %v6138_v41 = vadd.f32 %v7963_v32, %v7961_v12  ;;  %v6194_v12 = vadd.f32 %v8009_v62, %v8005_v13 }
 0x698   : > { %v8023_v60 = vpop.f32.mrf.mxu1  ;;  %v6356_v62 = vadd.f32 %v8035_v15, %v8029_v19 }
 0x699   : > { %8227 = vst [vmem:[#allocation42_spill] sm:$0xff] %v8023_v60  ;;  %v5411_v49 = vadd.f32 %v6185_v5, %v5306_v61  ;;  %v5416_v5 = vadd.f32 %v6188_v51, %v5311_v30  ;;  %v5316_v23 = vadd.f32 %v6135_v16, %v8041_v17  ;;  %v5321_v37 = vadd.f32 %v6138_v41, %v8041_v17 }
 0x69a   : > { %v8025_v4 = vpop.f32.mrf.mxu1  ;;  %v6144_v51 = vadd.f32 %v7971_v27, %v7969_v10 }
 0x69b   : > { %8228 = vst [vmem:[#allocation43_spill] sm:$0xff] %v8025_v4  ;;  %v8045_v4 = vpop.f32.mrf.mxu0  ;;  %v5516_v38 = vadd.f32 %v6241_v20, %v5411_v49  ;;  %v5421_v14 = vadd.f32 %v6191_v45, %v5316_v23  ;;  %v5521_v32 = vadd.f32 %v6244_v6, %v5416_v5  ;;  %v5426_v49 = vadd.f32 %v6194_v12, %v5321_v37 }
 0x69c   : > { %v6292_v8 = vpop.f32.mrf.mxu1 }
 0x69d   : > { %v8055_v46 = vpop.f32.mrf.mxu0 }
 0x69e   : > { %v6293_v48 = vpop.f32.mrf.mxu1  ;;  %v8231_v10 = vld [vmem:[#allocation41_spill] sm:$0xff] }
 0x69f   : > { %v8068_v22 = vpop.f32.mrf.mxu0  ;;  %v6200_v27 = vadd.f32 %v8231_v10, %v8017_v53 }
 0x6a0   : > { %v6295_v0 = vpop.f32.mrf.mxu1 }
 0x6a2   : > { %v6296_v21 = vpop.f32.mrf.mxu1 }
 0x6a3   : > { %v6297_v57 = vadd.f32 %v6296_v21, %v6295_v0 }
 0x6a4   : > { %v6298_v50 = vpop.f32.mrf.mxu1 }
 0x6a5   : > { %v5621_v63 = vadd.f32 %v6297_v57, %v5516_v38  ;;  %v8232_v57 = vld [vmem:[#allocation25_spill] sm:$0xff] }
 0x6a6   : > { %v6299_v54 = vpop.f32.mrf.mxu1 }
 0x6a7   : > { %v6300_v59 = vadd.f32 %v6299_v54, %v6298_v50 }
 0x6a8   : > { %v8027_v40 = vpop.f32.mrf.mxu1 }
 0x6aa   : > { %v8031_v24 = vpop.f32.mrf.mxu1 }
 0x6ab   : > { %v6303_v54 = vadd.f32 %v8031_v24, %v8027_v40  ;;  %v6250_v40 = vadd.f32 %v7995_v25, %v7993_v9  ;;  %v5331_v25 = vadd.f32 %v6144_v51, %v8041_v17 }
 0x6ac   : > { %v8033_v1 = vpop.f32.mrf.mxu1 }
 0x6ae   : > { %v8037_v7 = vpop.f32.mrf.mxu1 }
 0x6af   : > { %v6306_v19 = vadd.f32 %v8037_v7, %v8033_v1  ;;  %v8234_v1 = vld [vmem:[#allocation37_spill] sm:$0xff]  ;;  %v8235_v7 = vld [vmem:[#allocation26_spill] sm:$0xff] }
 0x6b0   : > { %v8043_v36 = vpop.f32.mrf.mxu1  ;;  %v6253_v5 = vadd.f32 %v8235_v7, %v8234_v1 }
 0x6b1   : > { %8229 = vst [vmem:[#allocation28_spill] sm:$0xff] %v8043_v36 }
 0x6b2   : > { %v8047_v60 = vpop.f32.mrf.mxu1 }
 0x6b3   : > { %8230 = vst [vmem:[#allocation27_spill] sm:$0xff] %v8047_v60  ;;  %v6294_v60 = vadd.f32 %v6293_v48, %v6292_v8  ;;  %v6350_v8 = vadd.f32 %v6349_v34, %v6348_v2  ;;  %v6361_v48 = vpop.f32.mrf.mxu0  ;;  %v6353_v2 = vadd.f32 %v6352_v58, %v6351_v18  ;;  %v6141_v34 = vadd.f32 %v7967_v42, %v7965_v52 }
 0x6b4   : > { %v8053_v56 = vpop.f32.mrf.mxu1  ;;  %v6247_v18 = vadd.f32 %v7991_v55, %v7989_v28  ;;  %v5626_v58 = vadd.f32 %v6300_v59, %v5521_v32  ;;  %v6197_v52 = vadd.f32 %v8015_v47, %v8011_v43  ;;  %v6359_v47 = vadd.f32 %v8055_v46, %v8045_v4  ;;  %v8240_v32 = vld [vmem:[#allocation36_spill] sm:$0xff] }
 0x6b5   : > { %v5616_v31 = vadd.f32 %v6294_v60, %v5511_v26  ;;  %v6363_v21 = vpop.f32.mrf.mxu0  ;;  %v5726_v33 = vadd.f32 %v6353_v2, %v5621_v63  ;;  %v5326_v55 = vadd.f32 %v6141_v34, %v8041_v17  ;;  %v5436_v59 = vadd.f32 %v6200_v27, %v5331_v25 }
 0x6b6   : > { %v8057_v44 = vpop.f32.mrf.mxu1  ;;  %v5526_v42 = vadd.f32 %v6247_v18, %v5421_v14  ;;  %v5731_v15 = vadd.f32 %v6356_v62, %v5626_v58 }
 0x6b7   : > { %v5721_v60 = vadd.f32 %v6350_v8, %v5616_v31  ;;  %v6364_v24 = vpop.f32.mrf.mxu0  ;;  %v5431_v20 = vadd.f32 %v6197_v52, %v5326_v55  ;;  %v5531_v31 = vadd.f32 %v6250_v40, %v5426_v49  ;;  %v6312_v58 = vadd.f32 %v8057_v44, %v8053_v56  ;;  %v8242_v49 = vld [vmem:[#allocation38_spill] sm:$0xff] }
 0x6b8   : > { %v8064_v36 = vpop.f32.mrf.mxu1  ;;  %v5631_v16 = vadd.f32 %v6303_v54, %v5526_v42  ;;  %v8236_v41 = vld [vmem:[#allocation28_spill] sm:$0xff] }
 0x6b9   : > { %v6366_v45 = vpop.f32.mrf.mxu0  ;;  %v5636_v23 = vadd.f32 %v6306_v19, %v5531_v31 }
 0x6ba   : > { %v8070_v3 = vpop.f32.mrf.mxu1  ;;  %v8237_v4 = vld [vmem:[#allocation27_spill] sm:$0xff]  ;;  %v5736_v6 = vadd.f32 %v6359_v47, %v5631_v16 }
 0x6bb   : > { %v6309_v46 = vadd.f32 %v8237_v4, %v8236_v41  ;;  %v6367_v34 = vpop.f32.mrf.mxu0  ;;  %v6315_v51 = vadd.f32 %v8070_v3, %v8064_v36 }
 0x6bc   : > { %v6404_v11 = vpop.f32.mrf.mxu1 }
 0x6bd   : > { %v6369_v42 = vpop.f32.mrf.mxu0 }
 0x6be   : > { %v6405_v61 = vpop.f32.mrf.mxu1 }
 0x6bf   : > { %v6406_v0 = vadd.f32 %v6405_v61, %v6404_v11  ;;  %v8233_v11 = vld [vmem:[#allocation35_spill] sm:$0xff]  ;;  %v6362_v61 = vadd.f32 %v6361_v48, %v8068_v22  ;;  %v6370_v16 = vpop.f32.mrf.mxu0 }
 0x6c0   : > { %v6407_v39 = vpop.f32.mrf.mxu1  ;;  %v6147_v8 = vadd.f32 %v8233_v11, %v8232_v57 }
 0x6c1   : > { %v5826_v29 = vadd.f32 %v6406_v0, %v5721_v60  ;;  %v8238_v60 = vld [vmem:[#allocation42_spill] sm:$0xff]  ;;  %v8239_v0 = vld [vmem:[#allocation43_spill] sm:$0xff]  ;;  %v5741_v22 = vadd.f32 %v6362_v61, %v5636_v23 }
 0x6c2   : > { %v6408_v50 = vpop.f32.mrf.mxu1  ;;  %v6203_v2 = vadd.f32 %v8239_v0, %v8238_v60  ;;  %v5336_v12 = vadd.f32 %v6147_v8, %v8041_v17  ;;  %v8243_v17 = vld [vmem:[#allocation40_spill] sm:$0xff] }
 0x6c3   : > { %5864 = vst [vmem:[%s8084_s15] sm:$0xff] %v5826_v29  ;;  %v6409_v13 = vadd.f32 %v6408_v50, %v6407_v39  ;;  %v5536_v39 = vadd.f32 %v6253_v5, %v5431_v20  ;;  %v8241_v29 = vld [vmem:[#allocation39_spill] sm:$0xff]  ;;  %v6259_v52 = vadd.f32 %v8243_v17, %v8242_v49  ;;  %v6371_v20 = vadd.f32 %v6370_v16, %v6369_v42 }
 0x6c4   : > { %v6410_v35 = vpop.f32.mrf.mxu1  ;;  %v6256_v37 = vadd.f32 %v8241_v29, %v8240_v32 }
 0x6c5   : > { %v5831_v28 = vadd.f32 %v6409_v13, %v5726_v33  ;;  %v5641_v50 = vadd.f32 %v6309_v46, %v5536_v39  ;;  %v6365_v33 = vadd.f32 %v6364_v24, %v6363_v21  ;;  %v5441_v13 = vadd.f32 %v6203_v2, %v5336_v12 }
 0x6c6   : > { %v6411_v26 = vpop.f32.mrf.mxu1  ;;  %v5541_v62 = vadd.f32 %v6256_v37, %v5436_v59 }
 0x6c7   : > { %5865 = vst [vmem:[%s8084_s15 + $0x8] sm:$0xff] %v5831_v28  ;;  %v6412_v43 = vadd.f32 %v6411_v26, %v6410_v35  ;;  %v5746_v56 = vadd.f32 %v6365_v33, %v5641_v50  ;;  %v6368_v26 = vadd.f32 %v6367_v34, %v6366_v45  ;;  %v5546_v21 = vadd.f32 %v6259_v52, %v5441_v13 }
 0x6c8   : > { %v6413_v30 = vpop.f32.mrf.mxu1  ;;  %v5646_v55 = vadd.f32 %v6312_v58, %v5541_v62 }
 0x6c9   : > { %v5836_v9 = vadd.f32 %v6412_v43, %v5731_v15  ;;  %v5651_v15 = vadd.f32 %v6315_v51, %v5546_v21 }
 0x6ca   : > { %v6414_v38 = vpop.f32.mrf.mxu1  ;;  %v5751_v43 = vadd.f32 %v6368_v26, %v5646_v55 }
 0x6cb   : > { %5866 = vst [vmem:[%s8084_s15 + $0x10] sm:$0xff] %v5836_v9  ;;  %v6415_v53 = vadd.f32 %v6414_v38, %v6413_v30  ;;  %v5756_v36 = vadd.f32 %v6371_v20, %v5651_v15 }
 0x6cc   : > { %v6416_v63 = vpop.f32.mrf.mxu1 }
 0x6cd   : > { %v5841_v14 = vadd.f32 %v6415_v53, %v5736_v6 }
 0x6ce   : > { %v6417_v18 = vpop.f32.mrf.mxu1 }
 0x6cf   : > { %5867 = vst [vmem:[%s8084_s15 + $0x18] sm:$0xff] %v5841_v14  ;;  %v6418_v48 = vadd.f32 %v6417_v18, %v6416_v63 }
 0x6d0   : > { %v6419_v54 = vpop.f32.mrf.mxu1 }
 0x6d1   : > { %v5846_v35 = vadd.f32 %v6418_v48, %v5741_v22 }
 0x6d2   : > { %v6420_v28 = vpop.f32.mrf.mxu1 }
 0x6d3   : > { %5868 = vst [vmem:[%s8084_s15 + $0x20] sm:$0xff] %v5846_v35  ;;  %v6421_v44 = vadd.f32 %v6420_v28, %v6419_v54 }
 0x6d4   : > { %v6422_v40 = vpop.f32.mrf.mxu1 }
 0x6d5   : > { %v5851_v24 = vadd.f32 %v6421_v44, %v5746_v56 }
 0x6d6   : > { %v6423_v19 = vpop.f32.mrf.mxu1 }
 0x6d7   : > { %5869 = vst [vmem:[%s8084_s15 + $0x28] sm:$0xff] %v5851_v24  ;;  %v6424_v47 = vadd.f32 %v6423_v19, %v6422_v40 }
 0x6d8   : > { %v6425_v30 = vpop.f32.mrf.mxu1 }
 0x6d9   : > { %v5856_v10 = vadd.f32 %v6424_v47, %v5751_v43 }
 0x6da   : > { %v6426_v27 = vpop.f32.mrf.mxu1 }
 0x6db   : > { %5870 = vst [vmem:[%s8084_s15 + $0x30] sm:$0xff] %v5856_v10  ;;  %v6427_v3 = vadd.f32 %v6426_v27, %v6425_v30 }
 0x6dd   : > { %v5861_v31 = vadd.f32 %v6427_v3, %v5756_v36 }
 0x6df   : > { %5871 = vst [vmem:[%s8084_s15 + $0x38] sm:$0xff] %v5861_v31 }
 0x6e0 PF: > { %s28_s21 = sadd.s32 1, %s6870_s21  }
 0x6e1   : > { %p25_p13 = scmp.ge.s32.totalorder %s28_s21, 4  }
 0x6e3   :  { %27 = sbr.rel (!%p25_p13) target bundleno = 6 (0x6), region = 144 }
 0x6e8   :  { %5894 = vsyncpa [#allocation3], 1 }
 0x6e9   :  { %5896 = vsyncpa [#allocation3 + $0x1], 1 }
 0x6ea   :  { %5897 = vsyncpa [#allocation5], 1 }
 0x6eb   :  { %5898 = vsyncpa [#allocation8], 1 }
 0x6ec   :  { %5899 = vsyncpa [#allocation11], 1 }
 0x6ed   :  { %5900 = vsyncpa [#allocation14], 1 }
 0x6ee   :  { %5901 = vsyncpa [#allocation17], 1 }

</bundles_post_ra>
